<compile_context>
chip_gen: v6e
topology: v6e:2x2x1
jax: 0.10.0
libtpu: 0.0.40
codegen_flags: <defaults>
</compile_context>

<pallas_src>
import numpy as np
import jax
import jax.numpy as jnp
from jax import lax
from jax.experimental import pallas as pl
from jax.experimental.pallas import tpu as pltpu

EPS = 1e-5          # nn.BatchNorm2d default eps
NEG_SLOPE = 0.01    # nn.LeakyReLU default negative_slope


# --------------------------- in-kernel helpers ----------------------------- #
def _bn_lrelu(z, gb):
    """Training-mode BatchNorm (batch stats over rows) + LeakyReLU.

    z: [M, C] f32 conv output (rows = (n, h, w)); gb: [2, C] = [gamma; beta].
    One-pass stats: var = E[z^2] - E[z]^2 (f32, fine at this tolerance).
    """
    m_rows = z.shape[0]
    inv_m = 1.0 / m_rows
    s1 = jnp.sum(z, axis=0, keepdims=True)
    s2 = jnp.sum(z * z, axis=0, keepdims=True)
    mean = s1 * inv_m
    var = jnp.maximum(s2 * inv_m - mean * mean, 0.0)
    gamma = gb[0:1, :]
    beta = gb[1:2, :]
    scale = gamma * lax.rsqrt(var + EPS)
    shift = beta - mean * scale
    y = z * scale + shift
    return jnp.maximum(y, NEG_SLOPE * y)          # LeakyReLU(0.01)


def _conv_from_gather(act_f32, idx, w_bf16, rows_out, cin):
    """3x3 / stride-2 / pad-1 conv on an in-VMEM activation.

    act_f32: [R_prev, Cin] previous activation, rows ordered (n, h*W + w).
    idx:     [9*rows_out, 1] int32 row index into act for every (tap, n, oh, ow);
             -1 marks the zero-padding region (matches no iota value).
    w_bf16:  [9*Cin, Cout] weight, K ordered (kh, kw, c).
    """
    r_prev = act_f32.shape[0]
    act_bf = act_f32.astype(jnp.bfloat16)
    # One-hot gather matrix built on the VPU (no HBM traffic).
    piota = lax.broadcasted_iota(jnp.int32, (idx.shape[0], r_prev), 1)
    sel = jnp.where(piota == idx, 1.0, 0.0).astype(jnp.bfloat16)
    # Exact gather (one-hot rows, f32 accumulation): g[k*rows_out + m, c].
    g = jnp.dot(sel, act_bf, preferred_element_type=jnp.float32)
    cout = w_bf16.shape[1]
    z = jnp.zeros((rows_out, cout), jnp.float32)
    for k in range(9):                             # static unroll: 9 MXU GEMMs
        gk = g[k * rows_out:(k + 1) * rows_out, :].astype(jnp.bfloat16)
        wk = w_bf16[k * cin:(k + 1) * cin, :]
        z = z + jnp.dot(gk, wk, preferred_element_type=jnp.float32)
    return z


def _make_fused_kernel(num_layers):
    """Kernel refs: p1, idx_2..idx_L, w_1..w_L, gb_1..gb_L, out."""
    def kernel(*refs):
        p1_ref = refs[0]
        idx_refs = refs[1:num_layers]
        w_refs = refs[num_layers:2 * num_layers]
        gb_refs = refs[2 * num_layers:3 * num_layers]
        o_ref = refs[3 * num_layers]

        # Layer 1: patches already in (kh, kw, c) order, bf16.
        z = jnp.dot(p1_ref[...], w_refs[0][...],
                    preferred_element_type=jnp.float32)
        act = _bn_lrelu(z, gb_refs[0][...])

        # Layers 2..L: gather + GEMM entirely in VMEM.
        for l in range(1, num_layers):
            idx = idx_refs[l - 1][...]
            rows_out = idx.shape[0] // 9
            z = _conv_from_gather(act, idx, w_refs[l][...],
                                  rows_out, act.shape[1])
            act = _bn_lrelu(z, gb_refs[l][...])

        o_ref[...] = act                            # [N*Ho*Wo, C_last], f32
    return kernel


# ------------------------------ host helpers ------------------------------- #
def _out_hw(h):
    return (h + 2 - 3) // 2 + 1


def _im2col_layer1(x_nhwc):
    """im2col for k=3, s=2, p=1 with (kh, kw, c) K-order -> [N*Ho*Wo, 9*C]."""
    n, h, w, c = x_nhwc.shape
    ho, wo = _out_hw(h), _out_hw(w)
    xp = jnp.pad(x_nhwc, ((0, 0), (1, 1), (1, 1), (0, 0)))
    cols = []
    for kh in range(3):
        for kw in range(3):
            cols.append(xp[:, kh:kh + 2 * ho - 1:2, kw:kw + 2 * wo - 1:2, :])
    patches = jnp.concatenate(cols, axis=-1)        # [N, Ho, Wo, 9*C]
    return patches.reshape(n * ho * wo, 9 * c), ho, wo


def _gather_indices(n, h, w):
    """Static row indices of the 9 conv taps for every output position.

    Row order is (k=(kh*3+kw), n, oh, ow); value is n*h*w + ih*w + iw into a
    [N*h*w, C] channels-last activation, or -1 for the zero-padding region.
    """
    ho, wo = _out_hw(h), _out_hw(w)
    idx = np.full((9, n, ho, wo), -1, dtype=np.int32)
    for k in range(9):
        kh, kw = divmod(k, 3)
        for oh in range(ho):
            ih = 2 * oh + kh - 1
            if not 0 <= ih < h:
                continue
            for ow in range(wo):
                iw = 2 * ow + kw - 1
                if not 0 <= iw < w:
                    continue
                for b in range(n):
                    idx[k, b, oh, ow] = b * h * w + ih * w + iw
    return idx.reshape(-1, 1), ho, wo


def conv_encoder_forward(x_nchw, params):
    """Forward pass of ConvEncoder28x28. x_nchw: [N, Cin, H, W] float32."""
    n, _cin, h, w = x_nchw.shape
    num_layers = len(params)
    x_nhwc = jnp.transpose(x_nchw, (0, 2, 3, 1))

    # Layer-1 im2col on the tiny raw input (bf16 for the MXU).
    p1, ho, wo = _im2col_layer1(x_nhwc)
    p1 = p1.astype(jnp.bfloat16)

    # Static gather indices for layers 2..L (host-side, shape-dependent only).
    hws = [(ho, wo)]
    idxs = []
    for _ in range(num_layers - 1):
        idx_np, ho, wo = _gather_indices(n, *hws[-1])
        idxs.append(jnp.asarray(idx_np))
        hws.append((ho, wo))

    # Weights -> [9*Cin, Cout], (kh, kw, c) K-order, bf16.  Conv bias dropped:
    # it cancels exactly under training-mode (batch-statistics) BatchNorm.
    ws, gbs = [], []
    for (wt, _b, gamma, beta) in params:
        cout, cin = wt.shape[0], wt.shape[1]
        ws.append(jnp.transpose(wt, (2, 3, 1, 0))
                  .reshape(9 * cin, cout).astype(jnp.bfloat16))
        gbs.append(jnp.stack([gamma, beta]).astype(jnp.float32))

    ho_last, wo_last = hws[-1]
    cout_last = params[-1][0].shape[0]
    m_out = n * ho_last * wo_last

    operands = [p1] + idxs + ws + gbs
    full2d = lambda a: pl.BlockSpec(a.shape, lambda i: (0, 0))

    out = pl.pallas_call(
        _make_fused_kernel(num_layers),
        out_shape=jax.ShapeDtypeStruct((m_out, cout_last), jnp.float32),
        grid=(1,),
        in_specs=[full2d(a) for a in operands],
        out_specs=pl.BlockSpec((m_out, cout_last), lambda i: (0, 0)),
        compiler_params=pltpu.CompilerParams(
            dimension_semantics=("arbitrary",)),
    )(*operands)

    # torch.flatten(out_NCHW, start_dim=1): channel-major (c, h, w) per image.
    out = out.reshape(n, ho_last, wo_last, cout_last)
    return jnp.transpose(out, (0, 3, 1, 2)).reshape(n, -1)


# --------------------------- reference / params ----------------------------- #
def init_params(key, in_channels, hidden_dims):
    """Deterministic synthetic parameters with the module's shapes."""
    params = []
    c_in = in_channels
    for h_dim in hidden_dims:
        key, k1, k2, k3, k4 = jax.random.split(key, 5)
        wt = 0.1 * jax.random.normal(k1, (h_dim, c_in, 3, 3), jnp.float32)  # OIHW
        b = 0.05 * jax.random.normal(k2, (h_dim,), jnp.float32)
        gamma = 1.0 + 0.1 * jax.random.normal(k3, (h_dim,), jnp.float32)
        beta = 0.05 * jax.random.normal(k4, (h_dim,), jnp.float32)
        params.append((wt, b, gamma, beta))
        c_in = h_dim
    return params


def reference_forward(x_nchw, params, mxu_bf16=False):
    """Pure-JAX reference: NCHW conv (+bias), training-mode BN, LeakyReLU,
    flatten.  mxu_bf16=True mirrors the kernel's bf16 GEMM inputs (with f32
    accumulation) so that comparison isolates algorithmic differences."""
    x = x_nchw
    for (wt, b, gamma, beta) in params:
        xin, win = x, wt
        if mxu_bf16:
            xin = xin.astype(jnp.bfloat16).astype(jnp.float32)
            win = win.astype(jnp.bfloat16).astype(jnp.float32)
        z = lax.conv_general_dilated(
            xin, win, window_strides=(2, 2), padding=((1, 1), (1, 1)),
            dimension_numbers=("NCHW", "OIHW", "NCHW"),
            precision=lax.Precision.HIGHEST)
        z = z + b[None, :, None, None]      # cancelled by batch-stat BN
        mean = jnp.mean(z, axis=(0, 2, 3), keepdims=True)
        var = jnp.mean((z - mean) ** 2, axis=(0, 2, 3), keepdims=True)
        y = (z - mean) / jnp.sqrt(var + EPS) * gamma[None, :, None, None] \
            + beta[None, :, None, None]
        x = jnp.where(y > 0, y, NEG_SLOPE * y)
    return x.reshape(x.shape[0], -1)


if __name__ == "__main__":
    key = jax.random.PRNGKey(0)
    k_in, k_par = jax.random.split(key)

    in_channels = 3
    hidden_dims = [32, 64, 128, 256]            # module defaults
    x = jax.random.normal(k_in, (2, in_channels, 28, 28), jnp.float32)
    params = init_params(k_par, in_channels, hidden_dims)

    forward = jax.jit(conv_encoder_forward)
    out = jax.block_until_ready(forward(x, params))

    # 28 -> 14 -> 7 -> 4 -> 2  =>  final shape (N, 256*2*2)
    assert out.shape == (2, hidden_dims[-1] * 2 * 2), out.shape

    # Tight check vs a reference that applies the same bf16 rounding to the
    # GEMM inputs (isolates kernel-structure errors: gather, K-order, BN, ...).
    ref_bf16 = jax.block_until_ready(reference_forward(x, params, mxu_bf16=True))
    err_tight = float(jnp.max(jnp.abs(out - ref_bf16)))
    assert jnp.allclose(out, ref_bf16, rtol=2e-3, atol=2e-3), err_tight

    # Budget check vs the pure-f32 module: only bf16 MXU-input rounding differs.
    ref_f32 = jax.block_until_ready(reference_forward(x, params))
    err_f32 = float(jnp.max(jnp.abs(out - ref_f32)))
    assert jnp.allclose(out, ref_f32, rtol=5e-2, atol=5e-2), err_f32

    print("KERNEL_OK")
</pallas_src>

<mosaic_0001>
module attributes {stable_mosaic.version = 11 : i64} {
  func.func @kernel(%arg0: i32, %arg1: memref<392x27xbf16, #tpu.memory_space<vmem>>, %arg2: memref<882x1xi32, #tpu.memory_space<vmem>>, %arg3: memref<288x1xi32, #tpu.memory_space<vmem>>, %arg4: memref<72x1xi32, #tpu.memory_space<vmem>>, %arg5: memref<27x32xbf16, #tpu.memory_space<vmem>>, %arg6: memref<288x64xbf16, #tpu.memory_space<vmem>>, %arg7: memref<576x128xbf16, #tpu.memory_space<vmem>>, %arg8: memref<1152x256xbf16, #tpu.memory_space<vmem>>, %arg9: memref<2x32xf32, #tpu.memory_space<vmem>>, %arg10: memref<2x64xf32, #tpu.memory_space<vmem>>, %arg11: memref<2x128xf32, #tpu.memory_space<vmem>>, %arg12: memref<2x256xf32, #tpu.memory_space<vmem>>, %arg13: memref<8x256xf32, #tpu.memory_space<vmem>>) attributes {dimension_semantics = [#tpu.dimension_semantics<arbitrary>], iteration_bounds = array<i64: 1>, scalar_prefetch = 0 : i64, scratch_operands = 0 : i64, tpu.core_type = #tpu.core_type<tc>, window_params = [{pipeline_mode = #tpu.pipeline_mode<synchronous>, transform_indices = @transform_0, window_bounds = array<i64: 392, 27>}, {pipeline_mode = #tpu.pipeline_mode<synchronous>, transform_indices = @transform_1, window_bounds = array<i64: 882, 1>}, {pipeline_mode = #tpu.pipeline_mode<synchronous>, transform_indices = @transform_2, window_bounds = array<i64: 288, 1>}, {pipeline_mode = #tpu.pipeline_mode<synchronous>, transform_indices = @transform_3, window_bounds = array<i64: 72, 1>}, {pipeline_mode = #tpu.pipeline_mode<synchronous>, transform_indices = @transform_4, window_bounds = array<i64: 27, 32>}, {pipeline_mode = #tpu.pipeline_mode<synchronous>, transform_indices = @transform_5, window_bounds = array<i64: 288, 64>}, {pipeline_mode = #tpu.pipeline_mode<synchronous>, transform_indices = @transform_6, window_bounds = array<i64: 576, 128>}, {pipeline_mode = #tpu.pipeline_mode<synchronous>, transform_indices = @transform_7, window_bounds = array<i64: 1152, 256>}, {pipeline_mode = #tpu.pipeline_mode<synchronous>, transform_indices = @transform_8, window_bounds = array<i64: 2, 32>}, {pipeline_mode = #tpu.pipeline_mode<synchronous>, transform_indices = @transform_9, window_bounds = array<i64: 2, 64>}, {pipeline_mode = #tpu.pipeline_mode<synchronous>, transform_indices = @transform_10, window_bounds = array<i64: 2, 128>}, {pipeline_mode = #tpu.pipeline_mode<synchronous>, transform_indices = @transform_11, window_bounds = array<i64: 2, 256>}, {pipeline_mode = #tpu.pipeline_mode<synchronous>, transform_indices = @transform_12, window_bounds = array<i64: 8, 256>}]} {
    %c0 = arith.constant 0 : index
    %c0_0 = arith.constant 0 : index
    %0 = vector.load %arg1[%c0, %c0_0] : memref<392x27xbf16, #tpu.memory_space<vmem>>, vector<392x27xbf16>
    %c0_1 = arith.constant 0 : index
    %c0_2 = arith.constant 0 : index
    %1 = vector.load %arg5[%c0_1, %c0_2] : memref<27x32xbf16, #tpu.memory_space<vmem>>, vector<27x32xbf16>
    %cst = arith.constant dense<0.000000e+00> : vector<392x32xf32>
    %2 = tpu.matmul %0, %1, %cst {dimension_numbers = #tpu.dot_dimension_numbers<[1], [0], [0], [1], [0, 0, 1, 1], [], []>} : vector<392x27xbf16>, vector<27x32xbf16>, vector<392x32xf32> -> vector<392x32xf32>
    %c0_3 = arith.constant 0 : index
    %c0_4 = arith.constant 0 : index
    %3 = vector.load %arg9[%c0_3, %c0_4] : memref<2x32xf32, #tpu.memory_space<vmem>>, vector<2x32xf32>
    %cst_5 = arith.constant dense<0.000000e+00> : vector<32xf32>
    %4 = vector.multi_reduction <add>, %2, %cst_5 [0] : vector<392x32xf32> to vector<32xf32>
    %5 = vector.shape_cast %4 : vector<32xf32> to vector<1x32xf32>
    %6 = arith.mulf %2, %2 : vector<392x32xf32>
    %cst_6 = arith.constant dense<0.000000e+00> : vector<32xf32>
    %7 = vector.multi_reduction <add>, %6, %cst_6 [0] : vector<392x32xf32> to vector<32xf32>
    %8 = vector.shape_cast %7 : vector<32xf32> to vector<1x32xf32>
    %cst_7 = arith.constant 0.00255102036 : f32
    %9 = vector.broadcast %cst_7 : f32 to vector<1x32xf32>
    %10 = arith.mulf %5, %9 : vector<1x32xf32>
    %cst_8 = arith.constant 0.00255102036 : f32
    %11 = vector.broadcast %cst_8 : f32 to vector<1x32xf32>
    %12 = arith.mulf %8, %11 : vector<1x32xf32>
    %13 = arith.mulf %10, %10 : vector<1x32xf32>
    %14 = arith.subf %12, %13 : vector<1x32xf32>
    %cst_9 = arith.constant 0.000000e+00 : f32
    %15 = vector.broadcast %cst_9 : f32 to vector<1x32xf32>
    %16 = arith.maximumf %14, %15 : vector<1x32xf32>
    %17 = vector.extract_strided_slice %3 {offsets = [0, 0], sizes = [1, 32], strides = [1, 1]} : vector<2x32xf32> to vector<1x32xf32>
    %18 = vector.extract_strided_slice %3 {offsets = [1, 0], sizes = [1, 32], strides = [1, 1]} : vector<2x32xf32> to vector<1x32xf32>
    %cst_10 = arith.constant 9.99999974E-6 : f32
    %19 = vector.broadcast %cst_10 : f32 to vector<1x32xf32>
    %20 = arith.addf %16, %19 : vector<1x32xf32>
    %21 = math.rsqrt %20 : vector<1x32xf32>
    %22 = arith.mulf %17, %21 : vector<1x32xf32>
    %23 = arith.mulf %10, %22 : vector<1x32xf32>
    %24 = arith.subf %18, %23 : vector<1x32xf32>
    %25 = vector.broadcast %22 : vector<1x32xf32> to vector<392x32xf32>
    %26 = arith.mulf %2, %25 : vector<392x32xf32>
    %27 = vector.broadcast %24 : vector<1x32xf32> to vector<392x32xf32>
    %28 = arith.addf %26, %27 : vector<392x32xf32>
    %cst_11 = arith.constant 0.00999999977 : f32
    %29 = vector.broadcast %cst_11 : f32 to vector<392x32xf32>
    %30 = arith.mulf %29, %28 : vector<392x32xf32>
    %31 = arith.maximumf %28, %30 : vector<392x32xf32>
    %c0_12 = arith.constant 0 : index
    %c0_13 = arith.constant 0 : index
    %32 = vector.load %arg2[%c0_12, %c0_13] : memref<882x1xi32, #tpu.memory_space<vmem>>, vector<882x1xi32>
    %c0_14 = arith.constant 0 : index
    %c0_15 = arith.constant 0 : index
    %33 = vector.load %arg6[%c0_14, %c0_15] : memref<288x64xbf16, #tpu.memory_space<vmem>>, vector<288x64xbf16>
    %34 = arith.truncf %31 : vector<392x32xf32> to vector<392x32xbf16>
    %35 = tpu.iota {dimensions = array<i32: 1>} : vector<882x392xi32>
    %36 = vector.broadcast %32 : vector<882x1xi32> to vector<882x392xi32>
    %37 = arith.cmpi eq, %35, %36 : vector<882x392xi32>
    %cst_16 = arith.constant 1.000000e+00 : f32
    %cst_17 = arith.constant 0.000000e+00 : f32
    %38 = vector.broadcast %cst_16 : f32 to vector<882x392xf32>
    %39 = vector.broadcast %cst_17 : f32 to vector<882x392xf32>
    %40 = arith.select %37, %38, %39 : vector<882x392xi1>, vector<882x392xf32>
    %41 = arith.truncf %40 : vector<882x392xf32> to vector<882x392xbf16>
    %cst_18 = arith.constant dense<0.000000e+00> : vector<882x32xf32>
    %42 = tpu.matmul %41, %34, %cst_18 {dimension_numbers = #tpu.dot_dimension_numbers<[1], [0], [0], [1], [0, 0, 1, 1], [], []>} : vector<882x392xbf16>, vector<392x32xbf16>, vector<882x32xf32> -> vector<882x32xf32>
    %cst_19 = arith.constant 0.000000e+00 : f32
    %43 = vector.broadcast %cst_19 : f32 to vector<98x64xf32>
    %44 = vector.extract_strided_slice %42 {offsets = [0, 0], sizes = [98, 32], strides = [1, 1]} : vector<882x32xf32> to vector<98x32xf32>
    %45 = arith.truncf %44 : vector<98x32xf32> to vector<98x32xbf16>
    %46 = vector.extract_strided_slice %33 {offsets = [0, 0], sizes = [32, 64], strides = [1, 1]} : vector<288x64xbf16> to vector<32x64xbf16>
    %cst_20 = arith.constant dense<0.000000e+00> : vector<98x64xf32>
    %47 = tpu.matmul %45, %46, %cst_20 {dimension_numbers = #tpu.dot_dimension_numbers<[1], [0], [0], [1], [0, 0, 1, 1], [], []>} : vector<98x32xbf16>, vector<32x64xbf16>, vector<98x64xf32> -> vector<98x64xf32>
    %48 = arith.addf %43, %47 : vector<98x64xf32>
    %49 = vector.extract_strided_slice %42 {offsets = [98, 0], sizes = [98, 32], strides = [1, 1]} : vector<882x32xf32> to vector<98x32xf32>
    %50 = arith.truncf %49 : vector<98x32xf32> to vector<98x32xbf16>
    %51 = vector.extract_strided_slice %33 {offsets = [32, 0], sizes = [32, 64], strides = [1, 1]} : vector<288x64xbf16> to vector<32x64xbf16>
    %cst_21 = arith.constant dense<0.000000e+00> : vector<98x64xf32>
    %52 = tpu.matmul %50, %51, %cst_21 {dimension_numbers = #tpu.dot_dimension_numbers<[1], [0], [0], [1], [0, 0, 1, 1], [], []>} : vector<98x32xbf16>, vector<32x64xbf16>, vector<98x64xf32> -> vector<98x64xf32>
    %53 = arith.addf %48, %52 : vector<98x64xf32>
    %54 = vector.extract_strided_slice %42 {offsets = [196, 0], sizes = [98, 32], strides = [1, 1]} : vector<882x32xf32> to vector<98x32xf32>
    %55 = arith.truncf %54 : vector<98x32xf32> to vector<98x32xbf16>
    %56 = vector.extract_strided_slice %33 {offsets = [64, 0], sizes = [32, 64], strides = [1, 1]} : vector<288x64xbf16> to vector<32x64xbf16>
    %cst_22 = arith.constant dense<0.000000e+00> : vector<98x64xf32>
    %57 = tpu.matmul %55, %56, %cst_22 {dimension_numbers = #tpu.dot_dimension_numbers<[1], [0], [0], [1], [0, 0, 1, 1], [], []>} : vector<98x32xbf16>, vector<32x64xbf16>, vector<98x64xf32> -> vector<98x64xf32>
    %58 = arith.addf %53, %57 : vector<98x64xf32>
    %59 = vector.extract_strided_slice %42 {offsets = [294, 0], sizes = [98, 32], strides = [1, 1]} : vector<882x32xf32> to vector<98x32xf32>
    %60 = arith.truncf %59 : vector<98x32xf32> to vector<98x32xbf16>
    %61 = vector.extract_strided_slice %33 {offsets = [96, 0], sizes = [32, 64], strides = [1, 1]} : vector<288x64xbf16> to vector<32x64xbf16>
    %cst_23 = arith.constant dense<0.000000e+00> : vector<98x64xf32>
    %62 = tpu.matmul %60, %61, %cst_23 {dimension_numbers = #tpu.dot_dimension_numbers<[1], [0], [0], [1], [0, 0, 1, 1], [], []>} : vector<98x32xbf16>, vector<32x64xbf16>, vector<98x64xf32> -> vector<98x64xf32>
    %63 = arith.addf %58, %62 : vector<98x64xf32>
    %64 = vector.extract_strided_slice %42 {offsets = [392, 0], sizes = [98, 32], strides = [1, 1]} : vector<882x32xf32> to vector<98x32xf32>
    %65 = arith.truncf %64 : vector<98x32xf32> to vector<98x32xbf16>
    %66 = vector.extract_strided_slice %33 {offsets = [128, 0], sizes = [32, 64], strides = [1, 1]} : vector<288x64xbf16> to vector<32x64xbf16>
    %cst_24 = arith.constant dense<0.000000e+00> : vector<98x64xf32>
    %67 = tpu.matmul %65, %66, %cst_24 {dimension_numbers = #tpu.dot_dimension_numbers<[1], [0], [0], [1], [0, 0, 1, 1], [], []>} : vector<98x32xbf16>, vector<32x64xbf16>, vector<98x64xf32> -> vector<98x64xf32>
    %68 = arith.addf %63, %67 : vector<98x64xf32>
    %69 = vector.extract_strided_slice %42 {offsets = [490, 0], sizes = [98, 32], strides = [1, 1]} : vector<882x32xf32> to vector<98x32xf32>
    %70 = arith.truncf %69 : vector<98x32xf32> to vector<98x32xbf16>
    %71 = vector.extract_strided_slice %33 {offsets = [160, 0], sizes = [32, 64], strides = [1, 1]} : vector<288x64xbf16> to vector<32x64xbf16>
    %cst_25 = arith.constant dense<0.000000e+00> : vector<98x64xf32>
    %72 = tpu.matmul %70, %71, %cst_25 {dimension_numbers = #tpu.dot_dimension_numbers<[1], [0], [0], [1], [0, 0, 1, 1], [], []>} : vector<98x32xbf16>, vector<32x64xbf16>, vector<98x64xf32> -> vector<98x64xf32>
    %73 = arith.addf %68, %72 : vector<98x64xf32>
    %74 = vector.extract_strided_slice %42 {offsets = [588, 0], sizes = [98, 32], strides = [1, 1]} : vector<882x32xf32> to vector<98x32xf32>
    %75 = arith.truncf %74 : vector<98x32xf32> to vector<98x32xbf16>
    %76 = vector.extract_strided_slice %33 {offsets = [192, 0], sizes = [32, 64], strides = [1, 1]} : vector<288x64xbf16> to vector<32x64xbf16>
    %cst_26 = arith.constant dense<0.000000e+00> : vector<98x64xf32>
    %77 = tpu.matmul %75, %76, %cst_26 {dimension_numbers = #tpu.dot_dimension_numbers<[1], [0], [0], [1], [0, 0, 1, 1], [], []>} : vector<98x32xbf16>, vector<32x64xbf16>, vector<98x64xf32> -> vector<98x64xf32>
    %78 = arith.addf %73, %77 : vector<98x64xf32>
    %79 = vector.extract_strided_slice %42 {offsets = [686, 0], sizes = [98, 32], strides = [1, 1]} : vector<882x32xf32> to vector<98x32xf32>
    %80 = arith.truncf %79 : vector<98x32xf32> to vector<98x32xbf16>
    %81 = vector.extract_strided_slice %33 {offsets = [224, 0], sizes = [32, 64], strides = [1, 1]} : vector<288x64xbf16> to vector<32x64xbf16>
    %cst_27 = arith.constant dense<0.000000e+00> : vector<98x64xf32>
    %82 = tpu.matmul %80, %81, %cst_27 {dimension_numbers = #tpu.dot_dimension_numbers<[1], [0], [0], [1], [0, 0, 1, 1], [], []>} : vector<98x32xbf16>, vector<32x64xbf16>, vector<98x64xf32> -> vector<98x64xf32>
    %83 = arith.addf %78, %82 : vector<98x64xf32>
    %84 = vector.extract_strided_slice %42 {offsets = [784, 0], sizes = [98, 32], strides = [1, 1]} : vector<882x32xf32> to vector<98x32xf32>
    %85 = arith.truncf %84 : vector<98x32xf32> to vector<98x32xbf16>
    %86 = vector.extract_strided_slice %33 {offsets = [256, 0], sizes = [32, 64], strides = [1, 1]} : vector<288x64xbf16> to vector<32x64xbf16>
    %cst_28 = arith.constant dense<0.000000e+00> : vector<98x64xf32>
    %87 = tpu.matmul %85, %86, %cst_28 {dimension_numbers = #tpu.dot_dimension_numbers<[1], [0], [0], [1], [0, 0, 1, 1], [], []>} : vector<98x32xbf16>, vector<32x64xbf16>, vector<98x64xf32> -> vector<98x64xf32>
    %88 = arith.addf %83, %87 : vector<98x64xf32>
    %c0_29 = arith.constant 0 : index
    %c0_30 = arith.constant 0 : index
    %89 = vector.load %arg10[%c0_29, %c0_30] : memref<2x64xf32, #tpu.memory_space<vmem>>, vector<2x64xf32>
    %cst_31 = arith.constant dense<0.000000e+00> : vector<64xf32>
    %90 = vector.multi_reduction <add>, %88, %cst_31 [0] : vector<98x64xf32> to vector<64xf32>
    %91 = vector.shape_cast %90 : vector<64xf32> to vector<1x64xf32>
    %92 = arith.mulf %88, %88 : vector<98x64xf32>
    %cst_32 = arith.constant dense<0.000000e+00> : vector<64xf32>
    %93 = vector.multi_reduction <add>, %92, %cst_32 [0] : vector<98x64xf32> to vector<64xf32>
    %94 = vector.shape_cast %93 : vector<64xf32> to vector<1x64xf32>
    %cst_33 = arith.constant 0.0102040814 : f32
    %95 = vector.broadcast %cst_33 : f32 to vector<1x64xf32>
    %96 = arith.mulf %91, %95 : vector<1x64xf32>
    %cst_34 = arith.constant 0.0102040814 : f32
    %97 = vector.broadcast %cst_34 : f32 to vector<1x64xf32>
    %98 = arith.mulf %94, %97 : vector<1x64xf32>
    %99 = arith.mulf %96, %96 : vector<1x64xf32>
    %100 = arith.subf %98, %99 : vector<1x64xf32>
    %cst_35 = arith.constant 0.000000e+00 : f32
    %101 = vector.broadcast %cst_35 : f32 to vector<1x64xf32>
    %102 = arith.maximumf %100, %101 : vector<1x64xf32>
    %103 = vector.extract_strided_slice %89 {offsets = [0, 0], sizes = [1, 64], strides = [1, 1]} : vector<2x64xf32> to vector<1x64xf32>
    %104 = vector.extract_strided_slice %89 {offsets = [1, 0], sizes = [1, 64], strides = [1, 1]} : vector<2x64xf32> to vector<1x64xf32>
    %cst_36 = arith.constant 9.99999974E-6 : f32
    %105 = vector.broadcast %cst_36 : f32 to vector<1x64xf32>
    %106 = arith.addf %102, %105 : vector<1x64xf32>
    %107 = math.rsqrt %106 : vector<1x64xf32>
    %108 = arith.mulf %103, %107 : vector<1x64xf32>
    %109 = arith.mulf %96, %108 : vector<1x64xf32>
    %110 = arith.subf %104, %109 : vector<1x64xf32>
    %111 = vector.broadcast %108 : vector<1x64xf32> to vector<98x64xf32>
    %112 = arith.mulf %88, %111 : vector<98x64xf32>
    %113 = vector.broadcast %110 : vector<1x64xf32> to vector<98x64xf32>
    %114 = arith.addf %112, %113 : vector<98x64xf32>
    %cst_37 = arith.constant 0.00999999977 : f32
    %115 = vector.broadcast %cst_37 : f32 to vector<98x64xf32>
    %116 = arith.mulf %115, %114 : vector<98x64xf32>
    %117 = arith.maximumf %114, %116 : vector<98x64xf32>
    %c0_38 = arith.constant 0 : index
    %c0_39 = arith.constant 0 : index
    %118 = vector.load %arg3[%c0_38, %c0_39] : memref<288x1xi32, #tpu.memory_space<vmem>>, vector<288x1xi32>
    %c0_40 = arith.constant 0 : index
    %c0_41 = arith.constant 0 : index
    %119 = vector.load %arg7[%c0_40, %c0_41] : memref<576x128xbf16, #tpu.memory_space<vmem>>, vector<576x128xbf16>
    %120 = arith.truncf %117 : vector<98x64xf32> to vector<98x64xbf16>
    %121 = tpu.iota {dimensions = array<i32: 1>} : vector<288x98xi32>
    %122 = vector.broadcast %118 : vector<288x1xi32> to vector<288x98xi32>
    %123 = arith.cmpi eq, %121, %122 : vector<288x98xi32>
    %cst_42 = arith.constant 1.000000e+00 : f32
    %cst_43 = arith.constant 0.000000e+00 : f32
    %124 = vector.broadcast %cst_42 : f32 to vector<288x98xf32>
    %125 = vector.broadcast %cst_43 : f32 to vector<288x98xf32>
    %126 = arith.select %123, %124, %125 : vector<288x98xi1>, vector<288x98xf32>
    %127 = arith.truncf %126 : vector<288x98xf32> to vector<288x98xbf16>
    %cst_44 = arith.constant dense<0.000000e+00> : vector<288x64xf32>
    %128 = tpu.matmul %127, %120, %cst_44 {dimension_numbers = #tpu.dot_dimension_numbers<[1], [0], [0], [1], [0, 0, 1, 1], [], []>} : vector<288x98xbf16>, vector<98x64xbf16>, vector<288x64xf32> -> vector<288x64xf32>
    %cst_45 = arith.constant 0.000000e+00 : f32
    %129 = vector.broadcast %cst_45 : f32 to vector<32x128xf32>
    %130 = vector.extract_strided_slice %128 {offsets = [0, 0], sizes = [32, 64], strides = [1, 1]} : vector<288x64xf32> to vector<32x64xf32>
    %131 = arith.truncf %130 : vector<32x64xf32> to vector<32x64xbf16>
    %132 = vector.extract_strided_slice %119 {offsets = [0, 0], sizes = [64, 128], strides = [1, 1]} : vector<576x128xbf16> to vector<64x128xbf16>
    %cst_46 = arith.constant dense<0.000000e+00> : vector<32x128xf32>
    %133 = tpu.matmul %131, %132, %cst_46 {dimension_numbers = #tpu.dot_dimension_numbers<[1], [0], [0], [1], [0, 0, 1, 1], [], []>} : vector<32x64xbf16>, vector<64x128xbf16>, vector<32x128xf32> -> vector<32x128xf32>
    %134 = arith.addf %129, %133 : vector<32x128xf32>
    %135 = vector.extract_strided_slice %128 {offsets = [32, 0], sizes = [32, 64], strides = [1, 1]} : vector<288x64xf32> to vector<32x64xf32>
    %136 = arith.truncf %135 : vector<32x64xf32> to vector<32x64xbf16>
    %137 = vector.extract_strided_slice %119 {offsets = [64, 0], sizes = [64, 128], strides = [1, 1]} : vector<576x128xbf16> to vector<64x128xbf16>
    %cst_47 = arith.constant dense<0.000000e+00> : vector<32x128xf32>
    %138 = tpu.matmul %136, %137, %cst_47 {dimension_numbers = #tpu.dot_dimension_numbers<[1], [0], [0], [1], [0, 0, 1, 1], [], []>} : vector<32x64xbf16>, vector<64x128xbf16>, vector<32x128xf32> -> vector<32x128xf32>
    %139 = arith.addf %134, %138 : vector<32x128xf32>
    %140 = vector.extract_strided_slice %128 {offsets = [64, 0], sizes = [32, 64], strides = [1, 1]} : vector<288x64xf32> to vector<32x64xf32>
    %141 = arith.truncf %140 : vector<32x64xf32> to vector<32x64xbf16>
    %142 = vector.extract_strided_slice %119 {offsets = [128, 0], sizes = [64, 128], strides = [1, 1]} : vector<576x128xbf16> to vector<64x128xbf16>
    %cst_48 = arith.constant dense<0.000000e+00> : vector<32x128xf32>
    %143 = tpu.matmul %141, %142, %cst_48 {dimension_numbers = #tpu.dot_dimension_numbers<[1], [0], [0], [1], [0, 0, 1, 1], [], []>} : vector<32x64xbf16>, vector<64x128xbf16>, vector<32x128xf32> -> vector<32x128xf32>
    %144 = arith.addf %139, %143 : vector<32x128xf32>
    %145 = vector.extract_strided_slice %128 {offsets = [96, 0], sizes = [32, 64], strides = [1, 1]} : vector<288x64xf32> to vector<32x64xf32>
    %146 = arith.truncf %145 : vector<32x64xf32> to vector<32x64xbf16>
    %147 = vector.extract_strided_slice %119 {offsets = [192, 0], sizes = [64, 128], strides = [1, 1]} : vector<576x128xbf16> to vector<64x128xbf16>
    %cst_49 = arith.constant dense<0.000000e+00> : vector<32x128xf32>
    %148 = tpu.matmul %146, %147, %cst_49 {dimension_numbers = #tpu.dot_dimension_numbers<[1], [0], [0], [1], [0, 0, 1, 1], [], []>} : vector<32x64xbf16>, vector<64x128xbf16>, vector<32x128xf32> -> vector<32x128xf32>
    %149 = arith.addf %144, %148 : vector<32x128xf32>
    %150 = vector.extract_strided_slice %128 {offsets = [128, 0], sizes = [32, 64], strides = [1, 1]} : vector<288x64xf32> to vector<32x64xf32>
    %151 = arith.truncf %150 : vector<32x64xf32> to vector<32x64xbf16>
    %152 = vector.extract_strided_slice %119 {offsets = [256, 0], sizes = [64, 128], strides = [1, 1]} : vector<576x128xbf16> to vector<64x128xbf16>
    %cst_50 = arith.constant dense<0.000000e+00> : vector<32x128xf32>
    %153 = tpu.matmul %151, %152, %cst_50 {dimension_numbers = #tpu.dot_dimension_numbers<[1], [0], [0], [1], [0, 0, 1, 1], [], []>} : vector<32x64xbf16>, vector<64x128xbf16>, vector<32x128xf32> -> vector<32x128xf32>
    %154 = arith.addf %149, %153 : vector<32x128xf32>
    %155 = vector.extract_strided_slice %128 {offsets = [160, 0], sizes = [32, 64], strides = [1, 1]} : vector<288x64xf32> to vector<32x64xf32>
    %156 = arith.truncf %155 : vector<32x64xf32> to vector<32x64xbf16>
    %157 = vector.extract_strided_slice %119 {offsets = [320, 0], sizes = [64, 128], strides = [1, 1]} : vector<576x128xbf16> to vector<64x128xbf16>
    %cst_51 = arith.constant dense<0.000000e+00> : vector<32x128xf32>
    %158 = tpu.matmul %156, %157, %cst_51 {dimension_numbers = #tpu.dot_dimension_numbers<[1], [0], [0], [1], [0, 0, 1, 1], [], []>} : vector<32x64xbf16>, vector<64x128xbf16>, vector<32x128xf32> -> vector<32x128xf32>
    %159 = arith.addf %154, %158 : vector<32x128xf32>
    %160 = vector.extract_strided_slice %128 {offsets = [192, 0], sizes = [32, 64], strides = [1, 1]} : vector<288x64xf32> to vector<32x64xf32>
    %161 = arith.truncf %160 : vector<32x64xf32> to vector<32x64xbf16>
    %162 = vector.extract_strided_slice %119 {offsets = [384, 0], sizes = [64, 128], strides = [1, 1]} : vector<576x128xbf16> to vector<64x128xbf16>
    %cst_52 = arith.constant dense<0.000000e+00> : vector<32x128xf32>
    %163 = tpu.matmul %161, %162, %cst_52 {dimension_numbers = #tpu.dot_dimension_numbers<[1], [0], [0], [1], [0, 0, 1, 1], [], []>} : vector<32x64xbf16>, vector<64x128xbf16>, vector<32x128xf32> -> vector<32x128xf32>
    %164 = arith.addf %159, %163 : vector<32x128xf32>
    %165 = vector.extract_strided_slice %128 {offsets = [224, 0], sizes = [32, 64], strides = [1, 1]} : vector<288x64xf32> to vector<32x64xf32>
    %166 = arith.truncf %165 : vector<32x64xf32> to vector<32x64xbf16>
    %167 = vector.extract_strided_slice %119 {offsets = [448, 0], sizes = [64, 128], strides = [1, 1]} : vector<576x128xbf16> to vector<64x128xbf16>
    %cst_53 = arith.constant dense<0.000000e+00> : vector<32x128xf32>
    %168 = tpu.matmul %166, %167, %cst_53 {dimension_numbers = #tpu.dot_dimension_numbers<[1], [0], [0], [1], [0, 0, 1, 1], [], []>} : vector<32x64xbf16>, vector<64x128xbf16>, vector<32x128xf32> -> vector<32x128xf32>
    %169 = arith.addf %164, %168 : vector<32x128xf32>
    %170 = vector.extract_strided_slice %128 {offsets = [256, 0], sizes = [32, 64], strides = [1, 1]} : vector<288x64xf32> to vector<32x64xf32>
    %171 = arith.truncf %170 : vector<32x64xf32> to vector<32x64xbf16>
    %172 = vector.extract_strided_slice %119 {offsets = [512, 0], sizes = [64, 128], strides = [1, 1]} : vector<576x128xbf16> to vector<64x128xbf16>
    %cst_54 = arith.constant dense<0.000000e+00> : vector<32x128xf32>
    %173 = tpu.matmul %171, %172, %cst_54 {dimension_numbers = #tpu.dot_dimension_numbers<[1], [0], [0], [1], [0, 0, 1, 1], [], []>} : vector<32x64xbf16>, vector<64x128xbf16>, vector<32x128xf32> -> vector<32x128xf32>
    %174 = arith.addf %169, %173 : vector<32x128xf32>
    %c0_55 = arith.constant 0 : index
    %c0_56 = arith.constant 0 : index
    %175 = vector.load %arg11[%c0_55, %c0_56] : memref<2x128xf32, #tpu.memory_space<vmem>>, vector<2x128xf32>
    %cst_57 = arith.constant dense<0.000000e+00> : vector<128xf32>
    %176 = vector.multi_reduction <add>, %174, %cst_57 [0] : vector<32x128xf32> to vector<128xf32>
    %177 = vector.shape_cast %176 : vector<128xf32> to vector<1x128xf32>
    %178 = arith.mulf %174, %174 : vector<32x128xf32>
    %cst_58 = arith.constant dense<0.000000e+00> : vector<128xf32>
    %179 = vector.multi_reduction <add>, %178, %cst_58 [0] : vector<32x128xf32> to vector<128xf32>
    %180 = vector.shape_cast %179 : vector<128xf32> to vector<1x128xf32>
    %cst_59 = arith.constant 3.125000e-02 : f32
    %181 = vector.broadcast %cst_59 : f32 to vector<1x128xf32>
    %182 = arith.mulf %177, %181 : vector<1x128xf32>
    %cst_60 = arith.constant 3.125000e-02 : f32
    %183 = vector.broadcast %cst_60 : f32 to vector<1x128xf32>
    %184 = arith.mulf %180, %183 : vector<1x128xf32>
    %185 = arith.mulf %182, %182 : vector<1x128xf32>
    %186 = arith.subf %184, %185 : vector<1x128xf32>
    %cst_61 = arith.constant 0.000000e+00 : f32
    %187 = vector.broadcast %cst_61 : f32 to vector<1x128xf32>
    %188 = arith.maximumf %186, %187 : vector<1x128xf32>
    %189 = vector.extract_strided_slice %175 {offsets = [0, 0], sizes = [1, 128], strides = [1, 1]} : vector<2x128xf32> to vector<1x128xf32>
    %190 = vector.extract_strided_slice %175 {offsets = [1, 0], sizes = [1, 128], strides = [1, 1]} : vector<2x128xf32> to vector<1x128xf32>
    %cst_62 = arith.constant 9.99999974E-6 : f32
    %191 = vector.broadcast %cst_62 : f32 to vector<1x128xf32>
    %192 = arith.addf %188, %191 : vector<1x128xf32>
    %193 = math.rsqrt %192 : vector<1x128xf32>
    %194 = arith.mulf %189, %193 : vector<1x128xf32>
    %195 = arith.mulf %182, %194 : vector<1x128xf32>
    %196 = arith.subf %190, %195 : vector<1x128xf32>
    %197 = vector.broadcast %194 : vector<1x128xf32> to vector<32x128xf32>
    %198 = arith.mulf %174, %197 : vector<32x128xf32>
    %199 = vector.broadcast %196 : vector<1x128xf32> to vector<32x128xf32>
    %200 = arith.addf %198, %199 : vector<32x128xf32>
    %cst_63 = arith.constant 0.00999999977 : f32
    %201 = vector.broadcast %cst_63 : f32 to vector<32x128xf32>
    %202 = arith.mulf %201, %200 : vector<32x128xf32>
    %203 = arith.maximumf %200, %202 : vector<32x128xf32>
    %c0_64 = arith.constant 0 : index
    %c0_65 = arith.constant 0 : index
    %204 = vector.load %arg4[%c0_64, %c0_65] : memref<72x1xi32, #tpu.memory_space<vmem>>, vector<72x1xi32>
    %c0_66 = arith.constant 0 : index
    %c0_67 = arith.constant 0 : index
    %205 = vector.load %arg8[%c0_66, %c0_67] : memref<1152x256xbf16, #tpu.memory_space<vmem>>, vector<1152x256xbf16>
    %206 = arith.truncf %203 : vector<32x128xf32> to vector<32x128xbf16>
    %207 = tpu.iota {dimensions = array<i32: 1>} : vector<72x32xi32>
    %208 = vector.broadcast %204 : vector<72x1xi32> to vector<72x32xi32>
    %209 = arith.cmpi eq, %207, %208 : vector<72x32xi32>
    %cst_68 = arith.constant 1.000000e+00 : f32
    %cst_69 = arith.constant 0.000000e+00 : f32
    %210 = vector.broadcast %cst_68 : f32 to vector<72x32xf32>
    %211 = vector.broadcast %cst_69 : f32 to vector<72x32xf32>
    %212 = arith.select %209, %210, %211 : vector<72x32xi1>, vector<72x32xf32>
    %213 = arith.truncf %212 : vector<72x32xf32> to vector<72x32xbf16>
    %cst_70 = arith.constant dense<0.000000e+00> : vector<72x128xf32>
    %214 = tpu.matmul %213, %206, %cst_70 {dimension_numbers = #tpu.dot_dimension_numbers<[1], [0], [0], [1], [0, 0, 1, 1], [], []>} : vector<72x32xbf16>, vector<32x128xbf16>, vector<72x128xf32> -> vector<72x128xf32>
    %cst_71 = arith.constant 0.000000e+00 : f32
    %215 = vector.broadcast %cst_71 : f32 to vector<8x256xf32>
    %216 = vector.extract_strided_slice %214 {offsets = [0, 0], sizes = [8, 128], strides = [1, 1]} : vector<72x128xf32> to vector<8x128xf32>
    %217 = arith.truncf %216 : vector<8x128xf32> to vector<8x128xbf16>
    %218 = vector.extract_strided_slice %205 {offsets = [0, 0], sizes = [128, 256], strides = [1, 1]} : vector<1152x256xbf16> to vector<128x256xbf16>
    %cst_72 = arith.constant dense<0.000000e+00> : vector<8x256xf32>
    %219 = tpu.matmul %217, %218, %cst_72 {dimension_numbers = #tpu.dot_dimension_numbers<[1], [0], [0], [1], [0, 0, 1, 1], [], []>} : vector<8x128xbf16>, vector<128x256xbf16>, vector<8x256xf32> -> vector<8x256xf32>
    %220 = arith.addf %215, %219 : vector<8x256xf32>
    %221 = vector.extract_strided_slice %214 {offsets = [8, 0], sizes = [8, 128], strides = [1, 1]} : vector<72x128xf32> to vector<8x128xf32>
    %222 = arith.truncf %221 : vector<8x128xf32> to vector<8x128xbf16>
    %223 = vector.extract_strided_slice %205 {offsets = [128, 0], sizes = [128, 256], strides = [1, 1]} : vector<1152x256xbf16> to vector<128x256xbf16>
    %cst_73 = arith.constant dense<0.000000e+00> : vector<8x256xf32>
    %224 = tpu.matmul %222, %223, %cst_73 {dimension_numbers = #tpu.dot_dimension_numbers<[1], [0], [0], [1], [0, 0, 1, 1], [], []>} : vector<8x128xbf16>, vector<128x256xbf16>, vector<8x256xf32> -> vector<8x256xf32>
    %225 = arith.addf %220, %224 : vector<8x256xf32>
    %226 = vector.extract_strided_slice %214 {offsets = [16, 0], sizes = [8, 128], strides = [1, 1]} : vector<72x128xf32> to vector<8x128xf32>
    %227 = arith.truncf %226 : vector<8x128xf32> to vector<8x128xbf16>
    %228 = vector.extract_strided_slice %205 {offsets = [256, 0], sizes = [128, 256], strides = [1, 1]} : vector<1152x256xbf16> to vector<128x256xbf16>
    %cst_74 = arith.constant dense<0.000000e+00> : vector<8x256xf32>
    %229 = tpu.matmul %227, %228, %cst_74 {dimension_numbers = #tpu.dot_dimension_numbers<[1], [0], [0], [1], [0, 0, 1, 1], [], []>} : vector<8x128xbf16>, vector<128x256xbf16>, vector<8x256xf32> -> vector<8x256xf32>
    %230 = arith.addf %225, %229 : vector<8x256xf32>
    %231 = vector.extract_strided_slice %214 {offsets = [24, 0], sizes = [8, 128], strides = [1, 1]} : vector<72x128xf32> to vector<8x128xf32>
    %232 = arith.truncf %231 : vector<8x128xf32> to vector<8x128xbf16>
    %233 = vector.extract_strided_slice %205 {offsets = [384, 0], sizes = [128, 256], strides = [1, 1]} : vector<1152x256xbf16> to vector<128x256xbf16>
    %cst_75 = arith.constant dense<0.000000e+00> : vector<8x256xf32>
    %234 = tpu.matmul %232, %233, %cst_75 {dimension_numbers = #tpu.dot_dimension_numbers<[1], [0], [0], [1], [0, 0, 1, 1], [], []>} : vector<8x128xbf16>, vector<128x256xbf16>, vector<8x256xf32> -> vector<8x256xf32>
    %235 = arith.addf %230, %234 : vector<8x256xf32>
    %236 = vector.extract_strided_slice %214 {offsets = [32, 0], sizes = [8, 128], strides = [1, 1]} : vector<72x128xf32> to vector<8x128xf32>
    %237 = arith.truncf %236 : vector<8x128xf32> to vector<8x128xbf16>
    %238 = vector.extract_strided_slice %205 {offsets = [512, 0], sizes = [128, 256], strides = [1, 1]} : vector<1152x256xbf16> to vector<128x256xbf16>
    %cst_76 = arith.constant dense<0.000000e+00> : vector<8x256xf32>
    %239 = tpu.matmul %237, %238, %cst_76 {dimension_numbers = #tpu.dot_dimension_numbers<[1], [0], [0], [1], [0, 0, 1, 1], [], []>} : vector<8x128xbf16>, vector<128x256xbf16>, vector<8x256xf32> -> vector<8x256xf32>
    %240 = arith.addf %235, %239 : vector<8x256xf32>
    %241 = vector.extract_strided_slice %214 {offsets = [40, 0], sizes = [8, 128], strides = [1, 1]} : vector<72x128xf32> to vector<8x128xf32>
    %242 = arith.truncf %241 : vector<8x128xf32> to vector<8x128xbf16>
    %243 = vector.extract_strided_slice %205 {offsets = [640, 0], sizes = [128, 256], strides = [1, 1]} : vector<1152x256xbf16> to vector<128x256xbf16>
    %cst_77 = arith.constant dense<0.000000e+00> : vector<8x256xf32>
    %244 = tpu.matmul %242, %243, %cst_77 {dimension_numbers = #tpu.dot_dimension_numbers<[1], [0], [0], [1], [0, 0, 1, 1], [], []>} : vector<8x128xbf16>, vector<128x256xbf16>, vector<8x256xf32> -> vector<8x256xf32>
    %245 = arith.addf %240, %244 : vector<8x256xf32>
    %246 = vector.extract_strided_slice %214 {offsets = [48, 0], sizes = [8, 128], strides = [1, 1]} : vector<72x128xf32> to vector<8x128xf32>
    %247 = arith.truncf %246 : vector<8x128xf32> to vector<8x128xbf16>
    %248 = vector.extract_strided_slice %205 {offsets = [768, 0], sizes = [128, 256], strides = [1, 1]} : vector<1152x256xbf16> to vector<128x256xbf16>
    %cst_78 = arith.constant dense<0.000000e+00> : vector<8x256xf32>
    %249 = tpu.matmul %247, %248, %cst_78 {dimension_numbers = #tpu.dot_dimension_numbers<[1], [0], [0], [1], [0, 0, 1, 1], [], []>} : vector<8x128xbf16>, vector<128x256xbf16>, vector<8x256xf32> -> vector<8x256xf32>
    %250 = arith.addf %245, %249 : vector<8x256xf32>
    %251 = vector.extract_strided_slice %214 {offsets = [56, 0], sizes = [8, 128], strides = [1, 1]} : vector<72x128xf32> to vector<8x128xf32>
    %252 = arith.truncf %251 : vector<8x128xf32> to vector<8x128xbf16>
    %253 = vector.extract_strided_slice %205 {offsets = [896, 0], sizes = [128, 256], strides = [1, 1]} : vector<1152x256xbf16> to vector<128x256xbf16>
    %cst_79 = arith.constant dense<0.000000e+00> : vector<8x256xf32>
    %254 = tpu.matmul %252, %253, %cst_79 {dimension_numbers = #tpu.dot_dimension_numbers<[1], [0], [0], [1], [0, 0, 1, 1], [], []>} : vector<8x128xbf16>, vector<128x256xbf16>, vector<8x256xf32> -> vector<8x256xf32>
    %255 = arith.addf %250, %254 : vector<8x256xf32>
    %256 = vector.extract_strided_slice %214 {offsets = [64, 0], sizes = [8, 128], strides = [1, 1]} : vector<72x128xf32> to vector<8x128xf32>
    %257 = arith.truncf %256 : vector<8x128xf32> to vector<8x128xbf16>
    %258 = vector.extract_strided_slice %205 {offsets = [1024, 0], sizes = [128, 256], strides = [1, 1]} : vector<1152x256xbf16> to vector<128x256xbf16>
    %cst_80 = arith.constant dense<0.000000e+00> : vector<8x256xf32>
    %259 = tpu.matmul %257, %258, %cst_80 {dimension_numbers = #tpu.dot_dimension_numbers<[1], [0], [0], [1], [0, 0, 1, 1], [], []>} : vector<8x128xbf16>, vector<128x256xbf16>, vector<8x256xf32> -> vector<8x256xf32>
    %260 = arith.addf %255, %259 : vector<8x256xf32>
    %c0_81 = arith.constant 0 : index
    %c0_82 = arith.constant 0 : index
    %261 = vector.load %arg12[%c0_81, %c0_82] : memref<2x256xf32, #tpu.memory_space<vmem>>, vector<2x256xf32>
    %cst_83 = arith.constant dense<0.000000e+00> : vector<256xf32>
    %262 = vector.multi_reduction <add>, %260, %cst_83 [0] : vector<8x256xf32> to vector<256xf32>
    %263 = vector.shape_cast %262 : vector<256xf32> to vector<1x256xf32>
    %264 = arith.mulf %260, %260 : vector<8x256xf32>
    %cst_84 = arith.constant dense<0.000000e+00> : vector<256xf32>
    %265 = vector.multi_reduction <add>, %264, %cst_84 [0] : vector<8x256xf32> to vector<256xf32>
    %266 = vector.shape_cast %265 : vector<256xf32> to vector<1x256xf32>
    %cst_85 = arith.constant 1.250000e-01 : f32
    %267 = vector.broadcast %cst_85 : f32 to vector<1x256xf32>
    %268 = arith.mulf %263, %267 : vector<1x256xf32>
    %cst_86 = arith.constant 1.250000e-01 : f32
    %269 = vector.broadcast %cst_86 : f32 to vector<1x256xf32>
    %270 = arith.mulf %266, %269 : vector<1x256xf32>
    %271 = arith.mulf %268, %268 : vector<1x256xf32>
    %272 = arith.subf %270, %271 : vector<1x256xf32>
    %cst_87 = arith.constant 0.000000e+00 : f32
    %273 = vector.broadcast %cst_87 : f32 to vector<1x256xf32>
    %274 = arith.maximumf %272, %273 : vector<1x256xf32>
    %275 = vector.extract_strided_slice %261 {offsets = [0, 0], sizes = [1, 256], strides = [1, 1]} : vector<2x256xf32> to vector<1x256xf32>
    %276 = vector.extract_strided_slice %261 {offsets = [1, 0], sizes = [1, 256], strides = [1, 1]} : vector<2x256xf32> to vector<1x256xf32>
    %cst_88 = arith.constant 9.99999974E-6 : f32
    %277 = vector.broadcast %cst_88 : f32 to vector<1x256xf32>
    %278 = arith.addf %274, %277 : vector<1x256xf32>
    %279 = math.rsqrt %278 : vector<1x256xf32>
    %280 = arith.mulf %275, %279 : vector<1x256xf32>
    %281 = arith.mulf %268, %280 : vector<1x256xf32>
    %282 = arith.subf %276, %281 : vector<1x256xf32>
    %283 = vector.broadcast %280 : vector<1x256xf32> to vector<8x256xf32>
    %284 = arith.mulf %260, %283 : vector<8x256xf32>
    %285 = vector.broadcast %282 : vector<1x256xf32> to vector<8x256xf32>
    %286 = arith.addf %284, %285 : vector<8x256xf32>
    %cst_89 = arith.constant 0.00999999977 : f32
    %287 = vector.broadcast %cst_89 : f32 to vector<8x256xf32>
    %288 = arith.mulf %287, %286 : vector<8x256xf32>
    %289 = arith.maximumf %286, %288 : vector<8x256xf32>
    %c0_90 = arith.constant 0 : index
    %c0_91 = arith.constant 0 : index
    %290 = vector.load %arg13[%c0_90, %c0_91] : memref<8x256xf32, #tpu.memory_space<vmem>>, vector<8x256xf32>
    tpu.vector_store %arg13[%c0_90, %c0_91], %289 {strides = array<i32>} : memref<8x256xf32, #tpu.memory_space<vmem>>, vector<8x256xf32>,
    return
  }
  func.func @transform_0(%arg0: i32) -> (i32, i32) {
    %c0_i32 = arith.constant 0 : i32
    %c0_i32_0 = arith.constant 0 : i32
    %c0_i32_1 = arith.constant 0 : i32
    return %c0_i32, %c0_i32_0 : i32, i32
  }
  func.func @transform_1(%arg0: i32) -> (i32, i32) {
    %c0_i32 = arith.constant 0 : i32
    %c0_i32_0 = arith.constant 0 : i32
    %c0_i32_1 = arith.constant 0 : i32
    return %c0_i32, %c0_i32_0 : i32, i32
  }
  func.func @transform_2(%arg0: i32) -> (i32, i32) {
    %c0_i32 = arith.constant 0 : i32
    %c0_i32_0 = arith.constant 0 : i32
    %c0_i32_1 = arith.constant 0 : i32
    return %c0_i32, %c0_i32_0 : i32, i32
  }
  func.func @transform_3(%arg0: i32) -> (i32, i32) {
    %c0_i32 = arith.constant 0 : i32
    %c0_i32_0 = arith.constant 0 : i32
    %c0_i32_1 = arith.constant 0 : i32
    return %c0_i32, %c0_i32_0 : i32, i32
  }
  func.func @transform_4(%arg0: i32) -> (i32, i32) {
    %c0_i32 = arith.constant 0 : i32
    %c0_i32_0 = arith.constant 0 : i32
    %c0_i32_1 = arith.constant 0 : i32
    return %c0_i32, %c0_i32_0 : i32, i32
  }
  func.func @transform_5(%arg0: i32) -> (i32, i32) {
    %c0_i32 = arith.constant 0 : i32
    %c0_i32_0 = arith.constant 0 : i32
    %c0_i32_1 = arith.constant 0 : i32
    return %c0_i32, %c0_i32_0 : i32, i32
  }
  func.func @transform_6(%arg0: i32) -> (i32, i32) {
    %c0_i32 = arith.constant 0 : i32
    %c0_i32_0 = arith.constant 0 : i32
    %c0_i32_1 = arith.constant 0 : i32
    return %c0_i32, %c0_i32_0 : i32, i32
  }
  func.func @transform_7(%arg0: i32) -> (i32, i32) {
    %c0_i32 = arith.constant 0 : i32
    %c0_i32_0 = arith.constant 0 : i32
    %c0_i32_1 = arith.constant 0 : i32
    return %c0_i32, %c0_i32_0 : i32, i32
  }
  func.func @transform_8(%arg0: i32) -> (i32, i32) {
    %c0_i32 = arith.constant 0 : i32
    %c0_i32_0 = arith.constant 0 : i32
    %c0_i32_1 = arith.constant 0 : i32
    return %c0_i32, %c0_i32_0 : i32, i32
  }
  func.func @transform_9(%arg0: i32) -> (i32, i32) {
    %c0_i32 = arith.constant 0 : i32
    %c0_i32_0 = arith.constant 0 : i32
    %c0_i32_1 = arith.constant 0 : i32
    return %c0_i32, %c0_i32_0 : i32, i32
  }
  func.func @transform_10(%arg0: i32) -> (i32, i32) {
    %c0_i32 = arith.constant 0 : i32
    %c0_i32_0 = arith.constant 0 : i32
    %c0_i32_1 = arith.constant 0 : i32
    return %c0_i32, %c0_i32_0 : i32, i32
  }
  func.func @transform_11(%arg0: i32) -> (i32, i32) {
    %c0_i32 = arith.constant 0 : i32
    %c0_i32_0 = arith.constant 0 : i32
    %c0_i32_1 = arith.constant 0 : i32
    return %c0_i32, %c0_i32_0 : i32, i32
  }
  func.func @transform_12(%arg0: i32) -> (i32, i32) {
    %c0_i32 = arith.constant 0 : i32
    %c0_i32_0 = arith.constant 0 : i32
    %c0_i32_1 = arith.constant 0 : i32
    return %c0_i32, %c0_i32_0 : i32, i32
  }
}

</mosaic_0001>

<bundles_post_ra>
// kernel: conv_encoder_forward.1
= control target key start
LH: loop header
LB: loop body
LE: loop exit
PB: predicated region body
PF: predicated region fallthrough
CT: control target
= control target key end

     0   :  { %vm305_vm0 = vcmask 1044480   ;;  %vm306_vm1 = vcmask 1045504   ;;  %v15043_v0 = vmov 0.0   ;;  %v10015_v2 = vmov 65535   ;;  %s15028_s4 = inlined_call_operand.vmem [shape: bf16[27,32], index: 4, kind: input, shape index: {}]   ;;  %s15029_s0 = inlined_call_operand.vmem [shape: bf16[392,27], index: 0, kind: input, shape index: {}]   ;;  %s15030_s1 = inlined_call_operand.vmem [shape: s32[882,1], index: 1, kind: input, shape index: {}]   ;;  %s15031_s2 = inlined_call_operand.vmem [shape: s32[288,1], index: 2, kind: input, shape index: {}]   ;;  %s15032_s3 = inlined_call_operand.vmem [shape: s32[72,1], index: 3, kind: input, shape index: {}]   ;;  %s15033_s8 = inlined_call_operand.vmem [shape: f32[2,32], index: 8, kind: input, shape index: {}]   ;;  %s15034_s5 = inlined_call_operand.vmem [shape: bf16[288,64], index: 5, kind: input, shape index: {}]   ;;  %s15035_s6 = inlined_call_operand.vmem [shape: bf16[576,128], index: 6, kind: input, shape index: {}]   ;;  %s15036_s9 = inlined_call_operand.vmem [shape: f32[2,64], index: 9, kind: input, shape index: {}]   ;;  %s15037_s7 = inlined_call_operand.vmem [shape: bf16[1152,256], index: 7, kind: input, shape index: {}]   ;;  %s15038_s10 = inlined_call_operand.vmem [shape: f32[2,128], index: 10, kind: input, shape index: {}]   ;;  %s15039_s11 = inlined_call_operand.vmem [shape: f32[2,256], index: 11, kind: input, shape index: {}]   ;;  %s15040_s12 = inlined_call_operand.vmem [shape: f32[8,256], index: 12, kind: output, shape index: {}]  }
   0x1   :  { %9120 = vmatprep.subr.bf16.mxu0 %v15043_v0  ;;  %v9707_v1 = vld [vmem:[%s15028_s4 + $0x8] sm:$0x3f]   ;;  %v307_v3 = vsel %vm305_vm0, 4294967295, %v10015_v2  ;;  %vm15124_vm2 = vmmov 0   ;;  %v9708_v6 = vld [vmem:[%s15028_s4] sm:$0xff]   ;;  %v15041_v7 = vmov 0  }
   0x2   :  { %v308_v4 = vsel %vm306_vm1, %v307_v3, 0  ;;  %9124 = vmatprep.mubr.msk.bf16.mxu0 %vm15124_vm2, %v15043_v0  ;;  %9705 = vset.pattern.permute.xlu0 %v15041_v7  ;;  %v9709_v8 = vld [vmem:[%s15029_s0] sm:$0xff]   ;;  %vm229_vm3 = vcmask 220160   ;;  %v1020_v10 = vld [vmem:[%s15030_s1 + $0x10] sm:$0xff]  ;;  %v1019_v11 = vld [vmem:[%s15030_s1 + $0x8] sm:$0xff]  ;;  %vm15123_vm4 = vcmask 261120  }
   0x3   :  { %v310_v5 = vand.u32 %v9707_v1, %v308_v4  ;;  %9706 = vset.pattern.permute.xlu1 %v15041_v7  ;;  %2813 = vmatprep.subr.bf16.mxu1 %v15041_v7  ;;  %v1018_v9 = vld [vmem:[%s15030_s1] sm:$0xff]  ;;  %v1021_v12 = vld [vmem:[%s15030_s1 + $0x18] sm:$0xff]  ;;  %v9710_v13 = vld [vmem:[%s15029_s0 + $0x8] sm:$0xff]   ;;  %vm2640_vm7 = vcmask 64512   ;;  %vm2809_vm13 = vcmask 1043456  }
   0x4   :  { %1196 = vperm.xlu0 %9705, %v1018_v9   ;;  %1202 = vperm.xlu1 %9706, %v1020_v10   ;;  %v1022_v14 = vld [vmem:[%s15030_s1 + $0x20] sm:$0xff]  ;;  %v1023_v15 = vld [vmem:[%s15030_s1 + $0x28] sm:$0xff]  ;;  %v1024_v16 = vld [vmem:[%s15030_s1 + $0x30] sm:$0xff] }
   0x5   :  { %9121 = vmatpush3.bf16.msra.mxu0 %v310_v5  ;;  %v1025_v17 = vld [vmem:[%s15030_s1 + $0x38] sm:$0xff]  ;;  %v9711_v18 = vld [vmem:[%s15029_s0 + $0x10] sm:$0xff]   ;;  %v1026_v19 = vld [vmem:[%s15030_s1 + $0x40] sm:$0xff] }
   0x6   :  { %9122 = vmatprep.subr.bf16.mxu0 %v15043_v0  ;;  %v1027_v20 = vld [vmem:[%s15030_s1 + $0x48] sm:$0xff]  ;;  %v1028_v21 = vld [vmem:[%s15030_s1 + $0x50] sm:$0xff]  ;;  %v1029_v22 = vld [vmem:[%s15030_s1 + $0x58] sm:$0xff] }
   0x7   :  { %v9712_v23 = vld [vmem:[%s15029_s0 + $0x18] sm:$0xff]   ;;  %v1030_v24 = vld [vmem:[%s15030_s1 + $0x60] sm:$0xff]  ;;  %v1031_v25 = vld [vmem:[%s15030_s1 + $0x68] sm:$0xff] }
   0x8   :  { %1199 = vperm.xlu0 %9705, %v1019_v11   ;;  %1205 = vperm.xlu1 %9706, %v1021_v12   ;;  %v1032_v26 = vld [vmem:[%s15030_s1 + $0x70] sm:$0xff]  ;;  %v9713_v27 = vld [vmem:[%s15029_s0 + $0x20] sm:$0xff]   ;;  %v1033_v28 = vld [vmem:[%s15030_s1 + $0x78] sm:$0xff] }
   0x9   :  { %9123 = vmatpush3.bf16.msra.mxu0 %v9708_v6  ;;  %v1034_v29 = vld [vmem:[%s15030_s1 + $0x80] sm:$0xff]  ;;  %v1035_v30 = vld [vmem:[%s15030_s1 + $0x88] sm:$0xff]  ;;  %v1036_v31 = vld [vmem:[%s15030_s1 + $0x90] sm:$0xff] }
   0xa   :  { %3293 = vmatprep.subr.bf16.mxu0 %v15041_v7  ;;  %v1037_v32 = vld [vmem:[%s15030_s1 + $0x98] sm:$0xff]  ;;  %v9714_v33 = vld [vmem:[%s15029_s0 + $0x28] sm:$0xff]   ;;  %v1038_v34 = vld [vmem:[%s15030_s1 + $0xa0] sm:$0xff] }
   0xb   :  { %v1039_v35 = vld [vmem:[%s15030_s1 + $0xa8] sm:$0xff]  ;;  %v1040_v36 = vld [vmem:[%s15030_s1 + $0xb0] sm:$0xff]  ;;  %v1041_v37 = vld [vmem:[%s15030_s1 + $0xb8] sm:$0xff] }
   0xc   :  { %9125 = vmatmul.mubr.msk.bf16.vlgmr.msra.gmra.mxu0 %vm229_vm3, %v9709_v8  ;;  %1208 = vperm.xlu0 %9705, %v1022_v14   ;;  %v9715_v38 = vld [vmem:[%s15029_s0 + $0x30] sm:$0xff]   ;;  %v1042_v39 = vld [vmem:[%s15030_s1 + $0xc0] sm:$0xff]  ;;  %v1043_v40 = vld [vmem:[%s15030_s1 + $0xc8] sm:$0xff] }
   0xd   :  { %9128 = vmatprep.mubr.msk.bf16.mxu0 %vm15124_vm2, %v15043_v0  ;;  %1211 = vperm.xlu1 %9706, %v1023_v15   ;;  %v1044_v41 = vld [vmem:[%s15030_s1 + $0xd0] sm:$0xff]  ;;  %v1045_v42 = vld [vmem:[%s15030_s1 + $0xd8] sm:$0xff]  ;;  %v1046_v44 = vld [vmem:[%s15030_s1 + $0xe0] sm:$0xff] }
   0xe   :  { %v9716_v43 = vld [vmem:[%s15029_s0 + $0x38] sm:$0xff]   ;;  %v1047_v45 = vld [vmem:[%s15030_s1 + $0xe8] sm:$0xff]  ;;  %v1048_v46 = vld [vmem:[%s15030_s1 + $0xf0] sm:$0xff] }
   0xf   :  { %v1049_v47 = vld [vmem:[%s15030_s1 + $0xf8] sm:$0xff]  ;;  %v9717_v48 = vld [vmem:[%s15029_s0 + $0x40] sm:$0xff]   ;;  %v1051_v50 = vld [vmem:[%s15030_s1 + $0x108] sm:$0xff] }
  0x10   :  { %1214 = vperm.xlu0 %9705, %v1024_v16   ;;  %v1050_v49 = vld [vmem:[%s15030_s1 + $0x100] sm:$0xff]  ;;  %v1052_v51 = vld [vmem:[%s15030_s1 + $0x110] sm:$0xff]  ;;  %v1053_v52 = vld [vmem:[%s15030_s1 + $0x118] sm:$0xff] }
  0x11   :  { %1217 = vperm.xlu1 %9706, %v1025_v17   ;;  %v9718_v53 = vld [vmem:[%s15029_s0 + $0x48] sm:$0xff]   ;;  %v1054_v54 = vld [vmem:[%s15030_s1 + $0x120] sm:$0xff]  ;;  %v1056_v56 = vld [vmem:[%s15030_s1 + $0x130] sm:$0xff] }
  0x12   :  { %v1055_v55 = vld [vmem:[%s15030_s1 + $0x128] sm:$0xff]  ;;  %v1057_v57 = vld [vmem:[%s15030_s1 + $0x138] sm:$0xff]  ;;  %v9719_v58 = vld [vmem:[%s15029_s0 + $0x50] sm:$0xff]  }
  0x13   :  { %v1058_v59 = vld [vmem:[%s15030_s1 + $0x140] sm:$0xff]  ;;  %v1059_v60 = vld [vmem:[%s15030_s1 + $0x148] sm:$0xff]  ;;  %v1060_v61 = vld [vmem:[%s15030_s1 + $0x150] sm:$0xff] }
  0x14   :  { %9129 = vmatmul.mubr.msk.bf16.gmra.mxu0 %vm229_vm3, %v9710_v13  ;;  %1220 = vperm.xlu0 %9705, %v1026_v19   ;;  %v1061_v62 = vld [vmem:[%s15030_s1 + $0x158] sm:$0xff]  ;;  %v1062_v1 = vld [vmem:[%s15030_s1 + $0x160] sm:$0xff]  ;;  %v1063_v2 = vld [vmem:[%s15030_s1 + $0x168] sm:$0xff] }
  0x15   :  { %9132 = vmatprep.mubr.msk.bf16.mxu0 %vm15124_vm2, %v15043_v0  ;;  %1223 = vperm.xlu1 %9706, %v1027_v20   ;;  %v9720_v63 = vld [vmem:[%s15029_s0 + $0x58] sm:$0xff]   ;;  %v1064_v3 = vld [vmem:[%s15030_s1 + $0x170] sm:$0xff]  ;;  %v9721_v5 = vld [vmem:[%s15029_s0 + $0x60] sm:$0xff]  }
  0x16   :  { %v1065_v4 = vld [vmem:[%s15030_s1 + $0x178] sm:$0xff]  ;;  %v1066_v6 = vld [vmem:[%s15030_s1 + $0x180] sm:$0xff]  ;;  %v1067_v8 = vld [vmem:[%s15030_s1 + $0x188] sm:$0xff] }
  0x17   :  { %v1068_v9 = vld [vmem:[%s15030_s1 + $0x190] sm:$0xff]  ;;  %v1069_v10 = vld [vmem:[%s15030_s1 + $0x198] sm:$0xff]  ;;  %v9722_v11 = vld [vmem:[%s15029_s0 + $0x68] sm:$0xff]  }
  0x18   :  { %1226 = vperm.xlu0 %9705, %v1028_v21   ;;  %v1070_v12 = vld [vmem:[%s15030_s1 + $0x1a0] sm:$0xff]  ;;  %v1071_v13 = vld [vmem:[%s15030_s1 + $0x1a8] sm:$0xff]  ;;  %v1072_v14 = vld [vmem:[%s15030_s1 + $0x1b0] sm:$0xff] }
  0x19   :  { %1229 = vperm.xlu1 %9706, %v1029_v22   ;;  %v1073_v15 = vld [vmem:[%s15030_s1 + $0x1b8] sm:$0xff]  ;;  %v9723_v16 = vld [vmem:[%s15029_s0 + $0x70] sm:$0xff]   ;;  %v1074_v17 = vld [vmem:[%s15030_s1 + $0x1c0] sm:$0xff] }
  0x1a   :  { %v1076_v19 = vld [vmem:[%s15030_s1 + $0x1d0] sm:$0xff]  ;;  %v1077_v20 = vld [vmem:[%s15030_s1 + $0x1d8] sm:$0xff]  ;;  %v1078_v22 = vld [vmem:[%s15030_s1 + $0x1e0] sm:$0xff] }
  0x1b   :  { %v9724_v21 = vld [vmem:[%s15029_s0 + $0x78] sm:$0xff]  }
  0x1c   :  { %9133 = vmatmul.mubr.msk.bf16.gmra.mxu0 %vm229_vm3, %v9711_v18  ;;  %1232 = vperm.xlu0 %9705, %v1030_v24   ;;  %v1075_v18 = vld [vmem:[%s15030_s1 + $0x1c8] sm:$0xff]  ;;  %v1080_v24 = vld [vmem:[%s15030_s1 + $0x1f0] sm:$0xff] }
  0x1d   :  { %9136 = vmatprep.mubr.msk.bf16.mxu0 %vm15124_vm2, %v15043_v0  ;;  %1235 = vperm.xlu1 %9706, %v1031_v25   ;;  %v1081_v25 = vld [vmem:[%s15030_s1 + $0x1f8] sm:$0xff] }
  0x20   :  { %1238 = vperm.xlu0 %9705, %v1032_v26   ;;  %v9725_v26 = vld [vmem:[%s15029_s0 + $0x80] sm:$0xff]  }
  0x21   :  { %1241 = vperm.xlu1 %9706, %v1033_v28   ;;  %v1083_v28 = vld [vmem:[%s15030_s1 + $0x208] sm:$0xff] }
  0x24   :  { %9137 = vmatmul.mubr.msk.bf16.gmra.mxu0 %vm229_vm3, %v9712_v23  ;;  %1244 = vperm.xlu0 %9705, %v1034_v29   ;;  %v1079_v23 = vld [vmem:[%s15030_s1 + $0x1e8] sm:$0xff]  ;;  %v1084_v29 = vld [vmem:[%s15030_s1 + $0x210] sm:$0xff] }
  0x25   :  { %9140 = vmatprep.mubr.msk.bf16.mxu0 %vm15124_vm2, %v15043_v0  ;;  %1247 = vperm.xlu1 %9706, %v1035_v30   ;;  %v1085_v30 = vld [vmem:[%s15030_s1 + $0x218] sm:$0xff] }
  0x28   :  { %1250 = vperm.xlu0 %9705, %v1036_v31   ;;  %v9726_v31 = vld [vmem:[%s15029_s0 + $0x88] sm:$0xff]  }
  0x29   :  { %1253 = vperm.xlu1 %9706, %v1037_v32   ;;  %v1086_v32 = vld [vmem:[%s15030_s1 + $0x220] sm:$0xff] }
  0x2c   :  { %9141 = vmatmul.mubr.msk.bf16.gmra.mxu0 %vm229_vm3, %v9713_v27  ;;  %1256 = vperm.xlu0 %9705, %v1038_v34   ;;  %v1082_v27 = vld [vmem:[%s15030_s1 + $0x200] sm:$0xff]  ;;  %v1088_v34 = vld [vmem:[%s15030_s1 + $0x230] sm:$0xff] }
  0x2d   :  { %9144 = vmatprep.mubr.msk.bf16.mxu0 %vm15124_vm2, %v15043_v0  ;;  %1259 = vperm.xlu1 %9706, %v1039_v35   ;;  %v1089_v35 = vld [vmem:[%s15030_s1 + $0x238] sm:$0xff] }
  0x30   :  { %1262 = vperm.xlu0 %9705, %v1040_v36   ;;  %v9727_v36 = vld [vmem:[%s15029_s0 + $0x90] sm:$0xff]  }
  0x31   :  { %1265 = vperm.xlu1 %9706, %v1041_v37  }
  0x34   :  { %9145 = vmatmul.mubr.msk.bf16.gmra.mxu0 %vm229_vm3, %v9714_v33  ;;  %1268 = vperm.xlu0 %9705, %v1042_v39   ;;  %v1087_v33 = vld [vmem:[%s15030_s1 + $0x228] sm:$0xff]  ;;  %v1090_v39 = vld [vmem:[%s15030_s1 + $0x240] sm:$0xff] }
  0x35   :  { %9148 = vmatprep.mubr.msk.bf16.mxu0 %vm15124_vm2, %v15043_v0  ;;  %1271 = vperm.xlu1 %9706, %v1043_v40   ;;  %v1091_v40 = vld [vmem:[%s15030_s1 + $0x248] sm:$0xff] }
  0x38   :  { %1274 = vperm.xlu0 %9705, %v1044_v41   ;;  %v1092_v41 = vld [vmem:[%s15030_s1 + $0x250] sm:$0xff] }
  0x39   :  { %1277 = vperm.xlu1 %9706, %v1045_v42  }
  0x3c   :  { %9149 = vmatmul.mubr.msk.bf16.gmra.mxu0 %vm229_vm3, %v9715_v38  ;;  %1280 = vperm.xlu0 %9705, %v1046_v44  }
  0x3d   :  { %9152 = vmatprep.mubr.msk.bf16.mxu0 %vm15124_vm2, %v15043_v0  ;;  %1283 = vperm.xlu1 %9706, %v1047_v45   ;;  %v9728_v45 = vld [vmem:[%s15029_s0 + $0x98] sm:$0xff]  }
  0x40   :  { %1286 = vperm.xlu0 %9705, %v1048_v46   ;;  %v1094_v46 = vld [vmem:[%s15030_s1 + $0x260] sm:$0xff] }
  0x41   :  { %1289 = vperm.xlu1 %9706, %v1049_v47   ;;  %v1095_v47 = vld [vmem:[%s15030_s1 + $0x268] sm:$0xff] }
  0x44   :  { %9153 = vmatmul.mubr.msk.bf16.gmra.mxu0 %vm229_vm3, %v9716_v43  ;;  %1292 = vperm.xlu0 %9705, %v1050_v49   ;;  %v1093_v43 = vld [vmem:[%s15030_s1 + $0x258] sm:$0xff] }
  0x45   :  { %9156 = vmatprep.mubr.msk.bf16.mxu0 %vm15124_vm2, %v15043_v0  ;;  %1295 = vperm.xlu1 %9706, %v1051_v50   ;;  %v1096_v50 = vld [vmem:[%s15030_s1 + $0x270] sm:$0xff] }
  0x48   :  { %1298 = vperm.xlu0 %9705, %v1052_v51   ;;  %v1097_v51 = vld [vmem:[%s15030_s1 + $0x278] sm:$0xff] }
  0x49   :  { %1301 = vperm.xlu1 %9706, %v1053_v52   ;;  %v9729_v52 = vld [vmem:[%s15029_s0 + $0xa0] sm:$0xff]  }
  0x4c   :  { %9157 = vmatmul.mubr.msk.bf16.gmra.mxu0 %vm229_vm3, %v9717_v48  ;;  %1304 = vperm.xlu0 %9705, %v1054_v54  }
  0x4d   :  { %9160 = vmatprep.mubr.msk.bf16.mxu0 %vm15124_vm2, %v15043_v0  ;;  %1307 = vperm.xlu1 %9706, %v1055_v55   ;;  %v1099_v55 = vld [vmem:[%s15030_s1 + $0x288] sm:$0xff] }
  0x50   :  { %1310 = vperm.xlu0 %9705, %v1056_v56  }
  0x51   :  { %1313 = vperm.xlu1 %9706, %v1057_v57   ;;  %v1100_v57 = vld [vmem:[%s15030_s1 + $0x290] sm:$0xff] }
  0x54   :  { %9161 = vmatmul.mubr.msk.bf16.gmra.mxu0 %vm229_vm3, %v9718_v53  ;;  %1316 = vperm.xlu0 %9705, %v1058_v59   ;;  %v1098_v53 = vld [vmem:[%s15030_s1 + $0x280] sm:$0xff]  ;;  %v9730_v59 = vld [vmem:[%s15029_s0 + $0xa8] sm:$0xff]  }
  0x55   :  { %9164 = vmatprep.mubr.msk.bf16.mxu0 %vm15124_vm2, %v15043_v0  ;;  %1319 = vperm.xlu1 %9706, %v1059_v60  }
  0x58   :  { %1322 = vperm.xlu0 %9705, %v1060_v61  }
  0x59   :  { %1325 = vperm.xlu1 %9706, %v1061_v62   ;;  %v1102_v62 = vld [vmem:[%s15030_s1 + $0x2a0] sm:$0xff] }
  0x5c   :  { %9165 = vmatmul.mubr.msk.bf16.gmra.mxu0 %vm229_vm3, %v9719_v58  ;;  %1328 = vperm.xlu0 %9705, %v1062_v1   ;;  %v1101_v58 = vld [vmem:[%s15030_s1 + $0x298] sm:$0xff]  ;;  %v1104_v1 = vld [vmem:[%s15030_s1 + $0x2b0] sm:$0xff] }
  0x5d   :  { %9168 = vmatprep.mubr.msk.bf16.mxu0 %vm15124_vm2, %v15043_v0  ;;  %1331 = vperm.xlu1 %9706, %v1063_v2  }
  0x60   :  { %1334 = vperm.xlu0 %9705, %v1064_v3   ;;  %v1105_v3 = vld [vmem:[%s15030_s1 + $0x2b8] sm:$0xff] }
  0x61   :  { %1337 = vperm.xlu1 %9706, %v1065_v4  }
  0x64   :  { %9169 = vmatmul.mubr.msk.bf16.gmra.mxu0 %vm229_vm3, %v9720_v63  ;;  %1340 = vperm.xlu0 %9705, %v1066_v6   ;;  %v1103_v63 = vld [vmem:[%s15030_s1 + $0x2a8] sm:$0xff]  ;;  %v1106_v6 = vld [vmem:[%s15030_s1 + $0x2c0] sm:$0xff] }
  0x65   :  { %9172 = vmatprep.mubr.msk.bf16.mxu0 %vm15124_vm2, %v15043_v0  ;;  %1343 = vperm.xlu1 %9706, %v1067_v8   ;;  %v1107_v8 = vld [vmem:[%s15030_s1 + $0x2c8] sm:$0xff] }
  0x68   :  { %1346 = vperm.xlu0 %9705, %v1068_v9  }
  0x69   :  { %1349 = vperm.xlu1 %9706, %v1069_v10  }
  0x6c   :  { %9173 = vmatmul.mubr.msk.bf16.gmra.mxu0 %vm229_vm3, %v9721_v5  ;;  %1352 = vperm.xlu0 %9705, %v1070_v12   ;;  %v9731_v5 = vld [vmem:[%s15029_s0 + $0xb0] sm:$0xff]   ;;  %v1109_v12 = vld [vmem:[%s15030_s1 + $0x2d8] sm:$0xff] }
  0x6d   :  { %9176 = vmatprep.mubr.msk.bf16.mxu0 %vm15124_vm2, %v15043_v0  ;;  %1355 = vperm.xlu1 %9706, %v1071_v13   ;;  %v9732_v13 = vld [vmem:[%s15029_s0 + $0xb8] sm:$0xff]  }
  0x70   :  { %1358 = vperm.xlu0 %9705, %v1072_v14   ;;  %v1110_v14 = vld [vmem:[%s15030_s1 + $0x2e0] sm:$0xff] }
  0x71   :  { %1361 = vperm.xlu1 %9706, %v1073_v15  }
  0x74   :  { %9177 = vmatmul.mubr.msk.bf16.gmra.mxu0 %vm229_vm3, %v9722_v11  ;;  %1364 = vperm.xlu0 %9705, %v1074_v17   ;;  %v1108_v11 = vld [vmem:[%s15030_s1 + $0x2d0] sm:$0xff] }
  0x75   :  { %9180 = vmatprep.mubr.msk.bf16.mxu0 %vm15124_vm2, %v15043_v0  ;;  %1367 = vperm.xlu1 %9706, %v1075_v18   ;;  %v1112_v18 = vld [vmem:[%s15030_s1 + $0x2f0] sm:$0xff] }
  0x78   :  { %1370 = vperm.xlu0 %9705, %v1076_v19   ;;  %v1113_v19 = vld [vmem:[%s15030_s1 + $0x2f8] sm:$0xff] }
  0x79   :  { %1373 = vperm.xlu1 %9706, %v1077_v20   ;;  %v9733_v20 = vld [vmem:[%s15029_s0 + $0xc0] ss:$0 sps:$4 sm:$0xff]  }
  0x7c   :  { %9181 = vmatmul.mubr.msk.bf16.gmra.mxu0 %vm229_vm3, %v9723_v16  ;;  %1376 = vperm.xlu0 %9705, %v1078_v22   ;;  %v1111_v16 = vld [vmem:[%s15030_s1 + $0x2e8] sm:$0xff] }
  0x7d   :  { %9184 = vmatprep.mubr.msk.bf16.mxu0 %vm15124_vm2, %v15043_v0  ;;  %1379 = vperm.xlu1 %9706, %v1079_v23   ;;  %v1114_v23 = vld [vmem:[%s15030_s1 + $0x300] sm:$0xff] }
  0x7f   :  { %v10428_v37 = vpop.permute.xlu0 %1196  ;;  %v10430_v38 = vpop.permute.xlu1 %1202 }
  0x80   :  { %1382 = vperm.xlu0 %9705, %v1080_v24   ;;  %v1115_v24 = vld [vmem:[%s15030_s1 + $0x308] sm:$0xff] }
  0x81   :  { %1385 = vperm.xlu1 %9706, %v1081_v25  }
  0x83   :  { %v10444_v42 = vpop.permute.xlu0 %1199  ;;  %v10449_v44 = vpop.permute.xlu1 %1205 }
  0x84   :  { %9185 = vmatmul.mubr.msk.bf16.gmra.mxu0 %vm229_vm3, %v9724_v21  ;;  %1388 = vperm.xlu0 %9705, %v1082_v27   ;;  %15134 = vst [vmem:[#allocation2_spill] sm:$0xff] %v10449_v44 }
  0x85   :  { %9188 = vmatprep.mubr.msk.bf16.mxu0 %vm15124_vm2, %v15043_v0  ;;  %1391 = vperm.xlu1 %9706, %v1083_v28  }
  0x87   :  { %v10461_v48 = vpop.permute.xlu0 %1208 }
  0x88   :  { %1394 = vperm.xlu0 %9705, %v1084_v29   ;;  %15135 = vst [vmem:[#allocation3_spill] sm:$0xff] %v10461_v48  ;;  %v10465_v49 = vpop.permute.xlu1 %1211  ;;  %v1117_v29 = vld [vmem:[%s15030_s1 + $0x318] sm:$0xff] }
  0x89   :  { %1397 = vperm.xlu1 %9706, %v1085_v30   ;;  %15136 = vst [vmem:[#allocation4_spill] sm:$0xff] %v10465_v49 }
  0x8b   :  { %v10479_v54 = vpop.permute.xlu0 %1214 }
  0x8c   :  { %9189 = vmatmul.mubr.msk.bf16.gmra.mxu0 %vm229_vm3, %v9725_v26  ;;  %1400 = vperm.xlu0 %9705, %v1086_v32   ;;  %15137 = vst [vmem:[#allocation5_spill] sm:$0xff] %v10479_v54  ;;  %v10484_v56 = vpop.permute.xlu1 %1217  ;;  %v1116_v26 = vld [vmem:[%s15030_s1 + $0x310] sm:$0xff]  ;;  %v1118_v32 = vld [vmem:[%s15030_s1 + $0x320] sm:$0xff] }
  0x8d   :  { %9192 = vmatprep.mubr.msk.bf16.mxu0 %vm15124_vm2, %v15043_v0  ;;  %1403 = vperm.xlu1 %9706, %v1087_v33   ;;  %15138 = vst [vmem:[#allocation6_spill] sm:$0xff] %v10484_v56 }
  0x8f   :  { %v10498_v60 = vpop.permute.xlu0 %1220 }
  0x90   :  { %1406 = vperm.xlu0 %9705, %v1088_v34   ;;  %15139 = vst [vmem:[#allocation7_spill] sm:$0xff] %v10498_v60  ;;  %v10500_v61 = vpop.permute.xlu1 %1223  ;;  %v1119_v34 = vld [vmem:[%s15030_s1 + $0x328] sm:$0xff] }
  0x91   :  { %1409 = vperm.xlu1 %9706, %v1089_v35   ;;  %15140 = vst [vmem:[#allocation8_spill] sm:$0xff] %v10500_v61 }
  0x93   :  { %v10514_v2 = vpop.permute.xlu0 %1226 }
  0x94   :  { %9193 = vmatmul.mubr.msk.bf16.gmra.mxu0 %vm229_vm3, %v9726_v31  ;;  %1412 = vperm.xlu0 %9705, %v1090_v39   ;;  %15141 = vst [vmem:[#allocation9_spill] sm:$0xff] %v10514_v2  ;;  %v10519_v4 = vpop.permute.xlu1 %1229 }
  0x95   :  { %9196 = vmatprep.mubr.msk.bf16.mxu0 %vm15124_vm2, %v15043_v0  ;;  %1415 = vperm.xlu1 %9706, %v1091_v40   ;;  %15142 = vst [vmem:[#allocation10_spill] sm:$0xff] %v10519_v4  ;;  %v1120_v40 = vld [vmem:[%s15030_s1 + $0x330] sm:$0xff] }
  0x97   :  { %v10531_v9 = vpop.permute.xlu0 %1232 }
  0x98   :  { %1418 = vperm.xlu0 %9705, %v1092_v41   ;;  %15143 = vst [vmem:[#allocation11_spill] sm:$0xff] %v10531_v9  ;;  %v10535_v10 = vpop.permute.xlu1 %1235 }
  0x99   :  { %1421 = vperm.xlu1 %9706, %v1093_v43   ;;  %15144 = vst [vmem:[#allocation12_spill] sm:$0xff] %v10535_v10  ;;  %v1121_v43 = vld [vmem:[%s15030_s1 + $0x338] sm:$0xff] }
  0x9b   :  { %v10549_v15 = vpop.permute.xlu0 %1238 }
  0x9c   :  { %9197 = vmatmul.mubr.msk.bf16.gmra.mxu0 %vm229_vm3, %v9727_v36  ;;  %1424 = vperm.xlu0 %9705, %v1094_v46   ;;  %15145 = vst [vmem:[#allocation13_spill] sm:$0xff] %v10549_v15  ;;  %v10554_v17 = vpop.permute.xlu1 %1241  ;;  %v1122_v46 = vld [vmem:[%s15030_s1 + $0x340] sm:$0xff] }
  0x9d   :  { %9200 = vmatprep.mubr.msk.bf16.mxu0 %vm15124_vm2, %v15043_v0  ;;  %1427 = vperm.xlu1 %9706, %v1095_v47   ;;  %15146 = vst [vmem:[#allocation14_spill] sm:$0xff] %v10554_v17 }
  0x9f   :  { %v10568_v21 = vpop.permute.xlu0 %1244 }
  0xa0   :  { %1430 = vperm.xlu0 %9705, %v1096_v50   ;;  %15147 = vst [vmem:[#allocation15_spill] sm:$0xff] %v10568_v21  ;;  %v10570_v22 = vpop.permute.xlu1 %1247 }
  0xa1   :  { %1433 = vperm.xlu1 %9706, %v1097_v51   ;;  %15148 = vst [vmem:[#allocation16_spill] sm:$0xff] %v10570_v22  ;;  %v1123_v51 = vld [vmem:[%s15030_s1 + $0x348] sm:$0xff] }
  0xa3   :  { %v10584_v28 = vpop.permute.xlu0 %1250 }
  0xa4   :  { %9201 = vmatmul.mubr.msk.bf16.gmra.mxu0 %vm229_vm3, %v9728_v45  ;;  %1436 = vperm.xlu0 %9705, %v1098_v53   ;;  %15149 = vst [vmem:[#allocation17_spill] sm:$0xff] %v10584_v28  ;;  %v10589_v30 = vpop.permute.xlu1 %1253 }
  0xa5   :  { %9204 = vmatprep.mubr.msk.bf16.mxu0 %vm15124_vm2, %v15043_v0  ;;  %1439 = vperm.xlu1 %9706, %v1099_v55   ;;  %15150 = vst [vmem:[#allocation18_spill] sm:$0xff] %v10589_v30  ;;  %v1124_v55 = vld [vmem:[%s15030_s1 + $0x350] sm:$0xff] }
  0xa7   :  { %v10601_v36 = vpop.permute.xlu0 %1256 }
  0xa8   :  { %1442 = vperm.xlu0 %9705, %v1100_v57   ;;  %15151 = vst [vmem:[#allocation19_spill] sm:$0xff] %v10601_v36  ;;  %v10603_v39 = vpop.permute.xlu1 %1259 }
  0xa9   :  { %1445 = vperm.xlu1 %9706, %v1101_v58   ;;  %15152 = vst [vmem:[#allocation20_spill] sm:$0xff] %v10603_v39  ;;  %v1125_v58 = vld [vmem:[%s15030_s1 + $0x358] sm:$0xff] }
  0xab   :  { %v10616_v50 = vpop.permute.xlu0 %1262 }
  0xac   :  { %9205 = vmatmul.mubr.msk.bf16.gmra.mxu0 %vm229_vm3, %v9729_v52  ;;  %1448 = vperm.xlu0 %9705, %v1102_v62   ;;  %15153 = vst [vmem:[#allocation21_spill] sm:$0xff] %v10616_v50  ;;  %v10621_v52 = vpop.permute.xlu1 %1265  ;;  %v6657_v50 = vld [vmem:[%s15032_s3 + $0x8] sm:$0xff] }
  0xad   :  { %9208 = vmatprep.mubr.msk.bf16.mxu0 %vm15124_vm2, %v15043_v0  ;;  %1451 = vperm.xlu1 %9706, %v1103_v63   ;;  %15154 = vst [vmem:[#allocation22_spill] sm:$0xff] %v10621_v52 }
  0xaf   :  { %v10633_v62 = vpop.permute.xlu0 %1268 }
  0xb0   :  { %1454 = vperm.xlu0 %9705, %v1104_v1   ;;  %15155 = vst [vmem:[#allocation23_spill] sm:$0xff] %v10633_v62  ;;  %v10635_v63 = vpop.permute.xlu1 %1271  ;;  %v1126_v1 = vld [vmem:[%s15030_s1 + $0x360] sm:$0xff] }
  0xb1   :  { %1457 = vperm.xlu1 %9706, %v1105_v3   ;;  %15156 = vst [vmem:[#allocation24_spill] sm:$0xff] %v10635_v63 }
  0xb4   :  { %9209 = vmatmul.mubr.msk.bf16.gmra.mxu0 %vm229_vm3, %v9730_v59  ;;  %1460 = vperm.xlu0 %9705, %v1106_v6  }
  0xb5   :  { %9212 = vmatprep.mubr.msk.bf16.mxu0 %vm15124_vm2, %v15043_v0  ;;  %1463 = vperm.xlu1 %9706, %v1107_v8   ;;  %v1128_v8 = vld [vmem:[%s15030_s1 + $0x370] sm:$0x3] }
  0xb8   :  { %1466 = vperm.xlu0 %9705, %v1108_v11  }
  0xb9   :  { %1469 = vperm.xlu1 %9706, %v1109_v12   ;;  %v10648_v12 = vpop.permute.xlu0 %1274 }
  0xba   :  { %15157 = vst [vmem:[#allocation25_spill] sm:$0xff] %v10648_v12 }
  0xbc   :  { %9213 = vmatmul.mubr.msk.bf16.gmra.mxu0 %vm229_vm3, %v9731_v5  ;;  %1472 = vperm.xlu0 %9705, %v1110_v14   ;;  %v1127_v5 = vld [vmem:[%s15030_s1 + $0x368] sm:$0xff]  ;;  %v10653_v14 = vpop.permute.xlu1 %1277 }
  0xbd   :  { %9216 = vmatprep.mubr.msk.bf16.mxu0 %vm15124_vm2, %v15043_v0  ;;  %1475 = vperm.xlu1 %9706, %v1111_v16   ;;  %15158 = vst [vmem:[#allocation26_spill] sm:$0xff] %v10653_v14 }
  0xc0   :  { %1478 = vperm.xlu0 %9705, %v1112_v18   ;;  %v5291_v18 = vld [vmem:[%s15031_s2 + $0x8] sm:$0xff] }
  0xc1   :  { %1481 = vperm.xlu1 %9706, %v1113_v19  }
  0xc4   :  { %9217 = vmatmul.mubr.msk.bf16.gmra.mxu0 %vm229_vm3, %v9732_v13  ;;  %1484 = vperm.xlu0 %9705, %v1114_v23   ;;  %v5290_v13 = vld [vmem:[%s15031_s2] sm:$0xff] }
  0xc5   :  { %9220 = vmatprep.mubr.msk.bf16.mxu0 %vm15124_vm2, %v15043_v0  ;;  %1487 = vperm.xlu1 %9706, %v1115_v24   ;;  %v10665_v24 = vpop.permute.xlu0 %1280 }
  0xc6   :  { %15159 = vst [vmem:[#allocation27_spill] sm:$0xff] %v10665_v24 }
  0xc8   :  { %1490 = vperm.xlu0 %9705, %v1116_v26   ;;  %v10667_v26 = vpop.permute.xlu1 %1283 }
  0xc9   :  { %1493 = vperm.xlu1 %9706, %v1117_v29   ;;  %15160 = vst [vmem:[#allocation28_spill] sm:$0xff] %v10667_v26 }
  0xcc   :  { %v10578_v25 = vpop.f32.mrf.mxu0  ;;  %9221 = vmatmul.mubr.msk.bf16.gmra.mxu0 %vm229_vm3, %v9733_v20  ;;  %1496 = vperm.xlu0 %9705, %v1118_v32   ;;  %v5292_v20 = vld [vmem:[%s15031_s2 + $0x10] sm:$0xff]  ;;  %v5294_v32 = vld [vmem:[%s15031_s2 + $0x20] sm:$0xff] }
  0xcd   :  { %1499 = vperm.xlu1 %9706, %v1119_v34   ;;  %v5295_v34 = vld [vmem:[%s15031_s2 + $0x28] sm:$0xff]  ;;  %v546_v26 = vsel %vm15123_vm4, %v10578_v25, 0.0 }
  0xce   :  { %v9126_v27 = vpop.f32.mrf.mxu0 }
  0xcf   :  { %v5293_v27 = vld [vmem:[%s15031_s2 + $0x18] sm:$0xff] }
  0xd0   :  { %v10591_v31 = vpop.f32.mrf.mxu0  ;;  %1502 = vperm.xlu0 %9705, %v1120_v40  }
  0xd1   :  { %1505 = vperm.xlu1 %9706, %v1121_v43   ;;  %v5296_v43 = vld [vmem:[%s15031_s2 + $0x30] sm:$0xff] }
  0xd2   :  { %v9127_v33 = vpop.f32.mrf.mxu0 }
  0xd4   :  { %v10599_v35 = vpop.f32.mrf.mxu0  ;;  %1508 = vperm.xlu0 %9705, %v1122_v46   ;;  %v10685_v46 = vpop.permute.xlu1 %1289 }
  0xd5   :  { %1511 = vperm.xlu1 %9706, %v1123_v51   ;;  %15162 = vst [vmem:[#allocation30_spill] sm:$0xff] %v10685_v46  ;;  %v5297_v51 = vld [vmem:[%s15031_s2 + $0x38] sm:$0xff]  ;;  %v549_v14 = vsel %vm15123_vm4, %v10599_v35, 0.0 }
  0xd6   :  { %v9130_v41 = vpop.f32.mrf.mxu0 }
  0xd7   :  { %v10680_v41 = vpop.permute.xlu0 %1286 }
  0xd8   :  { %v10611_v45 = vpop.f32.mrf.mxu0  ;;  %1514 = vperm.xlu0 %9705, %v1124_v55   ;;  %15161 = vst [vmem:[#allocation29_spill] sm:$0xff] %v10680_v41 }
  0xd9   :  { %1517 = vperm.xlu1 %9706, %v1125_v58   ;;  %v551_v52 = vsel %vm15123_vm4, %v10611_v45, 0.0 }
  0xda   :  { %v9131_v47 = vpop.f32.mrf.mxu0 }
  0xdc   :  { %v10623_v53 = vpop.f32.mrf.mxu0  ;;  %1520 = vperm.xlu0 %9705, %v1126_v1   ;;  %v10697_v1 = vpop.permute.xlu0 %1292 }
  0xdd   :  { %1523 = vperm.xlu1 %9706, %v1127_v5   ;;  %15163 = vst [vmem:[#allocation31_spill] sm:$0xff] %v10697_v1  ;;  %v5299_v5 = vld [vmem:[%s15031_s2 + $0x48] sm:$0xff] }
  0xde   :  { %v9134_v57 = vpop.f32.mrf.mxu0 }
  0xdf   :  { %v5298_v57 = vld [vmem:[%s15031_s2 + $0x40] sm:$0xff] }
  0xe0   :  { %v10631_v59 = vpop.f32.mrf.mxu0  ;;  %1526 = vperm.xlu0 %9705, %v1128_v8  }
  0xe1   :  { %5406 = vperm.xlu1 %9706, %v5290_v13   ;;  %v654_v39 = vmul.f32 %v10631_v59, %v10631_v59 }
  0xe2   :  { %v9135_v3 = vpop.f32.mrf.mxu0 }
  0xe3   :  { %v10699_v3 = vpop.permute.xlu1 %1295 }
  0xe4   :  { %v10643_v6 = vpop.f32.mrf.mxu0  ;;  %5409 = vperm.xlu0 %9705, %v5291_v18   ;;  %15164 = vst [vmem:[#allocation32_spill] sm:$0xff] %v10699_v3  ;;  %v5301_v18 = vld [vmem:[%s15031_s2 + $0x58] sm:$0xff] }
  0xe5   :  { %5412 = vperm.xlu1 %9706, %v5292_v20   ;;  %v10712_v20 = vpop.permute.xlu0 %1298 }
  0xe6   :  { %v9138_v11 = vpop.f32.mrf.mxu0  ;;  %15165 = vst [vmem:[#allocation33_spill] sm:$0xff] %v10712_v20 }
  0xe7   :  { %v5300_v11 = vld [vmem:[%s15031_s2 + $0x50] sm:$0xff] }
  0xe8   :  { %v10655_v16 = vpop.f32.mrf.mxu0  ;;  %5415 = vperm.xlu0 %9705, %v5293_v27   ;;  %v5302_v27 = vld [vmem:[%s15031_s2 + $0x60] sm:$0xff] }
  0xe9   :  { %5418 = vperm.xlu1 %9706, %v5294_v32  }
  0xea   :  { %v9139_v19 = vpop.f32.mrf.mxu0 }
  0xec   :  { %v10663_v23 = vpop.f32.mrf.mxu0  ;;  %5421 = vperm.xlu0 %9705, %v5295_v34   ;;  %v5303_v34 = vld [vmem:[%s15031_s2 + $0x68] sm:$0xff] }
  0xed   :  { %5424 = vperm.xlu1 %9706, %v5296_v43   ;;  %v5304_v43 = vld [vmem:[%s15031_s2 + $0x70] sm:$0xff] }
  0xee   :  { %v9142_v29 = vpop.f32.mrf.mxu0 }
  0xef   :  { %v10717_v29 = vpop.permute.xlu1 %1301 }
  0xf0   :  { %v10675_v33 = vpop.f32.mrf.mxu0  ;;  %5427 = vperm.xlu0 %9705, %v5297_v51   ;;  %15166 = vst [vmem:[#allocation34_spill] sm:$0xff] %v10717_v29 }
  0xf1   :  { %5430 = vperm.xlu1 %9706, %v5298_v57  }
  0xf2   :  { %v9143_v40 = vpop.f32.mrf.mxu0 }
  0xf3   :  { %v10731_v57 = vpop.permute.xlu1 %1307 }
  0xf4   :  { %v10687_v47 = vpop.f32.mrf.mxu0  ;;  %5433 = vperm.xlu0 %9705, %v5299_v5   ;;  %15168 = vst [vmem:[#allocation36_spill] sm:$0xff] %v10731_v57  ;;  %v5305_v5 = vld [vmem:[%s15031_s2 + $0x78] sm:$0xff] }
  0xf5   :  { %5436 = vperm.xlu1 %9706, %v5300_v11   ;;  %v5306_v11 = vld [vmem:[%s15031_s2 + $0x80] sm:$0xff] }
  0xf6   :  { %v9146_v55 = vpop.f32.mrf.mxu0 }
  0xf7   :  { %v10729_v55 = vpop.permute.xlu0 %1304 }
  0xf8   :  { %v10695_v58 = vpop.f32.mrf.mxu0  ;;  %5439 = vperm.xlu0 %9705, %v5301_v18   ;;  %15167 = vst [vmem:[#allocation35_spill] sm:$0xff] %v10729_v55 }
  0xf9   :  { %5442 = vperm.xlu1 %9706, %v5302_v27  }
  0xfa   :  { %v9147_v8 = vpop.f32.mrf.mxu0 }
  0xfc   :  { %v10707_v13 = vpop.f32.mrf.mxu0  ;;  %5445 = vperm.xlu0 %9705, %v5303_v34   ;;  %v10744_v34 = vpop.permute.xlu0 %1310 }
  0xfd   :  { %5448 = vperm.xlu1 %9706, %v5304_v43   ;;  %15169 = vst [vmem:[#allocation37_spill] sm:$0xff] %v10744_v34  ;;  %v10749_v43 = vpop.permute.xlu1 %1313 }
  0xfe   :  { %v9150_v19 = vpop.f32.mrf.mxu0  ;;  %15170 = vst [vmem:[#allocation38_spill] sm:$0xff] %v10749_v43 }
  0xff   :  { %v5307_v19 = vld [vmem:[%s15031_s2 + $0x88] sm:$0xff] }
 0x100   :  { %v10719_v32 = vpop.f32.mrf.mxu0  ;;  %5451 = vperm.xlu0 %9705, %v5305_v5   ;;  %v5309_v5 = vld [vmem:[%s15031_s2 + $0x98] sm:$0xff]  ;;  %v10761_v0 = vpop.permute.xlu0 %1316 }
 0x101   :  { %5454 = vperm.xlu1 %9706, %v5306_v11   ;;  %15173 = vst [vmem:[#allocation41_spill] sm:$0xff] %v10761_v0  ;;  %v10763_v34 = vpop.permute.xlu1 %1319 }
 0x102   :  { %v9151_v40 = vpop.f32.mrf.mxu0  ;;  %15174 = vst [vmem:[#allocation42_spill] sm:$0xff] %v10763_v34 }
 0x103   :  { %v5308_v40 = vld [vmem:[%s15031_s2 + $0x90] sm:$0xff] }
 0x104   :  { %v10727_v51 = vpop.f32.mrf.mxu0  ;;  %5457 = vperm.xlu0 %9705, %v5307_v19   ;;  %v5311_v19 = vld [vmem:[%s15031_s2 + $0xa8] sm:$0xff]  ;;  %v10776_v34 = vpop.permute.xlu0 %1322 }
 0x105   :  { %5460 = vperm.xlu1 %9706, %v5308_v40   ;;  %15176 = vst [vmem:[#allocation44_spill] sm:$0xff] %v10776_v34 }
 0x106   :  { %v9154_v8 = vpop.f32.mrf.mxu0 }
 0x108   :  { %v10739_v18 = vpop.f32.mrf.mxu0  ;;  %5463 = vperm.xlu0 %9705, %v5309_v5   ;;  %v5313_v5 = vld [vmem:[%s15031_s2 + $0xb8] sm:$0xff]  ;;  %v10793_v55 = vpop.permute.xlu0 %1328 }
 0x109   :  { %15180 = vst [vmem:[#allocation48_spill] sm:$0xff] %v10793_v55 }
 0x10a   :  { %v9155_v27 = vpop.f32.mrf.mxu0 }
 0x10b   :  { %v5310_v27 = vld [vmem:[%s15031_s2 + $0xa0] sm:$0xff] }
 0x10c   :  { %v10751_v8 = vpop.f32.mrf.mxu0  ;;  %5466 = vperm.xlu1 %9706, %v5310_v27   ;;  %5469 = vperm.xlu0 %9705, %v5311_v19   ;;  %v5314_v27 = vld [vmem:[%s15031_s2 + $0xc0] sm:$0xff]  ;;  %v5315_v19 = vld [vmem:[%s15031_s2 + $0xc8] sm:$0xff] }
 0x10d   :  { %15171 = vst [vmem:[#allocation39_spill] sm:$0xff] %v10751_v8 }
 0x10e   :  { %v9158_v11 = vpop.f32.mrf.mxu0 }
 0x10f   :  { %v5312_v11 = vld [vmem:[%s15031_s2 + $0xb0] sm:$0xff] }
 0x110   :  { %v10759_v7 = vpop.f32.mrf.mxu0  ;;  %5472 = vperm.xlu1 %9706, %v5312_v11   ;;  %5475 = vperm.xlu0 %9705, %v5313_v5   ;;  %v5317_v5 = vld [vmem:[%s15031_s2 + $0xd8] sm:$0xff] }
 0x111   :  { %15172 = vst [vmem:[#allocation40_spill] sm:$0xff] %v10759_v7  ;;  %v579_v10 = vsel %vm15123_vm4, %v10759_v7, 0.0 }
 0x112   :  { %v9159_v40 = vpop.f32.mrf.mxu0 }
 0x113   :  { %v10781_v40 = vpop.permute.xlu1 %1325 }
 0x114   :  { %v10771_v43 = vpop.f32.mrf.mxu0  ;;  %15177 = vst [vmem:[#allocation45_spill] sm:$0xff] %v10781_v40  ;;  %5478 = vperm.xlu1 %9706, %v5314_v27   ;;  %5481 = vperm.xlu0 %9705, %v5315_v19   ;;  %v5319_v19 = vld [vmem:[%s15031_s2 + $0xe8] sm:$0xff] }
 0x115   :  { %15175 = vst [vmem:[#allocation43_spill] sm:$0xff] %v10771_v43 }
 0x116   :  { %v9162_v0 = vpop.f32.mrf.mxu0 }
 0x117   :  { %v5316_v0 = vld [vmem:[%s15031_s2 + $0xd0] sm:$0xff]  ;;  %v10795_v29 = vpop.permute.xlu1 %1331 }
 0x118   :  { %v10783_v57 = vpop.f32.mrf.mxu0  ;;  %15181 = vst [vmem:[#allocation49_spill] sm:$0xff] %v10795_v29  ;;  %5484 = vperm.xlu1 %9706, %v5316_v0   ;;  %5487 = vperm.xlu0 %9705, %v5317_v5   ;;  %v10808_v29 = vpop.permute.xlu0 %1334  ;;  %v5320_v0 = vld [vmem:[%s15031_s2 + $0xf0] sm:$0xff]  ;;  %v5321_v5 = vld [vmem:[%s15031_s2 + $0xf8] sm:$0xff] }
 0x119   :  { %15178 = vst [vmem:[#allocation46_spill] sm:$0xff] %v10783_v57  ;;  %15183 = vst [vmem:[#allocation51_spill] sm:$0xff] %v10808_v29  ;;  %v583_v9 = vsel %vm15123_vm4, %v10783_v57, 0.0 }
 0x11a   :  { %v9163_v11 = vpop.f32.mrf.mxu0 }
 0x11b   :  { %v5318_v11 = vld [vmem:[%s15031_s2 + $0xe0] sm:$0xff] }
 0x11c   :  { %v10791_v34 = vpop.f32.mrf.mxu0  ;;  %5490 = vperm.xlu1 %9706, %v5318_v11   ;;  %5493 = vperm.xlu0 %9705, %v5319_v19   ;;  %v10825_v3 = vpop.permute.xlu0 %1340  ;;  %v5323_v19 = vld [vmem:[%s15031_s2 + $0x108] sm:$0xff] }
 0x11d   :  { %15179 = vst [vmem:[#allocation47_spill] sm:$0xff] %v10791_v34  ;;  %15187 = vst [vmem:[#allocation55_spill] sm:$0xff] %v10825_v3 }
 0x11e   :  { %v9166_v27 = vpop.f32.mrf.mxu0 }
 0x11f   :  { %v10813_v27 = vpop.permute.xlu1 %1337 }
 0x120   :  { %v10803_v40 = vpop.f32.mrf.mxu0  ;;  %15184 = vst [vmem:[#allocation52_spill] sm:$0xff] %v10813_v27  ;;  %5496 = vperm.xlu1 %9706, %v5320_v0   ;;  %5499 = vperm.xlu0 %9705, %v5321_v5   ;;  %v650_v27 = vmul.f32 %v10591_v31, %v10591_v31  ;;  %v649_v5 = vmul.f32 %v10578_v25, %v10578_v25  ;;  %v10848_v3 = vpop.permute.xlu0 %1346 }
 0x121   :  { %15182 = vst [vmem:[#allocation50_spill] sm:$0xff] %v10803_v40  ;;  %15190 = vst [vmem:[#allocation58_spill] sm:$0xff] %v10848_v3  ;;  %v587_v4 = vsel %vm15123_vm4, %v10803_v40, 0.0 }
 0x122   :  { %v9167_v55 = vpop.f32.mrf.mxu0  ;;  %v699_v24 = vsel %vm15123_vm4, %v650_v27, 0.0  ;;  %v653_v27 = vmul.f32 %v10623_v53, %v10623_v53 }
 0x123   :  { %v5322_v55 = vld [vmem:[%s15031_s2 + $0x100] sm:$0xff]  ;;  %v10827_v1 = vpop.permute.xlu1 %1343 }
 0x124   :  { %v10815_v20 = vpop.f32.mrf.mxu0  ;;  %15188 = vst [vmem:[#allocation56_spill] sm:$0xff] %v10827_v1  ;;  %5502 = vperm.xlu1 %9706, %v5322_v55   ;;  %5505 = vperm.xlu0 %9705, %v5323_v19   ;;  %v547_v55 = vsel %vm15123_vm4, %v10591_v31, 0.0  ;;  %v5325_v1 = vld [vmem:[%s15031_s2 + $0x118] sm:$0xff]  ;;  %v6656_v19 = vld [vmem:[%s15032_s3] sm:$0xff]  ;;  %v10881_v30 = vpop.permute.xlu0 %1352 }
 0x125   :  { %15185 = vst [vmem:[#allocation53_spill] sm:$0xff] %v10815_v20  ;;  %v548_v63 = vadd.f32 %v547_v55, %v546_v26  ;;  %15193 = vst [vmem:[#allocation61_spill] sm:$0xff] %v10881_v30 }
 0x126   :  { %v9170_v11 = vpop.f32.mrf.mxu0 }
 0x127   :  { %v5324_v11 = vld [vmem:[%s15031_s2 + $0x110] sm:$0xff]  ;;  %v10860_v12 = vpop.permute.xlu1 %1349  ;;  %v550_v26 = vadd.f32 %v549_v14, %v548_v63  ;;  %v705_v63 = vsel %vm15123_vm4, %v653_v27, 0.0  ;;  %v555_v14 = vsel %vm15123_vm4, %v10631_v59, 0.0  ;;  %v707_v27 = vsel %vm15123_vm4, %v654_v39, 0.0  ;;  %v6661_v39 = vld [vmem:[%s15032_s3 + $0x28] sm:$0xff] }
 0x128   :  { %v10823_v29 = vpop.f32.mrf.mxu0  ;;  %5508 = vperm.xlu1 %9706, %v5324_v11   ;;  %v652_v11 = vmul.f32 %v10611_v45, %v10611_v45  ;;  %15191 = vst [vmem:[#allocation59_spill] sm:$0xff] %v10860_v12  ;;  %5511 = vperm.xlu0 %9705, %v5325_v1   ;;  %v6658_v1 = vld [vmem:[%s15032_s3 + $0x10] sm:$0xff] }
 0x129   :  { %15186 = vst [vmem:[#allocation54_spill] sm:$0xff] %v10823_v29  ;;  %v552_v36 = vadd.f32 %v551_v52, %v550_v26  ;;  %v6659_v52 = vld [vmem:[%s15032_s3 + $0x18] sm:$0xff]  ;;  %v557_v26 = vsel %vm15123_vm4, %v10643_v6, 0.0  ;;  %v591_v2 = vsel %vm15123_vm4, %v10823_v29, 0.0 }
 0x12a   :  { %v9171_v0 = vpop.f32.mrf.mxu0 }
 0x12b   :  { %v651_v0 = vmul.f32 %v10599_v35, %v10599_v35 }
 0x12c   :  { %v10837_v46 = vpop.f32.mrf.mxu0  ;;  %6812 = vperm.xlu1 %9706, %v6656_v19   ;;  %6815 = vperm.xlu0 %9705, %v6657_v50   ;;  %v6660_v50 = vld [vmem:[%s15032_s3 + $0x20] sm:$0xff] }
 0x12d   :  { %15189 = vst [vmem:[#allocation57_spill] sm:$0xff] %v10837_v46  ;;  %v701_v62 = vsel %vm15123_vm4, %v651_v0, 0.0  ;;  %v553_v0 = vsel %vm15123_vm4, %v10623_v53, 0.0 }
 0x12e   :  { %v9174_v41 = vpop.f32.mrf.mxu0 }
 0x12f   :  { %v698_v41 = vsel %vm15123_vm4, %v649_v5, 0.0  ;;  %v703_v5 = vsel %vm15123_vm4, %v652_v11, 0.0  ;;  %v10890_v11 = vpop.permute.xlu1 %1355 }
 0x130   :  { %v10862_v3 = vpop.f32.mrf.mxu0  ;;  %v700_v12 = vadd.f32 %v699_v24, %v698_v41  ;;  %v655_v24 = vmul.f32 %v10643_v6, %v10643_v6  ;;  %15195 = vst [vmem:[#allocation63_spill] sm:$0xff] %v10890_v11  ;;  %6818 = vperm.xlu1 %9706, %v6658_v1   ;;  %6821 = vperm.xlu0 %9705, %v6659_v52  }
 0x131   :  { %15192 = vst [vmem:[#allocation60_spill] sm:$0xff] %v10862_v3  ;;  %v595_v61 = vsel %vm15123_vm4, %v10862_v3, 0.0 }
 0x132   :  { %v9175_v55 = vpop.f32.mrf.mxu0  ;;  %v702_v19 = vadd.f32 %v701_v62, %v700_v12  ;;  %v554_v12 = vadd.f32 %v553_v0, %v552_v36  ;;  %v709_v36 = vsel %vm15123_vm4, %v655_v24, 0.0  ;;  %v657_v0 = vmul.f32 %v10663_v23, %v10663_v23  ;;  %v6662_v24 = vld [vmem:[%s15032_s3 + $0x30] sm:$0xff] }
 0x133   :  { %v656_v55 = vmul.f32 %v10655_v16, %v10655_v16 }
 0x134   :  { %v10883_v28 = vpop.f32.mrf.mxu0  ;;  %v704_v62 = vadd.f32 %v703_v5, %v702_v19  ;;  %v556_v11 = vadd.f32 %v555_v14, %v554_v12  ;;  %v559_v5 = vsel %vm15123_vm4, %v10655_v16, 0.0  ;;  %6824 = vperm.xlu1 %9706, %v6660_v50   ;;  %v658_v12 = vmul.f32 %v10675_v33, %v10675_v33  ;;  %v10923_v50 = vpop.permute.xlu1 %1361 }
 0x135   :  { %15194 = vst [vmem:[#allocation62_spill] sm:$0xff] %v10883_v28  ;;  %v711_v52 = vsel %vm15123_vm4, %v656_v55, 0.0  ;;  %15198 = vst [vmem:[#allocation66_spill] sm:$0xff] %v10923_v50  ;;  %v659_v55 = vmul.f32 %v10687_v47, %v10687_v47 }
 0x136   :  { %v9178_v41 = vpop.f32.mrf.mxu0  ;;  %v706_v1 = vadd.f32 %v705_v63, %v704_v62  ;;  %v10913_v63 = vpop.permute.xlu0 %1358  ;;  %v561_v62 = vsel %vm15123_vm4, %v10663_v23, 0.0  ;;  %6827 = vperm.xlu0 %9705, %v6661_v39   ;;  %v565_v39 = vsel %vm15123_vm4, %v10687_v47, 0.0 }
 0x137   :  { %v558_v41 = vadd.f32 %v557_v26, %v556_v11  ;;  %15197 = vst [vmem:[#allocation65_spill] sm:$0xff] %v10913_v63  ;;  %v713_v26 = vsel %vm15123_vm4, %v657_v0, 0.0  ;;  %v715_v0 = vsel %vm15123_vm4, %v658_v12, 0.0 }
 0x138   :  { %v10903_v30 = vpop.f32.mrf.mxu0  ;;  %v708_v19 = vadd.f32 %v707_v27, %v706_v1  ;;  %v563_v1 = vsel %vm15123_vm4, %v10675_v33, 0.0  ;;  %6830 = vperm.xlu1 %9706, %v6662_v24   ;;  %v10952_v12 = vpop.permute.xlu1 %1367 }
 0x139   :  { %15196 = vst [vmem:[#allocation64_spill] sm:$0xff] %v10903_v30  ;;  %v560_v27 = vadd.f32 %v559_v5, %v558_v41  ;;  %v6664_v5 = vld [vmem:[%s15032_s3 + $0x40] sm:$0xff]  ;;  %15201 = vst [vmem:[#allocation69_spill] sm:$0xff] %v10952_v12  ;;  %v575_v12 = vsel %vm15123_vm4, %v10739_v18, 0.0  ;;  %v599_v60 = vsel %vm15123_vm4, %v10903_v30, 0.0 }
 0x13a   :  { %v9179_v14 = vpop.f32.mrf.mxu0  ;;  %v710_v22 = vadd.f32 %v709_v36, %v708_v19  ;;  %v660_v19 = vmul.f32 %v10695_v58, %v10695_v58  ;;  %v10943_v21 = vpop.permute.xlu0 %1364 }
 0x13b   :  { %v6663_v14 = vld [vmem:[%s15032_s3 + $0x38] sm:$0xff]  ;;  %v562_v50 = vadd.f32 %v561_v62, %v560_v27  ;;  %15199 = vst [vmem:[#allocation67_spill] sm:$0xff] %v10943_v21  ;;  %v661_v62 = vmul.f32 %v10707_v13, %v10707_v13 }
 0x13c   :  { %v10925_v11 = vpop.f32.mrf.mxu0  ;;  %v712_v63 = vadd.f32 %v711_v52, %v710_v22  ;;  %6833 = vperm.xlu0 %9705, %v6663_v14   ;;  %v717_v22 = vsel %vm15123_vm4, %v659_v55, 0.0  ;;  %v567_v52 = vsel %vm15123_vm4, %v10695_v58, 0.0  ;;  %6836 = vperm.xlu1 %9706, %v6664_v5   ;;  %v571_v5 = vsel %vm15123_vm4, %v10719_v32, 0.0 }
 0x13d   :  { %v564_v24 = vadd.f32 %v563_v1, %v562_v50  ;;  %v719_v50 = vsel %vm15123_vm4, %v660_v19, 0.0  ;;  %v662_v1 = vmul.f32 %v10719_v32, %v10719_v32  ;;  %v721_v15 = vsel %vm15123_vm4, %v661_v62, 0.0 }
 0x13e   :  { %v9182_v36 = vpop.f32.mrf.mxu0  ;;  %v714_v41 = vadd.f32 %v713_v26, %v712_v63  ;;  %v569_v26 = vsel %vm15123_vm4, %v10707_v13, 0.0 }
 0x13f   :  { %v566_v36 = vadd.f32 %v565_v39, %v564_v24  ;;  %v723_v24 = vsel %vm15123_vm4, %v662_v1, 0.0 }
 0x140   :  { %v10945_v17 = vpop.f32.mrf.mxu0  ;;  %v716_v27 = vadd.f32 %v715_v0, %v714_v41  ;;  %v663_v0 = vmul.f32 %v10727_v51, %v10727_v51 }
 0x141   :  { %15200 = vst [vmem:[#allocation68_spill] sm:$0xff] %v10945_v17  ;;  %v568_v14 = vadd.f32 %v567_v52, %v566_v36 }
 0x142   :  { %v9183_v63 = vpop.f32.mrf.mxu0  ;;  %v718_v55 = vadd.f32 %v717_v22, %v716_v27  ;;  %v664_v22 = vmul.f32 %v10739_v18, %v10739_v18  ;;  %v725_v36 = vsel %vm15123_vm4, %v663_v0, 0.0 }
 0x143   :  { %v570_v19 = vadd.f32 %v569_v26, %v568_v14  ;;  %v573_v63 = vsel %vm15123_vm4, %v10727_v51, 0.0 }
 0x144   :  { %v10959_v21 = vpop.f32.mrf.mxu0  ;;  %v720_v39 = vadd.f32 %v719_v50, %v718_v55  ;;  %v665_v50 = vmul.f32 %v10751_v8, %v10751_v8  ;;  %v727_v14 = vsel %vm15123_vm4, %v664_v22, 0.0 }
 0x145   :  { %v572_v27 = vadd.f32 %v571_v5, %v570_v19 }
 0x146   :  { %v9186_v41 = vpop.f32.mrf.mxu0  ;;  %v722_v52 = vadd.f32 %v721_v15, %v720_v39  ;;  %v666_v15 = vmul.f32 %v10759_v7, %v10759_v7  ;;  %v729_v19 = vsel %vm15123_vm4, %v665_v50, 0.0  ;;  %v603_v7 = vsel %vm15123_vm4, %v10945_v17, 0.0 }
 0x147   :  { %v574_v1 = vadd.f32 %v573_v63, %v572_v27  ;;  %v577_v41 = vsel %vm15123_vm4, %v10751_v8, 0.0 }
 0x148   :  { %v10971_v62 = vpop.f32.mrf.mxu0  ;;  %v724_v26 = vadd.f32 %v723_v24, %v722_v52  ;;  %v667_v24 = vmul.f32 %v10771_v43, %v10771_v43  ;;  %v731_v27 = vsel %vm15123_vm4, %v666_v15, 0.0 }
 0x149   :  { %v576_v39 = vadd.f32 %v575_v12, %v574_v1  ;;  %v668_v12 = vmul.f32 %v10783_v57, %v10783_v57  ;;  %v607_v8 = vsel %vm15123_vm4, %v10971_v62, 0.0 }
 0x14a   :  { %v9187_v55 = vpop.f32.mrf.mxu0  ;;  %v726_v5 = vadd.f32 %v725_v36, %v724_v26  ;;  %v733_v1 = vsel %vm15123_vm4, %v667_v24, 0.0 }
 0x14b   :  { %v578_v22 = vadd.f32 %v577_v41, %v576_v39  ;;  %v581_v55 = vsel %vm15123_vm4, %v10771_v43, 0.0  ;;  %v735_v39 = vsel %vm15123_vm4, %v668_v12, 0.0 }
 0x14c   :  { %v10983_v0 = vpop.f32.mrf.mxu0  ;;  %v728_v63 = vadd.f32 %v727_v14, %v726_v5  ;;  %v669_v14 = vmul.f32 %v10791_v34, %v10791_v34 }
 0x14d   :  { %v580_v26 = vadd.f32 %v579_v10, %v578_v22  ;;  %v670_v10 = vmul.f32 %v10803_v40, %v10803_v40 }
 0x14e   :  { %v9190_v52 = vpop.f32.mrf.mxu0  ;;  %v730_v36 = vadd.f32 %v729_v19, %v728_v63  ;;  %v737_v22 = vsel %vm15123_vm4, %v669_v14, 0.0 }
 0x14f   :  { %v582_v15 = vadd.f32 %v581_v55, %v580_v26  ;;  %v585_v52 = vsel %vm15123_vm4, %v10791_v34, 0.0  ;;  %v739_v26 = vsel %vm15123_vm4, %v670_v10, 0.0 }
 0x150   :  { %v10995_v50 = vpop.f32.mrf.mxu0  ;;  %v732_v41 = vadd.f32 %v731_v27, %v730_v36  ;;  %v671_v27 = vmul.f32 %v10815_v20, %v10815_v20 }
 0x151   :  { %v584_v63 = vadd.f32 %v583_v9, %v582_v15  ;;  %v672_v9 = vmul.f32 %v10823_v29, %v10823_v29  ;;  %v611_v57 = vsel %vm15123_vm4, %v10995_v50, 0.0 }
 0x152   :  { %v9191_v5 = vpop.f32.mrf.mxu0  ;;  %v734_v19 = vadd.f32 %v733_v1, %v732_v41  ;;  %v741_v15 = vsel %vm15123_vm4, %v671_v27, 0.0 }
 0x153   :  { %v586_v12 = vadd.f32 %v585_v52, %v584_v63  ;;  %v589_v5 = vsel %vm15123_vm4, %v10815_v20, 0.0  ;;  %v743_v63 = vsel %vm15123_vm4, %v672_v9, 0.0 }
 0x154   :  { %v11007_v24 = vpop.f32.mrf.mxu0  ;;  %v736_v55 = vadd.f32 %v735_v39, %v734_v19  ;;  %v673_v39 = vmul.f32 %v10837_v46, %v10837_v46 }
 0x155   :  { %v588_v41 = vadd.f32 %v587_v4, %v586_v12  ;;  %v674_v4 = vmul.f32 %v10862_v3, %v10862_v3 }
 0x156   :  { %v9194_v36 = vpop.f32.mrf.mxu0  ;;  %v738_v1 = vadd.f32 %v737_v22, %v736_v55  ;;  %v745_v12 = vsel %vm15123_vm4, %v673_v39, 0.0 }
 0x157   :  { %v590_v10 = vadd.f32 %v589_v5, %v588_v41  ;;  %v593_v36 = vsel %vm15123_vm4, %v10837_v46, 0.0  ;;  %v747_v41 = vsel %vm15123_vm4, %v674_v4, 0.0 }
 0x158   :  { %v11019_v14 = vpop.f32.mrf.mxu0  ;;  %v740_v52 = vadd.f32 %v739_v26, %v738_v1  ;;  %v675_v26 = vmul.f32 %v10883_v28, %v10883_v28 }
 0x159   :  { %v592_v55 = vadd.f32 %v591_v2, %v590_v10  ;;  %v676_v2 = vmul.f32 %v10903_v30, %v10903_v30  ;;  %v615_v43 = vsel %vm15123_vm4, %v11019_v14, 0.0 }
 0x15a   :  { %v9195_v19 = vpop.f32.mrf.mxu0  ;;  %v742_v22 = vadd.f32 %v741_v15, %v740_v52  ;;  %v749_v10 = vsel %vm15123_vm4, %v675_v26, 0.0 }
 0x15b   :  { %v594_v9 = vadd.f32 %v593_v36, %v592_v55  ;;  %v597_v19 = vsel %vm15123_vm4, %v10883_v28, 0.0  ;;  %v751_v55 = vsel %vm15123_vm4, %v676_v2, 0.0 }
 0x15c   :  { %v11031_v27 = vpop.f32.mrf.mxu0  ;;  %v744_v5 = vadd.f32 %v743_v63, %v742_v22  ;;  %v677_v63 = vmul.f32 %v10925_v11, %v10925_v11 }
 0x15d   :  { %v596_v52 = vadd.f32 %v595_v61, %v594_v9  ;;  %v678_v61 = vmul.f32 %v10945_v17, %v10945_v17 }
 0x15e   :  { %v9198_v1 = vpop.f32.mrf.mxu0  ;;  %v746_v15 = vadd.f32 %v745_v12, %v744_v5  ;;  %v753_v9 = vsel %vm15123_vm4, %v677_v63, 0.0 }
 0x15f   :  { %v598_v4 = vadd.f32 %v597_v19, %v596_v52  ;;  %v601_v1 = vsel %vm15123_vm4, %v10925_v11, 0.0  ;;  %v755_v52 = vsel %vm15123_vm4, %v678_v61, 0.0 }
 0x160   :  { %v11043_v39 = vpop.f32.mrf.mxu0  ;;  %v748_v36 = vadd.f32 %v747_v41, %v746_v15  ;;  %v679_v41 = vmul.f32 %v10959_v21, %v10959_v21 }
 0x161   :  { %v600_v5 = vadd.f32 %v599_v60, %v598_v4  ;;  %v680_v60 = vmul.f32 %v10971_v62, %v10971_v62  ;;  %v619_v56 = vsel %vm15123_vm4, %v11043_v39, 0.0 }
 0x162   :  { %v9199_v22 = vpop.f32.mrf.mxu0  ;;  %v750_v12 = vadd.f32 %v749_v10, %v748_v36  ;;  %v757_v4 = vsel %vm15123_vm4, %v679_v41, 0.0 }
 0x163   :  { %v602_v2 = vadd.f32 %v601_v1, %v600_v5  ;;  %v605_v22 = vsel %vm15123_vm4, %v10959_v21, 0.0  ;;  %v759_v5 = vsel %vm15123_vm4, %v680_v60, 0.0 }
 0x164   :  { %v11055_v26 = vpop.f32.mrf.mxu0  ;;  %v752_v19 = vadd.f32 %v751_v55, %v750_v12  ;;  %v681_v55 = vmul.f32 %v10983_v0, %v10983_v0 }
 0x165   :  { %v604_v36 = vadd.f32 %v603_v7, %v602_v2  ;;  %v682_v7 = vmul.f32 %v10995_v50, %v10995_v50 }
 0x166   :  { %v9202_v15 = vpop.f32.mrf.mxu0  ;;  %v754_v10 = vadd.f32 %v753_v9, %v752_v19  ;;  %v761_v2 = vsel %vm15123_vm4, %v681_v55, 0.0 }
 0x167   :  { %v606_v61 = vadd.f32 %v605_v22, %v604_v36  ;;  %v609_v15 = vsel %vm15123_vm4, %v10983_v0, 0.0  ;;  %v763_v36 = vsel %vm15123_vm4, %v682_v7, 0.0 }
 0x168   :  { %v11067_v63 = vpop.f32.mrf.mxu0  ;;  %v756_v1 = vadd.f32 %v755_v52, %v754_v10  ;;  %v683_v52 = vmul.f32 %v11007_v24, %v11007_v24 }
 0x169   :  { %v608_v19 = vadd.f32 %v607_v8, %v606_v61  ;;  %v684_v8 = vmul.f32 %v11019_v14, %v11019_v14  ;;  %v623_v54 = vsel %vm15123_vm4, %v11067_v63, 0.0 }
 0x16a   :  { %v9203_v12 = vpop.f32.mrf.mxu0  ;;  %v758_v9 = vadd.f32 %v757_v4, %v756_v1  ;;  %v765_v61 = vsel %vm15123_vm4, %v683_v52, 0.0 }
 0x16b   :  { %v610_v60 = vadd.f32 %v609_v15, %v608_v19  ;;  %v613_v12 = vsel %vm15123_vm4, %v11007_v24, 0.0  ;;  %v767_v19 = vsel %vm15123_vm4, %v684_v8, 0.0 }
 0x16c   :  { %v11079_v41 = vpop.f32.mrf.mxu0  ;;  %v760_v22 = vadd.f32 %v759_v5, %v758_v9  ;;  %v685_v5 = vmul.f32 %v11031_v27, %v11031_v27 }
 0x16d   :  { %v612_v1 = vadd.f32 %v611_v57, %v610_v60  ;;  %v686_v57 = vmul.f32 %v11043_v39, %v11043_v39 }
 0x16e   :  { %v9206_v10 = vpop.f32.mrf.mxu0  ;;  %v762_v4 = vadd.f32 %v761_v2, %v760_v22  ;;  %v769_v60 = vsel %vm15123_vm4, %v685_v5, 0.0 }
 0x16f   :  { %v614_v7 = vadd.f32 %v613_v12, %v612_v1  ;;  %v617_v10 = vsel %vm15123_vm4, %v11031_v27, 0.0  ;;  %v771_v1 = vsel %vm15123_vm4, %v686_v57, 0.0 }
 0x170   :  { %v11091_v55 = vpop.f32.mrf.mxu0  ;;  %v764_v15 = vadd.f32 %v763_v36, %v762_v4  ;;  %v687_v36 = vmul.f32 %v11055_v26, %v11055_v26 }
 0x171   :  { %v616_v22 = vadd.f32 %v615_v43, %v614_v7  ;;  %v688_v43 = vmul.f32 %v11067_v63, %v11067_v63 }
 0x172   :  { %v9207_v9 = vpop.f32.mrf.mxu0  ;;  %v766_v2 = vadd.f32 %v765_v61, %v764_v15  ;;  %v773_v7 = vsel %vm15123_vm4, %v687_v36, 0.0 }
 0x173   :  { %v618_v8 = vadd.f32 %v617_v10, %v616_v22  ;;  %v621_v9 = vsel %vm15123_vm4, %v11055_v26, 0.0  ;;  %v775_v22 = vsel %vm15123_vm4, %v688_v43, 0.0 }
 0x174   :  { %v11103_v52 = vpop.f32.mrf.mxu0  ;;  %v768_v12 = vadd.f32 %v767_v19, %v766_v2  ;;  %v689_v19 = vmul.f32 %v11079_v41, %v11079_v41 }
 0x175   :  { %v620_v15 = vadd.f32 %v619_v56, %v618_v8  ;;  %v690_v56 = vmul.f32 %v11091_v55, %v11091_v55  ;;  %v15104_v8 = vlaneseq }
 0x176   :  { %v9210_v4 = vpop.f32.mrf.mxu0  ;;  %v770_v61 = vadd.f32 %v769_v60, %v768_v12  ;;  %v777_v40 = vsel %vm15123_vm4, %v689_v19, 0.0 }
 0x177   :  { %v622_v57 = vadd.f32 %v621_v9, %v620_v15  ;;  %v625_v4 = vsel %vm15123_vm4, %v11079_v41, 0.0  ;;  %v691_v9 = vmul.f32 %v11103_v52, %v11103_v52 }
 0x178   :  { %v11115_v5 = vpop.f32.mrf.mxu0  ;;  %v772_v10 = vadd.f32 %v771_v1, %v770_v61  ;;  %v627_v1 = vsel %vm15123_vm4, %v11091_v55, 0.0 }
 0x179   :  { %v624_v12 = vadd.f32 %v623_v54, %v622_v57  ;;  %v629_v54 = vsel %vm15123_vm4, %v11103_v52, 0.0  ;;  %v692_v19 = vmul.f32 %v11115_v5, %v11115_v5  ;;  %v781_v29 = vsel %vm15123_vm4, %v691_v9, 0.0 }
 0x17a   :  { %v9211_v2 = vpop.f32.mrf.mxu0  ;;  %v774_v60 = vadd.f32 %v773_v7, %v772_v10  ;;  %v779_v7 = vsel %vm15123_vm4, %v690_v56, 0.0 }
 0x17b   :  { %v626_v61 = vadd.f32 %v625_v4, %v624_v12  ;;  %v11135_v2 = vand.u32 127, %v15104_v8  ;;  %v783_v8 = vsel %vm15123_vm4, %v692_v19, 0.0 }
 0x17c   :  { %v11127_v36 = vpop.f32.mrf.mxu0  ;;  %v776_v43 = vadd.f32 %v775_v22, %v774_v60  ;;  %v631_v22 = vsel %vm15123_vm4, %v11115_v5, 0.0 }
 0x17d   :  { %15202 = vst [vmem:[#allocation70_spill] sm:$0xff] %v11135_v2  ;;  %v628_v57 = vadd.f32 %v627_v1, %v626_v61  ;;  %v693_v4 = vmul.f32 %v11127_v36, %v11127_v36 }
 0x17e   :  { %v9214_v15 = vpop.f32.mrf.mxu0  ;;  %v778_v10 = vadd.f32 %v777_v40, %v776_v43  ;;  %v633_v40 = vsel %vm15123_vm4, %v11127_v36, 0.0 }
 0x17f   :  { %v630_v56 = vadd.f32 %v629_v54, %v628_v57  ;;  %v11150_v15 = vadd.s32 384, %v11135_v2  ;;  %v785_v20 = vsel %vm15123_vm4, %v693_v4, 0.0 }
 0x180   :  { %v11142_v34 = vpop.f32.mrf.mxu0  ;;  %v780_v60 = vadd.f32 %v779_v7, %v778_v10 }
 0x181   :  { %v694_v1 = vmul.f32 %v11142_v34, %v11142_v34  ;;  %v632_v43 = vadd.f32 %v631_v22, %v630_v56  ;;  %v635_v7 = vsel %vm15123_vm4, %v11142_v34, 0.0  ;;  %vm1531_vm5 = vcmp.eq.s32.totalorder %v11150_v15, %v10428_v37 }
 0x182   :  { %v9215_v12 = vpop.f32.mrf.mxu0  ;;  %v782_v9 = vadd.f32 %v781_v29, %v780_v60  ;;  %vm1535_vm6 = vcmp.eq.s32.totalorder %v11150_v15, %v10444_v42  ;;  %vm1539_vm11 = vcmp.eq.s32.totalorder %v11150_v15, %v10430_v38 }
 0x183   :  { %v634_v19 = vadd.f32 %v633_v40, %v632_v43  ;;  %v787_v12 = vsel %vm15123_vm4, %v694_v1, 0.0 }
 0x184   :  { %v11157_v61 = vpop.f32.mrf.mxu0  ;;  %v784_v10 = vadd.f32 %v783_v8, %v782_v9 }
 0x185   :  { %v695_v54 = vmul.f32 %v11157_v61, %v11157_v61  ;;  %v637_v29 = vsel %vm15123_vm4, %v11157_v61, 0.0  ;;  %v636_v4 = vadd.f32 %v635_v7, %v634_v19 }
 0x186   :  { %v9218_v57 = vpop.f32.mrf.mxu0  ;;  %v786_v22 = vadd.f32 %v785_v20, %v784_v10 }
 0x187   :  { %v789_v56 = vsel %vm15123_vm4, %v695_v54, 0.0  ;;  %v638_v1 = vadd.f32 %v637_v29, %v636_v4  ;;  %v15203_v57 = vmov 0.0  }
 0x188   :  { %v11171_v60 = vpop.f32.mrf.mxu0  ;;  %v788_v9 = vadd.f32 %v787_v12, %v786_v22  ;;  %v1975_v49 = vsel %vm1531_vm5, 1.0, %v15203_v57  ;;  %v1979_v20 = vsel %vm1535_vm6, 1.0, %v15203_v57 }
 0x189   :  { %v639_v8 = vsel %vm15123_vm4, %v11171_v60, 0.0  ;;  %v696_v40 = vmul.f32 %v11171_v60, %v11171_v60  ;;  %v2419_v54 = vpack.c.bf16 %v1979_v20, %v1975_v49 }
 0x18a   :  { %v9219_v43 = vpop.f32.mrf.mxu0  ;;  %v790_v7 = vadd.f32 %v789_v56, %v788_v9  ;;  %v640_v10 = vadd.f32 %v639_v8, %v638_v1 }
 0x18b   :  { %v791_v48 = vsel %vm15123_vm4, %v696_v40, 0.0  ;;  %8456 = vmatprep.mubr.msk.bf16.mxu0 %vm2640_vm7, %v2419_v54 }
 0x18c   :  { %v538_v19 = vpop.f32.mrf.mxu0  ;;  %v792_v30 = vadd.f32 %v791_v48, %v790_v7 }
 0x18d   :  { %v641_v3 = vsel %vm15123_vm4, %v538_v19, 0.0  ;;  %v697_v46 = vmul.f32 %v538_v19, %v538_v19 }
 0x18e   :  { %v642_v28 = vadd.f32 %v641_v3, %v640_v10  ;;  %v9222_v44 = vpop.f32.mrf.mxu0 }
 0x18f   :  { %v793_v12 = vsel %vm15123_vm4, %v697_v46, 0.0  ;;  %v11185_v44 = vadd.s32 128, %v11135_v2 }
 0x190   :  { %v643_v29 = vrot.slane %v642_v28, 4  ;;  %v794_v22 = vadd.f32 %v793_v12, %v792_v30  ;;  %v541_v4 = vpop.f32.mrf.mxu0 }
 0x191   :  { %vm1529_vm8 = vcmp.eq.s32.totalorder %v11185_v44, %v10428_v37  ;;  %vm1533_vm9 = vcmp.eq.s32.totalorder %v11185_v44, %v10444_v42  ;;  %v15204_v4 = vlaneseq }
 0x192   :  { %v644_v40 = vadd.f32 %v643_v29, %v642_v28  ;;  %v795_v43 = vrot.slane %v794_v22, 4  ;;  %v9223_v57 = vpop.f32.mrf.mxu0  ;;  %vm8232_vm10 = vmpackc.low %vm1533_vm9, %vm1529_vm8  ;;  %v15115_v28 = vmov 1.0|1.0  }
 0x193   :  { %8233 = vmatprep.mubr.msk.bf16.mxu1 %vm8232_vm10, %v15115_v28 }
 0x194   :  { %v645_v56 = vrot.slane %v644_v40, 2  ;;  %v796_v8 = vadd.f32 %v795_v43, %v794_v22 }
 0x196   :  { %v646_v9 = vadd.f32 %v645_v56, %v644_v40  ;;  %v797_v49 = vrot.slane %v796_v8, 2  ;;  %v11196_v40 = vshrl.u32 %v15204_v4, 7 }
 0x198   :  { %v647_v1 = vrot.slane %v646_v9, 1  ;;  %v798_v20 = vadd.f32 %v797_v49, %v796_v8  ;;  %15205 = vst [vmem:[#allocation71_spill] sm:$0xff] %v11196_v40  ;;  %v11199_v56 = vsub.s32 0, %v11196_v40 }
 0x19a   :  { %v648_v17 = vadd.f32 %v647_v1, %v646_v9  ;;  %v799_v48 = vrot.slane %v798_v20, 1  ;;  %15206 = vst [vmem:[#allocation72_spill] sm:$0xff] %v11199_v56  ;;  %v11202_v9 = vsub.s32 1, %v11196_v40 }
 0x19c   :  { %v800_v3 = vadd.f32 %v799_v48, %v798_v20  ;;  %v801_v7 = vmul.f32 0.0025510204, %v648_v17  ;;  %v544_v17 = vld [vmem:[%s15033_s8] sm:$0x3]  ;;  %15207 = vst [vmem:[#allocation73_spill] sm:$0xff] %v11202_v9 }
 0x19e   :  { %v802_v30 = vmul.f32 0.0025510204, %v800_v3  ;;  %v803_v46 = vmul.f32 %v801_v7, %v801_v7 }
 0x1a0   :  { %v804_v57 = vsub.f32 %v802_v30, %v803_v46 }
 0x1a2   :  { %v805_v10 = vmax.f32 %v804_v57, 0.0 }
 0x1a4   :  { %v806_v54 = vadd.f32 1e-05, %v805_v10 }
 0x1a6   :  { %10004 = vrsqrt.f32 %v806_v54 }
 0x1b3   :  { %v10005_v12 = vpop.eup %10004 }
 0x1b4   :  { %v808_v29 = vmul.f32 %v10005_v12, %v544_v17 }
 0x1b6   :  { %v809_v22 = vmul.f32 %v808_v29, %v801_v7  ;;  %v11205_v49 = vrot.slane %v808_v29, %v11199_v56 }
 0x1b8   :  { %v811_v43 = vrot.slane %v809_v22, 7  ;;  %v11211_v20 = vmul.f32 %v11205_v49, %v538_v19  ;;  %v11215_v48 = vmul.f32 %v11205_v49, %v10578_v25  ;;  %v11219_v3 = vmul.f32 %v11205_v49, %v10599_v35 }
 0x1b9   :  { %v830_v7 = vmul.f32 %v11205_v49, %v10707_v13  ;;  %v11225_v30 = vmul.f32 %v11205_v49, %v10611_v45  ;;  %v831_v46 = vmul.f32 %v11205_v49, %v10719_v32  ;;  %v862_v19 = vmul.f32 %v11205_v49, %v11127_v36 }
 0x1ba   :  { %v813_v8 = vsub.f32 %v544_v17, %v811_v43  ;;  %v864_v25 = vmul.f32 %v11205_v49, %v11157_v61  ;;  %v11235_v35 = vmul.f32 %v11205_v49, %v10623_v53  ;;  %v11239_v13 = vmul.f32 %v11205_v49, %v10631_v59 }
 0x1bb   :  { %v865_v45 = vmul.f32 %v11205_v49, %v11171_v60  ;;  %v863_v32 = vmul.f32 %v11205_v49, %v11142_v34  ;;  %v824_v59 = vmul.f32 %v11205_v49, %v10643_v6  ;;  %v832_v10 = vmul.f32 %v11205_v49, %v10727_v51 }
 0x1bc   :  { %v11208_v1 = vrot.slane %v813_v8, %v11202_v9  ;;  %v860_v60 = vmul.f32 %v11205_v49, %v11103_v52  ;;  %v825_v34 = vmul.f32 %v11205_v49, %v10655_v16  ;;  %v826_v12 = vmul.f32 %v11205_v49, %v10663_v23 }
 0x1bd   :  { %v833_v17 = vmul.f32 %v11205_v49, %v10739_v18  ;;  %v861_v6 = vmul.f32 %v11205_v49, %v11115_v5  ;;  %v828_v18 = vmul.f32 %v11205_v49, %v10687_v47  ;;  %v829_v8 = vmul.f32 %v11205_v49, %v10695_v58 }
 0x1be   :  { %v11244_v57 = vadd.f32 %v11208_v1, %v830_v7  ;;  %v11249_v36 = vadd.f32 %v11208_v1, %v831_v46  ;;  %v915_v61 = vadd.f32 %v11208_v1, %v862_v19  ;;  %v917_v53 = vadd.f32 %v11208_v1, %v864_v25 }
 0x1bf   :  { %v918_v54 = vadd.f32 %v11208_v1, %v865_v45  ;;  %v916_v29 = vadd.f32 %v11208_v1, %v863_v32  ;;  %v11270_v51 = vadd.f32 %v11208_v1, %v860_v60  ;;  %v885_v22 = vadd.f32 %v11208_v1, %v832_v10 }
 0x1c0   :  { %v932_v52 = vmul.f32 0.01, %v11244_v57  ;;  %v933_v16 = vmul.f32 0.01, %v11249_v36  ;;  %v964_v4 = vmul.f32 0.01, %v915_v61  ;;  %v886_v23 = vadd.f32 %v11208_v1, %v833_v17 }
 0x1c1   :  { %v966_v43 = vmul.f32 0.01, %v917_v53  ;;  %v914_v5 = vadd.f32 %v11208_v1, %v861_v6  ;;  %v967_v7 = vmul.f32 0.01, %v918_v54  ;;  %v827_v46 = vmul.f32 %v11205_v49, %v10675_v33 }
 0x1c2   :  { %v856_v19 = vmul.f32 %v11205_v49, %v11055_v26  ;;  %v858_v25 = vmul.f32 %v11205_v49, %v11079_v41  ;;  %v965_v45 = vmul.f32 0.01, %v916_v29  ;;  %v859_v32 = vmul.f32 %v11205_v49, %v11091_v55 }
 0x1c3   :  { %v881_v47 = vadd.f32 %v11208_v1, %v828_v18  ;;  %v882_v58 = vadd.f32 %v11208_v1, %v829_v8  ;;  %v962_v10 = vmul.f32 0.01, %v11270_v51  ;;  %v1015_v60 = vmax.f32 %v917_v53, %v966_v43 }
 0x1c4   :  { %v1016_v17 = vmax.f32 %v918_v54, %v967_v7  ;;  %v934_v6 = vmul.f32 0.01, %v885_v22  ;;  %v935_v33 = vmul.f32 0.01, %v886_v23  ;;  %v11293_v28 = vadd.f32 %v11208_v1, %v858_v25 }
 0x1c5   :  { %v11296_v26 = vadd.f32 %v11208_v1, %v859_v32  ;;  %v963_v41 = vmul.f32 0.01, %v914_v5  ;;  %v1013_v40 = vmax.f32 %v915_v61, %v964_v4  ;;  %v1014_v9 = vmax.f32 %v916_v29, %v965_v45 }
 0x1c6   :  { %v983_v55 = vmax.f32 %v885_v22, %v934_v6  ;;  %v984_v56 = vmax.f32 %v886_v23, %v935_v33  ;;  %v1188_v18 = vpack.c.bf16 %v1016_v17, %v1015_v60  ;;  %v857_v8 = vmul.f32 %v11205_v49, %v11067_v63 }
 0x1c7   :  { %v11301_v53 = vadd.f32 %v11208_v1, %v826_v12  ;;  %v11304_v54 = vadd.f32 %v11208_v1, %v827_v46  ;;  %v930_v43 = vmul.f32 0.01, %v881_v47  ;;  %v931_v7 = vmul.f32 0.01, %v882_v58 }
 0x1c8   :  { %v1172_v25 = vpack.c.bf16 %v984_v56, %v983_v55  ;;  %3294 = vmatpush1.bf16.msra.mxu0 %v1188_v18  ;;  %v981_v32 = vmax.f32 %v11244_v57, %v932_v52  ;;  %v982_v61 = vmax.f32 %v11249_v36, %v933_v16  ;;  %v854_v29 = vmul.f32 %v11205_v49, %v11031_v27 }
 0x1c9   :  { %v11311_v22 = vadd.f32 %v11208_v1, %v856_v19  ;;  %v11314_v63 = vadd.f32 %v11208_v1, %v857_v8  ;;  %v960_v12 = vmul.f32 0.01, %v11293_v28  ;;  %v15208_v4 = vmov 0  }
 0x1ca   :  { %3295 = vmatprep.subr.bf16.mxu0 %v15208_v4  ;;  %v961_v56 = vmul.f32 0.01, %v11296_v26  ;;  %v1011_v23 = vmax.f32 %v11270_v51, %v962_v10  ;;  %v1012_v57 = vmax.f32 %v914_v5, %v963_v41  ;;  %2814 = vmatpush1.bf16.msra.mxu1 %v1172_v25  ;;  %v1187_v36 = vpack.c.bf16 %v1014_v9, %v1013_v40 }
 0x1cb   :  { %v855_v27 = vmul.f32 %v11205_v49, %v11043_v39  ;;  %v11323_v52 = vadd.f32 %v11208_v1, %v824_v59  ;;  %v11326_v16 = vadd.f32 %v11208_v1, %v825_v34  ;;  %v928_v46 = vmul.f32 0.01, %v11301_v53  ;;  %2815 = vmatprep.subr.bf16.mxu1 %v15208_v4 }
 0x1cc   :  { %v929_v19 = vmul.f32 0.01, %v11304_v54  ;;  %v1171_v45 = vpack.c.bf16 %v982_v61, %v981_v32  ;;  %3296 = vmatpush1.bf16.msra.mxu0 %v1187_v36  ;;  %v979_v51 = vmax.f32 %v881_v47, %v930_v43  ;;  %v980_v5 = vmax.f32 %v882_v58, %v931_v7 }
 0x1cd   :  { %v852_v40 = vmul.f32 %v11205_v49, %v11007_v24  ;;  %v11334_v39 = vadd.f32 %v11208_v1, %v854_v29  ;;  %v11337_v9 = vadd.f32 %v11208_v1, %v855_v27  ;;  %v958_v59 = vmul.f32 0.01, %v11311_v22  ;;  %3297 = vmatprep.subr.bf16.mxu0 %v15208_v4 }
 0x1ce   :  { %v959_v34 = vmul.f32 0.01, %v11314_v63  ;;  %v1009_v10 = vmax.f32 %v11293_v28, %v960_v12  ;;  %v1010_v47 = vmax.f32 %v11296_v26, %v961_v56  ;;  %2816 = vmatpush1.bf16.msra.mxu1 %v1171_v45  ;;  %v1186_v58 = vpack.c.bf16 %v1012_v57, %v1011_v23 }
 0x1cf   :  { %v853_v24 = vmul.f32 %v11205_v49, %v11019_v14  ;;  %v11348_v60 = vadd.f32 %v11208_v1, %v11235_v35  ;;  %v11352_v17 = vadd.f32 %v11208_v1, %v11239_v13  ;;  %v926_v6 = vmul.f32 0.01, %v11323_v52  ;;  %2817 = vmatprep.subr.bf16.mxu1 %v15208_v4 }
 0x1d0   :  { %v927_v28 = vmul.f32 0.01, %v11326_v16  ;;  %v1170_v33 = vpack.c.bf16 %v980_v5, %v979_v51  ;;  %3298 = vmatpush1.bf16.msra.mxu0 %v1186_v58  ;;  %v977_v26 = vmax.f32 %v11301_v53, %v928_v46  ;;  %v978_v14 = vmax.f32 %v11304_v54, %v929_v19 }
 0x1d1   :  { %v850_v35 = vmul.f32 %v11205_v49, %v10983_v0  ;;  %v11362_v41 = vadd.f32 %v11208_v1, %v852_v40  ;;  %v11365_v13 = vadd.f32 %v11208_v1, %v853_v24  ;;  %v956_v55 = vmul.f32 0.01, %v11334_v39  ;;  %3299 = vmatprep.subr.bf16.mxu0 %v15208_v4 }
 0x1d2   :  { %v957_v18 = vmul.f32 0.01, %v11337_v9  ;;  %v1007_v8 = vmax.f32 %v11311_v22, %v958_v59  ;;  %v1008_v53 = vmax.f32 %v11314_v63, %v959_v34  ;;  %2818 = vmatpush1.bf16.msra.mxu1 %v1170_v33  ;;  %v1185_v54 = vpack.c.bf16 %v1010_v47, %v1009_v10 }
 0x1d3   :  { %v851_v0 = vmul.f32 %v11205_v49, %v10995_v50  ;;  %v11376_v43 = vadd.f32 %v11208_v1, %v11219_v3  ;;  %v11380_v7 = vadd.f32 %v11208_v1, %v11225_v30  ;;  %v924_v25 = vmul.f32 0.01, %v11348_v60  ;;  %2819 = vmatprep.subr.bf16.mxu1 %v15208_v4 }
 0x1d4   :  { %v925_v32 = vmul.f32 0.01, %v11352_v17  ;;  %v1169_v61 = vpack.c.bf16 %v978_v14, %v977_v26  ;;  %3300 = vmatpush1.bf16.msra.mxu0 %v1185_v54  ;;  %v975_v29 = vmax.f32 %v11323_v52, %v926_v6  ;;  %v976_v50 = vmax.f32 %v11326_v16, %v927_v28  ;;  %v15210_v28 = vld [vmem:[#allocation2_spill] sm:$0xff] }
 0x1d5   :  { %v819_v3 = vmul.f32 %v11205_v49, %v10591_v31  ;;  %v11390_v22 = vadd.f32 %v11208_v1, %v850_v35  ;;  %v904_v30 = vadd.f32 %v11208_v1, %v851_v0  ;;  %v954_v63 = vmul.f32 0.01, %v11362_v41  ;;  %3301 = vmatprep.subr.bf16.mxu0 %v15208_v4  ;;  %v15211_v0 = vld [vmem:[#allocation62_spill] sm:$0xff] }
 0x1d6   :  { %v955_v12 = vmul.f32 0.01, %v11365_v13  ;;  %v1005_v56 = vmax.f32 %v11334_v39, %v956_v55  ;;  %v1006_v23 = vmax.f32 %v11337_v9, %v957_v18  ;;  %2820 = vmatpush1.bf16.msra.mxu1 %v1169_v61  ;;  %v1184_v57 = vpack.c.bf16 %v1008_v53, %v1007_v8 }
 0x1d7   :  { %v919_v31 = vadd.f32 %v11208_v1, %v11211_v20  ;;  %v11402_v36 = vadd.f32 %v11208_v1, %v11215_v48  ;;  %v872_v27 = vadd.f32 %v11208_v1, %v819_v3  ;;  %v922_v52 = vmul.f32 0.01, %v11376_v43  ;;  %2821 = vmatprep.subr.bf16.mxu1 %v15208_v4 }
 0x1d8   :  { %v923_v16 = vmul.f32 0.01, %v11380_v7  ;;  %v1168_v46 = vpack.c.bf16 %v976_v50, %v975_v29  ;;  %3302 = vmatpush1.bf16.msra.mxu0 %v1184_v57  ;;  %v973_v19 = vmax.f32 %v11348_v60, %v924_v25  ;;  %v974_v45 = vmax.f32 %v11352_v17, %v925_v32  ;;  %v15209_v17 = vld [vmem:[#allocation68_spill] sm:$0xff] }
 0x1d9   :  { %v848_v20 = vmul.f32 %v11205_v49, %v10959_v21  ;;  %v849_v48 = vmul.f32 %v11205_v49, %v10971_v62  ;;  %v952_v51 = vmul.f32 0.01, %v11390_v22  ;;  %3303 = vmatprep.subr.bf16.mxu0 %v15208_v4  ;;  %v953_v5 = vmul.f32 0.01, %v904_v30 }
 0x1da   :  { %v1003_v40 = vmax.f32 %v11362_v41, %v954_v63  ;;  %v1004_v39 = vmax.f32 %v11365_v13, %v955_v12  ;;  %2822 = vmatpush1.bf16.msra.mxu1 %v1168_v46  ;;  %v1183_v9 = vpack.c.bf16 %v1006_v23, %v1005_v56  ;;  %v968_v59 = vmul.f32 0.01, %v919_v31  ;;  %v15217_v46 = vld [vmem:[#allocation4_spill] sm:$0xff] }
 0x1db   :  { %v11419_v34 = vadd.f32 %v11208_v1, %v848_v20  ;;  %v902_v21 = vadd.f32 %v11208_v1, %v849_v48  ;;  %v920_v10 = vmul.f32 0.01, %v11402_v36  ;;  %2823 = vmatprep.subr.bf16.mxu1 %v15208_v4  ;;  %v921_v62 = vmul.f32 0.01, %v872_v27 }
 0x1dc   :  { %v1167_v47 = vpack.c.bf16 %v974_v45, %v973_v19  ;;  %3304 = vmatpush1.bf16.msra.mxu0 %v1183_v9  ;;  %v971_v58 = vmax.f32 %v11376_v43, %v922_v52  ;;  %v972_v24 = vmax.f32 %v11380_v7, %v923_v16  ;;  %v846_v60 = vmul.f32 %v11205_v49, %v10925_v11  ;;  %v15212_v7 = vld [vmem:[#allocation64_spill] sm:$0xff]  ;;  %v15216_v16 = vld [vmem:[#allocation3_spill] sm:$0xff] }
 0x1dd   :  { %v847_v6 = vmul.f32 %v11205_v49, %v15209_v17  ;;  %3305 = vmatprep.subr.bf16.mxu0 %v15208_v4  ;;  %vm1543_vm12 = vcmp.eq.s32.totalorder %v11150_v15, %v15210_v28  ;;  %v1001_v33 = vmax.f32 %v11390_v22, %v952_v51  ;;  %v1002_v26 = vmax.f32 %v904_v30, %v953_v5 }
 0x1de   :  { %2824 = vmatpush1.bf16.msra.mxu1 %v1167_v47  ;;  %v1182_v14 = vpack.c.bf16 %v1004_v39, %v1003_v40  ;;  %v11437_v35 = vadd.f32 %v11208_v1, %v846_v60  ;;  %v950_v11 = vmul.f32 0.01, %v11419_v34  ;;  %v1017_v13 = vmax.f32 %v919_v31, %v968_v59  ;;  %v15214_v31 = vld [vmem:[#allocation57_spill] sm:$0xff] }
 0x1df   :  { %v900_v41 = vadd.f32 %v11208_v1, %v847_v6  ;;  %2825 = vmatprep.subr.bf16.mxu1 %v15208_v4  ;;  %v951_v55 = vmul.f32 0.01, %v902_v21  ;;  %v1166_v18 = vpack.c.bf16 %v972_v24, %v971_v58  ;;  %v969_v8 = vmax.f32 %v11402_v36, %v920_v10  ;;  %v15218_v59 = vld [vmem:[#allocation53_spill] sm:$0xff] }
 0x1e0   :  { %3306 = vmatpush1.bf16.msra.mxu0 %v1182_v14  ;;  %v970_v53 = vmax.f32 %v872_v27, %v921_v62  ;;  %v11444_v54 = vadd.s32 256, %v11135_v2  ;;  %v844_v43 = vmul.f32 %v11205_v49, %v15211_v0  ;;  %v845_v25 = vmul.f32 %v11205_v49, %v15212_v7  ;;  %v15215_v27 = vld [vmem:[#allocation60_spill] sm:$0xff]  ;;  %v11498_v62 = vld [vmem:[%s15034_s5 + $0x18] sm:$0xff]  }
 0x1e1   :  { %3307 = vmatprep.subr.bf16.mxu0 %v15208_v4  ;;  %v1181_v32 = vpack.c.bf16 %v1002_v26, %v1001_v33  ;;  %v15213_v61 = vmov 0.0   ;;  %v948_v30 = vmul.f32 0.01, %v11437_v35  ;;  %v1189_v63 = vpack.c.bf16 %v1017_v13, %v1017_v13  ;;  %v15222_v13 = vld [vmem:[#allocation50_spill] sm:$0xff] }
 0x1e2   :  { %2826 = vmatpush1.bf16.msra.mxu1 %v1166_v18  ;;  %v1983_v29 = vsel %vm1539_vm11, 1.0, %v15213_v61  ;;  %v1987_v50 = vsel %vm1543_vm12, 1.0, %v15213_v61  ;;  %v11460_v3 = vadd.f32 %v11208_v1, %v844_v43  ;;  %v898_v22 = vadd.f32 %v11208_v1, %v845_v25  ;;  %v15223_v18 = vld [vmem:[#allocation5_spill] sm:$0xff] }
 0x1e3   :  { %2827 = vmatprep.subr.bf16.mxu1 %v15208_v4  ;;  %v949_v12 = vmul.f32 0.01, %v900_v41  ;;  %v1165_v56 = vpack.c.bf16 %v970_v53, %v969_v8  ;;  %v999_v23 = vmax.f32 %v11419_v34, %v950_v11  ;;  %v1000_v57 = vmax.f32 %v902_v21, %v951_v55  ;;  %v15219_v21 = vld [vmem:[#allocation54_spill] sm:$0xff] }
 0x1e4   :  { %3308 = vmatpush1.bf16.msra.mxu0 %v1181_v32  ;;  %vm1530_vm14 = vcmp.eq.s32.totalorder %v11444_v54, %v10428_v37  ;;  %vm1534_vm15 = vcmp.eq.s32.totalorder %v11444_v54, %v10444_v42  ;;  %v842_v36 = vmul.f32 %v11205_v49, %v15214_v31  ;;  %v843_v52 = vmul.f32 %v11205_v49, %v15215_v27  ;;  %v15224_v8 = vld [vmem:[#allocation6_spill] sm:$0xff] }
 0x1e5   :  { %3323 = vmatprep.subr.bf16.mxu0 %v15208_v4  ;;  %vm1547_vm3 = vcmp.eq.s32.totalorder %v11150_v15, %v15216_v16  ;;  %vm1551_vm5 = vcmp.eq.s32.totalorder %v11150_v15, %v15217_v46  ;;  %v2423_v19 = vpack.c.bf16 %v1987_v50, %v1983_v29  ;;  %v946_v48 = vmul.f32 0.01, %v11460_v3  ;;  %vm8457_vm6 = vmpackc.low %vm1534_vm15, %vm1530_vm14 }
 0x1e6   :  { %2828 = vmatpush1.bf16.msra.mxu1 %v1165_v56  ;;  %v895_v45 = vadd.f32 %v11208_v1, %v842_v36  ;;  %v896_v20 = vadd.f32 %v11208_v1, %v843_v52  ;;  %v2811_v51 = vsel %vm2809_vm13, %v1189_v63, 0  ;;  %v947_v5 = vmul.f32 0.01, %v898_v22 }
 0x1e7   :  { %2829 = vmatprep.subr.bf16.mxu1 %v15208_v4  ;;  %v1180_v40 = vpack.c.bf16 %v1000_v57, %v999_v23  ;;  %v997_v39 = vmax.f32 %v11437_v35, %v948_v30  ;;  %v998_v9 = vmax.f32 %v900_v41, %v949_v12  ;;  %v840_v34 = vmul.f32 %v11205_v49, %v15218_v59  ;;  %v15221_v41 = vld [vmem:[#allocation47_spill] sm:$0xff]  ;;  %v15226_v30 = vld [vmem:[#allocation46_spill] sm:$0xff] }
 0x1e8   :  { %3324 = vmatpush2.bf16.msra.mxu0 %v2811_v51  ;;  %v841_v10 = vmul.f32 %v11205_v49, %v15219_v21  ;;  %v1991_v47 = vsel %vm1547_vm3, 1.0, %v15213_v61  ;;  %v944_v60 = vmul.f32 0.01, %v895_v45  ;;  %v15220_v17 = vmov 1.0|1.0  }
 0x1e9   :  { %9224 = vmatprep.subr.bf16.mxu0 %v15213_v61  ;;  %v893_v58 = vadd.f32 %v11208_v1, %v840_v34  ;;  %v1995_v6 = vsel %vm1551_vm5, 1.0, %v15213_v61  ;;  %v945_v33 = vmul.f32 0.01, %v896_v20  ;;  %v1179_v26 = vpack.c.bf16 %v998_v9, %v997_v39 }
 0x1ea   :  { %2830 = vmatpush2.bf16.msra.mxu1 %v1180_v40  ;;  %v894_v24 = vadd.f32 %v11208_v1, %v841_v10  ;;  %v995_v14 = vmax.f32 %v11460_v3, %v946_v48  ;;  %v996_v35 = vmax.f32 %v898_v22, %v947_v5  ;;  %v838_v11 = vmul.f32 %v11205_v49, %v15221_v41  ;;  %v15225_v3 = vld [vmem:[#allocation43_spill] sm:$0xff]  ;;  %v15228_v48 = vld [vmem:[#allocation40_spill] sm:$0xff] }
 0x1eb   :  { %2831 = vmatprep.subr.bf16.mxu1 %v15208_v4  ;;  %8458 = vmatmul.mubr.msk.bf16.vlgmr.msra.gmra.mxu0 %vm8457_vm6, %v15220_v17  ;;  %v839_v55 = vmul.f32 %v11205_v49, %v15222_v13  ;;  %vm1538_vm8 = vcmp.eq.s32.totalorder %v11444_v54, %v10430_v38  ;;  %vm1542_vm9 = vcmp.eq.s32.totalorder %v11444_v54, %v15210_v28  ;;  %v942_v43 = vmul.f32 0.01, %v893_v58  ;;  %v15229_v10 = vld [vmem:[#allocation7_spill] sm:$0xff]  ;;  %v15231_v13 = vld [vmem:[#allocation9_spill] sm:$0xff] }
 0x1ec   :  { %8459 = vmatprep.mubr.msk.bf16.mxu0 %vm2640_vm7, %v2423_v19  ;;  %9225 = vmatpush3.bf16.msra.mxu0 %v11498_v62  ;;  %vm1555_vm10 = vcmp.eq.s32.totalorder %v11150_v15, %v15223_v18  ;;  %vm1559_vm11 = vcmp.eq.s32.totalorder %v11150_v15, %v15224_v8  ;;  %v891_v53 = vadd.f32 %v11208_v1, %v838_v11  ;;  %v943_v25 = vmul.f32 0.01, %v894_v24  ;;  %vm8460_vm12 = vmpackc.low %vm1542_vm9, %vm1538_vm8 }
 0x1ed   :  { %9226 = vmatprep.subr.bf16.mxu0 %v15213_v61  ;;  %v892_v0 = vadd.f32 %v11208_v1, %v839_v55  ;;  %v2427_v7 = vpack.c.bf16 %v1995_v6, %v1991_v47  ;;  %v1178_v32 = vpack.c.bf16 %v996_v35, %v995_v14  ;;  %v993_v29 = vmax.f32 %v895_v45, %v944_v60  ;;  %v15227_v45 = vld [vmem:[#allocation39_spill] sm:$0xff]  ;;  %v15230_v47 = vld [vmem:[#allocation8_spill] sm:$0xff]  ;;  %v15232_v55 = vld [vmem:[#allocation10_spill] sm:$0xff] }
 0x1ee   :  { %2832 = vmatpush2.bf16.msra.mxu1 %v1179_v26  ;;  %v994_v50 = vmax.f32 %v896_v20, %v945_v33  ;;  %v836_v22 = vmul.f32 %v11205_v49, %v15225_v3  ;;  %v837_v63 = vmul.f32 %v11205_v49, %v15226_v30  ;;  %v1999_v12 = vsel %vm1555_vm10, 1.0, %v15213_v61  ;;  %v15238_v3 = vld [vmem:[#allocation16_spill] sm:$0xff] }
 0x1ef   :  { %2833 = vmatprep.subr.bf16.mxu1 %v15208_v4  ;;  %v940_v57 = vmul.f32 0.01, %v891_v53  ;;  %v2003_v31 = vsel %vm1559_vm11, 1.0, %v15213_v61  ;;  %v941_v36 = vmul.f32 0.01, %v892_v0  ;;  %v991_v52 = vmax.f32 %v893_v58, %v942_v43 }
 0x1f0   :  { %v889_v56 = vadd.f32 %v11208_v1, %v836_v22  ;;  %v890_v23 = vadd.f32 %v11208_v1, %v837_v63  ;;  %v1177_v27 = vpack.c.bf16 %v994_v50, %v993_v29  ;;  %v992_v19 = vmax.f32 %v894_v24, %v943_v25  ;;  %v15240_v63 = vld [vmem:[#allocation18_spill] sm:$0xff] }
 0x1f1   :  { %v834_v20 = vmul.f32 %v11205_v49, %v15227_v45  ;;  %v835_v51 = vmul.f32 %v11205_v49, %v15228_v48  ;;  %vm1546_vm13 = vcmp.eq.s32.totalorder %v11444_v54, %v15216_v16  ;;  %vm1550_vm14 = vcmp.eq.s32.totalorder %v11444_v54, %v15217_v46  ;;  %v15244_v45 = vld [vmem:[#allocation22_spill] sm:$0xff] }
 0x1f2   :  { %2834 = vmatpush2.bf16.msra.mxu1 %v1178_v32  ;;  %v938_v39 = vmul.f32 0.01, %v889_v56  ;;  %v2431_v9 = vpack.c.bf16 %v2003_v31, %v1999_v12  ;;  %v939_v59 = vmul.f32 0.01, %v890_v23  ;;  %v1176_v34 = vpack.c.bf16 %v992_v19, %v991_v52  ;;  %vm8463_vm15 = vmpackc.low %vm1550_vm14, %vm1546_vm13  ;;  %v15236_v32 = vld [vmem:[#allocation14_spill] sm:$0xff]  ;;  %v15242_v31 = vld [vmem:[#allocation20_spill] sm:$0xff] }
 0x1f3   :  { %2835 = vmatprep.subr.bf16.mxu1 %v15208_v4  ;;  %8461 = vmatmul.mubr.msk.bf16.gmra.mxu0 %vm8460_vm12, %v15220_v17  ;;  %v887_v5 = vadd.f32 %v11208_v1, %v834_v20  ;;  %v888_v40 = vadd.f32 %v11208_v1, %v835_v51  ;;  %v989_v21 = vmax.f32 %v891_v53, %v940_v57  ;;  %v15241_v57 = vld [vmem:[#allocation19_spill] sm:$0xff]  ;;  %v15243_v19 = vld [vmem:[#allocation21_spill] sm:$0xff] }
 0x1f4   :  { %8462 = vmatprep.mubr.msk.bf16.mxu0 %vm2640_vm7, %v2427_v7  ;;  %v990_v49 = vmax.f32 %v892_v0, %v941_v36  ;;  %vm1563_vm3 = vcmp.eq.s32.totalorder %v11150_v15, %v15229_v10  ;;  %vm1567_vm5 = vcmp.eq.s32.totalorder %v11150_v15, %v15230_v47  ;;  %v987_v60 = vmax.f32 %v889_v56, %v938_v39  ;;  %v15234_v7 = vld [vmem:[#allocation12_spill] sm:$0xff] }
 0x1f5   :  { %v936_v58 = vmul.f32 0.01, %v887_v5  ;;  %v937_v1 = vmul.f32 0.01, %v888_v40  ;;  %v988_v6 = vmax.f32 %v890_v23, %v939_v59  ;;  %vm1554_vm6 = vcmp.eq.s32.totalorder %v11444_v54, %v15223_v18 }
 0x1f6   :  { %2836 = vmatpush2.bf16.msra.mxu1 %v1177_v27  ;;  %v1175_v24 = vpack.c.bf16 %v990_v49, %v989_v21  ;;  %vm1558_vm8 = vcmp.eq.s32.totalorder %v11444_v54, %v15224_v8  ;;  %v2007_v33 = vsel %vm1563_vm3, 1.0, %v15213_v61  ;;  %v2011_v26 = vsel %vm1567_vm5, 1.0, %v15213_v61  ;;  %v15248_v21 = vld [vmem:[#allocation26_spill] sm:$0xff] }
 0x1f7   :  { %2837 = vmatprep.subr.bf16.mxu1 %v15208_v4  ;;  %v1174_v14 = vpack.c.bf16 %v988_v6, %v987_v60  ;;  %vm8466_vm9 = vmpackc.low %vm1558_vm8, %vm1554_vm6  ;;  %v985_v35 = vmax.f32 %v887_v5, %v936_v58  ;;  %v986_v41 = vmax.f32 %v888_v40, %v937_v1  ;;  %v2435_v11 = vpack.c.bf16 %v2011_v26, %v2007_v33  ;;  %v15245_v5 = vld [vmem:[#allocation23_spill] sm:$0xff]  ;;  %v15246_v40 = vld [vmem:[#allocation24_spill] sm:$0xff] }
 0x1f8   :  { %vm1571_vm10 = vcmp.eq.s32.totalorder %v11150_v15, %v15231_v13  ;;  %vm1575_vm11 = vcmp.eq.s32.totalorder %v11150_v15, %v15232_v55  ;;  %vm1537_vm12 = vcmp.eq.s32.totalorder %v11185_v44, %v10430_v38  ;;  %vm1541_vm13 = vcmp.eq.s32.totalorder %v11185_v44, %v15210_v28  ;;  %v15249_v58 = vld [vmem:[#allocation27_spill] sm:$0xff]  ;;  %v15250_v1 = vld [vmem:[#allocation28_spill] sm:$0xff]  ;;  %v15251_v33 = vld [vmem:[#allocation29_spill] sm:$0xff] }
 0x1f9   :  { %v1173_v53 = vpack.c.bf16 %v986_v41, %v985_v35  ;;  %vm1528_vm14 = vcmp.eq.s32.totalorder %v11135_v2, %v10428_v37  ;;  %vm8236_vm3 = vmpackc.low %vm1541_vm13, %vm1537_vm12  ;;  %vm1562_vm5 = vcmp.eq.s32.totalorder %v11444_v54, %v15229_v10  ;;  %vm1566_vm6 = vcmp.eq.s32.totalorder %v11444_v54, %v15230_v47  ;;  %v15252_v26 = vld [vmem:[#allocation30_spill] sm:$0xff] }
 0x1fa   :  { %2838 = vmatpush2.bf16.msra.mxu1 %v1176_v34  ;;  %v2015_v0 = vsel %vm1571_vm10, 1.0, %v15213_v61  ;;  %v2019_v43 = vsel %vm1575_vm11, 1.0, %v15213_v61  ;;  %vm1583_vm11 = vcmp.eq.s32.totalorder %v11150_v15, %v15234_v7  ;;  %vm1536_vm12 = vcmp.eq.s32.totalorder %v11135_v2, %v10430_v38  ;;  %v15247_v34 = vld [vmem:[#allocation25_spill] sm:$0xff] }
 0x1fb   :  { %2839 = vmatprep.subr.bf16.mxu1 %v15208_v4  ;;  %8464 = vmatmul.mubr.msk.bf16.gmra.mxu0 %vm8463_vm15, %v15220_v17  ;;  %vm1532_vm15 = vcmp.eq.s32.totalorder %v11135_v2, %v10444_v42  ;;  %v2439_v37 = vpack.c.bf16 %v2019_v43, %v2015_v0  ;;  %v15233_v42 = vld [vmem:[#allocation11_spill] sm:$0xff]  ;;  %vm1540_vm13 = vcmp.eq.s32.totalorder %v11135_v2, %v15210_v28  ;;  %v2027_v25 = vsel %vm1583_vm11, 1.0, %v15213_v61  ;;  %v15235_v28 = vld [vmem:[#allocation13_spill] sm:$0xff] }
 0x1fc   :  { %8465 = vmatprep.mubr.msk.bf16.mxu0 %vm2640_vm7, %v2431_v9  ;;  %vm8234_vm8 = vmpackc.low %vm1532_vm15, %vm1528_vm14  ;;  %vm1579_vm10 = vcmp.eq.s32.totalorder %v11150_v15, %v15233_v42  ;;  %vm1545_vm14 = vcmp.eq.s32.totalorder %v11185_v44, %v15216_v16  ;;  %vm1549_vm15 = vcmp.eq.s32.totalorder %v11185_v44, %v15217_v46  ;;  %vm1587_vm4 = vcmp.eq.s32.totalorder %v11150_v15, %v15235_v28  ;;  %v15255_v43 = vld [vmem:[#allocation33_spill] sm:$0xff] }
 0x1fd   :  { %vm1591_vm2 = vcmp.eq.s32.totalorder %v11150_v15, %v15236_v32  ;;  %vm1548_vm11 = vcmp.eq.s32.totalorder %v11135_v2, %v15217_v46  ;;  %v2031_v29 = vsel %vm1587_vm4, 1.0, %v15213_v61  ;;  %v15237_v46 = vld [vmem:[#allocation15_spill] sm:$0xff]  ;;  %vm1556_vm4 = vcmp.eq.s32.totalorder %v11135_v2, %v15224_v8 }
 0x1fe   :  { %2840 = vmatpush2.bf16.msra.mxu1 %v1175_v24  ;;  %v2035_v50 = vsel %vm1591_vm2, 1.0, %v15213_v61  ;;  %vm1552_vm2 = vcmp.eq.s32.totalorder %v11135_v2, %v15223_v18 }
 0x1ff   :  { %2841 = vmatprep.subr.bf16.mxu1 %v15208_v4 }
 0x202   :  { %2842 = vmatpush2.bf16.msra.mxu1 %v1174_v14 }
 0x203   :  { %2843 = vmatprep.subr.bf16.mxu1 %v15208_v4  ;;  %8467 = vmatmul.mubr.msk.bf16.gmra.mxu0 %vm8466_vm9, %v15220_v17  ;;  %vm8469_vm9 = vmpackc.low %vm1566_vm6, %vm1562_vm5  ;;  %vm1574_vm5 = vcmp.eq.s32.totalorder %v11444_v54, %v15232_v55 }
 0x204   :  { %8468 = vmatprep.mubr.msk.bf16.mxu0 %vm2640_vm7, %v2435_v11  ;;  %vm8238_vm6 = vmpackc.low %vm1540_vm13, %vm1536_vm12  ;;  %vm1553_vm12 = vcmp.eq.s32.totalorder %v11185_v44, %v15223_v18  ;;  %vm1557_vm13 = vcmp.eq.s32.totalorder %v11185_v44, %v15224_v8  ;;  %v15239_v8 = vld [vmem:[#allocation17_spill] sm:$0xff]  ;;  %v15253_v11 = vld [vmem:[#allocation31_spill] sm:$0xff] }
 0x206   :  { %2844 = vmatpush2.bf16.msra.mxu1 %v1173_v53 }
 0x207   :  { %9694 = vmatprep.subr.bf16.mxu1 %v15213_v61 }
 0x209   :  { %8235 = vmatmul.mubr.msk.bf16.vlgmr.msra.gmra.mxu1 %vm8234_vm8, %v15220_v17  ;;  %vm8240_vm8 = vmpackc.low %vm1549_vm15, %vm1545_vm14  ;;  %vm1578_vm14 = vcmp.eq.s32.totalorder %v11444_v54, %v15233_v42  ;;  %vm1582_vm15 = vcmp.eq.s32.totalorder %v11444_v54, %v15234_v7 }
 0x20a   :  { %8237 = vmatprep.mubr.msk.bf16.mxu1 %vm8236_vm3, %v15220_v17  ;;  %9696 = vmatpush3.bf16.msra.mxu1 %v11498_v62  ;;  %vm1570_vm3 = vcmp.eq.s32.totalorder %v11444_v54, %v15231_v13  ;;  %v2023_v62 = vsel %vm1579_vm10, 1.0, %v15213_v61  ;;  %vm1544_vm10 = vcmp.eq.s32.totalorder %v11135_v2, %v15216_v16  ;;  %v2447_v16 = vpack.c.bf16 %v2035_v50, %v2031_v29  ;;  %v15259_v50 = vld [vmem:[#allocation37_spill] sm:$0xff] }
 0x20b   :  { %8470 = vmatmul.mubr.msk.bf16.gmra.mxu0 %vm8469_vm9, %v15220_v17  ;;  %9695 = vmatprep.subr.bf16.mxu1 %v15213_v61  ;;  %vm8472_vm9 = vmpackc.low %vm1574_vm5, %vm1570_vm3  ;;  %v2443_v38 = vpack.c.bf16 %v2027_v25, %v2023_v62  ;;  %v15257_v25 = vld [vmem:[#allocation35_spill] sm:$0xff] }
 0x20c   :  { %8471 = vmatprep.mubr.msk.bf16.mxu0 %vm2640_vm7, %v2439_v37  ;;  %vm8242_vm3 = vmpackc.low %vm1548_vm11, %vm1544_vm10  ;;  %vm1561_vm10 = vcmp.eq.s32.totalorder %v11185_v44, %v15229_v10  ;;  %vm1565_vm11 = vcmp.eq.s32.totalorder %v11185_v44, %v15230_v47  ;;  %v15256_v37 = vld [vmem:[#allocation34_spill] sm:$0xff] }
 0x20d   :  { %vm8244_vm5 = vmpackc.low %vm1557_vm13, %vm1553_vm12  ;;  %vm1586_vm12 = vcmp.eq.s32.totalorder %v11444_v54, %v15235_v28  ;;  %vm1590_vm13 = vcmp.eq.s32.totalorder %v11444_v54, %v15236_v32 }
 0x211   :  { %8239 = vmatmul.mubr.msk.bf16.gmra.mxu1 %vm8238_vm6, %v15220_v17  ;;  %vm8475_vm6 = vmpackc.low %vm1582_vm15, %vm1578_vm14 }
 0x212   :  { %8241 = vmatprep.mubr.msk.bf16.mxu1 %vm8240_vm8, %v15220_v17  ;;  %vm1595_vm8 = vcmp.eq.s32.totalorder %v11150_v15, %v15237_v46  ;;  %vm8246_vm14 = vmpackc.low %vm1556_vm4, %vm1552_vm2  ;;  %vm1569_vm2 = vcmp.eq.s32.totalorder %v11185_v44, %v15231_v13  ;;  %vm1573_vm4 = vcmp.eq.s32.totalorder %v11185_v44, %v15232_v55 }
 0x213   :  { %8473 = vmatmul.mubr.msk.bf16.gmra.mxu0 %vm8472_vm9, %v15220_v17  ;;  %vm1599_vm9 = vcmp.eq.s32.totalorder %v11150_v15, %v15238_v3  ;;  %v2039_v22 = vsel %vm1595_vm8, 1.0, %v15213_v61  ;;  %vm8248_vm15 = vmpackc.low %vm1565_vm11, %vm1561_vm10  ;;  %vm1560_vm8 = vcmp.eq.s32.totalorder %v11135_v2, %v15229_v10  ;;  %vm1594_vm10 = vcmp.eq.s32.totalorder %v11444_v54, %v15237_v46 }
 0x214   :  { %8474 = vmatprep.mubr.msk.bf16.mxu0 %vm2640_vm7, %v2443_v38  ;;  %v2043_v30 = vsel %vm1599_vm9, 1.0, %v15213_v61  ;;  %vm1564_vm9 = vcmp.eq.s32.totalorder %v11135_v2, %v15230_v47  ;;  %vm1598_vm11 = vcmp.eq.s32.totalorder %v11444_v54, %v15238_v3  ;;  %v15258_v38 = vld [vmem:[#allocation36_spill] sm:$0xff] }
 0x215   :  { %v2451_v18 = vpack.c.bf16 %v2043_v30, %v2039_v22  ;;  %v15261_v30 = vld [vmem:[#allocation41_spill] sm:$0xff] }
 0x219   :  { %8243 = vmatmul.mubr.msk.bf16.gmra.mxu1 %vm8242_vm3, %v15220_v17  ;;  %vm8478_vm3 = vmpackc.low %vm1590_vm13, %vm1586_vm12 }
 0x21a   :  { %8245 = vmatprep.mubr.msk.bf16.mxu1 %vm8244_vm5, %v15220_v17  ;;  %vm1603_vm5 = vcmp.eq.s32.totalorder %v11150_v15, %v15239_v8  ;;  %vm8250_vm12 = vmpackc.low %vm1564_vm9, %vm1560_vm8  ;;  %vm1577_vm8 = vcmp.eq.s32.totalorder %v11185_v44, %v15233_v42  ;;  %vm1581_vm9 = vcmp.eq.s32.totalorder %v11185_v44, %v15234_v7 }
 0x21b   :  { %8476 = vmatmul.mubr.msk.bf16.gmra.mxu0 %vm8475_vm6, %v15220_v17  ;;  %vm1607_vm6 = vcmp.eq.s32.totalorder %v11150_v15, %v15240_v63  ;;  %v2047_v12 = vsel %vm1603_vm5, 1.0, %v15213_v61  ;;  %vm8252_vm13 = vmpackc.low %vm1573_vm4, %vm1569_vm2  ;;  %vm1568_vm5 = vcmp.eq.s32.totalorder %v11135_v2, %v15231_v13  ;;  %vm1602_vm2 = vcmp.eq.s32.totalorder %v11444_v54, %v15239_v8  ;;  %v15254_v13 = vld [vmem:[#allocation32_spill] sm:$0xff] }
 0x21c   :  { %8477 = vmatprep.mubr.msk.bf16.mxu0 %vm2640_vm7, %v2447_v16  ;;  %v2051_v56 = vsel %vm1607_vm6, 1.0, %v15213_v61  ;;  %vm1572_vm6 = vcmp.eq.s32.totalorder %v11135_v2, %v15232_v55  ;;  %vm1606_vm4 = vcmp.eq.s32.totalorder %v11444_v54, %v15240_v63  ;;  %v15260_v16 = vld [vmem:[#allocation38_spill] sm:$0xff] }
 0x21d   :  { %v2455_v23 = vpack.c.bf16 %v2051_v56, %v2047_v12  ;;  %v15263_v56 = vld [vmem:[#allocation44_spill] sm:$0xff] }
 0x221   :  { %8247 = vmatmul.mubr.msk.bf16.gmra.mxu1 %vm8246_vm14, %v15220_v17  ;;  %vm8481_vm14 = vmpackc.low %vm1598_vm11, %vm1594_vm10 }
 0x222   :  { %8249 = vmatprep.mubr.msk.bf16.mxu1 %vm8248_vm15, %v15220_v17  ;;  %vm1611_vm15 = vcmp.eq.s32.totalorder %v11150_v15, %v15241_v57  ;;  %vm8254_vm10 = vmpackc.low %vm1572_vm6, %vm1568_vm5  ;;  %vm1585_vm5 = vcmp.eq.s32.totalorder %v11185_v44, %v15235_v28  ;;  %vm1589_vm6 = vcmp.eq.s32.totalorder %v11185_v44, %v15236_v32 }
 0x223   :  { %8479 = vmatmul.mubr.msk.bf16.gmra.mxu0 %vm8478_vm3, %v15220_v17  ;;  %vm1615_vm3 = vcmp.eq.s32.totalorder %v11150_v15, %v15242_v31  ;;  %v2055_v36 = vsel %vm1611_vm15, 1.0, %v15213_v61  ;;  %vm8256_vm11 = vmpackc.low %vm1581_vm9, %vm1577_vm8  ;;  %vm1576_vm15 = vcmp.eq.s32.totalorder %v11135_v2, %v15233_v42  ;;  %vm1610_vm8 = vcmp.eq.s32.totalorder %v11444_v54, %v15241_v57 }
 0x224   :  { %8480 = vmatprep.mubr.msk.bf16.mxu0 %vm2640_vm7, %v2451_v18  ;;  %v2059_v27 = vsel %vm1615_vm3, 1.0, %v15213_v61  ;;  %vm1580_vm3 = vcmp.eq.s32.totalorder %v11135_v2, %v15234_v7  ;;  %vm1614_vm9 = vcmp.eq.s32.totalorder %v11444_v54, %v15242_v31  ;;  %v15262_v18 = vld [vmem:[#allocation42_spill] sm:$0xff] }
 0x225   :  { %v2459_v52 = vpack.c.bf16 %v2059_v27, %v2055_v36  ;;  %v15265_v27 = vld [vmem:[#allocation48_spill] sm:$0xff] }
 0x229   :  { %8251 = vmatmul.mubr.msk.bf16.gmra.mxu1 %vm8250_vm12, %v15220_v17  ;;  %vm8484_vm12 = vmpackc.low %vm1606_vm4, %vm1602_vm2 }
 0x22a   :  { %8253 = vmatprep.mubr.msk.bf16.mxu1 %vm8252_vm13, %v15220_v17  ;;  %vm1619_vm13 = vcmp.eq.s32.totalorder %v11150_v15, %v15243_v19  ;;  %vm8258_vm2 = vmpackc.low %vm1580_vm3, %vm1576_vm15  ;;  %vm1593_vm15 = vcmp.eq.s32.totalorder %v11185_v44, %v15237_v46  ;;  %vm1597_vm3 = vcmp.eq.s32.totalorder %v11185_v44, %v15238_v3 }
 0x22b   :  { %8482 = vmatmul.mubr.msk.bf16.gmra.mxu0 %vm8481_vm14, %v15220_v17  ;;  %vm1623_vm14 = vcmp.eq.s32.totalorder %v11150_v15, %v15244_v45  ;;  %v2063_v20 = vsel %vm1619_vm13, 1.0, %v15213_v61  ;;  %vm8260_vm4 = vmpackc.low %vm1589_vm6, %vm1585_vm5  ;;  %vm1584_vm13 = vcmp.eq.s32.totalorder %v11135_v2, %v15235_v28  ;;  %vm1618_vm5 = vcmp.eq.s32.totalorder %v11444_v54, %v15243_v19 }
 0x22c   :  { %8483 = vmatprep.mubr.msk.bf16.mxu0 %vm2640_vm7, %v2455_v23  ;;  %v2067_v48 = vsel %vm1623_vm14, 1.0, %v15213_v61  ;;  %vm1588_vm14 = vcmp.eq.s32.totalorder %v11135_v2, %v15236_v32  ;;  %vm1622_vm6 = vcmp.eq.s32.totalorder %v11444_v54, %v15244_v45  ;;  %v15264_v23 = vld [vmem:[#allocation45_spill] sm:$0xff] }
 0x22d   :  { %v2463_v51 = vpack.c.bf16 %v2067_v48, %v2063_v20 }
 0x231   :  { %8255 = vmatmul.mubr.msk.bf16.gmra.mxu1 %vm8254_vm10, %v15220_v17  ;;  %vm8487_vm10 = vmpackc.low %vm1614_vm9, %vm1610_vm8 }
 0x232   :  { %8257 = vmatprep.mubr.msk.bf16.mxu1 %vm8256_vm11, %v15220_v17  ;;  %vm1627_vm11 = vcmp.eq.s32.totalorder %v11150_v15, %v15245_v5  ;;  %vm8262_vm8 = vmpackc.low %vm1588_vm14, %vm1584_vm13  ;;  %vm1601_vm13 = vcmp.eq.s32.totalorder %v11185_v44, %v15239_v8  ;;  %vm1605_vm14 = vcmp.eq.s32.totalorder %v11185_v44, %v15240_v63 }
 0x233   :  { %8485 = vmatmul.mubr.msk.bf16.gmra.mxu0 %vm8484_vm12, %v15220_v17  ;;  %vm1631_vm12 = vcmp.eq.s32.totalorder %v11150_v15, %v15246_v40  ;;  %v2071_v39 = vsel %vm1627_vm11, 1.0, %v15213_v61  ;;  %vm8264_vm9 = vmpackc.low %vm1597_vm3, %vm1593_vm15  ;;  %vm1592_vm11 = vcmp.eq.s32.totalorder %v11135_v2, %v15237_v46  ;;  %vm1626_vm15 = vcmp.eq.s32.totalorder %v11444_v54, %v15245_v5 }
 0x234   :  { %8486 = vmatprep.mubr.msk.bf16.mxu0 %vm2640_vm7, %v2459_v52  ;;  %v2075_v9 = vsel %vm1631_vm12, 1.0, %v15213_v61  ;;  %vm1596_vm12 = vcmp.eq.s32.totalorder %v11135_v2, %v15238_v3  ;;  %vm1630_vm3 = vcmp.eq.s32.totalorder %v11444_v54, %v15246_v40  ;;  %v15266_v52 = vld [vmem:[#allocation49_spill] sm:$0xff] }
 0x235   :  { %v2467_v59 = vpack.c.bf16 %v2075_v9, %v2071_v39 }
 0x239   :  { %8259 = vmatmul.mubr.msk.bf16.gmra.mxu1 %vm8258_vm2, %v15220_v17  ;;  %vm8490_vm2 = vmpackc.low %vm1622_vm6, %vm1618_vm5 }
 0x23a   :  { %8261 = vmatprep.mubr.msk.bf16.mxu1 %vm8260_vm4, %v15220_v17  ;;  %vm1635_vm4 = vcmp.eq.s32.totalorder %v11150_v15, %v15247_v34  ;;  %vm8266_vm5 = vmpackc.low %vm1596_vm12, %vm1592_vm11  ;;  %vm1609_vm11 = vcmp.eq.s32.totalorder %v11185_v44, %v15241_v57  ;;  %vm1613_vm12 = vcmp.eq.s32.totalorder %v11185_v44, %v15242_v31 }
 0x23b   :  { %8488 = vmatmul.mubr.msk.bf16.gmra.mxu0 %vm8487_vm10, %v15220_v17  ;;  %vm1639_vm10 = vcmp.eq.s32.totalorder %v11150_v15, %v15248_v21  ;;  %v2079_v49 = vsel %vm1635_vm4, 1.0, %v15213_v61  ;;  %vm8268_vm6 = vmpackc.low %vm1605_vm14, %vm1601_vm13  ;;  %vm1600_vm4 = vcmp.eq.s32.totalorder %v11135_v2, %v15239_v8  ;;  %vm1634_vm13 = vcmp.eq.s32.totalorder %v11444_v54, %v15247_v34 }
 0x23c   :  { %8489 = vmatprep.mubr.msk.bf16.mxu0 %vm2640_vm7, %v2463_v51  ;;  %v2083_v10 = vsel %vm1639_vm10, 1.0, %v15213_v61  ;;  %vm1604_vm10 = vcmp.eq.s32.totalorder %v11135_v2, %v15240_v63  ;;  %vm1638_vm14 = vcmp.eq.s32.totalorder %v11444_v54, %v15248_v21  ;;  %v15267_v51 = vld [vmem:[#allocation51_spill] sm:$0xff] }
 0x23d   :  { %v2471_v47 = vpack.c.bf16 %v2083_v10, %v2079_v49 }
 0x241   :  { %8263 = vmatmul.mubr.msk.bf16.gmra.mxu1 %vm8262_vm8, %v15220_v17  ;;  %vm8493_vm8 = vmpackc.low %vm1630_vm3, %vm1626_vm15 }
 0x242   :  { %8265 = vmatprep.mubr.msk.bf16.mxu1 %vm8264_vm9, %v15220_v17  ;;  %vm1643_vm9 = vcmp.eq.s32.totalorder %v11150_v15, %v15249_v58  ;;  %vm8270_vm15 = vmpackc.low %vm1604_vm10, %vm1600_vm4  ;;  %vm1617_vm4 = vcmp.eq.s32.totalorder %v11185_v44, %v15243_v19  ;;  %vm1621_vm10 = vcmp.eq.s32.totalorder %v11185_v44, %v15244_v45 }
 0x243   :  { %8491 = vmatmul.mubr.msk.bf16.gmra.mxu0 %vm8490_vm2, %v15220_v17  ;;  %vm1647_vm2 = vcmp.eq.s32.totalorder %v11150_v15, %v15250_v1  ;;  %v2087_v24 = vsel %vm1643_vm9, 1.0, %v15213_v61  ;;  %vm8272_vm3 = vmpackc.low %vm1613_vm12, %vm1609_vm11  ;;  %vm1608_vm9 = vcmp.eq.s32.totalorder %v11135_v2, %v15241_v57  ;;  %vm1642_vm11 = vcmp.eq.s32.totalorder %v11444_v54, %v15249_v58 }
 0x244   :  { %8492 = vmatprep.mubr.msk.bf16.mxu0 %vm2640_vm7, %v2467_v59  ;;  %v2091_v60 = vsel %vm1647_vm2, 1.0, %v15213_v61  ;;  %vm1612_vm2 = vcmp.eq.s32.totalorder %v11135_v2, %v15242_v31  ;;  %vm1646_vm12 = vcmp.eq.s32.totalorder %v11444_v54, %v15250_v1  ;;  %v15269_v59 = vld [vmem:[#allocation55_spill] sm:$0xff] }
 0x245   :  { %v2475_v6 = vpack.c.bf16 %v2091_v60, %v2087_v24 }
 0x249   :  { %8267 = vmatmul.mubr.msk.bf16.gmra.mxu1 %vm8266_vm5, %v15220_v17  ;;  %vm8496_vm5 = vmpackc.low %vm1638_vm14, %vm1634_vm13 }
 0x24a   :  { %8269 = vmatprep.mubr.msk.bf16.mxu1 %vm8268_vm6, %v15220_v17  ;;  %vm1651_vm6 = vcmp.eq.s32.totalorder %v11150_v15, %v15251_v33  ;;  %vm8274_vm13 = vmpackc.low %vm1612_vm2, %vm1608_vm9  ;;  %vm1625_vm9 = vcmp.eq.s32.totalorder %v11185_v44, %v15245_v5  ;;  %vm1629_vm2 = vcmp.eq.s32.totalorder %v11185_v44, %v15246_v40 }
 0x24b   :  { %8494 = vmatmul.mubr.msk.bf16.gmra.mxu0 %vm8493_vm8, %v15220_v17  ;;  %vm1655_vm8 = vcmp.eq.s32.totalorder %v11150_v15, %v15252_v26  ;;  %v2095_v14 = vsel %vm1651_vm6, 1.0, %v15213_v61  ;;  %vm8276_vm14 = vmpackc.low %vm1621_vm10, %vm1617_vm4  ;;  %vm1616_vm6 = vcmp.eq.s32.totalorder %v11135_v2, %v15243_v19  ;;  %vm1650_vm4 = vcmp.eq.s32.totalorder %v11444_v54, %v15251_v33  ;;  %v9735_v19 = vld [vmem:[%s15034_s5 + $0x10] sm:$0xff]  }
 0x24c   :  { %8495 = vmatprep.mubr.msk.bf16.mxu0 %vm2640_vm7, %v2471_v47  ;;  %v2099_v35 = vsel %vm1655_vm8, 1.0, %v15213_v61  ;;  %vm1620_vm8 = vcmp.eq.s32.totalorder %v11135_v2, %v15244_v45  ;;  %vm1654_vm10 = vcmp.eq.s32.totalorder %v11444_v54, %v15252_v26  ;;  %9697 = vmatpush3.bf16.msra.mxu1 %v9735_v19  ;;  %v15271_v47 = vld [vmem:[#allocation58_spill] sm:$0xff] }
 0x24d   :  { %v2479_v41 = vpack.c.bf16 %v2099_v35, %v2095_v14  ;;  %9227 = vmatpush3.bf16.msra.mxu0 %v9735_v19  ;;  %9256 = vmatprep.subr.bf16.mxu1 %v15213_v61 }
 0x24e   :  { %9320 = vmatprep.subr.bf16.mxu0 %v15213_v61 }
 0x251   :  { %8271 = vmatmul.mubr.msk.bf16.gmra.mxu1 %vm8270_vm15, %v15220_v17  ;;  %vm8499_vm15 = vmpackc.low %vm1646_vm12, %vm1642_vm11 }
 0x252   :  { %8273 = vmatprep.mubr.msk.bf16.mxu1 %vm8272_vm3, %v15220_v17  ;;  %vm1659_vm3 = vcmp.eq.s32.totalorder %v11150_v15, %v15253_v11  ;;  %vm8278_vm11 = vmpackc.low %vm1620_vm8, %vm1616_vm6  ;;  %vm1633_vm6 = vcmp.eq.s32.totalorder %v11185_v44, %v15247_v34  ;;  %vm1637_vm8 = vcmp.eq.s32.totalorder %v11185_v44, %v15248_v21 }
 0x253   :  { %8497 = vmatmul.mubr.msk.bf16.gmra.mxu0 %vm8496_vm5, %v15220_v17  ;;  %vm1663_vm5 = vcmp.eq.s32.totalorder %v11150_v15, %v15254_v13  ;;  %v2103_v55 = vsel %vm1659_vm3, 1.0, %v15213_v61  ;;  %vm8280_vm12 = vmpackc.low %vm1629_vm2, %vm1625_vm9  ;;  %vm1624_vm3 = vcmp.eq.s32.totalorder %v11135_v2, %v15245_v5  ;;  %vm1658_vm9 = vcmp.eq.s32.totalorder %v11444_v54, %v15253_v11  ;;  %v15268_v5 = vld [vmem:[#allocation52_spill] sm:$0xff] }
 0x254   :  { %8498 = vmatprep.mubr.msk.bf16.mxu0 %vm2640_vm7, %v2475_v6  ;;  %v2107_v53 = vsel %vm1663_vm5, 1.0, %v15213_v61  ;;  %vm1628_vm5 = vcmp.eq.s32.totalorder %v11135_v2, %v15246_v40  ;;  %vm1662_vm2 = vcmp.eq.s32.totalorder %v11444_v54, %v15254_v13 }
 0x255   :  { %v2483_v0 = vpack.c.bf16 %v2107_v53, %v2103_v55 }
 0x259   :  { %8275 = vmatmul.mubr.msk.bf16.gmra.mxu1 %vm8274_vm13, %v15220_v17  ;;  %vm8502_vm13 = vmpackc.low %vm1654_vm10, %vm1650_vm4 }
 0x25a   :  { %8277 = vmatprep.mubr.msk.bf16.mxu1 %vm8276_vm14, %v15220_v17  ;;  %vm1667_vm14 = vcmp.eq.s32.totalorder %v11150_v15, %v15255_v43  ;;  %vm8282_vm4 = vmpackc.low %vm1628_vm5, %vm1624_vm3  ;;  %vm1641_vm3 = vcmp.eq.s32.totalorder %v11185_v44, %v15249_v58  ;;  %vm1645_vm5 = vcmp.eq.s32.totalorder %v11185_v44, %v15250_v1 }
 0x25b   :  { %8500 = vmatmul.mubr.msk.bf16.gmra.mxu0 %vm8499_vm15, %v15220_v17  ;;  %vm1671_vm15 = vcmp.eq.s32.totalorder %v11150_v15, %v15256_v37  ;;  %v2111_v42 = vsel %vm1667_vm14, 1.0, %v15213_v61  ;;  %vm8284_vm10 = vmpackc.low %vm1637_vm8, %vm1633_vm6  ;;  %vm1632_vm14 = vcmp.eq.s32.totalorder %v11135_v2, %v15247_v34  ;;  %vm1666_vm6 = vcmp.eq.s32.totalorder %v11444_v54, %v15255_v43  ;;  %v15270_v34 = vld [vmem:[#allocation56_spill] sm:$0xff] }
 0x25c   :  { %8501 = vmatprep.mubr.msk.bf16.mxu0 %vm2640_vm7, %v2479_v41  ;;  %v2115_v7 = vsel %vm1671_vm15, 1.0, %v15213_v61  ;;  %vm1636_vm15 = vcmp.eq.s32.totalorder %v11135_v2, %v15248_v21  ;;  %vm1670_vm8 = vcmp.eq.s32.totalorder %v11444_v54, %v15256_v37 }
 0x25d   :  { %v2487_v62 = vpack.c.bf16 %v2115_v7, %v2111_v42 }
 0x261   :  { %8279 = vmatmul.mubr.msk.bf16.gmra.mxu1 %vm8278_vm11, %v15220_v17  ;;  %vm8505_vm11 = vmpackc.low %vm1662_vm2, %vm1658_vm9 }
 0x262   :  { %8281 = vmatprep.mubr.msk.bf16.mxu1 %vm8280_vm12, %v15220_v17  ;;  %vm1675_vm12 = vcmp.eq.s32.totalorder %v11150_v15, %v15257_v25  ;;  %vm8286_vm9 = vmpackc.low %vm1636_vm15, %vm1632_vm14  ;;  %vm1649_vm14 = vcmp.eq.s32.totalorder %v11185_v44, %v15251_v33  ;;  %vm1653_vm15 = vcmp.eq.s32.totalorder %v11185_v44, %v15252_v26 }
 0x263   :  { %8503 = vmatmul.mubr.msk.bf16.gmra.mxu0 %vm8502_vm13, %v15220_v17  ;;  %vm1679_vm13 = vcmp.eq.s32.totalorder %v11150_v15, %v15258_v38  ;;  %v2119_v28 = vsel %vm1675_vm12, 1.0, %v15213_v61  ;;  %vm8288_vm2 = vmpackc.low %vm1645_vm5, %vm1641_vm3  ;;  %vm1640_vm12 = vcmp.eq.s32.totalorder %v11135_v2, %v15249_v58  ;;  %vm1674_vm3 = vcmp.eq.s32.totalorder %v11444_v54, %v15257_v25  ;;  %v15272_v58 = vld [vmem:[#allocation59_spill] sm:$0xff] }
 0x264   :  { %8504 = vmatprep.mubr.msk.bf16.mxu0 %vm2640_vm7, %v2483_v0  ;;  %v2123_v32 = vsel %vm1679_vm13, 1.0, %v15213_v61  ;;  %vm1644_vm13 = vcmp.eq.s32.totalorder %v11135_v2, %v15250_v1  ;;  %vm1678_vm5 = vcmp.eq.s32.totalorder %v11444_v54, %v15258_v38  ;;  %v15275_v0 = vld [vmem:[#allocation65_spill] sm:$0xff] }
 0x265   :  { %v2491_v29 = vpack.c.bf16 %v2123_v32, %v2119_v28  ;;  %v15277_v32 = vld [vmem:[#allocation67_spill] sm:$0xff] }
 0x269   :  { %8283 = vmatmul.mubr.msk.bf16.gmra.mxu1 %vm8282_vm4, %v15220_v17  ;;  %vm8508_vm4 = vmpackc.low %vm1670_vm8, %vm1666_vm6 }
 0x26a   :  { %8285 = vmatprep.mubr.msk.bf16.mxu1 %vm8284_vm10, %v15220_v17  ;;  %vm1683_vm10 = vcmp.eq.s32.totalorder %v11150_v15, %v15259_v50  ;;  %vm8290_vm6 = vmpackc.low %vm1644_vm13, %vm1640_vm12  ;;  %vm1657_vm12 = vcmp.eq.s32.totalorder %v11185_v44, %v15253_v11  ;;  %vm1661_vm13 = vcmp.eq.s32.totalorder %v11185_v44, %v15254_v13 }
 0x26b   :  { %8506 = vmatmul.mubr.msk.bf16.gmra.mxu0 %vm8505_vm11, %v15220_v17  ;;  %vm1687_vm11 = vcmp.eq.s32.totalorder %v11150_v15, %v15260_v16  ;;  %v2127_v46 = vsel %vm1683_vm10, 1.0, %v15213_v61  ;;  %vm8292_vm8 = vmpackc.low %vm1653_vm15, %vm1649_vm14  ;;  %vm1648_vm10 = vcmp.eq.s32.totalorder %v11135_v2, %v15251_v33  ;;  %vm1682_vm14 = vcmp.eq.s32.totalorder %v11444_v54, %v15259_v50  ;;  %v15273_v33 = vld [vmem:[#allocation61_spill] sm:$0xff] }
 0x26c   :  { %8507 = vmatprep.mubr.msk.bf16.mxu0 %vm2640_vm7, %v2487_v62  ;;  %v2131_v3 = vsel %vm1687_vm11, 1.0, %v15213_v61  ;;  %vm1652_vm11 = vcmp.eq.s32.totalorder %v11135_v2, %v15252_v26  ;;  %vm1686_vm15 = vcmp.eq.s32.totalorder %v11444_v54, %v15260_v16  ;;  %v15274_v26 = vld [vmem:[#allocation63_spill] sm:$0xff] }
 0x26d   :  { %v2495_v22 = vpack.c.bf16 %v2131_v3, %v2127_v46 }
 0x271   :  { %8287 = vmatmul.mubr.msk.bf16.gmra.mxu1 %vm8286_vm9, %v15220_v17  ;;  %vm8511_vm9 = vmpackc.low %vm1678_vm5, %vm1674_vm3 }
 0x272   :  { %8289 = vmatprep.mubr.msk.bf16.mxu1 %vm8288_vm2, %v15220_v17  ;;  %vm1691_vm2 = vcmp.eq.s32.totalorder %v11150_v15, %v15261_v30  ;;  %vm8294_vm3 = vmpackc.low %vm1652_vm11, %vm1648_vm10  ;;  %vm1665_vm10 = vcmp.eq.s32.totalorder %v11185_v44, %v15255_v43  ;;  %vm1669_vm11 = vcmp.eq.s32.totalorder %v11185_v44, %v15256_v37 }
 0x273   :  { %8509 = vmatmul.mubr.msk.bf16.gmra.mxu0 %vm8508_vm4, %v15220_v17  ;;  %vm1695_vm4 = vcmp.eq.s32.totalorder %v11150_v15, %v15262_v18  ;;  %v2135_v8 = vsel %vm1691_vm2, 1.0, %v15213_v61  ;;  %vm8296_vm5 = vmpackc.low %vm1661_vm13, %vm1657_vm12  ;;  %vm1656_vm2 = vcmp.eq.s32.totalorder %v11135_v2, %v15253_v11  ;;  %vm1690_vm12 = vcmp.eq.s32.totalorder %v11444_v54, %v15261_v30 }
 0x274   :  { %8510 = vmatprep.mubr.msk.bf16.mxu0 %vm2640_vm7, %v2491_v29  ;;  %v2139_v63 = vsel %vm1695_vm4, 1.0, %v15213_v61  ;;  %vm1660_vm4 = vcmp.eq.s32.totalorder %v11135_v2, %v15254_v13  ;;  %vm1694_vm13 = vcmp.eq.s32.totalorder %v11444_v54, %v15262_v18  ;;  %v15278_v29 = vld [vmem:[#allocation69_spill] sm:$0xff] }
 0x275   :  { %v2499_v12 = vpack.c.bf16 %v2139_v63, %v2135_v8  ;;  %v12125_v8 = vpop.permute.xlu1 %1373 }
 0x279   :  { %8291 = vmatmul.mubr.msk.bf16.gmra.mxu1 %vm8290_vm6, %v15220_v17  ;;  %vm8514_vm6 = vmpackc.low %vm1686_vm15, %vm1682_vm14 }
 0x27a   :  { %8293 = vmatprep.mubr.msk.bf16.mxu1 %vm8292_vm8, %v15220_v17  ;;  %vm1699_vm8 = vcmp.eq.s32.totalorder %v11150_v15, %v15263_v56  ;;  %vm8298_vm14 = vmpackc.low %vm1660_vm4, %vm1656_vm2  ;;  %vm1673_vm2 = vcmp.eq.s32.totalorder %v11185_v44, %v15257_v25  ;;  %vm1677_vm4 = vcmp.eq.s32.totalorder %v11185_v44, %v15258_v38 }
 0x27b   :  { %8512 = vmatmul.mubr.msk.bf16.gmra.mxu0 %vm8511_vm9, %v15220_v17  ;;  %vm1703_vm9 = vcmp.eq.s32.totalorder %v11150_v15, %v15264_v23  ;;  %v2143_v57 = vsel %vm1699_vm8, 1.0, %v15213_v61  ;;  %vm8300_vm15 = vmpackc.low %vm1669_vm11, %vm1665_vm10  ;;  %vm1664_vm8 = vcmp.eq.s32.totalorder %v11135_v2, %v15255_v43  ;;  %vm1698_vm10 = vcmp.eq.s32.totalorder %v11444_v54, %v15263_v56  ;;  %v15276_v43 = vld [vmem:[#allocation66_spill] sm:$0xff] }
 0x27c   :  { %8513 = vmatprep.mubr.msk.bf16.mxu0 %vm2640_vm7, %v2495_v22  ;;  %v2147_v31 = vsel %vm1703_vm9, 1.0, %v15213_v61  ;;  %vm1668_vm9 = vcmp.eq.s32.totalorder %v11135_v2, %v15256_v37  ;;  %vm1702_vm11 = vcmp.eq.s32.totalorder %v11444_v54, %v15264_v23 }
 0x27d   :  { %v2503_v36 = vpack.c.bf16 %v2147_v31, %v2143_v57 }
 0x281   :  { %8295 = vmatmul.mubr.msk.bf16.gmra.mxu1 %vm8294_vm3, %v15220_v17  ;;  %vm8517_vm3 = vmpackc.low %vm1694_vm13, %vm1690_vm12 }
 0x282   :  { %8297 = vmatprep.mubr.msk.bf16.mxu1 %vm8296_vm5, %v15220_v17  ;;  %vm1707_vm5 = vcmp.eq.s32.totalorder %v11150_v15, %v15265_v27  ;;  %vm8302_vm12 = vmpackc.low %vm1668_vm9, %vm1664_vm8  ;;  %vm1681_vm8 = vcmp.eq.s32.totalorder %v11185_v44, %v15259_v50  ;;  %vm1685_vm9 = vcmp.eq.s32.totalorder %v11185_v44, %v15260_v16 }
 0x283   :  { %8515 = vmatmul.mubr.msk.bf16.gmra.mxu0 %vm8514_vm6, %v15220_v17  ;;  %vm1711_vm6 = vcmp.eq.s32.totalorder %v11150_v15, %v15266_v52  ;;  %v2151_v45 = vsel %vm1707_vm5, 1.0, %v15213_v61  ;;  %vm8304_vm13 = vmpackc.low %vm1677_vm4, %vm1673_vm2  ;;  %vm1672_vm5 = vcmp.eq.s32.totalorder %v11135_v2, %v15257_v25  ;;  %vm1706_vm2 = vcmp.eq.s32.totalorder %v11444_v54, %v15265_v27 }
 0x284   :  { %8516 = vmatprep.mubr.msk.bf16.mxu0 %vm2640_vm7, %v2499_v12  ;;  %v2155_v20 = vsel %vm1711_vm6, 1.0, %v15213_v61  ;;  %vm1676_vm6 = vcmp.eq.s32.totalorder %v11135_v2, %v15258_v38  ;;  %vm1710_vm4 = vcmp.eq.s32.totalorder %v11444_v54, %v15266_v52 }
 0x285   :  { %v2507_v48 = vpack.c.bf16 %v2155_v20, %v2151_v45 }
 0x289   :  { %8299 = vmatmul.mubr.msk.bf16.gmra.mxu1 %vm8298_vm14, %v15220_v17  ;;  %vm8520_vm14 = vmpackc.low %vm1702_vm11, %vm1698_vm10 }
 0x28a   :  { %8301 = vmatprep.mubr.msk.bf16.mxu1 %vm8300_vm15, %v15220_v17  ;;  %vm1715_vm15 = vcmp.eq.s32.totalorder %v11150_v15, %v15267_v51  ;;  %vm8306_vm10 = vmpackc.low %vm1676_vm6, %vm1672_vm5  ;;  %vm1689_vm5 = vcmp.eq.s32.totalorder %v11185_v44, %v15261_v30  ;;  %vm1693_vm6 = vcmp.eq.s32.totalorder %v11185_v44, %v15262_v18 }
 0x28b   :  { %8518 = vmatmul.mubr.msk.bf16.gmra.mxu0 %vm8517_vm3, %v15220_v17  ;;  %vm1719_vm3 = vcmp.eq.s32.totalorder %v11150_v15, %v15268_v5  ;;  %v2159_v40 = vsel %vm1715_vm15, 1.0, %v15213_v61  ;;  %vm8308_vm11 = vmpackc.low %vm1685_vm9, %vm1681_vm8  ;;  %vm1680_vm15 = vcmp.eq.s32.totalorder %v11135_v2, %v15259_v50  ;;  %vm1714_vm8 = vcmp.eq.s32.totalorder %v11444_v54, %v15267_v51 }
 0x28c   :  { %8519 = vmatprep.mubr.msk.bf16.mxu0 %vm2640_vm7, %v2503_v36  ;;  %v2163_v39 = vsel %vm1719_vm3, 1.0, %v15213_v61  ;;  %vm1684_vm3 = vcmp.eq.s32.totalorder %v11135_v2, %v15260_v16  ;;  %vm1718_vm9 = vcmp.eq.s32.totalorder %v11444_v54, %v15268_v5 }
 0x28d   :  { %v2511_v9 = vpack.c.bf16 %v2163_v39, %v2159_v40 }
 0x291   :  { %8303 = vmatmul.mubr.msk.bf16.gmra.mxu1 %vm8302_vm12, %v15220_v17  ;;  %vm8523_vm12 = vmpackc.low %vm1710_vm4, %vm1706_vm2 }
 0x292   :  { %8305 = vmatprep.mubr.msk.bf16.mxu1 %vm8304_vm13, %v15220_v17  ;;  %vm1723_vm13 = vcmp.eq.s32.totalorder %v11150_v15, %v15269_v59  ;;  %vm8310_vm2 = vmpackc.low %vm1684_vm3, %vm1680_vm15  ;;  %vm1697_vm15 = vcmp.eq.s32.totalorder %v11185_v44, %v15263_v56  ;;  %vm1701_vm3 = vcmp.eq.s32.totalorder %v11185_v44, %v15264_v23 }
 0x293   :  { %8521 = vmatmul.mubr.msk.bf16.gmra.mxu0 %vm8520_vm14, %v15220_v17  ;;  %vm1727_vm14 = vcmp.eq.s32.totalorder %v11150_v15, %v15270_v34  ;;  %v2167_v21 = vsel %vm1723_vm13, 1.0, %v15213_v61  ;;  %vm8312_vm4 = vmpackc.low %vm1693_vm6, %vm1689_vm5  ;;  %vm1688_vm13 = vcmp.eq.s32.totalorder %v11135_v2, %v15261_v30  ;;  %vm1722_vm5 = vcmp.eq.s32.totalorder %v11444_v54, %v15269_v59  ;;  %v12122_v30 = vpop.permute.xlu0 %1370 }
 0x294   :  { %8522 = vmatprep.mubr.msk.bf16.mxu0 %vm2640_vm7, %v2507_v48  ;;  %v2171_v49 = vsel %vm1727_vm14, 1.0, %v15213_v61  ;;  %vm1692_vm14 = vcmp.eq.s32.totalorder %v11135_v2, %v15262_v18  ;;  %vm1726_vm6 = vcmp.eq.s32.totalorder %v11444_v54, %v15270_v34 }
 0x295   :  { %v2515_v10 = vpack.c.bf16 %v2171_v49, %v2167_v21 }
 0x299   :  { %8307 = vmatmul.mubr.msk.bf16.gmra.mxu1 %vm8306_vm10, %v15220_v17  ;;  %vm8526_vm10 = vmpackc.low %vm1718_vm9, %vm1714_vm8 }
 0x29a   :  { %8309 = vmatprep.mubr.msk.bf16.mxu1 %vm8308_vm11, %v15220_v17  ;;  %vm1731_vm11 = vcmp.eq.s32.totalorder %v11150_v15, %v15271_v47  ;;  %vm8314_vm8 = vmpackc.low %vm1692_vm14, %vm1688_vm13  ;;  %vm1705_vm13 = vcmp.eq.s32.totalorder %v11185_v44, %v15265_v27  ;;  %vm1709_vm14 = vcmp.eq.s32.totalorder %v11185_v44, %v15266_v52 }
 0x29b   :  { %8524 = vmatmul.mubr.msk.bf16.gmra.mxu0 %vm8523_vm12, %v15220_v17  ;;  %vm1735_vm12 = vcmp.eq.s32.totalorder %v11150_v15, %v15272_v58  ;;  %v2175_v1 = vsel %vm1731_vm11, 1.0, %v15213_v61  ;;  %vm8316_vm9 = vmpackc.low %vm1701_vm3, %vm1697_vm15  ;;  %vm1696_vm11 = vcmp.eq.s32.totalorder %v11135_v2, %v15263_v56  ;;  %vm1730_vm15 = vcmp.eq.s32.totalorder %v11444_v54, %v15271_v47 }
 0x29c   :  { %8525 = vmatprep.mubr.msk.bf16.mxu0 %vm2640_vm7, %v2511_v9  ;;  %v2179_v24 = vsel %vm1735_vm12, 1.0, %v15213_v61  ;;  %vm1700_vm12 = vcmp.eq.s32.totalorder %v11135_v2, %v15264_v23  ;;  %vm1734_vm3 = vcmp.eq.s32.totalorder %v11444_v54, %v15272_v58 }
 0x29d   :  { %v2519_v60 = vpack.c.bf16 %v2179_v24, %v2175_v1 }
 0x2a1   :  { %8311 = vmatmul.mubr.msk.bf16.gmra.mxu1 %vm8310_vm2, %v15220_v17  ;;  %vm8529_vm2 = vmpackc.low %vm1726_vm6, %vm1722_vm5 }
 0x2a2   :  { %8313 = vmatprep.mubr.msk.bf16.mxu1 %vm8312_vm4, %v15220_v17  ;;  %vm1739_vm4 = vcmp.eq.s32.totalorder %v11150_v15, %v15273_v33  ;;  %vm8318_vm5 = vmpackc.low %vm1700_vm12, %vm1696_vm11  ;;  %vm1713_vm11 = vcmp.eq.s32.totalorder %v11185_v44, %v15267_v51  ;;  %vm1717_vm12 = vcmp.eq.s32.totalorder %v11185_v44, %v15268_v5 }
 0x2a3   :  { %8527 = vmatmul.mubr.msk.bf16.gmra.mxu0 %vm8526_vm10, %v15220_v17  ;;  %vm1743_vm10 = vcmp.eq.s32.totalorder %v11150_v15, %v15274_v26  ;;  %v2183_v41 = vsel %vm1739_vm4, 1.0, %v15213_v61  ;;  %vm8320_vm6 = vmpackc.low %vm1709_vm14, %vm1705_vm13  ;;  %vm1704_vm4 = vcmp.eq.s32.totalorder %v11135_v2, %v15265_v27  ;;  %vm1738_vm13 = vcmp.eq.s32.totalorder %v11444_v54, %v15273_v33  ;;  %v12152_v27 = vpop.permute.xlu0 %1376 }
 0x2a4   :  { %8528 = vmatprep.mubr.msk.bf16.mxu0 %vm2640_vm7, %v2515_v10  ;;  %v2187_v11 = vsel %vm1743_vm10, 1.0, %v15213_v61  ;;  %vm1708_vm10 = vcmp.eq.s32.totalorder %v11135_v2, %v15266_v52  ;;  %vm1742_vm14 = vcmp.eq.s32.totalorder %v11444_v54, %v15274_v26  ;;  %v12154_v52 = vpop.permute.xlu1 %1379 }
 0x2a5   :  { %v2523_v55 = vpack.c.bf16 %v2187_v11, %v2183_v41 }
 0x2a9   :  { %8315 = vmatmul.mubr.msk.bf16.gmra.mxu1 %vm8314_vm8, %v15220_v17  ;;  %vm8532_vm8 = vmpackc.low %vm1734_vm3, %vm1730_vm15 }
 0x2aa   :  { %8317 = vmatprep.mubr.msk.bf16.mxu1 %vm8316_vm9, %v15220_v17  ;;  %vm1747_vm9 = vcmp.eq.s32.totalorder %v11150_v15, %v15275_v0  ;;  %vm8322_vm15 = vmpackc.low %vm1708_vm10, %vm1704_vm4  ;;  %vm1721_vm4 = vcmp.eq.s32.totalorder %v11185_v44, %v15269_v59  ;;  %vm1725_vm10 = vcmp.eq.s32.totalorder %v11185_v44, %v15270_v34 }
 0x2ab   :  { %v12045_v6 = vpop.f32.mrf.mxu0  ;;  %8530 = vmatmul.mubr.msk.bf16.gmra.mxu0 %vm8529_vm2, %v15220_v17  ;;  %vm1751_vm2 = vcmp.eq.s32.totalorder %v11150_v15, %v15276_v43  ;;  %v2191_v7 = vsel %vm1747_vm9, 1.0, %v15213_v61  ;;  %vm8324_vm3 = vmpackc.low %vm1717_vm12, %vm1713_vm11  ;;  %vm1712_vm9 = vcmp.eq.s32.totalorder %v11135_v2, %v15267_v51  ;;  %vm1746_vm11 = vcmp.eq.s32.totalorder %v11444_v54, %v15275_v0 }
 0x2ac   :  { %8531 = vmatprep.mubr.msk.bf16.mxu0 %vm2640_vm7, %v2519_v60  ;;  %v2195_v62 = vsel %vm1751_vm2, 1.0, %v15213_v61  ;;  %vm1716_vm2 = vcmp.eq.s32.totalorder %v11135_v2, %v15268_v5  ;;  %vm1750_vm12 = vcmp.eq.s32.totalorder %v11444_v54, %v15276_v43 }
 0x2ad   :  { %v3329_v14 = vpop.f32.mrf.mxu0  ;;  %v2527_v38 = vpack.c.bf16 %v2195_v62, %v2191_v7 }
 0x2af   :  { %v12061_v35 = vpop.f32.mrf.mxu0 }
 0x2b1   :  { %8319 = vmatmul.mubr.msk.bf16.gmra.mxu1 %vm8318_vm5, %v15220_v17  ;;  %v3332_v13 = vpop.f32.mrf.mxu0  ;;  %vm8535_vm5 = vmpackc.low %vm1742_vm14, %vm1738_vm13 }
 0x2b2   :  { %8321 = vmatprep.mubr.msk.bf16.mxu1 %vm8320_vm6, %v15220_v17  ;;  %vm1755_vm6 = vcmp.eq.s32.totalorder %v11150_v15, %v15277_v32  ;;  %vm8326_vm13 = vmpackc.low %vm1716_vm2, %vm1712_vm9  ;;  %vm1729_vm9 = vcmp.eq.s32.totalorder %v11185_v44, %v15271_v47  ;;  %vm1733_vm2 = vcmp.eq.s32.totalorder %v11185_v44, %v15272_v58 }
 0x2b3   :  { %v12071_v53 = vpop.f32.mrf.mxu0  ;;  %8533 = vmatmul.mubr.msk.bf16.gmra.mxu0 %vm8532_vm8, %v15220_v17  ;;  %vm1759_vm8 = vcmp.eq.s32.totalorder %v11150_v15, %v15278_v29  ;;  %v2199_v46 = vsel %vm1755_vm6, 1.0, %v15213_v61  ;;  %vm8328_vm14 = vmpackc.low %vm1725_vm10, %vm1721_vm4  ;;  %vm1720_vm6 = vcmp.eq.s32.totalorder %v11135_v2, %v15269_v59  ;;  %vm1754_vm4 = vcmp.eq.s32.totalorder %v11444_v54, %v15277_v32 }
 0x2b4   :  { %8534 = vmatprep.mubr.msk.bf16.mxu0 %vm2640_vm7, %v2523_v55  ;;  %v2203_v3 = vsel %vm1759_vm8, 1.0, %v15213_v61  ;;  %vm1724_vm8 = vcmp.eq.s32.totalorder %v11135_v2, %v15270_v34  ;;  %vm1758_vm10 = vcmp.eq.s32.totalorder %v11444_v54, %v15278_v29 }
 0x2b5   :  { %v3337_v37 = vpop.f32.mrf.mxu0  ;;  %v2531_v18 = vpack.c.bf16 %v2203_v3, %v2199_v46 }
 0x2b7   :  { %v12087_v42 = vpop.f32.mrf.mxu0 }
 0x2b9   :  { %8323 = vmatmul.mubr.msk.bf16.gmra.mxu1 %vm8322_vm15, %v15220_v17  ;;  %v3340_v25 = vpop.f32.mrf.mxu0  ;;  %vm8538_vm15 = vmpackc.low %vm1750_vm12, %vm1746_vm11 }
 0x2ba   :  { %8325 = vmatprep.mubr.msk.bf16.mxu1 %vm8324_vm3, %v15220_v17  ;;  %vm1763_vm3 = vcmp.eq.s32.totalorder %v11150_v15, %v12122_v30  ;;  %vm8330_vm11 = vmpackc.low %vm1724_vm8, %vm1720_vm6  ;;  %vm1737_vm6 = vcmp.eq.s32.totalorder %v11185_v44, %v15273_v33  ;;  %vm1741_vm8 = vcmp.eq.s32.totalorder %v11185_v44, %v15274_v26 }
 0x2bb   :  { %v12097_v28 = vpop.f32.mrf.mxu0  ;;  %8536 = vmatmul.mubr.msk.bf16.gmra.mxu0 %vm8535_vm5, %v15220_v17  ;;  %vm1767_vm5 = vcmp.eq.s32.totalorder %v11150_v15, %v12125_v8  ;;  %v2207_v56 = vsel %vm1763_vm3, 1.0, %v15213_v61  ;;  %vm8332_vm12 = vmpackc.low %vm1733_vm2, %vm1729_vm9  ;;  %vm1728_vm3 = vcmp.eq.s32.totalorder %v11135_v2, %v15271_v47  ;;  %vm1762_vm9 = vcmp.eq.s32.totalorder %v11444_v54, %v12122_v30  ;;  %v12190_v47 = vpop.permute.xlu0 %1382 }
 0x2bc   :  { %8537 = vmatprep.mubr.msk.bf16.mxu0 %vm2640_vm7, %v2527_v38  ;;  %v2211_v23 = vsel %vm1767_vm5, 1.0, %v15213_v61  ;;  %vm1732_vm5 = vcmp.eq.s32.totalorder %v11135_v2, %v15272_v58  ;;  %vm1766_vm2 = vcmp.eq.s32.totalorder %v11444_v54, %v12125_v8  ;;  %v12192_v58 = vpop.permute.xlu1 %1385 }
 0x2bd   :  { %v3345_v50 = vpop.f32.mrf.mxu0  ;;  %v2535_v45 = vpack.c.bf16 %v2211_v23, %v2207_v56 }
 0x2bf   :  { %v12113_v16 = vpop.f32.mrf.mxu0 }
 0x2c0   :  { %v12236_v7 = vpop.permute.xlu1 %1391 }
 0x2c1   :  { %8327 = vmatmul.mubr.msk.bf16.gmra.mxu1 %vm8326_vm13, %v15220_v17  ;;  %v3348_v22 = vpop.f32.mrf.mxu0  ;;  %vm8541_vm13 = vmpackc.low %vm1758_vm10, %vm1754_vm4 }
 0x2c2   :  { %8329 = vmatprep.mubr.msk.bf16.mxu1 %vm8328_vm14, %v15220_v17  ;;  %vm1771_vm14 = vcmp.eq.s32.totalorder %v11150_v15, %v12152_v27  ;;  %vm8334_vm4 = vmpackc.low %vm1732_vm5, %vm1728_vm3  ;;  %vm1745_vm3 = vcmp.eq.s32.totalorder %v11185_v44, %v15275_v0  ;;  %vm1749_vm5 = vcmp.eq.s32.totalorder %v11185_v44, %v15276_v43 }
 0x2c3   :  { %v12127_v63 = vpop.f32.mrf.mxu0  ;;  %8539 = vmatmul.mubr.msk.bf16.gmra.mxu0 %vm8538_vm15, %v15220_v17  ;;  %vm1775_vm15 = vcmp.eq.s32.totalorder %v11150_v15, %v12154_v52  ;;  %v2215_v39 = vsel %vm1771_vm14, 1.0, %v15213_v61  ;;  %vm8336_vm10 = vmpackc.low %vm1741_vm8, %vm1737_vm6  ;;  %vm1736_vm14 = vcmp.eq.s32.totalorder %v11135_v2, %v15273_v33  ;;  %vm1770_vm6 = vcmp.eq.s32.totalorder %v11444_v54, %v12152_v27 }
 0x2c4   :  { %8540 = vmatprep.mubr.msk.bf16.mxu0 %vm2640_vm7, %v2531_v18  ;;  %v2219_v9 = vsel %vm1775_vm15, 1.0, %v15213_v61  ;;  %vm1740_vm15 = vcmp.eq.s32.totalorder %v11135_v2, %v15274_v26  ;;  %vm1774_vm8 = vcmp.eq.s32.totalorder %v11444_v54, %v12154_v52 }
 0x2c5   :  { %v3353_v12 = vpop.f32.mrf.mxu0  ;;  %v2539_v24 = vpack.c.bf16 %v2219_v9, %v2215_v39 }
 0x2c7   :  { %v12145_v57 = vpop.f32.mrf.mxu0 }
 0x2c9   :  { %v2847_v31 = vpop.f32.mrf.mxu1  ;;  %8331 = vmatmul.mubr.msk.bf16.gmra.mxu1 %vm8330_vm11, %v15220_v17  ;;  %v3356_v36 = vpop.f32.mrf.mxu0  ;;  %vm8544_vm11 = vmpackc.low %vm1766_vm2, %vm1762_vm9 }
 0x2ca   :  { %v12157_v19 = vadd.f32 %v12045_v6, %v2847_v31  ;;  %8333 = vmatprep.mubr.msk.bf16.mxu1 %vm8332_vm12, %v15220_v17  ;;  %vm1779_vm12 = vcmp.eq.s32.totalorder %v11150_v15, %v12190_v47  ;;  %vm8338_vm9 = vmpackc.low %vm1740_vm15, %vm1736_vm14  ;;  %vm1753_vm14 = vcmp.eq.s32.totalorder %v11185_v44, %v15277_v32  ;;  %vm1757_vm15 = vcmp.eq.s32.totalorder %v11185_v44, %v15278_v29  ;;  %v12280_v31 = vpop.permute.xlu1 %1397 }
 0x2cb   :  { %v2849_v20 = vpop.f32.mrf.mxu1  ;;  %v12160_v48 = vpop.f32.mrf.mxu0  ;;  %8542 = vmatmul.mubr.msk.bf16.gmra.mxu0 %vm8541_vm13, %v15220_v17  ;;  %vm1783_vm13 = vcmp.eq.s32.totalorder %v11150_v15, %v12192_v58  ;;  %v2223_v33 = vsel %vm1779_vm12, 1.0, %v15213_v61  ;;  %vm8340_vm2 = vmpackc.low %vm1749_vm5, %vm1745_vm3  ;;  %vm1744_vm12 = vcmp.eq.s32.totalorder %v11135_v2, %v15275_v0  ;;  %vm1778_vm3 = vcmp.eq.s32.totalorder %v11444_v54, %v12190_v47 }
 0x2cc   :  { %8543 = vmatprep.mubr.msk.bf16.mxu0 %vm2640_vm7, %v2535_v45  ;;  %v2227_v11 = vsel %vm1783_vm13, 1.0, %v15213_v61  ;;  %vm1748_vm13 = vcmp.eq.s32.totalorder %v11135_v2, %v15276_v43  ;;  %vm1782_vm5 = vcmp.eq.s32.totalorder %v11444_v54, %v12192_v58 }
 0x2cd   :  { %v2850_v51 = vpop.f32.mrf.mxu1  ;;  %v3361_v5 = vpop.f32.mrf.mxu0  ;;  %v2543_v25 = vpack.c.bf16 %v2227_v11, %v2223_v33 }
 0x2ce   :  { %v12173_v40 = vadd.f32 %v12061_v35, %v2850_v51 }
 0x2cf   :  { %v2852_v59 = vpop.f32.mrf.mxu1  ;;  %v12185_v34 = vpop.f32.mrf.mxu0 }
 0x2d1   :  { %v2855_v49 = vpop.f32.mrf.mxu1  ;;  %8335 = vmatmul.mubr.msk.bf16.gmra.mxu1 %vm8334_vm4, %v15220_v17  ;;  %v3364_v10 = vpop.f32.mrf.mxu0  ;;  %vm8547_vm4 = vmpackc.low %vm1774_vm8, %vm1770_vm6 }
 0x2d2   :  { %v12195_v1 = vadd.f32 %v12071_v53, %v2855_v49  ;;  %8337 = vmatprep.mubr.msk.bf16.mxu1 %vm8336_vm10, %v15220_v17  ;;  %vm8342_vm6 = vmpackc.low %vm1748_vm13, %vm1744_vm12  ;;  %vm1761_vm12 = vcmp.eq.s32.totalorder %v11185_v44, %v12122_v30  ;;  %vm1765_vm13 = vcmp.eq.s32.totalorder %v11185_v44, %v12125_v8 }
 0x2d3   :  { %v2857_v60 = vpop.f32.mrf.mxu1  ;;  %v12204_v6 = vpop.f32.mrf.mxu0  ;;  %8545 = vmatmul.mubr.msk.bf16.gmra.mxu0 %vm8544_vm11, %v15220_v17  ;;  %vm1791_vm11 = vcmp.eq.s32.totalorder %v11150_v15, %v12236_v7  ;;  %vm8344_vm8 = vmpackc.low %vm1757_vm15, %vm1753_vm14  ;;  %vm1790_vm15 = vcmp.eq.s32.totalorder %v11444_v54, %v12236_v7 }
 0x2d4   :  { %8546 = vmatprep.mubr.msk.bf16.mxu0 %vm2640_vm7, %v2539_v24  ;;  %v2235_v22 = vsel %vm1791_vm11, 1.0, %v15213_v61  ;;  %vm1756_vm11 = vcmp.eq.s32.totalorder %v11135_v2, %v15278_v29  ;;  %v12324_v60 = vpop.permute.xlu1 %1403 }
 0x2d5   :  { %v2858_v14 = vpop.f32.mrf.mxu1  ;;  %v3369_v35 = vpop.f32.mrf.mxu0 }
 0x2d6   :  { %v12217_v41 = vadd.f32 %v12087_v42, %v2858_v14  ;;  %v12234_v42 = vpop.permute.xlu0 %1388 }
 0x2d7   :  { %v2860_v26 = vpop.f32.mrf.mxu1  ;;  %v12229_v13 = vpop.f32.mrf.mxu0  ;;  %vm1787_vm10 = vcmp.eq.s32.totalorder %v11150_v15, %v12234_v42  ;;  %vm1786_vm14 = vcmp.eq.s32.totalorder %v11444_v54, %v12234_v42 }
 0x2d8   :  { %v2231_v0 = vsel %vm1787_vm10, 1.0, %v15213_v61  ;;  %vm1752_vm10 = vcmp.eq.s32.totalorder %v11135_v2, %v15277_v32 }
 0x2d9   :  { %v2863_v53 = vpop.f32.mrf.mxu1  ;;  %8339 = vmatmul.mubr.msk.bf16.gmra.mxu1 %vm8338_vm9, %v15220_v17  ;;  %v3372_v37 = vpop.f32.mrf.mxu0  ;;  %vm8550_vm9 = vmpackc.low %vm1782_vm5, %vm1778_vm3  ;;  %v2547_v45 = vpack.c.bf16 %v2235_v22, %v2231_v0 }
 0x2da   :  { %v12239_v62 = vadd.f32 %v12097_v28, %v2863_v53  ;;  %8341 = vmatprep.mubr.msk.bf16.mxu1 %vm8340_vm2, %v15220_v17  ;;  %v12278_v23 = vpop.permute.xlu0 %1394  ;;  %vm8346_vm3 = vmpackc.low %vm1756_vm11, %vm1752_vm10  ;;  %vm1769_vm10 = vcmp.eq.s32.totalorder %v11185_v44, %v12152_v27  ;;  %vm1773_vm11 = vcmp.eq.s32.totalorder %v11185_v44, %v12154_v52  ;;  %v12368_v0 = vpop.permute.xlu1 %1409 }
 0x2db   :  { %v2865_v38 = vpop.f32.mrf.mxu1  ;;  %v12248_v50 = vpop.f32.mrf.mxu0  ;;  %8548 = vmatmul.mubr.msk.bf16.gmra.mxu0 %vm8547_vm4, %v15220_v17  ;;  %vm1795_vm2 = vcmp.eq.s32.totalorder %v11150_v15, %v12278_v23  ;;  %vm1799_vm4 = vcmp.eq.s32.totalorder %v11150_v15, %v12280_v31  ;;  %vm8348_vm5 = vmpackc.low %vm1765_vm13, %vm1761_vm12  ;;  %vm1794_vm12 = vcmp.eq.s32.totalorder %v11444_v54, %v12278_v23  ;;  %vm1798_vm13 = vcmp.eq.s32.totalorder %v11444_v54, %v12280_v31 }
 0x2dc   :  { %8549 = vmatprep.mubr.msk.bf16.mxu0 %vm2640_vm7, %v2543_v25  ;;  %v2239_v32 = vsel %vm1795_vm2, 1.0, %v15213_v61  ;;  %v2243_v9 = vsel %vm1799_vm4, 1.0, %v15213_v61  ;;  %vm1760_vm2 = vcmp.eq.s32.totalorder %v11135_v2, %v12122_v30  ;;  %vm1764_vm4 = vcmp.eq.s32.totalorder %v11135_v2, %v12125_v8 }
 0x2dd   :  { %v2866_v28 = vpop.f32.mrf.mxu1  ;;  %v3377_v46 = vpop.f32.mrf.mxu0  ;;  %v2551_v35 = vpack.c.bf16 %v2243_v9, %v2239_v32 }
 0x2de   :  { %v12261_v3 = vadd.f32 %v12113_v16, %v2866_v28  ;;  %v12322_v24 = vpop.permute.xlu0 %1400 }
 0x2df   :  { %v2868_v43 = vpop.f32.mrf.mxu1  ;;  %v12273_v18 = vpop.f32.mrf.mxu0 }
 0x2e1   :  { %v2871_v12 = vpop.f32.mrf.mxu1  ;;  %8343 = vmatmul.mubr.msk.bf16.gmra.mxu1 %vm8342_vm6, %v15220_v17  ;;  %v3380_v56 = vpop.f32.mrf.mxu0  ;;  %vm8553_vm6 = vmpackc.low %vm1790_vm15, %vm1786_vm14 }
 0x2e2   :  { %v12283_v36 = vadd.f32 %v12127_v63, %v2871_v12  ;;  %8345 = vmatprep.mubr.msk.bf16.mxu1 %vm8344_vm8, %v15220_v17  ;;  %vm1803_vm8 = vcmp.eq.s32.totalorder %v11150_v15, %v12322_v24  ;;  %vm8350_vm14 = vmpackc.low %vm1764_vm4, %vm1760_vm2  ;;  %v12366_v46 = vpop.permute.xlu0 %1406  ;;  %vm1777_vm2 = vcmp.eq.s32.totalorder %v11185_v44, %v12190_v47  ;;  %vm1781_vm4 = vcmp.eq.s32.totalorder %v11185_v44, %v12192_v58 }
 0x2e3   :  { %v2873_v20 = vpop.f32.mrf.mxu1  ;;  %v12292_v51 = vpop.f32.mrf.mxu0  ;;  %8551 = vmatmul.mubr.msk.bf16.gmra.mxu0 %vm8550_vm9, %v15220_v17  ;;  %vm1807_vm9 = vcmp.eq.s32.totalorder %v11150_v15, %v12324_v60  ;;  %v2247_v30 = vsel %vm1803_vm8, 1.0, %v15213_v61  ;;  %vm8352_vm15 = vmpackc.low %vm1773_vm11, %vm1769_vm10  ;;  %vm1768_vm8 = vcmp.eq.s32.totalorder %v11135_v2, %v12152_v27  ;;  %vm1802_vm10 = vcmp.eq.s32.totalorder %v11444_v54, %v12322_v24 }
 0x2e4   :  { %8552 = vmatprep.mubr.msk.bf16.mxu0 %vm2640_vm7, %v2547_v45  ;;  %v2251_v8 = vsel %vm1807_vm9, 1.0, %v15213_v61  ;;  %vm1772_vm9 = vcmp.eq.s32.totalorder %v11135_v2, %v12154_v52  ;;  %vm1806_vm11 = vcmp.eq.s32.totalorder %v11444_v54, %v12324_v60 }
 0x2e5   :  { %v2874_v63 = vpop.f32.mrf.mxu1  ;;  %v3385_v5 = vpop.f32.mrf.mxu0  ;;  %v2555_v43 = vpack.c.bf16 %v2251_v8, %v2247_v30 }
 0x2e6   :  { %v12305_v39 = vadd.f32 %v12145_v57, %v2874_v63 }
 0x2e7   :  { %v2876_v29 = vpop.f32.mrf.mxu1  ;;  %v12317_v59 = vpop.f32.mrf.mxu0 }
 0x2e8   :  { %v12410_v29 = vpop.permute.xlu0 %1412 }
 0x2e9   :  { %v2879_v49 = vpop.f32.mrf.mxu1  ;;  %8347 = vmatmul.mubr.msk.bf16.gmra.mxu1 %vm8346_vm3, %v15220_v17  ;;  %v3388_v10 = vpop.f32.mrf.mxu0  ;;  %vm8556_vm3 = vmpackc.low %vm1798_vm13, %vm1794_vm12 }
 0x2ea   :  { %v12327_v14 = vadd.f32 %v12160_v48, %v2879_v49  ;;  %8349 = vmatprep.mubr.msk.bf16.mxu1 %vm8348_vm5, %v15220_v17  ;;  %vm1811_vm5 = vcmp.eq.s32.totalorder %v11150_v15, %v12366_v46  ;;  %vm8354_vm12 = vmpackc.low %vm1772_vm9, %vm1768_vm8  ;;  %v12412_v49 = vpop.permute.xlu1 %1415  ;;  %vm1785_vm8 = vcmp.eq.s32.totalorder %v11185_v44, %v12234_v42  ;;  %vm1789_vm9 = vcmp.eq.s32.totalorder %v11185_v44, %v12236_v7 }
 0x2eb   :  { %v2881_v33 = vpop.f32.mrf.mxu1  ;;  %v12336_v11 = vpop.f32.mrf.mxu0  ;;  %8554 = vmatmul.mubr.msk.bf16.gmra.mxu0 %vm8553_vm6, %v15220_v17  ;;  %vm1815_vm6 = vcmp.eq.s32.totalorder %v11150_v15, %v12368_v0  ;;  %v2255_v27 = vsel %vm1811_vm5, 1.0, %v15213_v61  ;;  %vm8356_vm13 = vmpackc.low %vm1781_vm4, %vm1777_vm2  ;;  %vm1776_vm5 = vcmp.eq.s32.totalorder %v11135_v2, %v12190_v47  ;;  %vm1810_vm2 = vcmp.eq.s32.totalorder %v11444_v54, %v12366_v46 }
 0x2ec   :  { %8555 = vmatprep.mubr.msk.bf16.mxu0 %vm2640_vm7, %v2551_v35  ;;  %v2259_v52 = vsel %vm1815_vm6, 1.0, %v15213_v61  ;;  %vm1780_vm6 = vcmp.eq.s32.totalorder %v11135_v2, %v12192_v58  ;;  %vm1814_vm4 = vcmp.eq.s32.totalorder %v11444_v54, %v12368_v0 }
 0x2ed   :  { %v2882_v48 = vpop.f32.mrf.mxu1  ;;  %v3393_v26 = vpop.f32.mrf.mxu0  ;;  %v2559_v35 = vpack.c.bf16 %v2259_v52, %v2255_v27 }
 0x2ee   :  { %v12349_v53 = vadd.f32 %v12185_v34, %v2882_v48 }
 0x2ef   :  { %v2884_v37 = vpop.f32.mrf.mxu1  ;;  %v12361_v25 = vpop.f32.mrf.mxu0 }
 0x2f1   :  { %v2887_v38 = vpop.f32.mrf.mxu1  ;;  %8351 = vmatmul.mubr.msk.bf16.gmra.mxu1 %vm8350_vm14, %v15220_v17  ;;  %v3396_v28 = vpop.f32.mrf.mxu0  ;;  %vm8559_vm14 = vmpackc.low %vm1806_vm11, %vm1802_vm10 }
 0x2f2   :  { %v12371_v22 = vadd.f32 %v12204_v6, %v2887_v38  ;;  %8353 = vmatprep.mubr.msk.bf16.mxu1 %vm8352_vm15, %v15220_v17  ;;  %vm1819_vm15 = vcmp.eq.s32.totalorder %v11150_v15, %v12410_v29  ;;  %vm8358_vm10 = vmpackc.low %vm1780_vm6, %vm1776_vm5  ;;  %vm1793_vm5 = vcmp.eq.s32.totalorder %v11185_v44, %v12278_v23  ;;  %vm1797_vm6 = vcmp.eq.s32.totalorder %v11185_v44, %v12280_v31 }
 0x2f3   :  { %v2889_v12 = vpop.f32.mrf.mxu1  ;;  %v12380_v56 = vpop.f32.mrf.mxu0  ;;  %8557 = vmatmul.mubr.msk.bf16.gmra.mxu0 %vm8556_vm3, %v15220_v17  ;;  %vm1823_vm3 = vcmp.eq.s32.totalorder %v11150_v15, %v12412_v49  ;;  %v2263_v47 = vsel %vm1819_vm15, 1.0, %v15213_v61  ;;  %vm8360_vm11 = vmpackc.low %vm1789_vm9, %vm1785_vm8  ;;  %vm1784_vm15 = vcmp.eq.s32.totalorder %v11135_v2, %v12234_v42  ;;  %vm1818_vm8 = vcmp.eq.s32.totalorder %v11444_v54, %v12410_v29 }
 0x2f4   :  { %8558 = vmatprep.mubr.msk.bf16.mxu0 %vm2640_vm7, %v2555_v43  ;;  %v2267_v58 = vsel %vm1823_vm3, 1.0, %v15213_v61  ;;  %v12451_v43 = vpop.permute.xlu0 %1418  ;;  %v12453_v12 = vpop.permute.xlu1 %1421  ;;  %vm1788_vm3 = vcmp.eq.s32.totalorder %v11135_v2, %v12236_v7  ;;  %vm1822_vm9 = vcmp.eq.s32.totalorder %v11444_v54, %v12412_v49 }
 0x2f5   :  { %v2890_v6 = vpop.f32.mrf.mxu1  ;;  %v3401_v45 = vpop.f32.mrf.mxu0 }
 0x2f6   :  { %v12393_v20 = vadd.f32 %v12229_v13, %v2890_v6  ;;  %v2563_v45 = vpack.c.bf16 %v2267_v58, %v2263_v47 }
 0x2f7   :  { %v2892_v63 = vpop.f32.mrf.mxu1  ;;  %v12405_v5 = vpop.f32.mrf.mxu0 }
 0x2f9   :  { %v2895_v32 = vpop.f32.mrf.mxu1  ;;  %8355 = vmatmul.mubr.msk.bf16.gmra.mxu1 %vm8354_vm12, %v15220_v17  ;;  %v3404_v9 = vpop.f32.mrf.mxu0  ;;  %vm8562_vm12 = vmpackc.low %vm1814_vm4, %vm1810_vm2  ;;  %vm3794_vm4 = vcmask 1046528  }
 0x2fa   :  { %v12415_v10 = vadd.f32 %v12248_v50, %v2895_v32  ;;  %8357 = vmatprep.mubr.msk.bf16.mxu1 %vm8356_vm13, %v15220_v17  ;;  %vm1827_vm13 = vcmp.eq.s32.totalorder %v11150_v15, %v12451_v43  ;;  %vm8362_vm2 = vmpackc.low %vm1788_vm3, %vm1784_vm15  ;;  %vm1796_vm15 = vcmp.eq.s32.totalorder %v11135_v2, %v12280_v31  ;;  %vm1801_vm3 = vcmp.eq.s32.totalorder %v11185_v44, %v12322_v24 }
 0x2fb   :  { %v2897_v33 = vpop.f32.mrf.mxu1  ;;  %v12424_v48 = vpop.f32.mrf.mxu0  ;;  %8560 = vmatmul.mubr.msk.bf16.gmra.mxu0 %vm8559_vm14, %v15220_v17  ;;  %vm1831_vm14 = vcmp.eq.s32.totalorder %v11150_v15, %v12453_v12  ;;  %v2271_v42 = vsel %vm1827_vm13, 1.0, %v15213_v61 }
 0x2fc   :  { %8561 = vmatprep.mubr.msk.bf16.mxu0 %vm2640_vm7, %v2559_v35  ;;  %v2275_v7 = vsel %vm1831_vm14, 1.0, %v15213_v61  ;;  %vm1792_vm14 = vcmp.eq.s32.totalorder %v11135_v2, %v12278_v23 }
 0x2fd   :  { %v2898_v50 = vpop.f32.mrf.mxu1  ;;  %v3409_v26 = vpop.f32.mrf.mxu0 }
 0x2fe   :  { %v3379_v30 = vadd.f32 %v12273_v18, %v2898_v50  ;;  %v12489_v26 = vpop.permute.xlu0 %1424 }
 0x2ff   :  { %v2900_v8 = vpop.f32.mrf.mxu1  ;;  %v12447_v37 = vpop.f32.mrf.mxu0 }
 0x300   :  { %v3780_v18 = vpack.c.bf16 %v3379_v30, %v12415_v10  ;;  %v12491_v30 = vpop.permute.xlu1 %1427 }
 0x301   :  { %v2903_v38 = vpop.f32.mrf.mxu1  ;;  %8359 = vmatmul.mubr.msk.bf16.gmra.mxu1 %vm8358_vm10, %v15220_v17  ;;  %v3412_v28 = vpop.f32.mrf.mxu0  ;;  %vm8364_vm10 = vmpackc.low %vm1797_vm6, %vm1793_vm5  ;;  %vm1839_vm13 = vcmp.eq.s32.totalorder %v11150_v15, %v12491_v30  ;;  %vm1805_vm5 = vcmp.eq.s32.totalorder %v11185_v44, %v12324_v60  ;;  %vm1826_vm6 = vcmp.eq.s32.totalorder %v11444_v54, %v12451_v43 }
 0x302   :  { %v3384_v6 = vadd.f32 %v12292_v51, %v2903_v38  ;;  %8361 = vmatprep.mubr.msk.bf16.mxu1 %vm8360_vm11, %v15220_v17  ;;  %v3795_v47 = vrot.slane %v3780_v18, 1  ;;  %vm8565_vm11 = vmpackc.low %vm1822_vm9, %vm1818_vm8  ;;  %v2567_v38 = vpack.c.bf16 %v2275_v7, %v2271_v42  ;;  %vm1830_vm8 = vcmp.eq.s32.totalorder %v11444_v54, %v12453_v12  ;;  %v12530_v7 = vpop.permute.xlu0 %1430 }
 0x303   :  { %v2905_v27 = vpop.f32.mrf.mxu1  ;;  %v12463_v52 = vpop.f32.mrf.mxu0  ;;  %8563 = vmatmul.mubr.msk.bf16.gmra.mxu0 %vm8562_vm12, %v15220_v17  ;;  %vm1835_vm12 = vcmp.eq.s32.totalorder %v11150_v15, %v12489_v26  ;;  %v2283_v31 = vsel %vm1839_vm13, 1.0, %v15213_v61  ;;  %vm8366_vm9 = vmpackc.low %vm1796_vm15, %vm1792_vm14  ;;  %vm1800_vm13 = vcmp.eq.s32.totalorder %v11135_v2, %v12322_v24  ;;  %vm1804_vm14 = vcmp.eq.s32.totalorder %v11135_v2, %v12324_v60 }
 0x304   :  { %8564 = vmatprep.mubr.msk.bf16.mxu0 %vm2640_vm7, %v2563_v45  ;;  %v2279_v23 = vsel %vm1835_vm12, 1.0, %v15213_v61  ;;  %vm1809_vm15 = vcmp.eq.s32.totalorder %v11185_v44, %v12366_v46 }
 0x305   :  { %v2906_v51 = vpop.f32.mrf.mxu1  ;;  %v3417_v63 = vpop.f32.mrf.mxu0 }
 0x306   :  { %v3387_v32 = vadd.f32 %v12317_v59, %v2906_v51 }
 0x307   :  { %v2908_v9 = vpop.f32.mrf.mxu1  ;;  %v12486_v35 = vpop.f32.mrf.mxu0 }
 0x308   :  { %v3781_v59 = vpack.c.bf16 %v3387_v32, %v3384_v6  ;;  %v12532_v9 = vpop.permute.xlu1 %1433 }
 0x309   :  { %v2911_v33 = vpop.f32.mrf.mxu1  ;;  %8363 = vmatmul.mubr.msk.bf16.gmra.mxu1 %vm8362_vm2, %v15220_v17  ;;  %v3420_v50 = vpop.f32.mrf.mxu0  ;;  %vm8368_vm2 = vmpackc.low %vm1805_vm5, %vm1801_vm3  ;;  %vm1847_vm12 = vcmp.eq.s32.totalorder %v11150_v15, %v12532_v9  ;;  %vm1813_vm3 = vcmp.eq.s32.totalorder %v11185_v44, %v12368_v0  ;;  %vm1834_vm5 = vcmp.eq.s32.totalorder %v11444_v54, %v12489_v26 }
 0x30a   :  { %v3796_v58 = vrot.slane %v3781_v59, 1  ;;  %v3392_v8 = vadd.f32 %v12336_v11, %v2911_v33  ;;  %8365 = vmatprep.mubr.msk.bf16.mxu1 %vm8364_vm10, %v15220_v17  ;;  %vm8568_vm10 = vmpackc.low %vm1830_vm8, %vm1826_vm6  ;;  %v2571_v50 = vpack.c.bf16 %v2283_v31, %v2279_v23  ;;  %vm1838_vm6 = vcmp.eq.s32.totalorder %v11444_v54, %v12491_v30  ;;  %v12571_v31 = vpop.permute.xlu0 %1436 }
 0x30b   :  { %v2913_v28 = vpop.f32.mrf.mxu1  ;;  %v12501_v6 = vpop.f32.mrf.mxu0  ;;  %8566 = vmatmul.mubr.msk.bf16.gmra.mxu0 %vm8565_vm11, %v15220_v17  ;;  %vm1843_vm11 = vcmp.eq.s32.totalorder %v11150_v15, %v12530_v7  ;;  %v2291_v60 = vsel %vm1847_vm12, 1.0, %v15213_v61  ;;  %vm8370_vm8 = vmpackc.low %vm1804_vm14, %vm1800_vm13  ;;  %vm1808_vm12 = vcmp.eq.s32.totalorder %v11135_v2, %v12366_v46  ;;  %vm1812_vm13 = vcmp.eq.s32.totalorder %v11135_v2, %v12368_v0 }
 0x30c   :  { %v12509_v11 = vsel %vm3794_vm4, %v3795_v47, %v3796_v58  ;;  %8567 = vmatprep.mubr.msk.bf16.mxu0 %vm2640_vm7, %v2567_v38  ;;  %v2287_v24 = vsel %vm1843_vm11, 1.0, %v15213_v61  ;;  %vm1817_vm14 = vcmp.eq.s32.totalorder %v11185_v44, %v12410_v29 }
 0x30d   :  { %v2914_v18 = vpop.f32.mrf.mxu1  ;;  %v3425_v45 = vpop.f32.mrf.mxu0 }
 0x30e   :  { %v3395_v27 = vadd.f32 %v12361_v25, %v2914_v18 }
 0x30f   :  { %v2916_v51 = vpop.f32.mrf.mxu1  ;;  %v12527_v63 = vpop.f32.mrf.mxu0 }
 0x310   :  { %v3782_v25 = vpack.c.bf16 %v3395_v27, %v3392_v8  ;;  %v12573_v51 = vpop.permute.xlu1 %1439 }
 0x311   :  { %v2919_v32 = vpop.f32.mrf.mxu1  ;;  %8367 = vmatmul.mubr.msk.bf16.gmra.mxu1 %vm8366_vm9, %v15220_v17  ;;  %v3428_v42 = vpop.f32.mrf.mxu0  ;;  %vm8372_vm9 = vmpackc.low %vm1813_vm3, %vm1809_vm15  ;;  %vm1855_vm11 = vcmp.eq.s32.totalorder %v11150_v15, %v12573_v51  ;;  %vm1821_vm15 = vcmp.eq.s32.totalorder %v11185_v44, %v12412_v49  ;;  %vm1842_vm3 = vcmp.eq.s32.totalorder %v11444_v54, %v12530_v7 }
 0x312   :  { %v3798_v59 = vrot.slane %v3782_v25, 1  ;;  %v3400_v33 = vadd.f32 %v12380_v56, %v2919_v32  ;;  %8369 = vmatprep.mubr.msk.bf16.mxu1 %vm8368_vm2, %v15220_v17  ;;  %vm8571_vm2 = vmpackc.low %vm1838_vm6, %vm1834_vm5  ;;  %v2575_v42 = vpack.c.bf16 %v2291_v60, %v2287_v24  ;;  %vm1846_vm5 = vcmp.eq.s32.totalorder %v11444_v54, %v12532_v9 }
 0x313   :  { %v2921_v47 = vpop.f32.mrf.mxu1  ;;  %v12542_v8 = vpop.f32.mrf.mxu0  ;;  %8569 = vmatmul.mubr.msk.bf16.gmra.mxu0 %vm8568_vm10, %v15220_v17  ;;  %vm1851_vm10 = vcmp.eq.s32.totalorder %v11150_v15, %v12571_v31  ;;  %v2299_v0 = vsel %vm1855_vm11, 1.0, %v15213_v61  ;;  %vm8374_vm6 = vmpackc.low %vm1812_vm13, %vm1808_vm12  ;;  %vm1816_vm11 = vcmp.eq.s32.totalorder %v11135_v2, %v12410_v29  ;;  %vm1820_vm12 = vcmp.eq.s32.totalorder %v11135_v2, %v12412_v49 }
 0x314   :  { %v12550_v56 = vsel %vm3794_vm4, %v3796_v58, %v3798_v59  ;;  %8570 = vmatprep.mubr.msk.bf16.mxu0 %vm2640_vm7, %v2571_v50  ;;  %v2295_v46 = vsel %vm1851_vm10, 1.0, %v15213_v61  ;;  %vm1825_vm13 = vcmp.eq.s32.totalorder %v11185_v44, %v12451_v43 }
 0x315   :  { %v2922_v38 = vpop.f32.mrf.mxu1  ;;  %v3433_v28 = vpop.f32.mrf.mxu0 }
 0x316   :  { %v3403_v18 = vadd.f32 %v12405_v5, %v2922_v38 }
 0x317   :  { %v2924_v58 = vpop.f32.mrf.mxu1  ;;  %v12568_v45 = vpop.f32.mrf.mxu0 }
 0x318   :  { %v3783_v5 = vpack.c.bf16 %v3403_v18, %v3400_v33  ;;  %v12612_v58 = vpop.permute.xlu0 %1442 }
 0x319   :  { %v2927_v27 = vpop.f32.mrf.mxu1  ;;  %8371 = vmatmul.mubr.msk.bf16.gmra.mxu1 %vm8370_vm8, %v15220_v17  ;;  %v3436_v23 = vpop.f32.mrf.mxu0  ;;  %vm8376_vm8 = vmpackc.low %vm1821_vm15, %vm1817_vm14  ;;  %vm1829_vm14 = vcmp.eq.s32.totalorder %v11185_v44, %v12453_v12  ;;  %vm1850_vm15 = vcmp.eq.s32.totalorder %v11444_v54, %v12571_v31 }
 0x31a   :  { %v3800_v25 = vrot.slane %v3783_v5, 1  ;;  %v3408_v32 = vadd.f32 %v12424_v48, %v2927_v27  ;;  %8373 = vmatprep.mubr.msk.bf16.mxu1 %vm8372_vm9, %v15220_v17  ;;  %v12614_v5 = vpop.permute.xlu1 %1445  ;;  %vm8574_vm9 = vmpackc.low %vm1846_vm5, %vm1842_vm3  ;;  %vm1854_vm3 = vcmp.eq.s32.totalorder %v11444_v54, %v12573_v51 }
 0x31b   :  { %v2929_v33 = vpop.f32.mrf.mxu1  ;;  %v12583_v50 = vpop.f32.mrf.mxu0  ;;  %8572 = vmatmul.mubr.msk.bf16.gmra.mxu0 %vm8571_vm2, %v15220_v17  ;;  %vm1859_vm2 = vcmp.eq.s32.totalorder %v11150_v15, %v12612_v58  ;;  %vm1863_vm10 = vcmp.eq.s32.totalorder %v11150_v15, %v12614_v5  ;;  %vm8378_vm5 = vmpackc.low %vm1820_vm12, %vm1816_vm11  ;;  %vm1828_vm11 = vcmp.eq.s32.totalorder %v11135_v2, %v12453_v12  ;;  %vm1833_vm12 = vcmp.eq.s32.totalorder %v11185_v44, %v12489_v26 }
 0x31c   :  { %8573 = vmatprep.mubr.msk.bf16.mxu0 %vm2640_vm7, %v2575_v42  ;;  %v12592_v48 = vsel %vm3794_vm4, %v3798_v59, %v3800_v25  ;;  %v2303_v29 = vsel %vm1859_vm2, 1.0, %v15213_v61  ;;  %v2307_v49 = vsel %vm1863_vm10, 1.0, %v15213_v61  ;;  %vm1824_vm10 = vcmp.eq.s32.totalorder %v11135_v2, %v12451_v43 }
 0x31d   :  { %v2930_v47 = vpop.f32.mrf.mxu1  ;;  %v3441_v38 = vpop.f32.mrf.mxu0 }
 0x31e   :  { %v3411_v28 = vadd.f32 %v12447_v37, %v2930_v47 }
 0x31f   :  { %v2932_v59 = vpop.f32.mrf.mxu1  ;;  %v12609_v18 = vpop.f32.mrf.mxu0 }
 0x320   :  { %v3784_v37 = vpack.c.bf16 %v3411_v28, %v3408_v32  ;;  %v2579_v32 = vpack.c.bf16 %v2299_v0, %v2295_v46 }
 0x321   :  { %v2935_v24 = vpop.f32.mrf.mxu1  ;;  %8375 = vmatmul.mubr.msk.bf16.gmra.mxu1 %vm8374_vm6, %v15220_v17  ;;  %v3444_v60 = vpop.f32.mrf.mxu0  ;;  %vm8380_vm6 = vmpackc.low %vm1829_vm14, %vm1825_vm13  ;;  %vm1837_vm13 = vcmp.eq.s32.totalorder %v11185_v44, %v12491_v30  ;;  %vm1858_vm14 = vcmp.eq.s32.totalorder %v11444_v54, %v12612_v58 }
 0x322   :  { %v3802_v27 = vrot.slane %v3784_v37, 1  ;;  %v3416_v23 = vadd.f32 %v12463_v52, %v2935_v24  ;;  %8377 = vmatprep.mubr.msk.bf16.mxu1 %vm8376_vm8, %v15220_v17  ;;  %v12653_v37 = vpop.permute.xlu0 %1448  ;;  %v12655_v24 = vpop.permute.xlu1 %1451  ;;  %vm8577_vm8 = vmpackc.low %vm1854_vm3, %vm1850_vm15  ;;  %vm1862_vm15 = vcmp.eq.s32.totalorder %v11444_v54, %v12614_v5 }
 0x323   :  { %v2937_v42 = vpop.f32.mrf.mxu1  ;;  %v12624_v33 = vpop.f32.mrf.mxu0  ;;  %8575 = vmatmul.mubr.msk.bf16.gmra.mxu0 %vm8574_vm9, %v15220_v17  ;;  %vm1867_vm9 = vcmp.eq.s32.totalorder %v11150_v15, %v12653_v37  ;;  %vm1871_vm2 = vcmp.eq.s32.totalorder %v11150_v15, %v12655_v24  ;;  %vm8382_vm3 = vmpackc.low %vm1828_vm11, %vm1824_vm10  ;;  %vm1836_vm10 = vcmp.eq.s32.totalorder %v11135_v2, %v12491_v30  ;;  %vm1841_vm11 = vcmp.eq.s32.totalorder %v11185_v44, %v12530_v7 }
 0x324   :  { %8576 = vmatprep.mubr.msk.bf16.mxu0 %vm2640_vm7, %v2579_v32  ;;  %v12633_v52 = vsel %vm3794_vm4, %v3800_v25, %v3802_v27  ;;  %v2311_v12 = vsel %vm1867_vm9, 1.0, %v15213_v61 }
 0x325   :  { %v2938_v47 = vpop.f32.mrf.mxu1  ;;  %v3449_v38 = vpop.f32.mrf.mxu0 }
 0x326   :  { %v3419_v28 = vadd.f32 %v12486_v35, %v2938_v47 }
 0x327   :  { %v2940_v25 = vpop.f32.mrf.mxu1  ;;  %v12650_v46 = vpop.f32.mrf.mxu0 }
 0x328   :  { %v3785_v35 = vpack.c.bf16 %v3419_v28, %v3416_v23  ;;  %v2583_v23 = vpack.c.bf16 %v2307_v49, %v2303_v29 }
 0x329   :  { %v2943_v0 = vpop.f32.mrf.mxu1  ;;  %8379 = vmatmul.mubr.msk.bf16.gmra.mxu1 %vm8378_vm5, %v15220_v17  ;;  %v3452_v59 = vpop.f32.mrf.mxu0  ;;  %vm8384_vm5 = vmpackc.low %vm1837_vm13, %vm1833_vm12  ;;  %vm1845_vm12 = vcmp.eq.s32.totalorder %v11185_v44, %v12532_v9  ;;  %vm1866_vm13 = vcmp.eq.s32.totalorder %v11444_v54, %v12653_v37 }
 0x32a   :  { %v3804_v60 = vrot.slane %v3785_v35, 1  ;;  %v12658_v32 = vadd.f32 %v12501_v6, %v2943_v0  ;;  %8381 = vmatprep.mubr.msk.bf16.mxu1 %vm8380_vm6, %v15220_v17  ;;  %vm8580_vm6 = vmpackc.low %vm1862_vm15, %vm1858_vm14  ;;  %vm1870_vm14 = vcmp.eq.s32.totalorder %v11444_v54, %v12655_v24 }
 0x32b   :  { %v2945_v42 = vpop.f32.mrf.mxu1  ;;  %v12667_v47 = vpop.f32.mrf.mxu0  ;;  %8578 = vmatmul.mubr.msk.bf16.gmra.mxu0 %vm8577_vm8, %v15220_v17 }
 0x32c   :  { %v3786_v6 = vpack.c.bf16 %v12658_v32, %v12658_v32  ;;  %8579 = vmatprep.mubr.msk.bf16.mxu0 %vm2640_vm7, %v2583_v23  ;;  %v12678_v38 = vsel %vm3794_vm4, %v3802_v27, %v3804_v60  ;;  %v2315_v27 = vsel %vm1871_vm2, 1.0, %v15213_v61  ;;  %vm1832_vm2 = vcmp.eq.s32.totalorder %v11135_v2, %v12489_v26 }
 0x32d   :  { %v2946_v28 = vpop.f32.mrf.mxu1  ;;  %v3457_v29 = vpop.f32.mrf.mxu0  ;;  %v2587_v43 = vpack.c.bf16 %v2315_v27, %v2311_v12  ;;  %vm8386_vm15 = vmpackc.low %vm1836_vm10, %vm1832_vm2  ;;  %vm1844_vm2 = vcmp.eq.s32.totalorder %v11135_v2, %v12532_v9  ;;  %vm1849_vm10 = vcmp.eq.s32.totalorder %v11185_v44, %v12571_v31 }
 0x32e   :  { %v12684_v49 = vrot.slane %v3786_v6, 1  ;;  %v3427_v25 = vadd.f32 %v12527_v63, %v2946_v28  ;;  %v12708_v6 = vpop.permute.xlu0 %1454  ;;  %v12710_v28 = vpop.permute.xlu1 %1457 }
 0x32f   :  { %v2948_v35 = vpop.f32.mrf.mxu1  ;;  %v12697_v0 = vpop.f32.mrf.mxu0  ;;  %vm1875_vm8 = vcmp.eq.s32.totalorder %v11150_v15, %v12708_v6  ;;  %vm1879_vm9 = vcmp.eq.s32.totalorder %v11150_v15, %v12710_v28 }
 0x330   :  { %v4050_v63 = vpack.c.bf16 %v3427_v25, %v12658_v32  ;;  %v12705_v59 = vsel %vm3794_vm4, %v3804_v60, %v12684_v49  ;;  %v2319_v26 = vsel %vm1875_vm8, 1.0, %v15213_v61  ;;  %v2323_v30 = vsel %vm1879_vm9, 1.0, %v15213_v61 }
 0x331   :  { %v2951_v23 = vpop.f32.mrf.mxu1  ;;  %8383 = vmatmul.mubr.msk.bf16.gmra.mxu1 %vm8382_vm3, %v15220_v17  ;;  %v3460_v42 = vpop.f32.mrf.mxu0  ;;  %vm8388_vm3 = vmpackc.low %vm1845_vm12, %vm1841_vm11  ;;  %vm1840_vm9 = vcmp.eq.s32.totalorder %v11135_v2, %v12530_v7  ;;  %vm1853_vm11 = vcmp.eq.s32.totalorder %v11185_v44, %v12573_v51  ;;  %vm1874_vm12 = vcmp.eq.s32.totalorder %v11444_v54, %v12708_v6 }
 0x332   :  { %v3432_v29 = vadd.f32 %v12542_v8, %v2951_v23  ;;  %8385 = vmatprep.mubr.msk.bf16.mxu1 %vm8384_vm5, %v15220_v17  ;;  %vm8583_vm5 = vmpackc.low %vm1870_vm14, %vm1866_vm13  ;;  %vm1878_vm13 = vcmp.eq.s32.totalorder %v11444_v54, %v12710_v28 }
 0x333   :  { %v2953_v60 = vpop.f32.mrf.mxu1  ;;  %v12720_v32 = vpop.f32.mrf.mxu0  ;;  %8581 = vmatmul.mubr.msk.bf16.gmra.mxu0 %vm8580_vm6, %v15220_v17  ;;  %vm8390_vm14 = vmpackc.low %vm1844_vm2, %vm1840_vm9  ;;  %vm1852_vm9 = vcmp.eq.s32.totalorder %v11135_v2, %v12573_v51  ;;  %vm1857_vm2 = vcmp.eq.s32.totalorder %v11185_v44, %v12612_v58 }
 0x334   :  { %8582 = vmatprep.mubr.msk.bf16.mxu0 %vm2640_vm7, %v2587_v43  ;;  %v12746_v43 = vpop.permute.xlu0 %1460  ;;  %v12748_v60 = vpop.permute.xlu1 %1463 }
 0x335   :  { %v2954_v8 = vpop.f32.mrf.mxu1  ;;  %v3465_v25 = vpop.f32.mrf.mxu0  ;;  %vm1883_vm6 = vcmp.eq.s32.totalorder %v11150_v15, %v12746_v43  ;;  %vm1887_vm8 = vcmp.eq.s32.totalorder %v11150_v15, %v12748_v60 }
 0x336   :  { %v3435_v12 = vadd.f32 %v12568_v45, %v2954_v8  ;;  %v4065_v8 = vrot.slane %v4050_v63, 2  ;;  %v2327_v7 = vsel %vm1883_vm6, 1.0, %v15213_v61  ;;  %v2331_v9 = vsel %vm1887_vm8, 1.0, %v15213_v61 }
 0x337   :  { %v2956_v27 = vpop.f32.mrf.mxu1  ;;  %v12743_v35 = vpop.f32.mrf.mxu0  ;;  %vm1848_vm8 = vcmp.eq.s32.totalorder %v11135_v2, %v12571_v31 }
 0x338   :  { %v4051_v45 = vpack.c.bf16 %v3435_v12, %v3432_v29  ;;  %v2591_v29 = vpack.c.bf16 %v2323_v30, %v2319_v26 }
 0x339   :  { %v2959_v23 = vpop.f32.mrf.mxu1  ;;  %8387 = vmatmul.mubr.msk.bf16.gmra.mxu1 %vm8386_vm15, %v15220_v17  ;;  %v3468_v42 = vpop.f32.mrf.mxu0  ;;  %vm8392_vm15 = vmpackc.low %vm1853_vm11, %vm1849_vm10  ;;  %vm1861_vm10 = vcmp.eq.s32.totalorder %v11185_v44, %v12614_v5  ;;  %vm1882_vm11 = vcmp.eq.s32.totalorder %v11444_v54, %v12746_v43 }
 0x33a   :  { %v4066_v25 = vrot.slane %v4051_v45, 2  ;;  %v3440_v13 = vadd.f32 %v12583_v50, %v2959_v23  ;;  %8389 = vmatprep.mubr.msk.bf16.mxu1 %vm8388_vm3, %v15220_v17  ;;  %vm8586_vm3 = vmpackc.low %vm1878_vm13, %vm1874_vm12  ;;  %vm1886_vm12 = vcmp.eq.s32.totalorder %v11444_v54, %v12748_v60 }
 0x33b   :  { %v2961_v12 = vpop.f32.mrf.mxu1  ;;  %v12758_v27 = vpop.f32.mrf.mxu0  ;;  %8584 = vmatmul.mubr.msk.bf16.gmra.mxu0 %vm8583_vm5, %v15220_v17  ;;  %vm8394_vm13 = vmpackc.low %vm1852_vm9, %vm1848_vm8  ;;  %vm1860_vm8 = vcmp.eq.s32.totalorder %v11135_v2, %v12614_v5  ;;  %vm1865_vm9 = vcmp.eq.s32.totalorder %v11185_v44, %v12653_v37 }
 0x33c   :  { %v12766_v50 = vsel %vm306_vm1, %v4065_v8, %v4066_v25  ;;  %8585 = vmatprep.mubr.msk.bf16.mxu0 %vm2640_vm7, %v2591_v29  ;;  %v12787_v29 = vpop.permute.xlu0 %1466  ;;  %v12789_v12 = vpop.permute.xlu1 %1469 }
 0x33d   :  { %v2962_v63 = vpop.f32.mrf.mxu1  ;;  %v3473_v26 = vpop.f32.mrf.mxu0  ;;  %vm1891_vm5 = vcmp.eq.s32.totalorder %v11150_v15, %v12787_v29  ;;  %vm1895_vm6 = vcmp.eq.s32.totalorder %v11150_v15, %v12789_v12 }
 0x33e   :  { %v3443_v30 = vadd.f32 %v12609_v18, %v2962_v63  ;;  %v2335_v31 = vsel %vm1891_vm5, 1.0, %v15213_v61  ;;  %v2339_v51 = vsel %vm1895_vm6, 1.0, %v15213_v61  ;;  %vm1856_vm6 = vcmp.eq.s32.totalorder %v11135_v2, %v12612_v58 }
 0x33f   :  { %v2964_v45 = vpop.f32.mrf.mxu1  ;;  %v12784_v23 = vpop.f32.mrf.mxu0 }
 0x340   :  { %v4052_v18 = vpack.c.bf16 %v3443_v30, %v3440_v13  ;;  %v2595_v13 = vpack.c.bf16 %v2331_v9, %v2327_v7 }
 0x341   :  { %v2967_v42 = vpop.f32.mrf.mxu1  ;;  %8391 = vmatmul.mubr.msk.bf16.gmra.mxu1 %vm8390_vm14, %v15220_v17  ;;  %v3476_v8 = vpop.f32.mrf.mxu0  ;;  %vm8396_vm14 = vmpackc.low %vm1861_vm10, %vm1857_vm2  ;;  %vm1869_vm2 = vcmp.eq.s32.totalorder %v11185_v44, %v12655_v24  ;;  %vm1890_vm10 = vcmp.eq.s32.totalorder %v11444_v54, %v12787_v29 }
 0x342   :  { %v4068_v63 = vrot.slane %v4052_v18, 2  ;;  %v3448_v26 = vadd.f32 %v12624_v33, %v2967_v42  ;;  %8393 = vmatprep.mubr.msk.bf16.mxu1 %vm8392_vm15, %v15220_v17  ;;  %vm8589_vm15 = vmpackc.low %vm1886_vm12, %vm1882_vm11  ;;  %vm1894_vm11 = vcmp.eq.s32.totalorder %v11444_v54, %v12789_v12 }
 0x343   :  { %v2969_v30 = vpop.f32.mrf.mxu1  ;;  %v12799_v45 = vpop.f32.mrf.mxu0  ;;  %8587 = vmatmul.mubr.msk.bf16.gmra.mxu0 %vm8586_vm3, %v15220_v17  ;;  %vm8398_vm12 = vmpackc.low %vm1860_vm8, %vm1856_vm6  ;;  %vm1868_vm6 = vcmp.eq.s32.totalorder %v11135_v2, %v12655_v24  ;;  %vm1873_vm8 = vcmp.eq.s32.totalorder %v11185_v44, %v12708_v6 }
 0x344   :  { %8588 = vmatprep.mubr.msk.bf16.mxu0 %vm2640_vm7, %v2595_v13  ;;  %v12808_v33 = vsel %vm306_vm1, %v4066_v25, %v4068_v63  ;;  %v12828_v30 = vpop.permute.xlu0 %1472 }
 0x345   :  { %v2970_v7 = vpop.f32.mrf.mxu1  ;;  %v3481_v9 = vpop.f32.mrf.mxu0  ;;  %vm1899_vm3 = vcmp.eq.s32.totalorder %v11150_v15, %v12828_v30 }
 0x346   :  { %v3451_v18 = vadd.f32 %v12650_v46, %v2970_v7  ;;  %v12830_v7 = vpop.permute.xlu1 %1475  ;;  %v2343_v58 = vsel %vm1899_vm3, 1.0, %v15213_v61 }
 0x347   :  { %v2972_v25 = vpop.f32.mrf.mxu1  ;;  %v12825_v42 = vpop.f32.mrf.mxu0  ;;  %vm1903_vm5 = vcmp.eq.s32.totalorder %v11150_v15, %v12830_v7 }
 0x348   :  { %v4053_v46 = vpack.c.bf16 %v3451_v18, %v3448_v26  ;;  %v2599_v26 = vpack.c.bf16 %v2339_v51, %v2335_v31  ;;  %v2347_v5 = vsel %vm1903_vm5, 1.0, %v15213_v61  ;;  %vm1864_vm5 = vcmp.eq.s32.totalorder %v11135_v2, %v12653_v37 }
 0x349   :  { %v2975_v8 = vpop.f32.mrf.mxu1  ;;  %8395 = vmatmul.mubr.msk.bf16.gmra.mxu1 %vm8394_vm13, %v15220_v17  ;;  %v3484_v13 = vpop.f32.mrf.mxu0  ;;  %vm8400_vm13 = vmpackc.low %vm1869_vm2, %vm1865_vm9  ;;  %vm1877_vm9 = vcmp.eq.s32.totalorder %v11185_v44, %v12710_v28  ;;  %vm1898_vm2 = vcmp.eq.s32.totalorder %v11444_v54, %v12828_v30 }
 0x34a   :  { %v4070_v9 = vrot.slane %v4053_v46, 2  ;;  %v3456_v34 = vadd.f32 %v12667_v47, %v2975_v8  ;;  %8397 = vmatprep.mubr.msk.bf16.mxu1 %vm8396_vm14, %v15220_v17  ;;  %vm8592_vm14 = vmpackc.low %vm1894_vm11, %vm1890_vm10  ;;  %vm1902_vm10 = vcmp.eq.s32.totalorder %v11444_v54, %v12830_v7 }
 0x34b   :  { %v2977_v18 = vpop.f32.mrf.mxu1  ;;  %v12840_v25 = vpop.f32.mrf.mxu0  ;;  %8590 = vmatmul.mubr.msk.bf16.gmra.mxu0 %vm8589_vm15, %v15220_v17  ;;  %vm8402_vm11 = vmpackc.low %vm1868_vm6, %vm1864_vm5  ;;  %vm1876_vm5 = vcmp.eq.s32.totalorder %v11135_v2, %v12710_v28  ;;  %vm1881_vm6 = vcmp.eq.s32.totalorder %v11185_v44, %v12746_v43 }
 0x34c   :  { %8591 = vmatprep.mubr.msk.bf16.mxu0 %vm2640_vm7, %v2599_v26  ;;  %v12849_v47 = vsel %vm306_vm1, %v4068_v63, %v4070_v9  ;;  %v12869_v18 = vpop.permute.xlu0 %1478 }
 0x34d   :  { %v2978_v31 = vpop.f32.mrf.mxu1  ;;  %v3489_v51 = vpop.f32.mrf.mxu0  ;;  %vm1907_vm15 = vcmp.eq.s32.totalorder %v11150_v15, %v12869_v18 }
 0x34e   :  { %v3459_v46 = vadd.f32 %v12697_v0, %v2978_v31  ;;  %v12871_v31 = vpop.permute.xlu1 %1481  ;;  %v2351_v37 = vsel %vm1907_vm15, 1.0, %v15213_v61 }
 0x34f   :  { %v2980_v63 = vpop.f32.mrf.mxu1  ;;  %v12866_v8 = vpop.f32.mrf.mxu0  ;;  %vm1911_vm3 = vcmp.eq.s32.totalorder %v11150_v15, %v12871_v31 }
 0x350   :  { %v4054_v0 = vpack.c.bf16 %v3459_v46, %v3456_v34  ;;  %v2603_v34 = vpack.c.bf16 %v2347_v5, %v2343_v58  ;;  %v2355_v24 = vsel %vm1911_vm3, 1.0, %v15213_v61  ;;  %vm1872_vm3 = vcmp.eq.s32.totalorder %v11135_v2, %v12708_v6 }
 0x351   :  { %v2983_v13 = vpop.f32.mrf.mxu1  ;;  %8399 = vmatmul.mubr.msk.bf16.gmra.mxu1 %vm8398_vm12, %v15220_v17  ;;  %v3492_v26 = vpop.f32.mrf.mxu0  ;;  %vm8404_vm12 = vmpackc.low %vm1877_vm9, %vm1873_vm8  ;;  %vm1885_vm8 = vcmp.eq.s32.totalorder %v11185_v44, %v12748_v60  ;;  %vm1906_vm9 = vcmp.eq.s32.totalorder %v11444_v54, %v12869_v18 }
 0x352   :  { %v4072_v51 = vrot.slane %v4054_v0, 2  ;;  %v3464_v57 = vadd.f32 %v12720_v32, %v2983_v13  ;;  %8401 = vmatprep.mubr.msk.bf16.mxu1 %vm8400_vm13, %v15220_v17  ;;  %vm8595_vm13 = vmpackc.low %vm1902_vm10, %vm1898_vm2  ;;  %vm1910_vm2 = vcmp.eq.s32.totalorder %v11444_v54, %v12871_v31 }
 0x353   :  { %v2985_v46 = vpop.f32.mrf.mxu1  ;;  %v12881_v63 = vpop.f32.mrf.mxu0  ;;  %8593 = vmatmul.mubr.msk.bf16.gmra.mxu0 %vm8592_vm14, %v15220_v17  ;;  %vm8406_vm10 = vmpackc.low %vm1876_vm5, %vm1872_vm3  ;;  %vm1884_vm3 = vcmp.eq.s32.totalorder %v11135_v2, %v12748_v60  ;;  %vm1889_vm5 = vcmp.eq.s32.totalorder %v11185_v44, %v12787_v29 }
 0x354   :  { %8594 = vmatprep.mubr.msk.bf16.mxu0 %vm2640_vm7, %v2603_v34  ;;  %v12890_v32 = vsel %vm306_vm1, %v4070_v9, %v4072_v51  ;;  %v12910_v46 = vpop.permute.xlu0 %1484 }
 0x355   :  { %15279 = vst [vmem:[#allocation68_spill] sm:$0xff] %v12890_v32  ;;  %v2986_v58 = vpop.f32.mrf.mxu1  ;;  %v3497_v5 = vpop.f32.mrf.mxu0  ;;  %vm1915_vm14 = vcmp.eq.s32.totalorder %v11150_v15, %v12910_v46 }
 0x356   :  { %v3467_v0 = vadd.f32 %v12743_v35, %v2986_v58  ;;  %v12912_v58 = vpop.permute.xlu1 %1487  ;;  %v2359_v28 = vsel %vm1915_vm14, 1.0, %v15213_v61 }
 0x357   :  { %v2988_v9 = vpop.f32.mrf.mxu1  ;;  %v12907_v13 = vpop.f32.mrf.mxu0  ;;  %vm1919_vm15 = vcmp.eq.s32.totalorder %v11150_v15, %v12912_v58 }
 0x358   :  { %v4055_v35 = vpack.c.bf16 %v3467_v0, %v3464_v57  ;;  %v2607_v57 = vpack.c.bf16 %v2355_v24, %v2351_v37  ;;  %v12965_v55 = vpop.permute.xlu0 %1490 }
 0x359   :  { %v2991_v26 = vpop.f32.mrf.mxu1  ;;  %8403 = vmatmul.mubr.msk.bf16.gmra.mxu1 %vm8402_vm11, %v15220_v17  ;;  %v3500_v34 = vpop.f32.mrf.mxu0  ;;  %vm8408_vm11 = vmpackc.low %vm1885_vm8, %vm1881_vm6  ;;  %vm1893_vm6 = vcmp.eq.s32.totalorder %v11185_v44, %v12789_v12  ;;  %vm1914_vm8 = vcmp.eq.s32.totalorder %v11444_v54, %v12910_v46 }
 0x35a   :  { %v4074_v5 = vrot.slane %v4055_v35, 2  ;;  %v12915_v16 = vadd.f32 %v12758_v27, %v2991_v26  ;;  %8405 = vmatprep.mubr.msk.bf16.mxu1 %vm8404_vm12, %v15220_v17  ;;  %vm8598_vm12 = vmpackc.low %vm1910_vm2, %vm1906_vm9  ;;  %vm1918_vm9 = vcmp.eq.s32.totalorder %v11444_v54, %v12912_v58 }
 0x35b   :  { %v2993_v0 = vpop.f32.mrf.mxu1  ;;  %v12924_v9 = vpop.f32.mrf.mxu0  ;;  %8596 = vmatmul.mubr.msk.bf16.gmra.mxu0 %vm8595_vm13, %v15220_v17  ;;  %vm1923_vm13 = vcmp.eq.s32.totalorder %v11150_v15, %v12965_v55 }
 0x35c   :  { %v4056_v27 = vpack.c.bf16 %v12915_v16, %v12915_v16  ;;  %8597 = vmatprep.mubr.msk.bf16.mxu0 %vm2640_vm7, %v2607_v57  ;;  %v12935_v35 = vsel %vm306_vm1, %v4072_v51, %v4074_v5  ;;  %v2363_v51 = vsel %vm1919_vm15, 1.0, %v15213_v61  ;;  %vm1880_vm15 = vcmp.eq.s32.totalorder %v11135_v2, %v12746_v43 }
 0x35d   :  { %15280 = vst [vmem:[#allocation2_spill] sm:$0xff] %v12935_v35  ;;  %v2994_v37 = vpop.f32.mrf.mxu1  ;;  %v3505_v24 = vpop.f32.mrf.mxu0  ;;  %v2367_v43 = vsel %vm1923_vm13, 1.0, %v15213_v61  ;;  %vm8410_vm2 = vmpackc.low %vm1884_vm3, %vm1880_vm15  ;;  %vm1892_vm15 = vcmp.eq.s32.totalorder %v11135_v2, %v12789_v12  ;;  %vm1897_vm3 = vcmp.eq.s32.totalorder %v11185_v44, %v12828_v30 }
 0x35e   :  { %v12941_v26 = vrot.slane %v4056_v27, 2  ;;  %v3475_v34 = vadd.f32 %v12784_v23, %v2994_v37 }
 0x35f   :  { %v2996_v57 = vpop.f32.mrf.mxu1  ;;  %v12954_v0 = vpop.f32.mrf.mxu0 }
 0x360   :  { %15281 = vst [vmem:[#allocation62_spill] sm:$0xff] %v12941_v26  ;;  %v4212_v23 = vpack.c.bf16 %v3475_v34, %v12915_v16  ;;  %v12962_v27 = vsel %vm306_vm1, %v4074_v5, %v12941_v26  ;;  %v12967_v57 = vpop.permute.xlu1 %1493  ;;  %v2611_v16 = vpack.c.bf16 %v2363_v51, %v2359_v28 }
 0x361   :  { %15282 = vst [vmem:[#allocation64_spill] sm:$0xff] %v12962_v27  ;;  %v2999_v37 = vpop.f32.mrf.mxu1  ;;  %8407 = vmatmul.mubr.msk.bf16.gmra.mxu1 %vm8406_vm10, %v15220_v17  ;;  %v3508_v24 = vpop.f32.mrf.mxu0  ;;  %vm1927_vm14 = vcmp.eq.s32.totalorder %v11150_v15, %v12967_v57  ;;  %vm8412_vm10 = vmpackc.low %vm1893_vm6, %vm1889_vm5  ;;  %vm1901_vm5 = vcmp.eq.s32.totalorder %v11185_v44, %v12830_v7  ;;  %vm1922_vm6 = vcmp.eq.s32.totalorder %v11444_v54, %v12965_v55 }
 0x362   :  { %v3480_v21 = vadd.f32 %v12799_v45, %v2999_v37  ;;  %8409 = vmatprep.mubr.msk.bf16.mxu1 %vm8408_vm11, %v15220_v17  ;;  %v2371_v60 = vsel %vm1927_vm14, 1.0, %v15213_v61  ;;  %vm8601_vm11 = vmpackc.low %vm1918_vm9, %vm1914_vm8  ;;  %vm1888_vm14 = vcmp.eq.s32.totalorder %v11135_v2, %v12787_v29  ;;  %vm1926_vm8 = vcmp.eq.s32.totalorder %v11444_v54, %v12967_v57 }
 0x363   :  { %v3001_v6 = vpop.f32.mrf.mxu1  ;;  %v12977_v5 = vpop.f32.mrf.mxu0  ;;  %8599 = vmatmul.mubr.msk.bf16.gmra.mxu0 %vm8598_vm12, %v15220_v17  ;;  %vm8414_vm9 = vmpackc.low %vm1892_vm15, %vm1888_vm14  ;;  %vm1900_vm14 = vcmp.eq.s32.totalorder %v11135_v2, %v12830_v7  ;;  %vm1905_vm15 = vcmp.eq.s32.totalorder %v11185_v44, %v12869_v18 }
 0x364   :  { %8600 = vmatprep.mubr.msk.bf16.mxu0 %vm2640_vm7, %v2611_v16  ;;  %v13003_v6 = vpop.permute.xlu0 %1496 }
 0x365   :  { %v3002_v45 = vpop.f32.mrf.mxu1  ;;  %v3513_v34 = vpop.f32.mrf.mxu0  ;;  %vm1931_vm12 = vcmp.eq.s32.totalorder %v11150_v15, %v13003_v6 }
 0x366   :  { %v3483_v28 = vadd.f32 %v12825_v42, %v3002_v45  ;;  %v13005_v45 = vpop.permute.xlu1 %1499  ;;  %v4227_v34 = vrot.slane %v4212_v23, 3  ;;  %v2375_v29 = vsel %vm1931_vm12, 1.0, %v15213_v61 }
 0x367   :  { %v3004_v51 = vpop.f32.mrf.mxu1  ;;  %v13000_v37 = vpop.f32.mrf.mxu0  ;;  %vm1935_vm13 = vcmp.eq.s32.totalorder %v11150_v15, %v13005_v45 }
 0x368   :  { %v4213_v42 = vpack.c.bf16 %v3483_v28, %v3480_v21  ;;  %v2615_v21 = vpack.c.bf16 %v2371_v60, %v2367_v43  ;;  %v2379_v12 = vsel %vm1935_vm13, 1.0, %v15213_v61  ;;  %vm1896_vm13 = vcmp.eq.s32.totalorder %v11135_v2, %v12828_v30 }
 0x369   :  { %v3007_v24 = vpop.f32.mrf.mxu1  ;;  %8411 = vmatmul.mubr.msk.bf16.gmra.mxu1 %vm8410_vm2, %v15220_v17  ;;  %v3516_v16 = vpop.f32.mrf.mxu0  ;;  %vm8416_vm2 = vmpackc.low %vm1901_vm5, %vm1897_vm3  ;;  %vm1909_vm3 = vcmp.eq.s32.totalorder %v11185_v44, %v12871_v31  ;;  %vm1930_vm5 = vcmp.eq.s32.totalorder %v11444_v54, %v13003_v6 }
 0x36a   :  { %v4228_v4 = vrot.slane %v4213_v42, 3  ;;  %v3488_v26 = vadd.f32 %v12840_v25, %v3007_v24  ;;  %8413 = vmatprep.mubr.msk.bf16.mxu1 %vm8412_vm10, %v15220_v17  ;;  %vm8604_vm10 = vmpackc.low %vm1926_vm8, %vm1922_vm6  ;;  %vm1934_vm6 = vcmp.eq.s32.totalorder %v11444_v54, %v13005_v45 }
 0x36b   :  { %v3009_v28 = vpop.f32.mrf.mxu1  ;;  %v13015_v51 = vpop.f32.mrf.mxu0  ;;  %8602 = vmatmul.mubr.msk.bf16.gmra.mxu0 %vm8601_vm11, %v15220_v17  ;;  %vm8418_vm8 = vmpackc.low %vm1900_vm14, %vm1896_vm13  ;;  %vm1908_vm13 = vcmp.eq.s32.totalorder %v11135_v2, %v12871_v31  ;;  %vm1913_vm14 = vcmp.eq.s32.totalorder %v11185_v44, %v12910_v46 }
 0x36c   :  { %v13023_v25 = vsel %vm305_vm0, %v4227_v34, %v4228_v4  ;;  %8603 = vmatprep.mubr.msk.bf16.mxu0 %vm2640_vm7, %v2615_v21  ;;  %v13044_v21 = vpop.permute.xlu0 %1502  ;;  %v13046_v28 = vpop.permute.xlu1 %1505 }
 0x36d   :  { %v3010_v23 = vpop.f32.mrf.mxu1  ;;  %v3521_v43 = vpop.f32.mrf.mxu0  ;;  %vm1939_vm11 = vcmp.eq.s32.totalorder %v11150_v15, %v13044_v21  ;;  %vm1943_vm12 = vcmp.eq.s32.totalorder %v11150_v15, %v13046_v28 }
 0x36e   :  { %v3491_v60 = vadd.f32 %v12866_v8, %v3010_v23  ;;  %v2387_v30 = vsel %vm1943_vm12, 1.0, %v15213_v61  ;;  %vm1904_vm12 = vcmp.eq.s32.totalorder %v11135_v2, %v12869_v18 }
 0x36f   :  { %v3012_v42 = vpop.f32.mrf.mxu1  ;;  %v13041_v24 = vpop.f32.mrf.mxu0 }
 0x370   :  { %v4214_v8 = vpack.c.bf16 %v3491_v60, %v3488_v26  ;;  %v2619_v26 = vpack.c.bf16 %v2379_v12, %v2375_v29 }
 0x371   :  { %v3015_v16 = vpop.f32.mrf.mxu1  ;;  %8415 = vmatmul.mubr.msk.bf16.gmra.mxu1 %vm8414_vm9, %v15220_v17  ;;  %v3524_v34 = vpop.f32.mrf.mxu0  ;;  %vm8420_vm9 = vmpackc.low %vm1909_vm3, %vm1905_vm15  ;;  %vm1917_vm15 = vcmp.eq.s32.totalorder %v11185_v44, %v12912_v58  ;;  %vm1938_vm3 = vcmp.eq.s32.totalorder %v11444_v54, %v13044_v21 }
 0x372   :  { %v4230_v23 = vrot.slane %v4214_v8, 3  ;;  %v3496_v43 = vadd.f32 %v12881_v63, %v3015_v16  ;;  %8417 = vmatprep.mubr.msk.bf16.mxu1 %vm8416_vm2, %v15220_v17  ;;  %vm8607_vm2 = vmpackc.low %vm1934_vm6, %vm1930_vm5  ;;  %vm1942_vm5 = vcmp.eq.s32.totalorder %v11444_v54, %v13046_v28 }
 0x373   :  { %v3017_v60 = vpop.f32.mrf.mxu1  ;;  %v13056_v42 = vpop.f32.mrf.mxu0  ;;  %8605 = vmatmul.mubr.msk.bf16.gmra.mxu0 %vm8604_vm10, %v15220_v17  ;;  %vm8422_vm6 = vmpackc.low %vm1908_vm13, %vm1904_vm12  ;;  %vm1916_vm12 = vcmp.eq.s32.totalorder %v11135_v2, %v12912_v58  ;;  %vm1921_vm13 = vcmp.eq.s32.totalorder %v11185_v44, %v12965_v55 }
 0x374   :  { %8606 = vmatprep.mubr.msk.bf16.mxu0 %vm2640_vm7, %v2619_v26  ;;  %v13065_v63 = vsel %vm305_vm0, %v4228_v4, %v4230_v23  ;;  %v2383_v4 = vsel %vm1939_vm11, 1.0, %v15213_v61  ;;  %v13085_v60 = vpop.permute.xlu0 %1508 }
 0x375   :  { %v3018_v29 = vpop.f32.mrf.mxu1  ;;  %v3529_v12 = vpop.f32.mrf.mxu0  ;;  %vm1947_vm10 = vcmp.eq.s32.totalorder %v11150_v15, %v13085_v60 }
 0x376   :  { %v3499_v8 = vadd.f32 %v12907_v13, %v3018_v29  ;;  %v13087_v29 = vpop.permute.xlu1 %1511  ;;  %v2391_v18 = vsel %vm1947_vm10, 1.0, %v15213_v61 }
 0x377   :  { %v3020_v7 = vpop.f32.mrf.mxu1  ;;  %v13082_v16 = vpop.f32.mrf.mxu0  ;;  %vm1951_vm11 = vcmp.eq.s32.totalorder %v11150_v15, %v13087_v29 }
 0x378   :  { %v4215_v13 = vpack.c.bf16 %v3499_v8, %v3496_v43  ;;  %v2623_v43 = vpack.c.bf16 %v2387_v30, %v2383_v4  ;;  %v2395_v31 = vsel %vm1951_vm11, 1.0, %v15213_v61  ;;  %vm1912_vm11 = vcmp.eq.s32.totalorder %v11135_v2, %v12910_v46 }
 0x379   :  { %v3023_v34 = vpop.f32.mrf.mxu1  ;;  %8419 = vmatmul.mubr.msk.bf16.gmra.mxu1 %vm8418_vm8, %v15220_v17  ;;  %v3532_v26 = vpop.f32.mrf.mxu0  ;;  %vm8424_vm8 = vmpackc.low %vm1917_vm15, %vm1913_vm14  ;;  %vm1925_vm14 = vcmp.eq.s32.totalorder %v11185_v44, %v12967_v57  ;;  %vm1946_vm15 = vcmp.eq.s32.totalorder %v11444_v54, %v13085_v60 }
 0x37a   :  { %v4232_v12 = vrot.slane %v4215_v13, 3  ;;  %v3504_v27 = vadd.f32 %v12924_v9, %v3023_v34  ;;  %8421 = vmatprep.mubr.msk.bf16.mxu1 %vm8420_vm9, %v15220_v17  ;;  %vm8610_vm9 = vmpackc.low %vm1942_vm5, %vm1938_vm3  ;;  %vm1950_vm3 = vcmp.eq.s32.totalorder %v11444_v54, %v13087_v29 }
 0x37b   :  { %v3025_v8 = vpop.f32.mrf.mxu1  ;;  %v13097_v7 = vpop.f32.mrf.mxu0  ;;  %8608 = vmatmul.mubr.msk.bf16.gmra.mxu0 %vm8607_vm2, %v15220_v17  ;;  %vm8426_vm5 = vmpackc.low %vm1916_vm12, %vm1912_vm11  ;;  %vm1924_vm11 = vcmp.eq.s32.totalorder %v11135_v2, %v12967_v57  ;;  %vm1929_vm12 = vcmp.eq.s32.totalorder %v11185_v44, %v13003_v6 }
 0x37c   :  { %8609 = vmatprep.mubr.msk.bf16.mxu0 %vm2640_vm7, %v2623_v43  ;;  %v13106_v9 = vsel %vm305_vm0, %v4230_v23, %v4232_v12  ;;  %v13126_v8 = vpop.permute.xlu0 %1514 }
 0x37d   :  { %v3026_v4 = vpop.f32.mrf.mxu1  ;;  %v3537_v30 = vpop.f32.mrf.mxu0  ;;  %vm1955_vm2 = vcmp.eq.s32.totalorder %v11150_v15, %v13126_v8 }
 0x37e   :  { %v3507_v13 = vadd.f32 %v12954_v0, %v3026_v4  ;;  %v13128_v4 = vpop.permute.xlu1 %1517  ;;  %v2399_v46 = vsel %vm1955_vm2, 1.0, %v15213_v61 }
 0x37f   :  { %v3028_v23 = vpop.f32.mrf.mxu1  ;;  %v13123_v34 = vpop.f32.mrf.mxu0  ;;  %vm1959_vm10 = vcmp.eq.s32.totalorder %v11150_v15, %v13128_v4 }
 0x380   :  { %v4216_v0 = vpack.c.bf16 %v3507_v13, %v3504_v27  ;;  %v2627_v27 = vpack.c.bf16 %v2395_v31, %v2391_v18  ;;  %v2403_v58 = vsel %vm1959_vm10, 1.0, %v15213_v61  ;;  %vm1920_vm10 = vcmp.eq.s32.totalorder %v11135_v2, %v12965_v55 }
 0x381   :  { %v3031_v26 = vpop.f32.mrf.mxu1  ;;  %8423 = vmatmul.mubr.msk.bf16.gmra.mxu1 %vm8422_vm6, %v15220_v17  ;;  %v3540_v43 = vpop.f32.mrf.mxu0  ;;  %vm8428_vm6 = vmpackc.low %vm1925_vm14, %vm1921_vm13  ;;  %vm1933_vm13 = vcmp.eq.s32.totalorder %v11185_v44, %v13005_v45  ;;  %vm1954_vm14 = vcmp.eq.s32.totalorder %v11444_v54, %v13126_v8 }
 0x382   :  { %v4234_v30 = vrot.slane %v4216_v0, 3  ;;  %v3512_v35 = vadd.f32 %v12977_v5, %v3031_v26  ;;  %8425 = vmatprep.mubr.msk.bf16.mxu1 %vm8424_vm8, %v15220_v17  ;;  %vm8613_vm8 = vmpackc.low %vm1950_vm3, %vm1946_vm15  ;;  %vm1958_vm15 = vcmp.eq.s32.totalorder %v11444_v54, %v13128_v4 }
 0x383   :  { %v3033_v13 = vpop.f32.mrf.mxu1  ;;  %v13138_v23 = vpop.f32.mrf.mxu0  ;;  %8611 = vmatmul.mubr.msk.bf16.gmra.mxu0 %vm8610_vm9, %v15220_v17  ;;  %vm8430_vm3 = vmpackc.low %vm1924_vm11, %vm1920_vm10  ;;  %vm1937_vm10 = vcmp.eq.s32.totalorder %v11185_v44, %v13044_v21  ;;  %vm1941_vm11 = vcmp.eq.s32.totalorder %v11185_v44, %v13046_v28 }
 0x384   :  { %8612 = vmatprep.mubr.msk.bf16.mxu0 %vm2640_vm7, %v2627_v27  ;;  %v13147_v5 = vsel %vm305_vm0, %v4232_v12, %v4234_v30  ;;  %v13167_v13 = vpop.permute.xlu0 %1520 }
 0x385   :  { %v3034_v18 = vpop.f32.mrf.mxu1  ;;  %v3545_v31 = vpop.f32.mrf.mxu0  ;;  %vm1963_vm9 = vcmp.eq.s32.totalorder %v11150_v15, %v13167_v13 }
 0x386   :  { %v3515_v0 = vadd.f32 %v13000_v37, %v3034_v18  ;;  %v13169_v18 = vpop.permute.xlu1 %1523  ;;  %v2407_v55 = vsel %vm1963_vm9, 1.0, %v15213_v61  ;;  %vm1928_vm9 = vcmp.eq.s32.totalorder %v11135_v2, %v13003_v6 }
 0x387   :  { %v3036_v12 = vpop.f32.mrf.mxu1  ;;  %v13164_v26 = vpop.f32.mrf.mxu0  ;;  %vm1967_vm2 = vcmp.eq.s32.totalorder %v11150_v15, %v13169_v18 }
 0x388   :  { %v4217_v37 = vpack.c.bf16 %v3515_v0, %v3512_v35  ;;  %v2631_v35 = vpack.c.bf16 %v2403_v58, %v2399_v46 }
 0x389   :  { %v3039_v43 = vpop.f32.mrf.mxu1  ;;  %8427 = vmatmul.mubr.msk.bf16.gmra.mxu1 %vm8426_vm5, %v15220_v17  ;;  %v3548_v27 = vpop.f32.mrf.mxu0  ;;  %vm8432_vm5 = vmpackc.low %vm1933_vm13, %vm1929_vm12  ;;  %vm1962_vm12 = vcmp.eq.s32.totalorder %v11444_v54, %v13167_v13  ;;  %vm1966_vm13 = vcmp.eq.s32.totalorder %v11444_v54, %v13169_v18 }
 0x38a   :  { %v4236_v31 = vrot.slane %v4217_v37, 3  ;;  %v3520_v32 = vadd.f32 %v13015_v51, %v3039_v43  ;;  %8429 = vmatprep.mubr.msk.bf16.mxu1 %vm8428_vm6, %v15220_v17  ;;  %vm8616_vm6 = vmpackc.low %vm1958_vm15, %vm1954_vm14 }
 0x38b   :  { %v3041_v0 = vpop.f32.mrf.mxu1  ;;  %v13179_v12 = vpop.f32.mrf.mxu0  ;;  %8614 = vmatmul.mubr.msk.bf16.gmra.mxu0 %vm8613_vm8, %v15220_v17  ;;  %vm8436_vm15 = vmpackc.low %vm1941_vm11, %vm1937_vm10 }
 0x38c   :  { %v4218_v51 = vpack.c.bf16 %v3520_v32, %v3520_v32  ;;  %8615 = vmatprep.mubr.msk.bf16.mxu0 %vm2640_vm7, %v2631_v35  ;;  %v13188_v37 = vsel %vm305_vm0, %v4234_v30, %v4236_v31  ;;  %v2411_v32 = vsel %vm1967_vm2, 1.0, %v15213_v61  ;;  %vm1932_vm2 = vcmp.eq.s32.totalorder %v11135_v2, %v13005_v45 }
 0x38d   :  { %v3042_v46 = vpop.f32.mrf.mxu1  ;;  %v3553_v58 = vpop.f32.mrf.mxu0  ;;  %vm8434_vm14 = vmpackc.low %vm1932_vm2, %vm1928_vm9  ;;  %vm1949_vm9 = vcmp.eq.s32.totalorder %v11185_v44, %v13087_v29 }
 0x38e   :  { %v13194_v43 = vrot.slane %v4218_v51, 3  ;;  %v13197_v27 = vadd.f32 %v13041_v24, %v3042_v46  ;;  %v13216_v51 = vpop.permute.xlu0 %1526  ;;  %v2635_v58 = vpack.c.bf16 %v2411_v32, %v2407_v55 }
 0x38f   :  { %v3044_v57 = vpop.f32.mrf.mxu1  ;;  %v13209_v30 = vpop.f32.mrf.mxu0  ;;  %vm1971_vm8 = vcmp.eq.s32.totalorder %v11150_v15, %v13216_v51 }
 0x390   :  { %v13213_v24 = vsel %vm305_vm0, %v4236_v31, %v13194_v43  ;;  %v2415_v15 = vsel %vm1971_vm8, 1.0, %v15213_v61  ;;  %vm1945_vm8 = vcmp.eq.s32.totalorder %v11185_v44, %v13085_v60 }
 0x391   :  { %v3047_v35 = vpop.f32.mrf.mxu1  ;;  %8431 = vmatmul.mubr.msk.bf16.gmra.mxu1 %vm8430_vm3, %v15220_v17  ;;  %v3556_v0 = vpop.f32.mrf.mxu0  ;;  %vm8619_vm3 = vmpackc.low %vm1966_vm13, %vm1962_vm12  ;;  %vm15283_vm12 = vmmov 0   ;;  %vm1944_vm13 = vcmp.eq.s32.totalorder %v11135_v2, %v13085_v60  ;;  %v9736_v60 = vld [vmem:[%s15034_s5 + $0x38] sm:$0xff]  }
 0x392   :  { %v13219_v46 = vadd.f32 %v13056_v42, %v3047_v35  ;;  %8433 = vmatprep.mubr.msk.bf16.mxu1 %vm8432_vm5, %v15220_v17  ;;  %vm1936_vm5 = vcmp.eq.s32.totalorder %v11135_v2, %v13044_v21  ;;  %vm8440_vm10 = vmpackc.low %vm1949_vm9, %vm1945_vm8  ;;  %vm15284_vm8 = vcmask 261120   ;;  %vm1952_vm9 = vcmp.eq.s32.totalorder %v11135_v2, %v13126_v8 }
 0x393   :  { %v3049_v57 = vpop.f32.mrf.mxu1  ;;  %v13225_v31 = vpop.f32.mrf.mxu0  ;;  %8617 = vmatmul.mubr.msk.bf16.gmra.mxu0 %vm8616_vm6, %v15220_v17  ;;  %vm1940_vm6 = vcmp.eq.s32.totalorder %v11135_v2, %v13046_v28 }
 0x394   :  { %8618 = vmatprep.mubr.msk.bf16.mxu0 %vm2640_vm7, %v2635_v58  ;;  %v2639_v58 = vpack.c.bf16 %v2415_v15, %v2415_v15  ;;  %vm8438_vm2 = vmpackc.low %vm1940_vm6, %vm1936_vm5 }
 0x395   :  { %v3050_v42 = vpop.f32.mrf.mxu1  ;;  %v3561_v55 = vpop.f32.mrf.mxu0 }
 0x396   :  { %v13238_v32 = vadd.f32 %v13082_v16, %v3050_v42 }
 0x397   :  { %v3052_v6 = vpop.f32.mrf.mxu1  ;;  %v13249_v45 = vpop.f32.mrf.mxu0 }
 0x399   :  { %v3055_v16 = vpop.f32.mrf.mxu1  ;;  %8435 = vmatmul.mubr.msk.bf16.gmra.mxu1 %vm8434_vm14, %v15220_v17  ;;  %v3564_v35 = vpop.f32.mrf.mxu0  ;;  %vm1948_vm14 = vcmp.eq.s32.totalorder %v11135_v2, %v13087_v29 }
 0x39a   :  { %v13253_v57 = vadd.f32 %v13097_v7, %v3055_v16  ;;  %8437 = vmatprep.mubr.msk.bf16.mxu1 %vm8436_vm15, %v15220_v17  ;;  %vm1953_vm15 = vcmp.eq.s32.totalorder %v11185_v44, %v13126_v8  ;;  %vm8442_vm5 = vmpackc.low %vm1948_vm14, %vm1944_vm13  ;;  %v9739_v8 = vld [vmem:[%s15034_s5 + $0x58] sm:$0xff]  }
 0x39b   :  { %v3057_v42 = vpop.f32.mrf.mxu1  ;;  %v13256_v55 = vpop.f32.mrf.mxu0  ;;  %8620 = vmatmul.mubr.msk.bf16.gmra.mxu0 %vm8619_vm3, %v15220_v17  ;;  %vm1957_vm3 = vcmp.eq.s32.totalorder %v11185_v44, %v13128_v4  ;;  %vm15286_vm14 = vmmov %vm15284_vm8 }
 0x39c   :  { %8621 = vmatprep.mubr.msk.bf16.mxu0 %vm2640_vm7, %v2639_v58  ;;  %vm1970_vm7 = vcmp.eq.s32.totalorder %v11444_v54, %v13216_v51  ;;  %vm8444_vm6 = vmpackc.low %vm1957_vm3, %vm1953_vm15  ;;  %v9737_v54 = vld [vmem:[%s15034_s5 + $0x30] sm:$0xff]   ;;  %vm1960_vm15 = vcmp.eq.s32.totalorder %v11135_v2, %v13167_v13  ;;  %vm1964_vm3 = vcmp.eq.s32.totalorder %v11135_v2, %v13169_v18 }
 0x39d   :  { %v3058_v7 = vpop.f32.mrf.mxu1  ;;  %v3569_v15 = vpop.f32.mrf.mxu0  ;;  %vm8622_vm11 = vmpackc.low %vm1970_vm7, %vm1970_vm7  ;;  %vm1956_vm7 = vcmp.eq.s32.totalorder %v11135_v2, %v13128_v4 }
 0x39e   :  { %v13267_v16 = vadd.f32 %v13123_v34, %v3058_v7 }
 0x39f   :  { %v3060_v35 = vpop.f32.mrf.mxu1  ;;  %v13275_v58 = vpop.f32.mrf.mxu0 }
 0x3a1   :  { %v3063_v21 = vpop.f32.mrf.mxu1  ;;  %8439 = vmatmul.mubr.msk.bf16.gmra.mxu1 %vm8438_vm2, %v15220_v17  ;;  %v3572_v28 = vpop.f32.mrf.mxu0  ;;  %vm1961_vm2 = vcmp.eq.s32.totalorder %v11185_v44, %v13167_v13 }
 0x3a2   :  { %v13279_v34 = vadd.f32 %v13138_v23, %v3063_v21  ;;  %8441 = vmatprep.mubr.msk.bf16.mxu1 %vm8440_vm10, %v15220_v17  ;;  %vm1965_vm10 = vcmp.eq.s32.totalorder %v11185_v44, %v13169_v18 }
 0x3a3   :  { %v3065_v42 = vpop.f32.mrf.mxu1  ;;  %v13282_v7 = vpop.f32.mrf.mxu0  ;;  %8623 = vmatmul.mubr.msk.bf16.gmra.mxu0 %vm8622_vm11, %v15220_v17  ;;  %vm8446_vm11 = vmpackc.low %vm1956_vm7, %vm1952_vm9  ;;  %vm1968_vm7 = vcmp.eq.s32.totalorder %v11135_v2, %v13216_v51 }
 0x3a4   :  { %9228 = vmatprep.mubr.msk.bf16.mxu0 %vm15283_vm12, %v15213_v61  ;;  %vm8448_vm13 = vmpackc.low %vm1965_vm10, %vm1961_vm2 }
 0x3a5   :  { %v3066_v23 = vpop.f32.mrf.mxu1  ;;  %v3577_v15 = vpop.f32.mrf.mxu0  ;;  %vm15289_vm9 = vmmov %vm15286_vm14 }
 0x3a6   :  { %v13294_v35 = vadd.f32 %v13164_v26, %v3066_v23  ;;  %vm8454_vm2 = vmpackc.low %vm1968_vm7, %vm1968_vm7 }
 0x3a7   :  { %v3068_v21 = vpop.f32.mrf.mxu1  ;;  %v13300_v28 = vpop.f32.mrf.mxu0  ;;  %vm15290_vm10 = vmmov %vm15289_vm9 }
 0x3a9   :  { %v3071_v29 = vpop.f32.mrf.mxu1  ;;  %8443 = vmatmul.mubr.msk.bf16.gmra.mxu1 %vm8442_vm5, %v15220_v17  ;;  %v3580_v26 = vpop.f32.mrf.mxu0  ;;  %vm1969_vm5 = vcmp.eq.s32.totalorder %v11185_v44, %v13216_v51 }
 0x3aa   :  { %v13307_v42 = vadd.f32 %v13179_v12, %v3071_v29  ;;  %8445 = vmatprep.mubr.msk.bf16.mxu1 %vm8444_vm6, %v15220_v17  ;;  %vm8450_vm6 = vmpackc.low %vm1964_vm3, %vm1960_vm15 }
 0x3ab   :  { %v3073_v23 = vpop.f32.mrf.mxu1  ;;  %v13310_v15 = vpop.f32.mrf.mxu0  ;;  %9229 = vmatmul.mubr.msk.bf16.vlgmr.msra.gmra.mxu0 %vm15284_vm8, %v12509_v11  ;;  %vm8452_vm8 = vmpackc.low %vm1969_vm5, %vm1969_vm5 }
 0x3ac   :  { %9321 = vmatpush3.bf16.msra.mxu0 %v9736_v60  ;;  %9324 = vmatprep.mubr.msk.bf16.mxu0 %vm15283_vm12, %v15213_v61  ;;  %vm15294_vm15 = vmmov %vm15289_vm9 }
 0x3ad   :  { %v3074_v12 = vpop.f32.mrf.mxu1  ;;  %v3585_v29 = vpop.f32.mrf.mxu0  ;;  %9322 = vmatprep.subr.bf16.mxu0 %v15213_v61  ;;  %vm15295_vm3 = vmmov %vm15289_vm9 }
 0x3ae   :  { %v13327_v11 = vadd.f32 %v13209_v30, %v3074_v12  ;;  %vm15296_vm5 = vmmov %vm15295_vm3 }
 0x3af   :  { %v3076_v60 = vpop.f32.mrf.mxu1  ;;  %v13333_v26 = vpop.f32.mrf.mxu0  ;;  %vm15301_vm7 = vmmov %vm15295_vm3 }
 0x3b0   :  { %15285 = vst [vmem:[#allocation57_spill] sm:$0xff] %v13327_v11  ;;  %9323 = vmatpush3.bf16.msra.mxu0 %v9737_v54 }
 0x3b1   :  { %v3079_v4 = vpop.f32.mrf.mxu1  ;;  %8447 = vmatmul.mubr.msk.bf16.gmra.mxu1 %vm8446_vm11, %v15220_v17  ;;  %v3588_v30 = vpop.f32.mrf.mxu0  ;;  %9384 = vmatprep.subr.bf16.mxu0 %v15213_v61  ;;  %vm15291_vm11 = vmmov %vm15289_vm9 }
 0x3b2   :  { %v13341_v23 = vadd.f32 %v13225_v31, %v3079_v4  ;;  %8449 = vmatprep.mubr.msk.bf16.mxu1 %vm8448_vm13, %v15220_v17  ;;  %v9740_v31 = vld [vmem:[%s15034_s5 + $0x50] sm:$0xff]   ;;  %vm15292_vm13 = vmmov %vm15289_vm9 }
 0x3b3   :  { %v3081_v12 = vpop.f32.mrf.mxu1  ;;  %v13344_v29 = vpop.f32.mrf.mxu0  ;;  %9325 = vmatmul.mubr.msk.bf16.vlgmr.msra.gmra.mxu0 %vm15286_vm14, %v13023_v25  ;;  %vm15293_vm14 = vmmov %vm15289_vm9 }
 0x3b4   :  { %9328 = vmatprep.mubr.msk.bf16.mxu0 %vm15283_vm12, %v15213_v61  ;;  %9385 = vmatpush3.bf16.msra.mxu0 %v9739_v8 }
 0x3b5   :  { %v3082_v60 = vpop.f32.mrf.mxu1  ;;  %v3593_v4 = vpop.f32.mrf.mxu0  ;;  %9386 = vmatprep.subr.bf16.mxu0 %v15213_v61 }
 0x3b6   :  { %v13361_v25 = vadd.f32 %v13249_v45, %v3082_v60 }
 0x3b7   :  { %v3084_v8 = vpop.f32.mrf.mxu1  ;;  %v13365_v30 = vpop.f32.mrf.mxu0 }
 0x3b8   :  { %15287 = vst [vmem:[#allocation60_spill] sm:$0xff] %v13361_v25  ;;  %9387 = vmatpush3.bf16.msra.mxu0 %v9740_v31 }
 0x3b9   :  { %v3087_v12 = vpop.f32.mrf.mxu1  ;;  %8451 = vmatmul.mubr.msk.bf16.gmra.mxu1 %vm8450_vm6, %v15220_v17  ;;  %v3596_v13 = vpop.f32.mrf.mxu0  ;;  %9448 = vmatprep.subr.bf16.mxu0 %v15213_v61  ;;  %vm15297_vm6 = vmmov %vm15295_vm3 }
 0x3ba   :  { %v13370_v18 = vadd.f32 %v13256_v55, %v3087_v12  ;;  %8453 = vmatprep.mubr.msk.bf16.mxu1 %vm8452_vm8, %v15220_v17  ;;  %vm15298_vm8 = vmmov %vm15295_vm3 }
 0x3bb   :  { %v3089_v45 = vpop.f32.mrf.mxu1  ;;  %v13373_v60 = vpop.f32.mrf.mxu0  ;;  %9329 = vmatmul.mubr.msk.bf16.gmra.mxu0 %vm15289_vm9, %v13065_v63  ;;  %vm15300_vm9 = vmmov %vm15295_vm3 }
 0x3bc   :  { %15288 = vst [vmem:[#allocation3_spill] sm:$0xff] %v13370_v18  ;;  %9332 = vmatprep.mubr.msk.bf16.mxu0 %vm15283_vm12, %v15213_v61 }
 0x3bd   :  { %v3090_v31 = vpop.f32.mrf.mxu1  ;;  %v3601_v55 = vpop.f32.mrf.mxu0 }
 0x3be   :  { %v13387_v63 = vadd.f32 %v13275_v58, %v3090_v31 }
 0x3bf   :  { %v3092_v4 = vpop.f32.mrf.mxu1  ;;  %v13383_v8 = vpop.f32.mrf.mxu0 }
 0x3c1   :  { %v3095_v12 = vpop.f32.mrf.mxu1  ;;  %8455 = vmatmul.mubr.msk.bf16.gmra.mxu1 %vm8454_vm2, %v15220_v17  ;;  %v3604_v13 = vpop.f32.mrf.mxu0  ;;  %vm15302_vm2 = vmmov %vm15295_vm3 }
 0x3c2   :  { %v13390_v45 = vadd.f32 %v13282_v7, %v3095_v12  ;;  %9232 = vmatprep.mubr.msk.bf16.mxu1 %vm15283_vm12, %v15213_v61  ;;  %v9738_v7 = vld [vmem:[%s15034_s5 + $0x8] sm:$0xff]   ;;  %v9741_v13 = vld [vmem:[%s15034_s5] sm:$0xff]  }
 0x3c3   :  { %v3097_v51 = vpop.f32.mrf.mxu1  ;;  %v13394_v44 = vpop.f32.mrf.mxu0  ;;  %9333 = vmatmul.mubr.msk.bf16.gmra.mxu0 %vm15290_vm10, %v13106_v9  ;;  %vm15303_vm10 = vmmov %vm15302_vm2 }
 0x3c4   :  { %9336 = vmatprep.mubr.msk.bf16.mxu0 %vm15283_vm12, %v15213_v61 }
 0x3c5   :  { %v3098_v17 = vpop.f32.mrf.mxu1  ;;  %v3609_v58 = vpop.f32.mrf.mxu0 }
 0x3c7   :  { %v3100_v31 = vpop.f32.mrf.mxu1  ;;  %v13405_v4 = vpop.f32.mrf.mxu0 }
 0x3c9   :  { %v3103_v12 = vpop.f32.mrf.mxu1  ;;  %9233 = vmatmul.mubr.msk.bf16.vlgmr.msra.gmra.mxu1 %vm15291_vm11, %v12550_v56  ;;  %v3612_v9 = vpop.f32.mrf.mxu0  ;;  %vm15305_vm11 = vmmov %vm15302_vm2 }
 0x3ca   :  { %9236 = vmatprep.mubr.msk.bf16.mxu1 %vm15283_vm12, %v15213_v61  ;;  %9257 = vmatpush3.bf16.msra.mxu1 %v9738_v7 }
 0x3cb   :  { %v3105_v51 = vpop.f32.mrf.mxu1  ;;  %v13414_v58 = vpop.f32.mrf.mxu0  ;;  %9337 = vmatmul.mubr.msk.bf16.gmra.mxu0 %vm15292_vm13, %v13147_v5  ;;  %9258 = vmatprep.subr.bf16.mxu1 %v15213_v61  ;;  %vm15306_vm13 = vmmov %vm15302_vm2 }
 0x3cc   :  { %9340 = vmatprep.mubr.msk.bf16.mxu0 %vm15283_vm12, %v15213_v61 }
 0x3cd   :  { %v3106_v56 = vpop.f32.mrf.mxu1  ;;  %v3617_v31 = vpop.f32.mrf.mxu0 }
 0x3ce   :  { %9259 = vmatpush3.bf16.msra.mxu1 %v9741_v13 }
 0x3cf   :  { %v3108_v9 = vpop.f32.mrf.mxu1  ;;  %v13421_v7 = vpop.f32.mrf.mxu0  ;;  %9288 = vmatprep.subr.bf16.mxu1 %v15213_v61 }
 0x3d1   :  { %v3111_v54 = vpop.f32.mrf.mxu1  ;;  %9237 = vmatmul.mubr.msk.bf16.gmra.mxu1 %vm15293_vm14, %v12592_v48  ;;  %v3620_v51 = vpop.f32.mrf.mxu0  ;;  %vm15308_vm14 = vmmov %vm15302_vm2 }
 0x3d2   :  { %9240 = vmatprep.mubr.msk.bf16.mxu1 %vm15283_vm12, %v15213_v61 }
 0x3d3   :  { %v3113_v5 = vpop.f32.mrf.mxu1  ;;  %v13428_v21 = vpop.f32.mrf.mxu0  ;;  %9341 = vmatmul.mubr.msk.bf16.gmra.mxu0 %vm15294_vm15, %v13188_v37  ;;  %vm15309_vm15 = vmmov %vm15302_vm2 }
 0x3d4   :  { %9344 = vmatprep.mubr.msk.bf16.mxu0 %vm15283_vm12, %v15213_v61 }
 0x3d5   :  { %v3114_v13 = vpop.f32.mrf.mxu1  ;;  %v3625_v31 = vpop.f32.mrf.mxu0 }
 0x3d7   :  { %v3116_v9 = vpop.f32.mrf.mxu1  ;;  %v13434_v6 = vpop.f32.mrf.mxu0 }
 0x3d8   :  { %v3584_v9 = vadd.f32 %v13310_v15, %v3103_v12 }
 0x3d9   :  { %v3119_v0 = vpop.f32.mrf.mxu1  ;;  %9241 = vmatmul.mubr.msk.bf16.gmra.mxu1 %vm15295_vm3, %v12633_v52  ;;  %v3628_v48 = vpop.f32.mrf.mxu0  ;;  %vm15311_vm3 = vmmov %vm15302_vm2 }
 0x3da   :  { %9244 = vmatprep.mubr.msk.bf16.mxu1 %vm15283_vm12, %v15213_v61  ;;  %v3579_v48 = vadd.f32 %v13300_v28, %v3098_v17 }
 0x3db   :  { %v3121_v51 = vpop.f32.mrf.mxu1  ;;  %v13440_v5 = vpop.f32.mrf.mxu0  ;;  %9345 = vmatmul.mubr.msk.bf16.gmra.mxu0 %vm15296_vm5, %v13213_v24  ;;  %vm15312_vm5 = vmmov %vm15302_vm2 }
 0x3dc   :  { %9348 = vmatprep.mubr.msk.bf16.mxu0 %vm15283_vm12, %v15213_v61  ;;  %v4516_v18 = vpack.c.bf16 %v3584_v9, %v3579_v48  ;;  %v3587_v48 = vadd.f32 %v13333_v26, %v3106_v56 }
 0x3dd   :  { %v13446_v37 = vpop.f32.mrf.mxu1  ;;  %v3633_v31 = vpop.f32.mrf.mxu0 }
 0x3de   :  { %v15299_v31 = vpack.c.bf16 %v13390_v45, %v13387_v63 }
 0x3df   :  { %v3124_v55 = vpop.f32.mrf.mxu1  ;;  %v13449_v52 = vpop.f32.mrf.mxu0 }
 0x3e0   :  { %v4530_v55 = vrot.slane %v4516_v18, 1  ;;  %v4529_v9 = vrot.slane %v15299_v31, 1 }
 0x3e1   :  { %v3127_v25 = vpop.f32.mrf.mxu1  ;;  %9245 = vmatmul.mubr.msk.bf16.gmra.mxu1 %vm15297_vm6, %v12678_v38  ;;  %v3636_v51 = vpop.f32.mrf.mxu0  ;;  %v3592_v38 = vadd.f32 %v13344_v29, %v3111_v54  ;;  %vm15314_vm6 = vmmov %vm15302_vm2 }
 0x3e2   :  { %9248 = vmatprep.mubr.msk.bf16.mxu1 %vm15283_vm12, %v15213_v61  ;;  %v4531_v29 = vsel %vm3794_vm4, %v4529_v9, %v4530_v55  ;;  %v3595_v9 = vadd.f32 %v13365_v30, %v3114_v13 }
 0x3e3   :  { %v3129_v24 = vpop.f32.mrf.mxu1  ;;  %v13456_v11 = vpop.f32.mrf.mxu0  ;;  %9349 = vmatmul.mubr.msk.bf16.gmra.mxu0 %vm15298_vm8, %v13194_v43  ;;  %v9743_v43 = vld [vmem:[%s15034_s5 + $0x78] sm:$0xff]   ;;  %v4517_v54 = vpack.c.bf16 %v3592_v38, %v3587_v48  ;;  %v3600_v38 = vadd.f32 %v13373_v60, %v3119_v0  ;;  %vm15315_vm8 = vmmov %vm15302_vm2 }
 0x3e4   :  { %9388 = vmatprep.mubr.msk.bf16.mxu0 %vm15283_vm12, %v15213_v61 }
 0x3e5   :  { %v13462_v15 = vpop.f32.mrf.mxu1  ;;  %v3641_v28 = vpop.f32.mrf.mxu0 }
 0x3e6   :  { %v4532_v28 = vrot.slane %v4517_v54, 1 }
 0x3e7   :  { %v3132_v17 = vpop.f32.mrf.mxu1  ;;  %v13465_v12 = vpop.f32.mrf.mxu0 }
 0x3e8   :  { %v4533_v54 = vsel %vm3794_vm4, %v4530_v55, %v4532_v28 }
 0x3e9   :  { %v3135_v51 = vpop.f32.mrf.mxu1  ;;  %9249 = vmatmul.mubr.msk.bf16.gmra.mxu1 %vm15300_vm9, %v12705_v59  ;;  %v3644_v18 = vpop.f32.mrf.mxu0  ;;  %v9745_v59 = vld [vmem:[%s15034_s5 + $0x70] sm:$0xff]   ;;  %vm15318_vm9 = vmmov %vm15302_vm2 }
 0x3ea   :  { %9252 = vmatprep.mubr.msk.bf16.mxu1 %vm15283_vm12, %v15213_v61  ;;  %v4518_v18 = vpack.c.bf16 %v3600_v38, %v3595_v9 }
 0x3eb   :  { %v3137_v24 = vpop.f32.mrf.mxu1  ;;  %v13479_v45 = vpop.f32.mrf.mxu0  ;;  %9389 = vmatmul.mubr.msk.bf16.vlgmr.msra.gmra.mxu0 %vm15301_vm7, %v4531_v29  ;;  %vm15320_vm7 = vmmov %vm15302_vm2 }
 0x3ec   :  { %9392 = vmatprep.mubr.msk.bf16.mxu0 %vm15283_vm12, %v15213_v61  ;;  %9449 = vmatpush3.bf16.msra.mxu0 %v9743_v43 }
 0x3ed   :  { %v3138_v26 = vpop.f32.mrf.mxu1  ;;  %v3649_v56 = vpop.f32.mrf.mxu0  ;;  %9450 = vmatprep.subr.bf16.mxu0 %v15213_v61 }
 0x3ee   :  { %v13495_v29 = vadd.f32 %v13421_v7, %v3138_v26  ;;  %v3603_v26 = vadd.f32 %v13383_v8, %v13446_v37  ;;  %v9744_v8 = vld [vmem:[%s15034_s5 + $0x20] sm:$0xff]  }
 0x3ef   :  { %v3140_v17 = vpop.f32.mrf.mxu1  ;;  %v13489_v31 = vpop.f32.mrf.mxu0 }
 0x3f0   :  { %9451 = vmatpush3.bf16.msra.mxu0 %v9745_v59  ;;  %v9742_v59 = vld [vmem:[%s15034_s5 + $0x28] sm:$0xff]  }
 0x3f1   :  { %v3143_v48 = vpop.f32.mrf.mxu1  ;;  %9253 = vmatmul.mubr.msk.bf16.gmra.mxu1 %vm15302_vm2, %v12684_v49  ;;  %v3652_v43 = vpop.f32.mrf.mxu0  ;;  %v3608_v49 = vadd.f32 %v13394_v44, %v3127_v25  ;;  %v15304_v25 = vpack.c.bf16 %v12173_v40, %v12157_v19 }
 0x3f2   :  { %v3624_v24 = vadd.f32 %v13428_v21, %v3143_v48  ;;  %9260 = vmatprep.mubr.msk.bf16.mxu1 %vm15283_vm12, %v15213_v61  ;;  %v4534_v21 = vrot.slane %v4518_v18, 1  ;;  %v3616_v18 = vadd.f32 %v13414_v58, %v3135_v51  ;;  %v15307_v58 = vpack.c.bf16 %v12217_v41, %v12195_v1 }
 0x3f3   :  { %v3145_v0 = vpop.f32.mrf.mxu1  ;;  %v13501_v60 = vpop.f32.mrf.mxu0  ;;  %9393 = vmatmul.mubr.msk.bf16.gmra.mxu0 %vm15303_vm10, %v4533_v54  ;;  %v4519_v17 = vpack.c.bf16 %v3608_v49, %v3603_v26 }
 0x3f4   :  { %v4676_v30 = vpack.c.bf16 %v3624_v24, %v13495_v29  ;;  %9396 = vmatprep.mubr.msk.bf16.mxu0 %vm15283_vm12, %v15213_v61  ;;  %v4535_v48 = vsel %vm3794_vm4, %v4532_v28, %v4534_v21 }
 0x3f5   :  { %v3146_v7 = vpop.f32.mrf.mxu1  ;;  %v3657_v13 = vpop.f32.mrf.mxu0  ;;  %v4536_v40 = vrot.slane %v4519_v17, 1 }
 0x3f6   :  { %v3627_v55 = vadd.f32 %v13434_v6, %v3146_v7  ;;  %v4690_v24 = vrot.slane %v4676_v30, 2  ;;  %v3611_v13 = vadd.f32 %v13405_v4, %v13462_v15 }
 0x3f7   :  { %v3148_v56 = vpop.f32.mrf.mxu1  ;;  %v13514_v38 = vpop.f32.mrf.mxu0  ;;  %v4537_v26 = vsel %vm3794_vm4, %v4534_v21, %v4536_v40 }
 0x3f9   :  { %v3151_v9 = vpop.f32.mrf.mxu1  ;;  %9261 = vmatmul.mubr.msk.bf16.vlgmr.msra.gmra.mxu1 %vm15305_vm11, %v15304_v25  ;;  %v3660_v44 = vpop.f32.mrf.mxu0 }
 0x3fa   :  { %v3632_v6 = vadd.f32 %v13440_v5, %v3151_v9  ;;  %9264 = vmatprep.mubr.msk.bf16.mxu1 %vm15283_vm12, %v15213_v61  ;;  %9289 = vmatpush3.bf16.msra.mxu1 %v9742_v59 }
 0x3fb   :  { %v3153_v37 = vpop.f32.mrf.mxu1  ;;  %v13527_v43 = vpop.f32.mrf.mxu0  ;;  %9397 = vmatmul.mubr.msk.bf16.gmra.mxu0 %vm15306_vm13, %v4535_v48  ;;  %9290 = vmatprep.subr.bf16.mxu1 %v15213_v61  ;;  %v15310_v48 = vpack.c.bf16 %v12261_v3, %v12239_v62 }
 0x3fc   :  { %v4677_v19 = vpack.c.bf16 %v3632_v6, %v3627_v55  ;;  %9400 = vmatprep.mubr.msk.bf16.mxu0 %vm15283_vm12, %v15213_v61  ;;  %v4521_v37 = vpack.c.bf16 %v13495_v29, %v13495_v29 }
 0x3fd   :  { %v3154_v5 = vpop.f32.mrf.mxu1  ;;  %v3665_v28 = vpop.f32.mrf.mxu0 }
 0x3fe   :  { %v4691_v54 = vrot.slane %v4677_v19, 2  ;;  %v3635_v0 = vadd.f32 %v13449_v52, %v3154_v5  ;;  %9291 = vmatpush3.bf16.msra.mxu1 %v9744_v8  ;;  %v4520_v52 = vpack.c.bf16 %v3616_v18, %v3611_v13  ;;  %v15313_v13 = vpack.c.bf16 %v12305_v39, %v12283_v36 }
 0x3ff   :  { %v3156_v49 = vpop.f32.mrf.mxu1  ;;  %v13535_v7 = vpop.f32.mrf.mxu0  ;;  %9352 = vmatprep.subr.bf16.mxu1 %v15213_v61 }
 0x400   :  { %v13541_v55 = vsel %vm306_vm1, %v4690_v24, %v4691_v54  ;;  %v4538_v17 = vrot.slane %v4520_v52, 1  ;;  %v4540_v24 = vrot.slane %v4521_v37, 1 }
 0x401   :  { %v3159_v59 = vpop.f32.mrf.mxu1  ;;  %9265 = vmatmul.mubr.msk.bf16.gmra.mxu1 %vm15308_vm14, %v15307_v58  ;;  %v3668_v51 = vpop.f32.mrf.mxu0 }
 0x402   :  { %v3640_v30 = vadd.f32 %v13456_v11, %v3159_v59  ;;  %9268 = vmatprep.mubr.msk.bf16.mxu1 %vm15283_vm12, %v15213_v61  ;;  %v4541_v51 = vsel %vm3794_vm4, %v4538_v17, %v4540_v24 }
 0x403   :  { %v3161_v56 = vpop.f32.mrf.mxu1  ;;  %v13551_v4 = vpop.f32.mrf.mxu0  ;;  %9401 = vmatmul.mubr.msk.bf16.gmra.mxu0 %vm15309_vm15, %v4537_v26 }
 0x404   :  { %v4678_v15 = vpack.c.bf16 %v3640_v30, %v3635_v0  ;;  %9404 = vmatprep.mubr.msk.bf16.mxu0 %vm15283_vm12, %v15213_v61 }
 0x405   :  { %v3162_v1 = vpop.f32.mrf.mxu1  ;;  %v3673_v41 = vpop.f32.mrf.mxu0 }
 0x406   :  { %v4693_v9 = vrot.slane %v4678_v15, 2  ;;  %v3643_v11 = vadd.f32 %v13465_v12, %v3162_v1  ;;  %v4539_v12 = vsel %vm3794_vm4, %v4536_v40, %v4538_v17  ;;  %v15316_v17 = vpack.c.bf16 %v12349_v53, %v12327_v14  ;;  %vm15317_vm4 = vmmov %vm15302_vm2 }
 0x407   :  { %v3164_v25 = vpop.f32.mrf.mxu1  ;;  %v13557_v21 = vpop.f32.mrf.mxu0 }
 0x408   :  { %v13560_v44 = vsel %vm306_vm1, %v4691_v54, %v4693_v9 }
 0x409   :  { %v3167_v6 = vpop.f32.mrf.mxu1  ;;  %9269 = vmatmul.mubr.msk.bf16.gmra.mxu1 %vm15311_vm3, %v15310_v48  ;;  %v3676_v8 = vpop.f32.mrf.mxu0 }
 0x40a   :  { %v3648_v19 = vadd.f32 %v13479_v45, %v3167_v6  ;;  %9272 = vmatprep.mubr.msk.bf16.mxu1 %vm15283_vm12, %v15213_v61 }
 0x40b   :  { %v3169_v5 = vpop.f32.mrf.mxu1  ;;  %v13572_v28 = vpop.f32.mrf.mxu0  ;;  %9405 = vmatmul.mubr.msk.bf16.gmra.mxu0 %vm15312_vm5, %v4539_v12 }
 0x40c   :  { %v4679_v18 = vpack.c.bf16 %v3648_v19, %v3643_v11  ;;  %9408 = vmatprep.mubr.msk.bf16.mxu0 %vm15283_vm12, %v15213_v61 }
 0x40d   :  { %v3170_v62 = vpop.f32.mrf.mxu1  ;;  %v3681_v3 = vpop.f32.mrf.mxu0 }
 0x40e   :  { %v4695_v29 = vrot.slane %v4679_v18, 2  ;;  %v3651_v45 = vadd.f32 %v13489_v31, %v3170_v62  ;;  %v15319_v18 = vpack.c.bf16 %v12393_v20, %v12371_v22  ;;  %v3779_v22 = vpack.c.bf16 %v12415_v10, %v12415_v10 }
 0x40f   :  { %v3172_v54 = vpop.f32.mrf.mxu1  ;;  %v13578_v40 = vpop.f32.mrf.mxu0 }
 0x410   :  { %v13581_v0 = vsel %vm306_vm1, %v4693_v9, %v4695_v29 }
 0x411   :  { %v3175_v49 = vpop.f32.mrf.mxu1  ;;  %9273 = vmatmul.mubr.msk.bf16.gmra.mxu1 %vm15314_vm6, %v15313_v13  ;;  %v3684_v59 = vpop.f32.mrf.mxu0 }
 0x412   :  { %v3656_v58 = vadd.f32 %v13501_v60, %v3175_v49  ;;  %9276 = vmatprep.mubr.msk.bf16.mxu1 %vm15283_vm12, %v15213_v61 }
 0x413   :  { %v3177_v31 = vpop.f32.mrf.mxu1  ;;  %v13591_v52 = vpop.f32.mrf.mxu0  ;;  %9409 = vmatmul.mubr.msk.bf16.gmra.mxu0 %vm15315_vm8, %v4541_v51 }
 0x414   :  { %v4680_v30 = vpack.c.bf16 %v3656_v58, %v3651_v45  ;;  %9412 = vmatprep.mubr.msk.bf16.mxu0 %vm15283_vm12, %v15213_v61 }
 0x415   :  { %v3178_v36 = vpop.f32.mrf.mxu1  ;;  %v3689_v39 = vpop.f32.mrf.mxu0 }
 0x416   :  { %v4697_v26 = vrot.slane %v4680_v30, 2  ;;  %v3659_v56 = vadd.f32 %v13514_v38, %v3178_v36 }
 0x417   :  { %v3180_v60 = vpop.f32.mrf.mxu1  ;;  %v13597_v15 = vpop.f32.mrf.mxu0 }
 0x418   :  { %v13600_v1 = vsel %vm306_vm1, %v4695_v29, %v4697_v26 }
 0x419   :  { %v3183_v41 = vpop.f32.mrf.mxu1  ;;  %9277 = vmatmul.mubr.msk.bf16.gmra.mxu1 %vm15317_vm4, %v15316_v17  ;;  %v3692_v9 = vpop.f32.mrf.mxu0 }
 0x41a   :  { %v3664_v11 = vadd.f32 %v13527_v43, %v3183_v41  ;;  %9280 = vmatprep.mubr.msk.bf16.mxu1 %vm15283_vm12, %v15213_v61 }
 0x41b   :  { %v3185_v25 = vpop.f32.mrf.mxu1  ;;  %v13609_v38 = vpop.f32.mrf.mxu0  ;;  %9413 = vmatmul.mubr.msk.bf16.gmra.mxu0 %vm15318_vm9, %v4540_v24 }
 0x41c   :  { %v4681_v6 = vpack.c.bf16 %v3664_v11, %v3659_v56  ;;  %9452 = vmatprep.mubr.msk.bf16.mxu0 %vm15283_vm12, %v15213_v61 }
 0x41d   :  { %v3186_v48 = vpop.f32.mrf.mxu1  ;;  %v3697_v8 = vpop.f32.mrf.mxu0 }
 0x41e   :  { %v4699_v14 = vrot.slane %v4681_v6, 2  ;;  %v3667_v53 = vadd.f32 %v13535_v7, %v3186_v48 }
 0x41f   :  { %v3188_v37 = vpop.f32.mrf.mxu1  ;;  %v13615_v19 = vpop.f32.mrf.mxu0 }
 0x420   :  { %v4682_v43 = vpack.c.bf16 %v3667_v53, %v3667_v53  ;;  %v13618_v12 = vsel %vm306_vm1, %v4697_v26, %v4699_v14 }
 0x421   :  { %v3191_v5 = vpop.f32.mrf.mxu1  ;;  %9281 = vmatmul.mubr.msk.bf16.gmra.mxu1 %vm15320_vm7, %v15319_v18  ;;  %v3700_v62 = vpop.f32.mrf.mxu0 }
 0x422   :  { %v13624_v3 = vrot.slane %v4682_v43, 2  ;;  %9284 = vmatprep.mubr.msk.bf16.mxu1 %vm15283_vm12, %v15213_v61  ;;  %v3672_v49 = vadd.f32 %v13551_v4, %v3191_v5 }
 0x423   :  { %v3193_v7 = vpop.f32.mrf.mxu1  ;;  %v13628_v24 = vpop.f32.mrf.mxu0 }
 0x424   :  { %v13632_v29 = vsel %vm306_vm1, %v4699_v14, %v13624_v3  ;;  %v4837_v51 = vpack.c.bf16 %v3672_v49, %v3667_v53  ;;  %vm15321_vm1 = vmmov %vm15302_vm2 }
 0x425   :  { %v3194_v45 = vpop.f32.mrf.mxu1  ;;  %v3705_v54 = vpop.f32.mrf.mxu0  ;;  %vm15322_vm10 = vmmov %vm15321_vm1 }
 0x426   :  { %v3675_v31 = vadd.f32 %v13557_v21, %v3194_v45  ;;  %v4851_v56 = vrot.slane %v4837_v51, 3  ;;  %v9746_v21 = vld [vmem:[%s15034_s5 + $0x48] sm:$0xff]   ;;  %vm15323_vm11 = vmmov %vm15321_vm1 }
 0x427   :  { %v3196_v20 = vpop.f32.mrf.mxu1  ;;  %v13637_v13 = vpop.f32.mrf.mxu0  ;;  %vm15324_vm13 = vmmov %vm15321_vm1 }
 0x428   :  { %vm15325_vm14 = vmmov %vm15321_vm1 }
 0x429   :  { %v3199_v59 = vpop.f32.mrf.mxu1  ;;  %9285 = vmatmul.mubr.msk.bf16.gmra.mxu1 %vm15302_vm2, %v3779_v22  ;;  %v3708_v58 = vpop.f32.mrf.mxu0  ;;  %vm15326_vm15 = vmmov %vm15321_vm1 }
 0x42a   :  { %v3680_v30 = vadd.f32 %v13572_v28, %v3199_v59  ;;  %9292 = vmatprep.mubr.msk.bf16.mxu1 %vm15283_vm12, %v15213_v61  ;;  %vm15328_vm3 = vmmov %vm15321_vm1 }
 0x42b   :  { %v3201_v36 = vpop.f32.mrf.mxu1  ;;  %v13644_v4 = vpop.f32.mrf.mxu0  ;;  %vm15329_vm5 = vmmov %vm15321_vm1 }
 0x42c   :  { %v4838_v39 = vpack.c.bf16 %v3680_v30, %v3675_v31  ;;  %vm15331_vm6 = vmmov %vm15321_vm1 }
 0x42d   :  { %v3202_v10 = vpop.f32.mrf.mxu1  ;;  %v3713_v26 = vpop.f32.mrf.mxu0  ;;  %vm15332_vm8 = vmmov %vm15321_vm1 }
 0x42e   :  { %v4852_v60 = vrot.slane %v4838_v39, 3  ;;  %v3683_v25 = vadd.f32 %v13578_v40, %v3202_v10  ;;  %vm15334_vm4 = vmmov %vm15321_vm1 }
 0x42f   :  { %v3204_v41 = vpop.f32.mrf.mxu1  ;;  %v13646_v17 = vpop.f32.mrf.mxu0  ;;  %vm15335_vm9 = vmmov %vm15321_vm1 }
 0x430   :  { %v4853_v28 = vsel %vm305_vm0, %v4851_v56, %v4852_v60 }
 0x431   :  { %v3207_v9 = vpop.f32.mrf.mxu1  ;;  %9293 = vmatmul.mubr.msk.bf16.vlgmr.msra.gmra.mxu1 %vm15321_vm1, %v12766_v50  ;;  %9453 = vmatmul.mubr.msk.bf16.vlgmr.msra.gmra.mxu0 %vm15322_vm10, %v4853_v28  ;;  %v3716_v11 = vpop.f32.mrf.mxu0  ;;  %v9747_v50 = vld [vmem:[%s15034_s5 + $0x40] sm:$0xff]   ;;  %vm15337_vm10 = vmmov %vm15321_vm1 }
 0x432   :  { %v3688_v6 = vadd.f32 %v13591_v52, %v3207_v9  ;;  %9296 = vmatprep.mubr.msk.bf16.mxu1 %vm15283_vm12, %v15213_v61  ;;  %9456 = vmatprep.mubr.msk.bf16.mxu0 %vm15283_vm12, %v15213_v61 }
 0x433   :  { %v3209_v48 = vpop.f32.mrf.mxu1  ;;  %v13661_v8 = vpop.f32.mrf.mxu0  ;;  %9353 = vmatpush3.bf16.msra.mxu1 %v9746_v21 }
 0x434   :  { %v4839_v14 = vpack.c.bf16 %v3688_v6, %v3683_v25  ;;  %9354 = vmatprep.subr.bf16.mxu1 %v15213_v61 }
 0x435   :  { %v3210_v40 = vpop.f32.mrf.mxu1  ;;  %v3721_v53 = vpop.f32.mrf.mxu0 }
 0x436   :  { %v4854_v52 = vrot.slane %v4839_v14, 3  ;;  %v3691_v7 = vadd.f32 %v13597_v15, %v3210_v40 }
 0x437   :  { %v3212_v37 = vpop.f32.mrf.mxu1  ;;  %v13667_v43 = vpop.f32.mrf.mxu0  ;;  %9355 = vmatpush3.bf16.msra.mxu1 %v9747_v50 }
 0x438   :  { %v4855_v5 = vsel %vm305_vm0, %v4852_v60, %v4854_v52  ;;  %9416 = vmatprep.subr.bf16.mxu1 %v15213_v61 }
 0x439   :  { %v3215_v18 = vpop.f32.mrf.mxu1  ;;  %9297 = vmatmul.mubr.msk.bf16.gmra.mxu1 %vm15323_vm11, %v12808_v33  ;;  %9457 = vmatmul.mubr.msk.bf16.gmra.mxu0 %vm15324_vm13, %v4855_v5  ;;  %v3724_v62 = vpop.f32.mrf.mxu0  ;;  %vm15339_vm11 = vmmov %vm15321_vm1 }
 0x43a   :  { %v3696_v45 = vadd.f32 %v13609_v38, %v3215_v18  ;;  %9300 = vmatprep.mubr.msk.bf16.mxu1 %vm15283_vm12, %v15213_v61  ;;  %9460 = vmatprep.mubr.msk.bf16.mxu0 %vm15283_vm12, %v15213_v61  ;;  %v15330_v62 = vld [vmem:[#allocation2_spill] sm:$0xff]  ;;  %vm15341_vm13 = vmmov %vm15321_vm1 }
 0x43b   :  { %v3217_v54 = vpop.f32.mrf.mxu1  ;;  %v13680_v49 = vpop.f32.mrf.mxu0 }
 0x43c   :  { %v4840_v22 = vpack.c.bf16 %v3696_v45, %v3691_v7 }
 0x43d   :  { %v3218_v20 = vpop.f32.mrf.mxu1  ;;  %v3729_v59 = vpop.f32.mrf.mxu0 }
 0x43e   :  { %v4856_v33 = vrot.slane %v4840_v22, 3  ;;  %v3699_v30 = vadd.f32 %v13615_v19, %v3218_v20 }
 0x43f   :  { %v3220_v58 = vpop.f32.mrf.mxu1  ;;  %v13682_v51 = vpop.f32.mrf.mxu0 }
 0x440   :  { %v4857_v15 = vsel %vm305_vm0, %v4854_v52, %v4856_v33 }
 0x441   :  { %v3223_v31 = vpop.f32.mrf.mxu1  ;;  %9301 = vmatmul.mubr.msk.bf16.gmra.mxu1 %vm15325_vm14, %v12849_v47  ;;  %9461 = vmatmul.mubr.msk.bf16.gmra.mxu0 %vm15326_vm15, %v4857_v15  ;;  %v3732_v38 = vpop.f32.mrf.mxu0  ;;  %vm15343_vm14 = vmmov %vm15321_vm1 }
 0x442   :  { %v3704_v36 = vadd.f32 %v13628_v24, %v3223_v31  ;;  %9304 = vmatprep.mubr.msk.bf16.mxu1 %vm15283_vm12, %v15213_v61  ;;  %9464 = vmatprep.mubr.msk.bf16.mxu0 %vm15283_vm12, %v15213_v61  ;;  %v15327_v24 = vld [vmem:[#allocation68_spill] sm:$0xff]  ;;  %v5410_v31 = vpop.permute.xlu0 %5409  ;;  %vm15345_vm15 = vmmov %vm15321_vm1 }
 0x443   :  { %v3225_v39 = vpop.f32.mrf.mxu1  ;;  %v13694_v10 = vpop.f32.mrf.mxu0  ;;  %vm5514_vm2 = vcmp.eq.s32.totalorder %v11135_v2, %v5410_v31 }
 0x444   :  { %v4841_v26 = vpack.c.bf16 %v3704_v36, %v3699_v30  ;;  %v15333_v39 = vld [vmem:[#allocation64_spill] sm:$0xff] }
 0x445   :  { %v3226_v56 = vpop.f32.mrf.mxu1  ;;  %v3737_v60 = vpop.f32.mrf.mxu0 }
 0x446   :  { %v4858_v47 = vrot.slane %v4841_v26, 3  ;;  %v3707_v11 = vadd.f32 %v13637_v13, %v3226_v56 }
 0x447   :  { %v3228_v41 = vpop.f32.mrf.mxu1  ;;  %v13696_v21 = vpop.f32.mrf.mxu0 }
 0x448   :  { %v4859_v19 = vsel %vm305_vm0, %v4856_v33, %v4858_v47  ;;  %v5550_v41 = vsel %vm5514_vm2, 1.0, %v15213_v61  ;;  %vm15358_vm2 = vmmov %vm15321_vm1 }
 0x449   :  { %v3231_v28 = vpop.f32.mrf.mxu1  ;;  %9305 = vmatmul.mubr.msk.bf16.gmra.mxu1 %vm15328_vm3, %v15327_v24  ;;  %9465 = vmatmul.mubr.msk.bf16.gmra.mxu0 %vm15329_vm5, %v4859_v19  ;;  %v3740_v9 = vpop.f32.mrf.mxu0  ;;  %vm15348_vm3 = vmmov %vm15321_vm1 }
 0x44a   :  { %v3712_v25 = vadd.f32 %v13644_v4, %v3231_v28  ;;  %9308 = vmatprep.mubr.msk.bf16.mxu1 %vm15283_vm12, %v15213_v61  ;;  %9468 = vmatprep.mubr.msk.bf16.mxu0 %vm15283_vm12, %v15213_v61  ;;  %vm15352_vm5 = vmmov %vm15321_vm1 }
 0x44b   :  { %v3233_v6 = vpop.f32.mrf.mxu1  ;;  %v13708_v48 = vpop.f32.mrf.mxu0 }
 0x44c   :  { %v4842_v50 = vpack.c.bf16 %v3712_v25, %v3707_v11 }
 0x44d   :  { %v3234_v14 = vpop.f32.mrf.mxu1  ;;  %v3745_v40 = vpop.f32.mrf.mxu0 }
 0x44e   :  { %v4860_v53 = vrot.slane %v4842_v50, 3  ;;  %v3715_v52 = vadd.f32 %v13646_v17, %v3234_v14  ;;  %v15336_v50 = vld [vmem:[#allocation62_spill] sm:$0xff] }
 0x44f   :  { %v3236_v37 = vpop.f32.mrf.mxu1  ;;  %v13711_v5 = vpop.f32.mrf.mxu0 }
 0x450   :  { %v4843_v13 = vpack.c.bf16 %v3715_v52, %v3715_v52  ;;  %v4861_v4 = vsel %vm305_vm0, %v4858_v47, %v4860_v53 }
 0x451   :  { %v3239_v18 = vpop.f32.mrf.mxu1  ;;  %9309 = vmatmul.mubr.msk.bf16.gmra.mxu1 %vm15331_vm6, %v15330_v62  ;;  %9469 = vmatmul.mubr.msk.bf16.gmra.mxu0 %vm15332_vm8, %v4861_v4  ;;  %v3748_v7 = vpop.f32.mrf.mxu0  ;;  %v9748_v4 = vld [vmem:[%s15034_s5 + $0x68] sm:$0xff]   ;;  %vm15353_vm6 = vmmov %vm15321_vm1 }
 0x452   :  { %v13718_v45 = vadd.f32 %v13661_v8, %v3239_v18  ;;  %9312 = vmatprep.mubr.msk.bf16.mxu1 %vm15283_vm12, %v15213_v61  ;;  %9472 = vmatprep.mubr.msk.bf16.mxu0 %vm15283_vm12, %v15213_v61  ;;  %v4862_v22 = vrot.slane %v4843_v13, 3  ;;  %v5407_v8 = vpop.permute.xlu1 %5406  ;;  %vm15354_vm8 = vmmov %vm15321_vm1 }
 0x453   :  { %v3241_v17 = vpop.f32.mrf.mxu1  ;;  %v13724_v54 = vpop.f32.mrf.mxu0  ;;  %vm5513_vm7 = vcmp.eq.s32.totalorder %v11135_v2, %v5407_v8 }
 0x454   :  { %v4863_v30 = vsel %vm305_vm0, %v4860_v53, %v4862_v22  ;;  %v5549_v47 = vsel %vm5513_vm7, 1.0, %v15213_v61  ;;  %vm5603_vm0 = vcmask 801792   ;;  %v15338_v17 = vpack.c.bf16 %v13219_v46, %v13197_v27  ;;  %vm15357_vm7 = vmmov %vm15321_vm1 }
 0x455   :  { %v3242_v20 = vpop.f32.mrf.mxu1  ;;  %v3753_v59 = vpop.f32.mrf.mxu0  ;;  %v5585_v11 = vpack.c.bf16 %v5550_v41, %v5549_v47 }
 0x456   :  { %v13727_v33 = vadd.f32 %v13667_v43, %v3242_v20 }
 0x457   :  { %v3244_v58 = vpop.f32.mrf.mxu1  ;;  %v13729_v15 = vpop.f32.mrf.mxu0 }
 0x459   :  { %v3247_v36 = vpop.f32.mrf.mxu1  ;;  %9313 = vmatmul.mubr.msk.bf16.gmra.mxu1 %vm15334_vm4, %v15333_v39  ;;  %9473 = vmatmul.mubr.msk.bf16.gmra.mxu0 %vm15335_vm9, %v4863_v30  ;;  %v3756_v26 = vpop.f32.mrf.mxu0  ;;  %v15340_v39 = vpack.c.bf16 %v13253_v57, %v13238_v32  ;;  %vm15355_vm4 = vmmov %vm15321_vm1 }
 0x45a   :  { %v13740_v43 = vadd.f32 %v13680_v49, %v3247_v36  ;;  %9316 = vmatprep.mubr.msk.bf16.mxu1 %vm15283_vm12, %v15213_v61  ;;  %9476 = vmatprep.mubr.msk.bf16.mxu0 %vm15283_vm12, %v15213_v61  ;;  %vm15356_vm9 = vmmov %vm15321_vm1 }
 0x45b   :  { %v3249_v56 = vpop.f32.mrf.mxu1  ;;  %v3759_v60 = vpop.f32.mrf.mxu0 }
 0x45d   :  { %v3250_v19 = vpop.f32.mrf.mxu1  ;;  %v3761_v28 = vpop.f32.mrf.mxu0 }
 0x45e   :  { %v13749_v24 = vadd.f32 %v13682_v51, %v3250_v19 }
 0x45f   :  { %v3252_v9 = vpop.f32.mrf.mxu1  ;;  %v3762_v49 = vpop.f32.mrf.mxu0 }
 0x461   :  { %v3255_v6 = vpop.f32.mrf.mxu1  ;;  %9317 = vmatmul.mubr.msk.bf16.gmra.mxu1 %vm15321_vm1, %v15336_v50  ;;  %9477 = vmatmul.mubr.msk.bf16.gmra.mxu0 %vm15337_vm10, %v4862_v22  ;;  %v3764_v14 = vpop.f32.mrf.mxu0  ;;  %vm15359_vm10 = vmmov %vm15321_vm1 }
 0x462   :  { %v13757_v40 = vadd.f32 %v13694_v10, %v3255_v6  ;;  %9526 = vmatprep.mubr.msk.bf16.mxu0 %vm5603_vm0, %v5585_v11  ;;  %9356 = vmatprep.mubr.msk.bf16.mxu1 %vm15283_vm12, %v15213_v61 }
 0x463   :  { %v3257_v51 = vpop.f32.mrf.mxu1  ;;  %v3767_v53 = vpop.f32.mrf.mxu0 }
 0x465   :  { %v3258_v52 = vpop.f32.mrf.mxu1  ;;  %v3769_v37 = vpop.f32.mrf.mxu0 }
 0x466   :  { %v13763_v13 = vadd.f32 %v13696_v21, %v3258_v52  ;;  %v9749_v21 = vld [vmem:[%s15034_s5 + $0x60] sm:$0xff]  }
 0x467   :  { %v3260_v18 = vpop.f32.mrf.mxu1  ;;  %v3770_v62 = vpop.f32.mrf.mxu0 }
 0x469   :  { %v3263_v7 = vpop.f32.mrf.mxu1  ;;  %9357 = vmatmul.mubr.msk.bf16.vlgmr.msra.gmra.mxu1 %vm15339_vm11, %v15338_v17  ;;  %v3771_v22 = vpop.f32.mrf.mxu0  ;;  %vm15362_vm11 = vmmov %vm15321_vm1 }
 0x46a   :  { %v13775_v20 = vadd.f32 %v13708_v48, %v3263_v7  ;;  %9360 = vmatprep.mubr.msk.bf16.mxu1 %vm15283_vm12, %v15213_v61  ;;  %9417 = vmatpush3.bf16.msra.mxu1 %v9748_v4 }
 0x46b   :  { %v3265_v59 = vpop.f32.mrf.mxu1  ;;  %v13782_v58 = vpop.f32.mrf.mxu0  ;;  %9418 = vmatprep.subr.bf16.mxu1 %v15213_v61 }
 0x46d   :  { %v3266_v27 = vpop.f32.mrf.mxu1  ;;  %v9230_v46 = vpop.f32.mrf.mxu0 }
 0x46e   :  { %v13786_v8 = vadd.f32 %v13711_v5, %v3266_v27  ;;  %9419 = vmatpush3.bf16.msra.mxu1 %v9749_v21 }
 0x46f   :  { %v3268_v48 = vpop.f32.mrf.mxu1  ;;  %v13788_v31 = vpop.f32.mrf.mxu0  ;;  %9480 = vmatprep.subr.bf16.mxu1 %v15213_v61 }
 0x471   :  { %v3271_v36 = vpop.f32.mrf.mxu1  ;;  %9361 = vmatmul.mubr.msk.bf16.gmra.mxu1 %vm15341_vm13, %v15340_v39  ;;  %v9231_v26 = vpop.f32.mrf.mxu0  ;;  %vm15365_vm13 = vmmov %vm15321_vm1 }
 0x472   :  { %v13798_v56 = vadd.f32 %v13724_v54, %v3271_v36  ;;  %9364 = vmatprep.mubr.msk.bf16.mxu1 %vm15283_vm12, %v15213_v61  ;;  %v15342_v54 = vpack.c.bf16 %v13279_v34, %v13267_v16 }
 0x473   :  { %v3273_v5 = vpop.f32.mrf.mxu1  ;;  %v13802_v47 = vpop.f32.mrf.mxu0 }
 0x475   :  { %v3274_v41 = vpop.f32.mrf.mxu1  ;;  %v9326_v19 = vpop.f32.mrf.mxu0 }
 0x476   :  { %v13805_v28 = vadd.f32 %v13729_v15, %v3274_v41 }
 0x477   :  { %v3276_v9 = vpop.f32.mrf.mxu1  ;;  %v13807_v11 = vpop.f32.mrf.mxu0 }
 0x478   :  { %v15349_v9 = vld [vmem:[#allocation3_spill] sm:$0xff] }
 0x479   :  { %v3279_v57 = vpop.f32.mrf.mxu1  ;;  %9365 = vmatmul.mubr.msk.bf16.gmra.mxu1 %vm15343_vm14, %v15342_v54  ;;  %v9327_v6 = vpop.f32.mrf.mxu0  ;;  %vm15367_vm14 = vmmov %vm15321_vm1 }
 0x47a   :  { %v13815_v50 = vadd.f32 %v3759_v60, %v3279_v57  ;;  %9368 = vmatprep.mubr.msk.bf16.mxu1 %vm15283_vm12, %v15213_v61  ;;  %v15344_v60 = vpack.c.bf16 %v13307_v42, %v13294_v35  ;;  %v15346_v35 = vld [vmem:[#allocation57_spill] sm:$0xff]  ;;  %v15350_v57 = vld [vmem:[#allocation60_spill] sm:$0xff] }
 0x47b   :  { %v3281_v15 = vpop.f32.mrf.mxu1  ;;  %v13819_v14 = vpop.f32.mrf.mxu0  ;;  %v15347_v42 = vpack.c.bf16 %v13341_v23, %v15346_v35  ;;  %v15351_v23 = vpack.c.bf16 %v15349_v9, %v15350_v57 }
 0x47d   :  { %v3282_v51 = vpop.f32.mrf.mxu1  ;;  %v9330_v52 = vpop.f32.mrf.mxu0 }
 0x47e   :  { %v13821_v37 = vadd.f32 %v3762_v49, %v3282_v51 }
 0x47f   :  { %v3284_v4 = vpop.f32.mrf.mxu1  ;;  %v13823_v18 = vpop.f32.mrf.mxu0 }
 0x480   :  { %v4380_v4 = vpack.c.bf16 %v13387_v63, %v13387_v63  ;;  %v9750_v63 = vld [vmem:[%s15034_s5 + $0x88] sm:$0xff]  }
 0x481   :  { %v3287_v34 = vpop.f32.mrf.mxu1  ;;  %9369 = vmatmul.mubr.msk.bf16.gmra.mxu1 %vm15345_vm15, %v15344_v60  ;;  %v9331_v62 = vpop.f32.mrf.mxu0  ;;  %vm15369_vm15 = vmmov %vm15321_vm1 }
 0x482   :  { %v13831_v7 = vadd.f32 %v3767_v53, %v3287_v34  ;;  %9372 = vmatprep.mubr.msk.bf16.mxu1 %vm15283_vm12, %v15213_v61 }
 0x483   :  { %v3289_v49 = vpop.f32.mrf.mxu1  ;;  %v13835_v17 = vpop.f32.mrf.mxu0 }
 0x485   :  { %v3290_v22 = vpop.f32.mrf.mxu1  ;;  %v9334_v21 = vpop.f32.mrf.mxu0 }
 0x487   :  { %v3291_v59 = vpop.f32.mrf.mxu1  ;;  %v13837_v27 = vpop.f32.mrf.mxu0 }
 0x489   :  { %v13839_v46 = vpop.f32.mrf.mxu1  ;;  %9373 = vmatmul.mubr.msk.bf16.gmra.mxu1 %vm15348_vm3, %v15347_v42  ;;  %v9335_v53 = vpop.f32.mrf.mxu0  ;;  %vm15371_vm3 = vmmov %vm15321_vm1 }
 0x48a   :  { %9376 = vmatprep.mubr.msk.bf16.mxu1 %vm15283_vm12, %v15213_v61 }
 0x48b   :  { %v9234_v48 = vpop.f32.mrf.mxu1  ;;  %v13847_v36 = vpop.f32.mrf.mxu0 }
 0x48d   :  { %v13849_v39 = vpop.f32.mrf.mxu1  ;;  %v9338_v26 = vpop.f32.mrf.mxu0 }
 0x48f   :  { %v9235_v5 = vpop.f32.mrf.mxu1  ;;  %v13851_v41 = vpop.f32.mrf.mxu0 }
 0x490   :  { %v9751_v5 = vld [vmem:[%s15034_s5 + $0x80] sm:$0xff]  }
 0x491   :  { %v13853_v19 = vpop.f32.mrf.mxu1  ;;  %9377 = vmatmul.mubr.msk.bf16.gmra.mxu1 %vm15352_vm5, %v15351_v23  ;;  %v9339_v54 = vpop.f32.mrf.mxu0  ;;  %vm15373_vm5 = vmmov %vm15321_vm1 }
 0x492   :  { %9380 = vmatprep.mubr.msk.bf16.mxu1 %vm15283_vm12, %v15213_v61 }
 0x493   :  { %v9238_v6 = vpop.f32.mrf.mxu1  ;;  %v13861_v15 = vpop.f32.mrf.mxu0 }
 0x495   :  { %v13863_v51 = vpop.f32.mrf.mxu1  ;;  %v9342_v52 = vpop.f32.mrf.mxu0 }
 0x497   :  { %v9239_v34 = vpop.f32.mrf.mxu1  ;;  %v13867_v60 = vpop.f32.mrf.mxu0 }
 0x499   :  { %v13869_v62 = vpop.f32.mrf.mxu1  ;;  %9381 = vmatmul.mubr.msk.bf16.gmra.mxu1 %vm15353_vm6, %v4380_v4  ;;  %v9343_v49 = vpop.f32.mrf.mxu0  ;;  %vm15374_vm6 = vmmov %vm15321_vm1 }
 0x49a   :  { %9420 = vmatprep.mubr.msk.bf16.mxu1 %vm15283_vm12, %v15213_v61 }
 0x49b   :  { %v9242_v22 = vpop.f32.mrf.mxu1  ;;  %v13874_v21 = vpop.f32.mrf.mxu0 }
 0x49d   :  { %v13876_v59 = vpop.f32.mrf.mxu1  ;;  %v9346_v35 = vpop.f32.mrf.mxu0 }
 0x49f   :  { %v9243_v42 = vpop.f32.mrf.mxu1  ;;  %v13881_v53 = vpop.f32.mrf.mxu0 }
 0x4a1   :  { %v13883_v48 = vpop.f32.mrf.mxu1  ;;  %9421 = vmatmul.mubr.msk.bf16.vlgmr.msra.gmra.mxu1 %vm15354_vm8, %v13541_v55  ;;  %v9347_v26 = vpop.f32.mrf.mxu0  ;;  %vm5140_vm8 = vcmask 523264  }
 0x4a2   :  { %9424 = vmatprep.mubr.msk.bf16.mxu1 %vm15283_vm12, %v15213_v61  ;;  %9481 = vmatpush3.bf16.msra.mxu1 %v9750_v63 }
 0x4a3   :  { %v9246_v9 = vpop.f32.mrf.mxu1  ;;  %v13892_v57 = vpop.f32.mrf.mxu0  ;;  %9482 = vmatprep.subr.bf16.mxu1 %v15213_v61 }
 0x4a5   :  { %v13895_v23 = vpop.f32.mrf.mxu1  ;;  %v9350_v54 = vpop.f32.mrf.mxu0 }
 0x4a6   :  { %9483 = vmatpush3.bf16.msra.mxu1 %v9751_v5 }
 0x4a7   :  { %v9247_v6 = vpop.f32.mrf.mxu1  ;;  %v4358_v55 = vpop.f32.mrf.mxu0 }
 0x4a9   :  { %v13897_v52 = vpop.f32.mrf.mxu1  ;;  %9425 = vmatmul.mubr.msk.bf16.gmra.mxu1 %vm15355_vm4, %v13560_v44  ;;  %v9351_v4 = vpop.f32.mrf.mxu0  ;;  %vm5164_vm4 = vcmask 517120  }
 0x4aa   :  { %9428 = vmatprep.mubr.msk.bf16.mxu1 %vm15283_vm12, %v15213_v61 }
 0x4ab   :  { %v9250_v34 = vpop.f32.mrf.mxu1  ;;  %v13903_v49 = vpop.f32.mrf.mxu0 }
 0x4ad   :  { %v13905_v22 = vpop.f32.mrf.mxu1  ;;  %v9390_v35 = vpop.f32.mrf.mxu0 }
 0x4af   :  { %v9251_v63 = vpop.f32.mrf.mxu1  ;;  %v13907_v42 = vpop.f32.mrf.mxu0 }
 0x4b1   :  { %v13909_v26 = vpop.f32.mrf.mxu1  ;;  %9429 = vmatmul.mubr.msk.bf16.gmra.mxu1 %vm15356_vm9, %v13581_v0  ;;  %v9391_v5 = vpop.f32.mrf.mxu0  ;;  %vm5658_vm9 = vcmask 1040384  }
 0x4b2   :  { %9432 = vmatprep.mubr.msk.bf16.mxu1 %vm15283_vm12, %v15213_v61 }
 0x4b3   :  { %v9254_v44 = vpop.f32.mrf.mxu1  ;;  %v13915_v9 = vpop.f32.mrf.mxu0 }
 0x4b5   :  { %v3926_v54 = vpop.f32.mrf.mxu1  ;;  %v9394_v6 = vpop.f32.mrf.mxu0 }
 0x4b7   :  { %v9255_v55 = vpop.f32.mrf.mxu1  ;;  %v13917_v4 = vpop.f32.mrf.mxu0 }
 0x4b9   :  { %v13919_v34 = vpop.f32.mrf.mxu1  ;;  %9433 = vmatmul.mubr.msk.bf16.gmra.mxu1 %vm15357_vm7, %v13600_v1  ;;  %v9395_v35 = vpop.f32.mrf.mxu0 }
 0x4ba   :  { %9436 = vmatprep.mubr.msk.bf16.mxu1 %vm15283_vm12, %v15213_v61 }
 0x4bb   :  { %v9262_v0 = vpop.f32.mrf.mxu1  ;;  %v13925_v63 = vpop.f32.mrf.mxu0 }
 0x4bd   :  { %v13927_v5 = vpop.f32.mrf.mxu1  ;;  %v9398_v44 = vpop.f32.mrf.mxu0 }
 0x4bf   :  { %v9263_v54 = vpop.f32.mrf.mxu1  ;;  %v13929_v6 = vpop.f32.mrf.mxu0 }
 0x4c1   :  { %v4004_v55 = vpop.f32.mrf.mxu1  ;;  %9437 = vmatmul.mubr.msk.bf16.gmra.mxu1 %vm15358_vm2, %v13618_v12  ;;  %v9399_v16 = vpop.f32.mrf.mxu0 }
 0x4c2   :  { %v13934_v1 = vadd.f32 %v4004_v55, %v13839_v46  ;;  %9440 = vmatprep.mubr.msk.bf16.mxu1 %vm15283_vm12, %v15213_v61 }
 0x4c3   :  { %v9266_v35 = vpop.f32.mrf.mxu1  ;;  %v13938_v0 = vpop.f32.mrf.mxu0 }
 0x4c5   :  { %v4007_v32 = vpop.f32.mrf.mxu1  ;;  %v9402_v30 = vpop.f32.mrf.mxu0 }
 0x4c6   :  { %v13941_v44 = vadd.f32 %v4007_v32, %v13849_v39 }
 0x4c7   :  { %v9267_v54 = vpop.f32.mrf.mxu1  ;;  %v13943_v10 = vpop.f32.mrf.mxu0 }
 0x4c9   :  { %v4012_v25 = vpop.f32.mrf.mxu1  ;;  %9441 = vmatmul.mubr.msk.bf16.gmra.mxu1 %vm15321_vm1, %v13632_v29  ;;  %v9403_v12 = vpop.f32.mrf.mxu0 }
 0x4ca   :  { %v13948_v16 = vadd.f32 %v4012_v25, %v13853_v19  ;;  %9444 = vmatprep.mubr.msk.bf16.mxu1 %vm15283_vm12, %v15213_v61 }
 0x4cb   :  { %v9270_v46 = vpop.f32.mrf.mxu1  ;;  %v13952_v55 = vpop.f32.mrf.mxu0 }
 0x4cd   :  { %v4015_v30 = vpop.f32.mrf.mxu1  ;;  %v9406_v32 = vpop.f32.mrf.mxu0 }
 0x4ce   :  { %v13955_v39 = vadd.f32 %v4015_v30, %v13863_v51 }
 0x4cf   :  { %v9271_v35 = vpop.f32.mrf.mxu1  ;;  %v13957_v54 = vpop.f32.mrf.mxu0 }
 0x4d1   :  { %v4020_v38 = vpop.f32.mrf.mxu1  ;;  %9445 = vmatmul.mubr.msk.bf16.gmra.mxu1 %vm15359_vm10, %v13624_v3  ;;  %v9407_v29 = vpop.f32.mrf.mxu0  ;;  %v15361_v3 = vpack.c.bf16 %v13727_v33, %v13718_v45  ;;  %v15364_v33 = vpack.c.bf16 %v13749_v24, %v13740_v43 }
 0x4d2   :  { %v13962_v25 = vadd.f32 %v4020_v38, %v13869_v62  ;;  %9484 = vmatprep.mubr.msk.bf16.mxu1 %vm15283_vm12, %v15213_v61 }
 0x4d3   :  { %v9274_v19 = vpop.f32.mrf.mxu1  ;;  %v13966_v12 = vpop.f32.mrf.mxu0 }
 0x4d5   :  { %v4023_v46 = vpop.f32.mrf.mxu1  ;;  %v9410_v51 = vpop.f32.mrf.mxu0 }
 0x4d6   :  { %v13969_v30 = vadd.f32 %v4023_v46, %v13876_v59 }
 0x4d7   :  { %v9275_v32 = vpop.f32.mrf.mxu1  ;;  %v13971_v35 = vpop.f32.mrf.mxu0 }
 0x4d8   :  { %15360 = vst [vmem:[#allocation4_spill] sm:$0xff] %v13971_v35 }
 0x4d9   :  { %v4028_v2 = vpop.f32.mrf.mxu1  ;;  %9485 = vmatmul.mubr.msk.bf16.vlgmr.msra.gmra.mxu1 %vm15362_vm11, %v15361_v3  ;;  %v9411_v38 = vpop.f32.mrf.mxu0 }
 0x4da   :  { %v13978_v62 = vadd.f32 %v4028_v2, %v13883_v48  ;;  %9488 = vmatprep.mubr.msk.bf16.mxu1 %vm15283_vm12, %v15213_v61 }
 0x4db   :  { %v9278_v29 = vpop.f32.mrf.mxu1  ;;  %v13982_v19 = vpop.f32.mrf.mxu0 }
 0x4dc   :  { %15363 = vst [vmem:[#allocation53_spill] sm:$0xff] %v13982_v19 }
 0x4dd   :  { %v4031_v59 = vpop.f32.mrf.mxu1  ;;  %v9414_v46 = vpop.f32.mrf.mxu0 }
 0x4de   :  { %v13985_v51 = vadd.f32 %v4031_v59, %v13895_v23  ;;  %v15366_v59 = vpack.c.bf16 %v13763_v13, %v13757_v40  ;;  %v15368_v40 = vpack.c.bf16 %v13786_v8, %v13775_v20 }
 0x4df   :  { %v9279_v32 = vpop.f32.mrf.mxu1  ;;  %v4660_v35 = vpop.f32.mrf.mxu0 }
 0x4e1   :  { %v4036_v45 = vpop.f32.mrf.mxu1  ;;  %9489 = vmatmul.mubr.msk.bf16.gmra.mxu1 %vm15365_vm13, %v15364_v33  ;;  %v9415_v2 = vpop.f32.mrf.mxu0 }
 0x4e2   :  { %v13992_v48 = vadd.f32 %v4036_v45, %v13897_v52  ;;  %9492 = vmatprep.mubr.msk.bf16.mxu1 %vm15283_vm12, %v15213_v61  ;;  %v4000_v2 = vadd.f32 %v13927_v5, %v13788_v31 }
 0x4e3   :  { %v9282_v3 = vpop.f32.mrf.mxu1 }
 0x4e5   :  { %v4039_v38 = vpop.f32.mrf.mxu1 }
 0x4e6   :  { %v13997_v23 = vadd.f32 %v4039_v38, %v13905_v22  ;;  %v3997_v22 = vadd.f32 %v13919_v34, %v13782_v58 }
 0x4e7   :  { %v9283_v29 = vpop.f32.mrf.mxu1 }
 0x4e9   :  { %v4044_v35 = vpop.f32.mrf.mxu1  ;;  %9493 = vmatmul.mubr.msk.bf16.gmra.mxu1 %vm15367_vm14, %v15366_v59 }
 0x4ea   :  { %v14004_v43 = vadd.f32 %v4044_v35, %v13909_v26  ;;  %9496 = vmatprep.mubr.msk.bf16.mxu1 %vm15283_vm12, %v15213_v61  ;;  %v15370_v35 = vpack.c.bf16 %v13805_v28, %v13798_v56  ;;  %v15372_v28 = vpack.c.bf16 %v13821_v37, %v13815_v50 }
 0x4eb   :  { %v9286_v24 = vpop.f32.mrf.mxu1 }
 0x4ed   :  { %v4047_v52 = vpop.f32.mrf.mxu1 }
 0x4ef   :  { %v9287_v46 = vpop.f32.mrf.mxu1 }
 0x4f1   :  { %v4145_v32 = vpop.f32.mrf.mxu1  ;;  %v14010_v45 = vpop.f32.mrf.mxu0  ;;  %9497 = vmatmul.mubr.msk.bf16.gmra.mxu1 %vm15369_vm15, %v15368_v40 }
 0x4f2   :  { %v14016_v13 = vadd.f32 %v4145_v32, %v3997_v22  ;;  %9500 = vmatprep.mubr.msk.bf16.mxu1 %vm15283_vm12, %v15213_v61 }
 0x4f3   :  { %v9294_v26 = vpop.f32.mrf.mxu1  ;;  %v9454_v33 = vpop.f32.mrf.mxu0 }
 0x4f5   :  { %v4148_v3 = vpop.f32.mrf.mxu1  ;;  %v14022_v58 = vpop.f32.mrf.mxu0 }
 0x4f6   :  { %v14024_v34 = vadd.f32 %v4148_v3, %v4000_v2 }
 0x4f7   :  { %v9295_v38 = vpop.f32.mrf.mxu1  ;;  %v9455_v29 = vpop.f32.mrf.mxu0 }
 0x4f8   :  { %v5004_v38 = vpack.c.bf16 %v13831_v7, %v13831_v7 }
 0x4f9   :  { %v4153_v20 = vpop.f32.mrf.mxu1  ;;  %v14026_v8 = vpop.f32.mrf.mxu0  ;;  %9501 = vmatmul.mubr.msk.bf16.gmra.mxu1 %vm15371_vm3, %v15370_v35 }
 0x4fa   :  { %v14033_v59 = vadd.f32 %v4153_v20, %v13934_v1  ;;  %9504 = vmatprep.mubr.msk.bf16.mxu1 %vm15283_vm12, %v15213_v61 }
 0x4fb   :  { %v9298_v31 = vpop.f32.mrf.mxu1  ;;  %v9458_v5 = vpop.f32.mrf.mxu0 }
 0x4fd   :  { %v4156_v24 = vpop.f32.mrf.mxu1  ;;  %v14037_v52 = vpop.f32.mrf.mxu0 }
 0x4fe   :  { %v14040_v46 = vadd.f32 %v4156_v24, %v13941_v44 }
 0x4ff   :  { %v9299_v22 = vpop.f32.mrf.mxu1  ;;  %v9459_v32 = vpop.f32.mrf.mxu0 }
 0x501   :  { %v4161_v40 = vpop.f32.mrf.mxu1  ;;  %v14042_v56 = vpop.f32.mrf.mxu0  ;;  %9505 = vmatmul.mubr.msk.bf16.gmra.mxu1 %vm15373_vm5, %v15372_v28 }
 0x502   :  { %v14049_v1 = vadd.f32 %v4161_v40, %v13948_v16  ;;  %9508 = vmatprep.mubr.msk.bf16.mxu1 %vm15283_vm12, %v15213_v61 }
 0x503   :  { %v9302_v26 = vpop.f32.mrf.mxu1  ;;  %v9462_v33 = vpop.f32.mrf.mxu0 }
 0x505   :  { %v4164_v44 = vpop.f32.mrf.mxu1  ;;  %v14053_v2 = vpop.f32.mrf.mxu0 }
 0x506   :  { %v14056_v3 = vadd.f32 %v4164_v44, %v13955_v39 }
 0x507   :  { %v9303_v50 = vpop.f32.mrf.mxu1  ;;  %v9463_v37 = vpop.f32.mrf.mxu0 }
 0x509   :  { %v4169_v29 = vpop.f32.mrf.mxu1  ;;  %v14060_v20 = vpop.f32.mrf.mxu0  ;;  %9509 = vmatmul.mubr.msk.bf16.gmra.mxu1 %vm15374_vm6, %v5004_v38 }
 0x50a   :  { %v4205_v16 = vadd.f32 %v4169_v29, %v13962_v25 }
 0x50b   :  { %v9306_v35 = vpop.f32.mrf.mxu1  ;;  %v9466_v31 = vpop.f32.mrf.mxu0 }
 0x50d   :  { %v4172_v5 = vpop.f32.mrf.mxu1  ;;  %v14064_v24 = vpop.f32.mrf.mxu0 }
 0x50e   :  { %v4206_v39 = vadd.f32 %v4172_v5, %v13969_v30 }
 0x50f   :  { %v9307_v22 = vpop.f32.mrf.mxu1  ;;  %v9467_v32 = vpop.f32.mrf.mxu0 }
 0x511   :  { %v4177_v40 = vpop.f32.mrf.mxu1  ;;  %v14067_v7 = vpop.f32.mrf.mxu0 }
 0x512   :  { %v4207_v28 = vadd.f32 %v4177_v40, %v13978_v62 }
 0x513   :  { %v9310_v26 = vpop.f32.mrf.mxu1  ;;  %v9470_v33 = vpop.f32.mrf.mxu0 }
 0x515   :  { %v4180_v44 = vpop.f32.mrf.mxu1  ;;  %v14070_v38 = vpop.f32.mrf.mxu0 }
 0x516   :  { %v4208_v25 = vadd.f32 %v4180_v44, %v13985_v51 }
 0x517   :  { %v9311_v50 = vpop.f32.mrf.mxu1  ;;  %v9471_v37 = vpop.f32.mrf.mxu0 }
 0x519   :  { %v4185_v29 = vpop.f32.mrf.mxu1  ;;  %v14073_v35 = vpop.f32.mrf.mxu0 }
 0x51a   :  { %15375 = vst [vmem:[#allocation54_spill] sm:$0xff] %v14073_v35  ;;  %v4209_v30 = vadd.f32 %v4185_v29, %v13992_v48  ;;  %v4361_v29 = vadd.f32 %v13802_v47, %v14016_v13 }
 0x51b   :  { %v9314_v31 = vpop.f32.mrf.mxu1  ;;  %v9474_v5 = vpop.f32.mrf.mxu0 }
 0x51d   :  { %v4188_v22 = vpop.f32.mrf.mxu1  ;;  %v14076_v32 = vpop.f32.mrf.mxu0 }
 0x51e   :  { %15376 = vst [vmem:[#allocation47_spill] sm:$0xff] %v14076_v32  ;;  %v4210_v62 = vadd.f32 %v4188_v22, %v13997_v23  ;;  %v4362_v23 = vadd.f32 %v13807_v11, %v14024_v34 }
 0x51f   :  { %v9315_v40 = vpop.f32.mrf.mxu1  ;;  %v9475_v26 = vpop.f32.mrf.mxu0 }
 0x521   :  { %v4193_v33 = vpop.f32.mrf.mxu1  ;;  %v14079_v61 = vpop.f32.mrf.mxu0 }
 0x522   :  { %v4211_v51 = vadd.f32 %v4193_v33, %v14004_v43  ;;  %v4363_v43 = vadd.f32 %v13819_v14, %v14033_v59 }
 0x523   :  { %v9318_v44 = vpop.f32.mrf.mxu1  ;;  %v9478_v50 = vpop.f32.mrf.mxu0 }
 0x525   :  { %v4196_v37 = vpop.f32.mrf.mxu1  ;;  %v4982_v19 = vpop.f32.mrf.mxu0 }
 0x527   :  { %v9319_v35 = vpop.f32.mrf.mxu1  ;;  %v9479_v48 = vpop.f32.mrf.mxu0 }
 0x528   :  { %v4364_v35 = vadd.f32 %v13823_v18, %v14040_v46  ;;  %v4366_v48 = vadd.f32 %v13837_v27, %v14056_v3  ;;  %v4368_v46 = vadd.f32 %v13851_v41, %v4206_v39  ;;  %v4370_v3 = vadd.f32 %v13867_v60, %v4208_v25 }
 0x529   :  { %v4448_v31 = vpop.f32.mrf.mxu1 }
 0x52a   :  { %v4502_v5 = vadd.f32 %v4448_v31, %v4361_v29  ;;  %v4367_v31 = vadd.f32 %v13847_v36, %v4205_v16  ;;  %v4371_v16 = vadd.f32 %v13874_v21, %v4209_v30 }
 0x52b   :  { %v9358_v32 = vpop.f32.mrf.mxu1 }
 0x52c   :  { %v4365_v32 = vadd.f32 %v13835_v17, %v14049_v1  ;;  %v4369_v1 = vadd.f32 %v13861_v15, %v4207_v28  ;;  %v4663_v21 = vadd.f32 %v13903_v49, %v4502_v5 }
 0x52d   :  { %v4451_v22 = vpop.f32.mrf.mxu1 }
 0x52e   :  { %v4503_v40 = vadd.f32 %v4451_v22, %v4362_v23 }
 0x52f   :  { %v9359_v26 = vpop.f32.mrf.mxu1 }
 0x531   :  { %v4456_v33 = vpop.f32.mrf.mxu1 }
 0x532   :  { %v4504_v44 = vadd.f32 %v4456_v33, %v4363_v43 }
 0x533   :  { %v9362_v19 = vpop.f32.mrf.mxu1 }
 0x535   :  { %v4459_v50 = vpop.f32.mrf.mxu1 }
 0x536   :  { %v4505_v47 = vadd.f32 %v4459_v50, %v4364_v35 }
 0x537   :  { %v9363_v13 = vpop.f32.mrf.mxu1 }
 0x539   :  { %v4464_v37 = vpop.f32.mrf.mxu1 }
 0x53a   :  { %v4506_v11 = vadd.f32 %v4464_v37, %v4365_v32  ;;  %v4372_v32 = vadd.f32 %v13881_v53, %v4210_v62 }
 0x53b   :  { %v9366_v34 = vpop.f32.mrf.mxu1 }
 0x53c   :  { %v4373_v34 = vadd.f32 %v13892_v57, %v4211_v51  ;;  %v4667_v49 = vadd.f32 %v13925_v63, %v4506_v11 }
 0x53d   :  { %v4467_v29 = vpop.f32.mrf.mxu1 }
 0x53e   :  { %v4507_v14 = vadd.f32 %v4467_v29, %v4366_v48 }
 0x53f   :  { %v9367_v59 = vpop.f32.mrf.mxu1 }
 0x541   :  { %v4472_v23 = vpop.f32.mrf.mxu1 }
 0x542   :  { %v4508_v22 = vadd.f32 %v4472_v23, %v4367_v31 }
 0x543   :  { %v9370_v18 = vpop.f32.mrf.mxu1 }
 0x544   :  { %v4664_v18 = vadd.f32 %v13907_v42, %v4503_v40  ;;  %v4668_v42 = vadd.f32 %v13929_v6, %v4507_v14 }
 0x545   :  { %v4475_v26 = vpop.f32.mrf.mxu1 }
 0x546   :  { %v14096_v43 = vadd.f32 %v4475_v26, %v4368_v46  ;;  %v4665_v26 = vadd.f32 %v13915_v9, %v4504_v44  ;;  %v4669_v9 = vadd.f32 %v13938_v0, %v4508_v22 }
 0x547   :  { %v9371_v17 = vpop.f32.mrf.mxu1 }
 0x549   :  { %v4480_v33 = vpop.f32.mrf.mxu1 }
 0x54a   :  { %v14099_v19 = vadd.f32 %v4480_v33, %v4369_v1  ;;  %v4666_v1 = vadd.f32 %v13917_v4, %v4505_v47 }
 0x54b   :  { %v9374_v27 = vpop.f32.mrf.mxu1 }
 0x54d   :  { %v4483_v35 = vpop.f32.mrf.mxu1 }
 0x54e   :  { %v14102_v50 = vadd.f32 %v4483_v35, %v4370_v3 }
 0x54f   :  { %v9375_v36 = vpop.f32.mrf.mxu1 }
 0x551   :  { %v4488_v13 = vpop.f32.mrf.mxu1 }
 0x552   :  { %v14105_v41 = vadd.f32 %v4488_v13, %v4371_v16 }
 0x553   :  { %v9378_v39 = vpop.f32.mrf.mxu1 }
 0x555   :  { %v4491_v37 = vpop.f32.mrf.mxu1 }
 0x556   :  { %v14108_v15 = vadd.f32 %v4491_v37, %v4372_v32 }
 0x557   :  { %v9379_v28 = vpop.f32.mrf.mxu1 }
 0x559   :  { %v4496_v48 = vpop.f32.mrf.mxu1 }
 0x55a   :  { %v14111_v60 = vadd.f32 %v4496_v48, %v4373_v34 }
 0x55b   :  { %v9382_v25 = vpop.f32.mrf.mxu1 }
 0x55d   :  { %v4499_v29 = vpop.f32.mrf.mxu1 }
 0x55f   :  { %v9383_v59 = vpop.f32.mrf.mxu1 }
 0x561   :  { %v4770_v30 = vpop.f32.mrf.mxu1 }
 0x562   :  { %v4824_v31 = vadd.f32 %v4770_v30, %v4663_v21 }
 0x563   :  { %v9422_v23 = vpop.f32.mrf.mxu1 }
 0x565   :  { %v4773_v53 = vpop.f32.mrf.mxu1 }
 0x566   :  { %v4825_v62 = vadd.f32 %v4773_v53, %v4664_v18 }
 0x567   :  { %v9423_v46 = vpop.f32.mrf.mxu1 }
 0x568   :  { %v4986_v46 = vadd.f32 %v14022_v58, %v4825_v62 }
 0x569   :  { %v4778_v17 = vpop.f32.mrf.mxu1 }
 0x56a   :  { %v4826_v57 = vadd.f32 %v4778_v17, %v4665_v26  ;;  %v4985_v17 = vadd.f32 %v14010_v45, %v4824_v31 }
 0x56b   :  { %v9426_v51 = vpop.f32.mrf.mxu1 }
 0x56d   :  { %v4781_v33 = vpop.f32.mrf.mxu1 }
 0x56e   :  { %v4827_v27 = vadd.f32 %v4781_v33, %v4666_v1  ;;  %v4987_v1 = vadd.f32 %v14026_v8, %v4826_v57 }
 0x56f   :  { %v9427_v3 = vpop.f32.mrf.mxu1 }
 0x571   :  { %v4786_v5 = vpop.f32.mrf.mxu1 }
 0x572   :  { %v4828_v35 = vadd.f32 %v4786_v5, %v4667_v49  ;;  %v4988_v5 = vadd.f32 %v14037_v52, %v4827_v27 }
 0x573   :  { %v9430_v36 = vpop.f32.mrf.mxu1 }
 0x574   :  { %v4989_v45 = vadd.f32 %v14042_v56, %v4828_v35 }
 0x575   :  { %v4789_v40 = vpop.f32.mrf.mxu1 }
 0x576   :  { %v4829_v16 = vadd.f32 %v4789_v40, %v4668_v42  ;;  %v4670_v40 = vadd.f32 %v13943_v10, %v14096_v43 }
 0x577   :  { %v9431_v13 = vpop.f32.mrf.mxu1 }
 0x578   :  { %v4990_v62 = vadd.f32 %v14053_v2, %v4829_v16 }
 0x579   :  { %v4794_v44 = vpop.f32.mrf.mxu1 }
 0x57a   :  { %v4830_v39 = vadd.f32 %v4794_v44, %v4669_v9 }
 0x57b   :  { %v9434_v32 = vpop.f32.mrf.mxu1 }
 0x57d   :  { %v4797_v37 = vpop.f32.mrf.mxu1 }
 0x57e   :  { %v4831_v44 = vadd.f32 %v4797_v37, %v4670_v40 }
 0x57f   :  { %v9435_v4 = vpop.f32.mrf.mxu1 }
 0x581   :  { %v4802_v47 = vpop.f32.mrf.mxu1 }
 0x583   :  { %v9438_v28 = vpop.f32.mrf.mxu1 }
 0x584   :  { %v4991_v28 = vadd.f32 %v14060_v20, %v4830_v39 }
 0x585   :  { %v14120_v34 = vpop.f32.mrf.mxu1 }
 0x587   :  { %v9439_v63 = vpop.f32.mrf.mxu1 }
 0x589   :  { %v14122_v11 = vpop.f32.mrf.mxu1 }
 0x58b   :  { %v9442_v48 = vpop.f32.mrf.mxu1 }
 0x58d   :  { %v14124_v25 = vpop.f32.mrf.mxu1 }
 0x58f   :  { %v9443_v6 = vpop.f32.mrf.mxu1 }
 0x590   :  { %v4671_v6 = vadd.f32 %v13952_v55, %v14099_v19 }
 0x591   :  { %v14126_v14 = vpop.f32.mrf.mxu1 }
 0x593   :  { %v9446_v29 = vpop.f32.mrf.mxu1 }
 0x595   :  { %v4821_v0 = vpop.f32.mrf.mxu1 }
 0x597   :  { %v9447_v22 = vpop.f32.mrf.mxu1 }
 0x599   :  { %v5072_v59 = vpop.f32.mrf.mxu1 }
 0x59a   :  { %v14133_v3 = vadd.f32 %v5072_v59, %v4985_v17 }
 0x59b   :  { %v9486_v21 = vpop.f32.mrf.mxu1 }
 0x59c   :  { %v5173_v8 = vmul.f32 %v14133_v3, %v14133_v3  ;;  %v5141_v56 = vsel %vm5140_vm8, %v14133_v3, 0.0  ;;  %v4832_v21 = vadd.f32 %v4802_v47, %v4671_v6 }
 0x59d   :  { %v5075_v30 = vpop.f32.mrf.mxu1 }
 0x59e   :  { %v14130_v51 = vadd.f32 %v5075_v30, %v4986_v46  ;;  %v5186_v10 = vsel %vm5140_vm8, %v5173_v8, 0.0  ;;  %v4992_v46 = vadd.f32 %v14064_v24, %v4831_v44 }
 0x59f   :  { %v9487_v23 = vpop.f32.mrf.mxu1 }
 0x5a0   :  { %v5174_v42 = vmul.f32 %v14130_v51, %v14130_v51  ;;  %v5142_v57 = vsel %vm5140_vm8, %v14130_v51, 0.0 }
 0x5a1   :  { %v5080_v18 = vpop.f32.mrf.mxu1  ;;  %v5143_v32 = vadd.f32 %v5142_v57, %v5141_v56  ;;  %v4673_v56 = vadd.f32 %v13966_v12, %v14105_v41  ;;  %v15377_v41 = vld [vmem:[#allocation4_spill] sm:$0xff] }
 0x5a2   :  { %v14135_v49 = vadd.f32 %v5080_v18, %v4987_v1  ;;  %v5187_v2 = vsel %vm5140_vm8, %v5174_v42, 0.0 }
 0x5a3   :  { %v9490_v53 = vpop.f32.mrf.mxu1  ;;  %v5188_v29 = vadd.f32 %v5187_v2, %v5186_v10 }
 0x5a4   :  { %v5175_v52 = vmul.f32 %v14135_v49, %v14135_v49  ;;  %v5144_v16 = vsel %vm5140_vm8, %v14135_v49, 0.0 }
 0x5a5   :  { %v5083_v26 = vpop.f32.mrf.mxu1  ;;  %v5145_v0 = vadd.f32 %v5144_v16, %v5143_v32 }
 0x5a6   :  { %v14140_v58 = vadd.f32 %v5083_v26, %v4988_v5  ;;  %v5189_v43 = vsel %vm5140_vm8, %v5175_v52, 0.0 }
 0x5a7   :  { %v9491_v33 = vpop.f32.mrf.mxu1  ;;  %v5190_v30 = vadd.f32 %v5189_v43, %v5188_v29  ;;  %v4674_v43 = vadd.f32 %v15377_v41, %v14108_v15  ;;  %v15379_v15 = vld [vmem:[#allocation53_spill] sm:$0xff] }
 0x5a8   :  { %v5176_v13 = vmul.f32 %v14140_v58, %v14140_v58  ;;  %v5146_v63 = vsel %vm5140_vm8, %v14140_v58, 0.0  ;;  %v4672_v33 = vadd.f32 %v13957_v54, %v14102_v50 }
 0x5a9   :  { %v5088_v36 = vpop.f32.mrf.mxu1  ;;  %v5147_v23 = vadd.f32 %v5146_v63, %v5145_v0  ;;  %v4835_v29 = vadd.f32 %v14124_v25, %v4674_v43 }
 0x5aa   :  { %v14150_v27 = vadd.f32 %v5088_v36, %v4989_v45  ;;  %v5191_v22 = vsel %vm5140_vm8, %v5176_v13, 0.0  ;;  %v4833_v24 = vadd.f32 %v14120_v34, %v4672_v33  ;;  %v4834_v13 = vadd.f32 %v14122_v11, %v4673_v56 }
 0x5ab   :  { %v9494_v31 = vpop.f32.mrf.mxu1  ;;  %v5192_v26 = vadd.f32 %v5191_v22, %v5190_v30 }
 0x5ac   :  { %v5177_v48 = vmul.f32 %v14150_v27, %v14150_v27  ;;  %v5148_v20 = vsel %vm5140_vm8, %v14150_v27, 0.0 }
 0x5ad   :  { %v5091_v35 = vpop.f32.mrf.mxu1  ;;  %v5149_v17 = vadd.f32 %v5148_v20, %v5147_v23 }
 0x5ae   :  { %v14161_v9 = vadd.f32 %v5091_v35, %v4990_v62  ;;  %v5193_v53 = vsel %vm5140_vm8, %v5177_v48, 0.0  ;;  %v4993_v62 = vadd.f32 %v14067_v7, %v4832_v21  ;;  %v4675_v21 = vadd.f32 %v15379_v15, %v14111_v60 }
 0x5af   :  { %v9495_v4 = vpop.f32.mrf.mxu1  ;;  %v5194_v42 = vadd.f32 %v5193_v53, %v5192_v26 }
 0x5b0   :  { %v5178_v39 = vmul.f32 %v14161_v9, %v14161_v9  ;;  %v5150_v55 = vsel %vm5140_vm8, %v14161_v9, 0.0  ;;  %v4994_v4 = vadd.f32 %v14070_v38, %v4833_v24  ;;  %v4836_v25 = vadd.f32 %v14126_v14, %v4675_v21 }
 0x5b1   :  { %v5096_v37 = vpop.f32.mrf.mxu1  ;;  %v5151_v45 = vadd.f32 %v5150_v55, %v5149_v17 }
 0x5b2   :  { %v14177_v59 = vadd.f32 %v5096_v37, %v4991_v28  ;;  %v5195_v47 = vsel %vm5140_vm8, %v5178_v39, 0.0  ;;  %v15378_v37 = vld [vmem:[#allocation54_spill] sm:$0xff]  ;;  %v4997_v14 = vadd.f32 %v14079_v61, %v4836_v25  ;;  %v14245_v25 = vpop.permute.xlu0 %5415 }
 0x5b3   :  { %v9498_v18 = vpop.f32.mrf.mxu1  ;;  %v5196_v50 = vadd.f32 %v5195_v47, %v5194_v42  ;;  %v4995_v22 = vadd.f32 %v15378_v37, %v4834_v13  ;;  %v9752_v37 = vld [vmem:[%s15035_s6 + $0x38] sm:$0xff]  }
 0x5b4   :  { %v5179_v19 = vmul.f32 %v14177_v59, %v14177_v59  ;;  %v5152_v5 = vsel %vm5140_vm8, %v14177_v59, 0.0  ;;  %9562 = vmatprep.subr.bf16.mxu1 %v9752_v37 }
 0x5b5   :  { %v5099_v1 = vpop.f32.mrf.mxu1  ;;  %v5153_v52 = vadd.f32 %v5152_v5, %v5151_v45  ;;  %9563 = vmatpush3.bf16.msra.mxu1 %v9752_v37 }
 0x5b6   :  { %v14190_v36 = vadd.f32 %v5099_v1, %v4992_v46  ;;  %v5197_v8 = vsel %vm5140_vm8, %v5179_v19, 0.0  ;;  %v15380_v46 = vld [vmem:[#allocation47_spill] sm:$0xff] }
 0x5b7   :  { %v9499_v31 = vpop.f32.mrf.mxu1  ;;  %v5198_v7 = vadd.f32 %v5197_v8, %v5196_v50  ;;  %v4996_v26 = vadd.f32 %v15380_v46, %v4835_v29 }
 0x5b8   :  { %v5154_v57 = vsel %vm5140_vm8, %v14190_v36, 0.0  ;;  %v5180_v54 = vmul.f32 %v14190_v36, %v14190_v36 }
 0x5b9   :  { %v5104_v40 = vpop.f32.mrf.mxu1  ;;  %v5155_v34 = vadd.f32 %v5154_v57, %v5153_v52 }
 0x5ba   :  { %v5199_v35 = vsel %vm5140_vm8, %v5180_v54, 0.0  ;;  %v14202_v2 = vadd.f32 %v5104_v40, %v4993_v62 }
 0x5bb   :  { %v9502_v16 = vpop.f32.mrf.mxu1  ;;  %v5200_v28 = vadd.f32 %v5199_v35, %v5198_v7 }
 0x5bc   :  { %v5156_v44 = vsel %vm5140_vm8, %v14202_v2, 0.0  ;;  %v5181_v32 = vmul.f32 %v14202_v2, %v14202_v2 }
 0x5bd   :  { %v5157_v10 = vadd.f32 %v5156_v44, %v5155_v34  ;;  %v5107_v12 = vpop.f32.mrf.mxu1 }
 0x5be   :  { %v5201_v63 = vsel %vm5140_vm8, %v5181_v32, 0.0  ;;  %v14213_v48 = vadd.f32 %v5107_v12, %v4994_v4 }
 0x5bf   :  { %v5202_v6 = vadd.f32 %v5201_v63, %v5200_v28  ;;  %v9503_v11 = vpop.f32.mrf.mxu1 }
 0x5c0   :  { %v5158_v0 = vsel %vm5140_vm8, %v14213_v48, 0.0  ;;  %v5182_v38 = vmul.f32 %v14213_v48, %v14213_v48 }
 0x5c1   :  { %v5159_v20 = vadd.f32 %v5158_v0, %v5157_v10  ;;  %v5112_v39 = vpop.f32.mrf.mxu1 }
 0x5c2   :  { %v5203_v30 = vsel %vm5140_vm8, %v5182_v38, 0.0  ;;  %v14224_v23 = vadd.f32 %v5112_v39, %v4995_v22 }
 0x5c3   :  { %v5204_v18 = vadd.f32 %v5203_v30, %v5202_v6  ;;  %v9506_v53 = vpop.f32.mrf.mxu1  ;;  %v15381_v30 = vld [vmem:[#allocation72_spill] sm:$0xff] }
 0x5c4   :  { %v5160_v55 = vsel %vm5140_vm8, %v14224_v23, 0.0  ;;  %v5183_v19 = vmul.f32 %v14224_v23, %v14224_v23  ;;  %v14243_v53 = vpop.permute.xlu1 %5412 }
 0x5c5   :  { %v5161_v17 = vadd.f32 %v5160_v55, %v5159_v20  ;;  %v5115_v1 = vpop.f32.mrf.mxu1  ;;  %v5139_v20 = vld [vmem:[%s15036_s9] sm:$0x3] }
 0x5c6   :  { %v5205_v60 = vsel %vm5140_vm8, %v5183_v19, 0.0  ;;  %v5137_v33 = vadd.f32 %v5115_v1, %v4996_v26 }
 0x5c7   :  { %v5206_v47 = vadd.f32 %v5205_v60, %v5204_v18  ;;  %v9507_v5 = vpop.f32.mrf.mxu1 }
 0x5c8   :  { %v5162_v42 = vsel %vm5140_vm8, %v5137_v33, 0.0  ;;  %v5184_v45 = vmul.f32 %v5137_v33, %v5137_v33  ;;  %v15382_v5 = vld [vmem:[#allocation73_spill] sm:$0xff] }
 0x5c9   :  { %v5163_v31 = vadd.f32 %v5162_v42, %v5161_v17  ;;  %v5120_v62 = vpop.f32.mrf.mxu1 }
 0x5ca   :  { %v5207_v24 = vsel %vm5140_vm8, %v5184_v45, 0.0  ;;  %v5138_v8 = vadd.f32 %v5120_v62, %v4997_v14 }
 0x5cb   :  { %v5208_v57 = vadd.f32 %v5207_v24, %v5206_v47  ;;  %v9510_v54 = vpop.f32.mrf.mxu1 }
 0x5cc   :  { %v5165_v50 = vsel %vm5164_vm4, %v5138_v8, 0.0  ;;  %v5185_v52 = vmul.f32 %v5138_v8, %v5138_v8 }
 0x5cd   :  { %v5166_v40 = vadd.f32 %v5165_v50, %v5163_v31  ;;  %v5123_v56 = vpop.f32.mrf.mxu1 }
 0x5ce   :  { %v5209_v35 = vsel %vm5164_vm4, %v5185_v52, 0.0 }
 0x5cf   :  { %v5167_v7 = vrot.slane %v5166_v40, 4  ;;  %v5210_v34 = vadd.f32 %v5209_v35, %v5208_v57  ;;  %v9511_v16 = vpop.f32.mrf.mxu1 }
 0x5d1   :  { %v5168_v13 = vadd.f32 %v5167_v7, %v5166_v40  ;;  %v5211_v44 = vrot.slane %v5210_v34, 4 }
 0x5d3   :  { %v5169_v32 = vrot.slane %v5168_v13, 2  ;;  %v5212_v61 = vadd.f32 %v5211_v44, %v5210_v34 }
 0x5d5   :  { %v5170_v4 = vadd.f32 %v5169_v32, %v5168_v13  ;;  %v5213_v28 = vrot.slane %v5212_v61, 2 }
 0x5d7   :  { %v5171_v10 = vrot.slane %v5170_v4, 1  ;;  %v5214_v12 = vadd.f32 %v5213_v28, %v5212_v61 }
 0x5d9   :  { %v5172_v41 = vadd.f32 %v5171_v10, %v5170_v4  ;;  %v5215_v43 = vrot.slane %v5214_v12, 1 }
 0x5db   :  { %v5216_v63 = vadd.f32 %v5215_v43, %v5214_v12  ;;  %v5217_v6 = vmul.f32 0.010204081, %v5172_v41 }
 0x5dd   :  { %v5218_v11 = vmul.f32 0.010204081, %v5216_v63  ;;  %v5219_v29 = vmul.f32 %v5217_v6, %v5217_v6 }
 0x5df   :  { %v5220_v0 = vsub.f32 %v5218_v11, %v5219_v29 }
 0x5e1   :  { %v5221_v38 = vmax.f32 %v5220_v0, 0.0 }
 0x5e3   :  { %v5222_v22 = vadd.f32 1e-05, %v5221_v38 }
 0x5e5   :  { %10006 = vrsqrt.f32 %v5222_v22 }
 0x5f2   :  { %v10007_v39 = vpop.eup %10006 }
 0x5f3   :  { %v5224_v15 = vmul.f32 %v10007_v39, %v5139_v20 }
 0x5f5   :  { %v5225_v21 = vmul.f32 %v5224_v15, %v5217_v6  ;;  %v5233_v18 = vrot.slane %v5224_v15, %v15381_v30 }
 0x5f7   :  { %v5227_v55 = vrot.slane %v5225_v21, 7  ;;  %v5246_v19 = vmul.f32 %v5233_v18, %v5138_v8  ;;  %v5244_v46 = vmul.f32 %v5233_v18, %v14224_v23  ;;  %v5245_v26 = vmul.f32 %v5233_v18, %v5137_v33  ;;  %v14259_v33 = vpop.permute.xlu1 %5418 }
 0x5f8   :  { %v5242_v17 = vmul.f32 %v5233_v18, %v14202_v2  ;;  %v5243_v1 = vmul.f32 %v5233_v18, %v14213_v48  ;;  %v5241_v60 = vmul.f32 %v5233_v18, %v14190_v36  ;;  %v5240_v45 = vmul.f32 %v5233_v18, %v14177_v59  ;;  %v14261_v36 = vpop.permute.xlu0 %5421 }
 0x5f9   :  { %v5229_v47 = vsub.f32 %v5139_v20, %v5227_v55  ;;  %v5238_v14 = vmul.f32 %v5233_v18, %v14150_v27  ;;  %v5239_v31 = vmul.f32 %v5233_v18, %v14161_v9  ;;  %v5236_v62 = vmul.f32 %v5233_v18, %v14135_v49 }
 0x5fa   :  { %v5237_v23 = vmul.f32 %v5233_v18, %v14140_v58  ;;  %v5234_v2 = vmul.f32 %v5233_v18, %v14133_v3  ;;  %v5235_v48 = vmul.f32 %v5233_v18, %v14130_v51 }
 0x5fb   :  { %v5250_v42 = vrot.slane %v5229_v47, %v15382_v5  ;;  %v14263_v28 = vpop.permute.xlu1 %5424 }
 0x5fc   :  { %v14265_v10 = vpop.permute.xlu0 %5427 }
 0x5fd   :  { %v5263_v24 = vadd.f32 %v5250_v42, %v5246_v19  ;;  %v5261_v8 = vadd.f32 %v5250_v42, %v5244_v46  ;;  %v5262_v57 = vadd.f32 %v5250_v42, %v5245_v26  ;;  %v5259_v59 = vadd.f32 %v5250_v42, %v5242_v17 }
 0x5fe   :  { %v5260_v54 = vadd.f32 %v5250_v42, %v5243_v1  ;;  %v5257_v27 = vadd.f32 %v5250_v42, %v5240_v45  ;;  %v5258_v50 = vadd.f32 %v5250_v42, %v5241_v60  ;;  %v5255_v9 = vadd.f32 %v5250_v42, %v5238_v14 }
 0x5ff   :  { %v5276_v52 = vmul.f32 0.01, %v5263_v24  ;;  %v5274_v49 = vmul.f32 0.01, %v5261_v8  ;;  %v5275_v40 = vmul.f32 0.01, %v5262_v57  ;;  %v5256_v58 = vadd.f32 %v5250_v42, %v5239_v31  ;;  %v5431_v26 = vpop.permute.xlu1 %5430 }
 0x600   :  { %v5272_v56 = vmul.f32 0.01, %v5259_v59  ;;  %v5273_v3 = vmul.f32 0.01, %v5260_v54  ;;  %v5270_v35 = vmul.f32 0.01, %v5257_v27  ;;  %v5253_v51 = vadd.f32 %v5250_v42, %v5236_v62  ;;  %v5434_v17 = vpop.permute.xlu0 %5433 }
 0x601   :  { %v5289_v7 = vmax.f32 %v5263_v24, %v5276_v52  ;;  %v5287_v34 = vmax.f32 %v5261_v8, %v5274_v49  ;;  %v5288_v16 = vmax.f32 %v5262_v57, %v5275_v40  ;;  %v5271_v13 = vmul.f32 0.01, %v5258_v50 }
 0x602   :  { %v5285_v44 = vmax.f32 %v5259_v59, %v5272_v56  ;;  %v5286_v32 = vmax.f32 %v5260_v54, %v5273_v3  ;;  %v5283_v61 = vmax.f32 %v5257_v27, %v5270_v35  ;;  %v5268_v4 = vmul.f32 0.01, %v5255_v9 }
 0x603   :  { %v5404_v12 = vpack.c.bf16 %v5289_v7, %v5289_v7  ;;  %v5403_v41 = vpack.c.bf16 %v5288_v16, %v5287_v34  ;;  %v5284_v43 = vmax.f32 %v5258_v50, %v5271_v13  ;;  %v5269_v63 = vmul.f32 0.01, %v5256_v58  ;;  %v5437_v14 = vpop.permute.xlu1 %5436 }
 0x604   :  { %v5402_v6 = vpack.c.bf16 %v5286_v32, %v5285_v44  ;;  %v5281_v11 = vmax.f32 %v5255_v9, %v5268_v4  ;;  %v5254_v29 = vadd.f32 %v5250_v42, %v5237_v23  ;;  %v5266_v0 = vmul.f32 0.01, %v5253_v51  ;;  %v5440_v31 = vpop.permute.xlu0 %5439  ;;  %v15383_v23 = vld [vmem:[#allocation70_spill] sm:$0xff] }
 0x605   :  { %9698 = vmatprep.subr.msk.bf16.mxu0 %vm5658_vm9, %v5404_v12  ;;  %v5660_v38 = vsel %vm5658_vm9, %v5404_v12, 0  ;;  %v5401_v37 = vpack.c.bf16 %v5284_v43, %v5283_v61  ;;  %v5282_v22 = vmax.f32 %v5256_v58, %v5269_v63  ;;  %v5251_v20 = vadd.f32 %v5250_v42, %v5234_v2 }
 0x606   :  { %9513 = vmatpush3.bf16.msra.mxu0 %v5660_v38  ;;  %v5267_v39 = vmul.f32 0.01, %v5254_v29  ;;  %v5279_v15 = vmax.f32 %v5253_v51, %v5266_v0  ;;  %v5252_v21 = vadd.f32 %v5250_v42, %v5235_v48  ;;  %vm5515_vm7 = vcmp.eq.s32.totalorder %v15383_v23, %v14243_v53 }
 0x607   :  { %9514 = vmatprep.subr.bf16.mxu0 %v5403_v41  ;;  %v5400_v18 = vpack.c.bf16 %v5282_v22, %v5281_v11  ;;  %v5264_v55 = vmul.f32 0.01, %v5251_v20  ;;  %v5443_v42 = vpop.permute.xlu1 %5442  ;;  %vm5516_vm2 = vcmp.eq.s32.totalorder %v15383_v23, %v14245_v25  ;;  %vm5517_vm1 = vcmp.eq.s32.totalorder %v15383_v23, %v14259_v33 }
 0x608   :  { %v5280_v19 = vmax.f32 %v5254_v29, %v5267_v39  ;;  %v5265_v46 = vmul.f32 0.01, %v5252_v21  ;;  %v5446_v62 = vpop.permute.xlu0 %5445  ;;  %vm5518_vm10 = vcmp.eq.s32.totalorder %v15383_v23, %v14261_v36  ;;  %v15384_v24 = vmov 0.0  }
 0x609   :  { %v5277_v1 = vmax.f32 %v5251_v20, %v5264_v55  ;;  %v5551_v8 = vsel %vm5515_vm7, 1.0, %v15384_v24  ;;  %v5552_v57 = vsel %vm5516_vm2, 1.0, %v15384_v24  ;;  %v5553_v59 = vsel %vm5517_vm1, 1.0, %v15384_v24 }
 0x60a   :  { %9515 = vmatpush3.bf16.msra.mxu0 %v5403_v41  ;;  %v5399_v60 = vpack.c.bf16 %v5280_v19, %v5279_v15  ;;  %v5278_v47 = vmax.f32 %v5252_v21, %v5265_v46  ;;  %v5554_v53 = vsel %vm5518_vm10, 1.0, %v15384_v24  ;;  %v5586_v25 = vpack.c.bf16 %v5552_v57, %v5551_v8 }
 0x60b   :  { %9516 = vmatprep.subr.bf16.mxu0 %v5402_v6  ;;  %v5449_v2 = vpop.permute.xlu1 %5448  ;;  %v5587_v54 = vpack.c.bf16 %v5554_v53, %v5553_v59  ;;  %vm5519_vm11 = vcmp.eq.s32.totalorder %v15383_v23, %v14263_v28  ;;  %vm5520_vm13 = vcmp.eq.s32.totalorder %v15383_v23, %v14265_v10  ;;  %vm5521_vm14 = vcmp.eq.s32.totalorder %v15383_v23, %v5431_v26 }
 0x60c   :  { %v5398_v45 = vpack.c.bf16 %v5278_v47, %v5277_v1  ;;  %v5452_v48 = vpop.permute.xlu0 %5451  ;;  %vm5522_vm15 = vcmp.eq.s32.totalorder %v15383_v23, %v5434_v17  ;;  %v5555_v27 = vsel %vm5519_vm11, 1.0, %v15384_v24  ;;  %v5556_v50 = vsel %vm5520_vm13, 1.0, %v15384_v24 }
 0x60d   :  { %v5557_v9 = vsel %vm5521_vm14, 1.0, %v15384_v24  ;;  %v5558_v52 = vsel %vm5522_vm15, 1.0, %v15384_v24  ;;  %v5588_v49 = vpack.c.bf16 %v5556_v50, %v5555_v27  ;;  %vm5523_vm3 = vcmp.eq.s32.totalorder %v15383_v23, %v5437_v14 }
 0x60e   :  { %9517 = vmatpush3.bf16.msra.mxu0 %v5402_v6  ;;  %v5589_v56 = vpack.c.bf16 %v5558_v52, %v5557_v9  ;;  %vm5524_vm5 = vcmp.eq.s32.totalorder %v15383_v23, %v5440_v31  ;;  %vm5525_vm6 = vcmp.eq.s32.totalorder %v15383_v23, %v5443_v42  ;;  %vm5526_vm4 = vcmp.eq.s32.totalorder %v15383_v23, %v5446_v62  ;;  %v9753_v52 = vld [vmem:[%s15035_s6 + $0x30] sm:$0xff]  }
 0x60f   :  { %9518 = vmatprep.subr.bf16.mxu0 %v5401_v37  ;;  %v5455_v33 = vpop.permute.xlu1 %5454  ;;  %v5559_v3 = vsel %vm5523_vm3, 1.0, %v15384_v24  ;;  %v5560_v35 = vsel %vm5524_vm5, 1.0, %v15384_v24  ;;  %v5561_v51 = vsel %vm5525_vm6, 1.0, %v15384_v24  ;;  %v5562_v7 = vsel %vm5526_vm4, 1.0, %v15384_v24  ;;  %9564 = vmatprep.subr.bf16.mxu1 %v9753_v52 }
 0x610   :  { %v5458_v36 = vpop.permute.xlu0 %5457  ;;  %v5590_v13 = vpack.c.bf16 %v5560_v35, %v5559_v3  ;;  %v5591_v44 = vpack.c.bf16 %v5562_v7, %v5561_v51  ;;  %vm5527_vm9 = vcmp.eq.s32.totalorder %v15383_v23, %v5449_v2  ;;  %vm5528_vm7 = vcmp.eq.s32.totalorder %v15383_v23, %v5452_v48  ;;  %9565 = vmatpush3.bf16.msra.mxu1 %v9753_v52  ;;  %v9759_v3 = vld [vmem:[%s15035_s6 + $0x70] sm:$0xff]   ;;  %v9761_v35 = vld [vmem:[%s15035_s6 + $0x68] sm:$0xff]   ;;  %v9763_v51 = vld [vmem:[%s15035_s6 + $0x60] sm:$0xff]  }
 0x611   :  { %vm5529_vm2 = vcmp.eq.s32.totalorder %v15383_v23, %v5455_v33  ;;  %vm5530_vm1 = vcmp.eq.s32.totalorder %v15383_v23, %v5458_v36  ;;  %v5563_v4 = vsel %vm5527_vm9, 1.0, %v15384_v24  ;;  %v5564_v28 = vsel %vm5528_vm7, 1.0, %v15384_v24  ;;  %v9765_v7 = vld [vmem:[%s15035_s6 + $0xb8] sm:$0xff]  }
 0x612   :  { %9519 = vmatpush3.bf16.msra.mxu0 %v5401_v37  ;;  %v5565_v10 = vsel %vm5529_vm2, 1.0, %v15384_v24  ;;  %v5566_v12 = vsel %vm5530_vm1, 1.0, %v15384_v24  ;;  %v5592_v41 = vpack.c.bf16 %v5564_v28, %v5563_v4 }
 0x613   :  { %9520 = vmatprep.subr.bf16.mxu0 %v5400_v18  ;;  %v5461_v40 = vpop.permute.xlu1 %5460  ;;  %v5593_v43 = vpack.c.bf16 %v5566_v12, %v5565_v10 }
 0x614   :  { %v5464_v58 = vpop.permute.xlu0 %5463  ;;  %vm5531_vm10 = vcmp.eq.s32.totalorder %v15383_v23, %v5461_v40  ;;  %v9755_v40 = vld [vmem:[%s15035_s6 + $0x20] sm:$0xff]  }
 0x615   :  { %vm5532_vm11 = vcmp.eq.s32.totalorder %v15383_v23, %v5464_v58  ;;  %v5567_v11 = vsel %vm5531_vm10, 1.0, %v15384_v24  ;;  %v9756_v58 = vld [vmem:[%s15035_s6 + $0x18] sm:$0xff]  }
 0x616   :  { %9521 = vmatpush3.bf16.msra.mxu0 %v5400_v18  ;;  %v5568_v29 = vsel %vm5532_vm11, 1.0, %v15384_v24 }
 0x617   :  { %9522 = vmatprep.subr.bf16.mxu0 %v5399_v60  ;;  %v5467_v34 = vpop.permute.xlu1 %5466  ;;  %v5594_v37 = vpack.c.bf16 %v5568_v29, %v5567_v11  ;;  %v9760_v29 = vld [vmem:[%s15035_s6 + $0x8] sm:$0xff]  }
 0x618   :  { %v5470_v16 = vpop.permute.xlu0 %5469  ;;  %vm5533_vm13 = vcmp.eq.s32.totalorder %v15383_v23, %v5467_v34 }
 0x619   :  { %vm5534_vm14 = vcmp.eq.s32.totalorder %v15383_v23, %v5470_v16  ;;  %v5569_v0 = vsel %vm5533_vm13, 1.0, %v15384_v24 }
 0x61a   :  { %9523 = vmatpush3.bf16.msra.mxu0 %v5399_v60  ;;  %v5570_v38 = vsel %vm5534_vm14, 1.0, %v15384_v24 }
 0x61b   :  { %9524 = vmatprep.subr.bf16.mxu0 %v5398_v45  ;;  %v5473_v32 = vpop.permute.xlu1 %5472  ;;  %v5595_v39 = vpack.c.bf16 %v5570_v38, %v5569_v0 }
 0x61c   :  { %v5476_v61 = vpop.permute.xlu0 %5475  ;;  %vm5535_vm15 = vcmp.eq.s32.totalorder %v15383_v23, %v5473_v32 }
 0x61d   :  { %vm5536_vm3 = vcmp.eq.s32.totalorder %v15383_v23, %v5476_v61  ;;  %v5571_v15 = vsel %vm5535_vm15, 1.0, %v15384_v24 }
 0x61e   :  { %9525 = vmatpush3.bf16.msra.mxu0 %v5398_v45  ;;  %v5572_v21 = vsel %vm5536_vm3, 1.0, %v15384_v24 }
 0x61f   :  { %v5479_v63 = vpop.permute.xlu1 %5478  ;;  %v5596_v26 = vpack.c.bf16 %v5572_v21, %v5571_v15 }
 0x620   :  { %v5482_v6 = vpop.permute.xlu0 %5481  ;;  %vm5537_vm5 = vcmp.eq.s32.totalorder %v15383_v23, %v5479_v63 }
 0x621   :  { %9527 = vmatmul.mubr.msk.bf16.vlgmr.msra.gmra.mxu0 %vm5603_vm0, %v5586_v25  ;;  %vm5538_vm6 = vcmp.eq.s32.totalorder %v15383_v23, %v5482_v6  ;;  %v5573_v18 = vsel %vm5537_vm5, 1.0, %v15384_v24 }
 0x622   :  { %9530 = vmatprep.mubr.msk.bf16.mxu0 %vm5603_vm0, %v5587_v54  ;;  %v5574_v55 = vsel %vm5538_vm6, 1.0, %v15384_v24  ;;  %vm15386_vm6 = vcmask 261120  }
 0x623   :  { %v5485_v22 = vpop.permute.xlu1 %5484  ;;  %v5597_v17 = vpack.c.bf16 %v5574_v55, %v5573_v18 }
 0x624   :  { %v5488_v20 = vpop.permute.xlu0 %5487  ;;  %vm5539_vm4 = vcmp.eq.s32.totalorder %v15383_v23, %v5485_v22 }
 0x625   :  { %vm5540_vm9 = vcmp.eq.s32.totalorder %v15383_v23, %v5488_v20  ;;  %v5575_v47 = vsel %vm5539_vm4, 1.0, %v15384_v24 }
 0x626   :  { %v5576_v45 = vsel %vm5540_vm9, 1.0, %v15384_v24 }
 0x627   :  { %v5491_v19 = vpop.permute.xlu1 %5490  ;;  %v5598_v42 = vpack.c.bf16 %v5576_v45, %v5575_v47  ;;  %v9768_v47 = vld [vmem:[%s15035_s6 + $0x48] sm:$0xff]  }
 0x628   :  { %v5494_v46 = vpop.permute.xlu0 %5493  ;;  %vm5541_vm7 = vcmp.eq.s32.totalorder %v15383_v23, %v5491_v19  ;;  %v9769_v45 = vld [vmem:[%s15035_s6 + $0xa8] sm:$0xff]  }
 0x629   :  { %9531 = vmatmul.mubr.msk.bf16.gmra.mxu0 %vm5603_vm0, %v5588_v49  ;;  %vm5542_vm2 = vcmp.eq.s32.totalorder %v15383_v23, %v5494_v46  ;;  %v5577_v14 = vsel %vm5541_vm7, 1.0, %v15384_v24  ;;  %v9754_v49 = vld [vmem:[%s15035_s6 + $0x28] sm:$0xff]   ;;  %v9766_v46 = vld [vmem:[%s15035_s6 + $0x50] sm:$0xff]   ;;  %vm15387_vm7 = vmmov %vm15386_vm6 }
 0x62a   :  { %9534 = vmatprep.mubr.msk.bf16.mxu0 %vm5603_vm0, %v5589_v56  ;;  %v5578_v31 = vsel %vm5542_vm2, 1.0, %v15384_v24  ;;  %9566 = vmatprep.subr.bf16.mxu1 %v9754_v49  ;;  %v9757_v56 = vld [vmem:[%s15035_s6 + $0x78] sm:$0xff]  }
 0x62b   :  { %v5497_v1 = vpop.permute.xlu1 %5496  ;;  %v5599_v62 = vpack.c.bf16 %v5578_v31, %v5577_v14  ;;  %9567 = vmatpush3.bf16.msra.mxu1 %v9754_v49  ;;  %9598 = vmatprep.subr.bf16.mxu0 %v9757_v56  ;;  %v9776_v49 = vld [vmem:[%s15035_s6 + $0x88] sm:$0xff]  }
 0x62c   :  { %v5500_v60 = vpop.permute.xlu0 %5499  ;;  %vm5543_vm1 = vcmp.eq.s32.totalorder %v15383_v23, %v5497_v1  ;;  %9568 = vmatprep.subr.bf16.mxu1 %v9755_v40  ;;  %9599 = vmatpush3.bf16.msra.mxu0 %v9757_v56 }
 0x62d   :  { %vm5544_vm10 = vcmp.eq.s32.totalorder %v15383_v23, %v5500_v60  ;;  %v5579_v8 = vsel %vm5543_vm1, 1.0, %v15384_v24  ;;  %9600 = vmatprep.subr.bf16.mxu0 %v9759_v3 }
 0x62e   :  { %v5580_v57 = vsel %vm5544_vm10, 1.0, %v15384_v24  ;;  %vm15388_vm10 = vmmov %vm15386_vm6 }
 0x62f   :  { %v5503_v2 = vpop.permute.xlu1 %5502  ;;  %v5600_v25 = vpack.c.bf16 %v5580_v57, %v5579_v8  ;;  %9569 = vmatpush3.bf16.msra.mxu1 %v9755_v40  ;;  %v9772_v8 = vld [vmem:[%s15035_s6 + $0x98] sm:$0xff]  }
 0x630   :  { %v5506_v48 = vpop.permute.xlu0 %5505  ;;  %vm5545_vm11 = vcmp.eq.s32.totalorder %v15383_v23, %v5503_v2  ;;  %9574 = vmatprep.subr.bf16.mxu1 %v9756_v58  ;;  %9601 = vmatpush3.bf16.msra.mxu0 %v9759_v3  ;;  %v9773_v57 = vld [vmem:[%s15035_s6 + $0xf8] sm:$0xff]   ;;  %v9778_v3 = vld [vmem:[%s15035_s6 + $0x80] sm:$0xff]  }
 0x631   :  { %9535 = vmatmul.mubr.msk.bf16.gmra.mxu0 %vm5603_vm0, %v5590_v13  ;;  %vm5546_vm13 = vcmp.eq.s32.totalorder %v15383_v23, %v5506_v48  ;;  %v5581_v59 = vsel %vm5545_vm11, 1.0, %v15384_v24  ;;  %9602 = vmatprep.subr.bf16.mxu0 %v9761_v35 }
 0x632   :  { %9538 = vmatprep.mubr.msk.bf16.mxu0 %vm5603_vm0, %v5591_v44  ;;  %v5582_v53 = vsel %vm5546_vm13, 1.0, %v15384_v24  ;;  %vm15389_vm13 = vmmov %vm15386_vm6 }
 0x633   :  { %v5601_v54 = vpack.c.bf16 %v5582_v53, %v5581_v59  ;;  %v5509_v33 = vpop.permute.xlu1 %5508 }
 0x634   :  { %v5512_v36 = vpop.permute.xlu0 %5511  ;;  %vm5547_vm14 = vcmp.eq.s32.totalorder %v15383_v23, %v5509_v33  ;;  %9603 = vmatpush3.bf16.msra.mxu0 %v9761_v35  ;;  %v9774_v33 = vld [vmem:[%s15035_s6 + $0x90] sm:$0xff]  }
 0x635   :  { %vm5548_vm15 = vcmp.eq.s32.totalorder %v15383_v23, %v5512_v36  ;;  %v5583_v27 = vsel %vm5547_vm14, 1.0, %v15384_v24  ;;  %9604 = vmatprep.subr.bf16.mxu0 %v9763_v51  ;;  %vm15390_vm14 = vmmov %vm15386_vm6 }
 0x636   :  { %v5584_v50 = vsel %vm5548_vm15, 1.0, %v15384_v24 }
 0x637   :  { %v5602_v9 = vpack.c.bf16 %v5584_v50, %v5583_v27 }
 0x638   :  { %9605 = vmatpush3.bf16.msra.mxu0 %v9763_v51  ;;  %v9779_v51 = vld [vmem:[%s15035_s6 + $0xe0] sm:$0xff]  }
 0x639   :  { %9539 = vmatmul.mubr.msk.bf16.gmra.mxu0 %vm5603_vm0, %v5592_v41  ;;  %9622 = vmatprep.subr.bf16.mxu0 %v9765_v7 }
 0x63a   :  { %9542 = vmatprep.mubr.msk.bf16.mxu0 %vm5603_vm0, %v5593_v43  ;;  %v9758_v43 = vld [vmem:[%s15035_s6 + $0x10] sm:$0xff]  }
 0x641   :  { %9543 = vmatmul.mubr.msk.bf16.gmra.mxu0 %vm5603_vm0, %v5594_v37  ;;  %v9762_v37 = vld [vmem:[%s15035_s6] sm:$0xff]  }
 0x642   :  { %9546 = vmatprep.mubr.msk.bf16.mxu0 %vm5603_vm0, %v5595_v39  ;;  %v9764_v39 = vld [vmem:[%s15035_s6 + $0x58] sm:$0xff]  }
 0x649   :  { %9547 = vmatmul.mubr.msk.bf16.gmra.mxu0 %vm5603_vm0, %v5596_v26 }
 0x64a   :  { %9550 = vmatprep.mubr.msk.bf16.mxu0 %vm5603_vm0, %v5597_v17  ;;  %v9767_v17 = vld [vmem:[%s15035_s6 + $0xb0] sm:$0xff]  }
 0x651   :  { %9551 = vmatmul.mubr.msk.bf16.gmra.mxu0 %vm5603_vm0, %v5598_v42  ;;  %v9770_v42 = vld [vmem:[%s15035_s6 + $0x40] sm:$0xff]  }
 0x652   :  { %9554 = vmatprep.mubr.msk.bf16.mxu0 %vm5603_vm0, %v5599_v62  ;;  %v9771_v62 = vld [vmem:[%s15035_s6 + $0xa0] sm:$0xff]  }
 0x659   :  { %9555 = vmatmul.mubr.msk.bf16.gmra.mxu0 %vm5603_vm0, %v5600_v25 }
 0x65a   :  { %9558 = vmatprep.mubr.msk.bf16.mxu0 %vm5603_vm0, %v5601_v54 }
 0x661   :  { %9559 = vmatmul.mubr.msk.bf16.gmra.mxu0 %vm5603_vm0, %v5602_v9  ;;  %v9775_v9 = vld [vmem:[%s15035_s6 + $0xf0] sm:$0xff]  }
 0x6e1   :  { %v9528_v34 = vpop.f32.mrf.mxu0 }
 0x6e3   :  { %v5696_v16 = vpop.f32.mrf.mxu0 }
 0x6e5   :  { %v9529_v13 = vpop.f32.mrf.mxu0 }
 0x6e6   :  { %v5840_v18 = vpack.c.bf16 %v9529_v13, %v9528_v34  ;;  %v9780_v34 = vld [vmem:[%s15035_s6 + $0xd8] sm:$0xff]  }
 0x6e7   :  { %v5699_v44 = vpop.f32.mrf.mxu0 }
 0x6e8   :  { %v5839_v63 = vpack.c.bf16 %v5699_v44, %v5696_v16 }
 0x6e9   :  { %v9532_v32 = vpop.f32.mrf.mxu0 }
 0x6eb   :  { %v5712_v61 = vpop.f32.mrf.mxu0 }
 0x6ed   :  { %v9533_v4 = vpop.f32.mrf.mxu0 }
 0x6ee   :  { %v5842_v12 = vpack.c.bf16 %v9533_v4, %v9532_v32  ;;  %v9781_v32 = vld [vmem:[%s15035_s6 + $0xd0] sm:$0xff]  }
 0x6ef   :  { %v5715_v28 = vpop.f32.mrf.mxu0 }
 0x6f0   :  { %v5841_v10 = vpack.c.bf16 %v5715_v28, %v5712_v61 }
 0x6f1   :  { %v14387_v41 = vpop.f32.mrf.mxu0 }
 0x6f2   :  { %9570 = vmatprep.mubr.msk.bf16.mxu1 %vm5140_vm8, %v5841_v10  ;;  %v9782_v10 = vld [vmem:[%s15035_s6 + $0xc8] sm:$0xff]  }
 0x6f3   :  { %v5728_v6 = vpop.f32.mrf.mxu0  ;;  %9571 = vmatmul.mubr.msk.bf16.vlgmr.msra.gmra.mxu1 %vm5140_vm8, %v5842_v12 }
 0x6f4   :  { %9575 = vmatpush3.bf16.msra.mxu1 %v9756_v58  ;;  %9582 = vmatprep.mubr.msk.bf16.mxu1 %vm5140_vm8, %v5839_v63  ;;  %v9777_v58 = vld [vmem:[%s15035_s6 + $0xe8] sm:$0xff]   ;;  %v9784_v63 = vld [vmem:[%s15035_s6 + $0x118] sm:$0xff]  }
 0x6f5   :  { %v14395_v11 = vpop.f32.mrf.mxu0  ;;  %9576 = vmatprep.subr.bf16.mxu1 %v9758_v43 }
 0x6f6   :  { %v6002_v25 = vpack.c.bf16 %v14395_v11, %v14387_v41  ;;  %v9783_v41 = vld [vmem:[%s15035_s6 + $0xc0] sm:$0xff]  }
 0x6f7   :  { %v5731_v0 = vpop.f32.mrf.mxu0 }
 0x6f8   :  { %9577 = vmatpush3.bf16.msra.mxu1 %v9758_v43  ;;  %v6001_v26 = vpack.c.bf16 %v5731_v0, %v5728_v6 }
 0x6f9   :  { %v9540_v38 = vpop.f32.mrf.mxu0  ;;  %9578 = vmatprep.subr.bf16.mxu1 %v9760_v29 }
 0x6fb   :  { %v5744_v22 = vpop.f32.mrf.mxu0 }
 0x6fc   :  { %9579 = vmatpush3.bf16.msra.mxu1 %v9760_v29  ;;  %v9785_v29 = vld [vmem:[%s15035_s6 + $0x110] sm:$0xff]  }
 0x6fd   :  { %v9541_v20 = vpop.f32.mrf.mxu0  ;;  %9580 = vmatprep.subr.bf16.mxu1 %v9762_v37 }
 0x6fe   :  { %v6087_v55 = vpack.c.bf16 %v9541_v20, %v9540_v38  ;;  %v9786_v38 = vld [vmem:[%s15035_s6 + $0x108] sm:$0xff]   ;;  %v15385_v20 = vmov 0  }
 0x6ff   :  { %v5747_v15 = vpop.f32.mrf.mxu0 }
 0x700   :  { %v6086_v21 = vpack.c.bf16 %v5747_v15, %v5744_v22  ;;  %9581 = vmatpush3.bf16.msra.mxu1 %v9762_v37  ;;  %v9787_v37 = vld [vmem:[%s15035_s6 + $0x100] sm:$0xff]  }
 0x701   :  { %v14406_v19 = vpop.f32.mrf.mxu0  ;;  %9586 = vmatprep.subr.bf16.mxu1 %v9764_v39 }
 0x702   :  { %9606 = vmatprep.mubr.msk.bf16.mxu0 %vm5140_vm8, %v6086_v21 }
 0x703   :  { %9583 = vmatmul.mubr.msk.bf16.vlgmr.msra.gmra.mxu1 %vm5140_vm8, %v5840_v18  ;;  %v5760_v1 = vpop.f32.mrf.mxu0  ;;  %9607 = vmatmul.mubr.msk.bf16.vlgmr.msra.gmra.mxu0 %vm5140_vm8, %v6087_v55 }
 0x704   :  { %9587 = vmatpush3.bf16.msra.mxu1 %v9764_v39  ;;  %9594 = vmatprep.mubr.msk.bf16.mxu1 %vm5140_vm8, %v6001_v26 }
 0x705   :  { %9623 = vmatpush3.bf16.msra.mxu0 %v9765_v7  ;;  %v14418_v60 = vpop.f32.mrf.mxu0  ;;  %9588 = vmatprep.subr.bf16.mxu1 %v9766_v46 }
 0x706   :  { %9624 = vmatprep.subr.bf16.mxu0 %v9767_v17  ;;  %v6172_v44 = vpack.c.bf16 %v14418_v60, %v14406_v19 }
 0x707   :  { %v5763_v14 = vpop.f32.mrf.mxu0 }
 0x708   :  { %9589 = vmatpush3.bf16.msra.mxu1 %v9766_v46  ;;  %v6171_v36 = vpack.c.bf16 %v5763_v14, %v5760_v1 }
 0x709   :  { %9625 = vmatpush3.bf16.msra.mxu0 %v9767_v17  ;;  %v9548_v31 = vpop.f32.mrf.mxu0  ;;  %9590 = vmatprep.subr.bf16.mxu1 %v9768_v47 }
 0x70a   :  { %9626 = vmatprep.subr.bf16.mxu0 %v9769_v45 }
 0x70b   :  { %v5776_v2 = vpop.f32.mrf.mxu0 }
 0x70c   :  { %9591 = vmatpush3.bf16.msra.mxu1 %v9768_v47 }
 0x70d   :  { %9627 = vmatpush3.bf16.msra.mxu0 %v9769_v45  ;;  %v9549_v48 = vpop.f32.mrf.mxu0  ;;  %9592 = vmatprep.subr.bf16.mxu1 %v9770_v42 }
 0x70e   :  { %9628 = vmatprep.subr.bf16.mxu0 %v9771_v62  ;;  %v6257_v27 = vpack.c.bf16 %v9549_v48, %v9548_v31 }
 0x70f   :  { %v5779_v59 = vpop.f32.mrf.mxu0 }
 0x710   :  { %v6256_v53 = vpack.c.bf16 %v5779_v59, %v5776_v2  ;;  %9593 = vmatpush3.bf16.msra.mxu1 %v9770_v42  ;;  %v9791_v59 = vld [vmem:[%s15037_s7 + $0xf0] ss:$8 sps:$4 sm:$0xff]  }
 0x711   :  { %9629 = vmatpush3.bf16.msra.mxu0 %v9771_v62  ;;  %v14440_v54 = vpop.f32.mrf.mxu0  ;;  %9610 = vmatprep.subr.bf16.mxu1 %v9772_v8 }
 0x712   :  { %9630 = vmatprep.mubr.msk.bf16.mxu0 %vm5140_vm8, %v6256_v53  ;;  %9646 = vmatprep.subr.bf16.mxu0 %v9773_v57  ;;  %v9793_v53 = vld [vmem:[%s15037_s7 + $0xf4] ss:$8 sps:$4 sm:$0xff]  }
 0x713   :  { %9595 = vmatmul.mubr.msk.bf16.vlgmr.msra.gmra.mxu1 %vm5140_vm8, %v6002_v25  ;;  %v5792_v50 = vpop.f32.mrf.mxu0 }
 0x714   :  { %9611 = vmatpush3.bf16.msra.mxu1 %v9772_v8  ;;  %9618 = vmatprep.mubr.msk.bf16.mxu1 %vm5140_vm8, %v6171_v36 }
 0x715   :  { %9631 = vmatmul.mubr.msk.bf16.vlgmr.msra.gmra.mxu0 %vm5140_vm8, %v6257_v27  ;;  %v9553_v52 = vpop.f32.mrf.mxu0  ;;  %9612 = vmatprep.subr.bf16.mxu1 %v9774_v33 }
 0x716   :  { %9647 = vmatpush3.bf16.msra.mxu0 %v9773_v57  ;;  %v6342_v11 = vpack.c.bf16 %v9553_v52, %v14440_v54 }
 0x717   :  { %v5795_v40 = vpop.f32.mrf.mxu0  ;;  %9648 = vmatprep.subr.bf16.mxu0 %v9775_v9 }
 0x718   :  { %9613 = vmatpush3.bf16.msra.mxu1 %v9774_v33  ;;  %v6341_v61 = vpack.c.bf16 %v5795_v40, %v5792_v50  ;;  %v9797_v33 = vld [vmem:[%s15037_s7 + $0xe0] ss:$8 sps:$4 sm:$0xff]   ;;  %v9799_v50 = vld [vmem:[%s15037_s7 + $0xe4] ss:$8 sps:$4 sm:$0xff]   ;;  %v9805_v40 = vld [vmem:[%s15037_s7 + $0xd4] ss:$8 sps:$4 sm:$0xff]  }
 0x719   :  { %v9556_v56 = vpop.f32.mrf.mxu0  ;;  %9614 = vmatprep.subr.bf16.mxu1 %v9776_v49 }
 0x71a   :  { %9649 = vmatpush3.bf16.msra.mxu0 %v9775_v9 }
 0x71b   :  { %v5808_v35 = vpop.f32.mrf.mxu0  ;;  %9650 = vmatprep.subr.bf16.mxu0 %v9777_v58 }
 0x71c   :  { %9615 = vmatpush3.bf16.msra.mxu1 %v9776_v49 }
 0x71d   :  { %v9557_v7 = vpop.f32.mrf.mxu0  ;;  %9616 = vmatprep.subr.bf16.mxu1 %v9778_v3 }
 0x71e   :  { %9651 = vmatpush3.bf16.msra.mxu0 %v9777_v58  ;;  %v6427_v4 = vpack.c.bf16 %v9557_v7, %v9556_v56  ;;  %v9803_v7 = vld [vmem:[%s15037_s7 + $0xd0] ss:$8 sps:$4 sm:$0xff]  }
 0x71f   :  { %v5811_v16 = vpop.f32.mrf.mxu0  ;;  %9652 = vmatprep.subr.bf16.mxu0 %v9779_v51 }
 0x720   :  { %v6426_v13 = vpack.c.bf16 %v5811_v16, %v5808_v35  ;;  %9617 = vmatpush3.bf16.msra.mxu1 %v9778_v3 }
 0x721   :  { %9634 = vmatprep.subr.bf16.mxu1 %v9780_v34  ;;  %v9560_v28 = vpop.f32.mrf.mxu0 }
 0x722   :  { %9653 = vmatpush3.bf16.msra.mxu0 %v9779_v51  ;;  %9654 = vmatprep.mubr.msk.bf16.mxu0 %vm5140_vm8, %v6426_v13  ;;  %v9811_v13 = vld [vmem:[%s15037_s7 + $0xc4] ss:$8 sps:$4 sm:$0xff]  }
 0x723   :  { %9619 = vmatmul.mubr.msk.bf16.vlgmr.msra.gmra.mxu1 %vm5140_vm8, %v6172_v44  ;;  %9670 = vmatprep.subr.bf16.mxu0 %v15384_v24  ;;  %v5824_v12 = vpop.f32.mrf.mxu0 }
 0x724   :  { %9635 = vmatpush3.bf16.msra.mxu1 %v9780_v34  ;;  %9642 = vmatprep.mubr.msk.bf16.mxu1 %vm5140_vm8, %v6341_v61 }
 0x725   :  { %9655 = vmatmul.mubr.msk.bf16.vlgmr.msra.gmra.mxu0 %vm5140_vm8, %v6427_v4  ;;  %9636 = vmatprep.subr.bf16.mxu1 %v9781_v32  ;;  %v9561_v43 = vpop.f32.mrf.mxu0 }
 0x726   :  { %9674 = vmatprep.mubr.msk.bf16.mxu0 %vm15283_vm12, %v15384_v24  ;;  %v6512_v22 = vpack.c.bf16 %v9561_v43, %v9560_v28 }
 0x727   :  { %v5827_v6 = vpop.f32.mrf.mxu0 }
 0x728   :  { %9637 = vmatpush3.bf16.msra.mxu1 %v9781_v32  ;;  %v6511_v0 = vpack.c.bf16 %v5827_v6, %v5824_v12 }
 0x729   :  { %9638 = vmatprep.subr.bf16.mxu1 %v9782_v10 }
 0x72c   :  { %9639 = vmatpush3.bf16.msra.mxu1 %v9782_v10  ;;  %v9809_v10 = vld [vmem:[%s15037_s7 + $0xc0] ss:$8 sps:$4 sm:$0xff]  }
 0x72d   :  { %9640 = vmatprep.subr.bf16.mxu1 %v9783_v41 }
 0x730   :  { %9641 = vmatpush3.bf16.msra.mxu1 %v9783_v41 }
 0x731   :  { %9658 = vmatprep.subr.bf16.mxu1 %v9784_v63 }
 0x733   :  { %9643 = vmatmul.mubr.msk.bf16.vlgmr.msra.gmra.mxu1 %vm5140_vm8, %v6342_v11 }
 0x734   :  { %9659 = vmatpush3.bf16.msra.mxu1 %v9784_v63  ;;  %9666 = vmatprep.mubr.msk.bf16.mxu1 %vm5140_vm8, %v6511_v0  ;;  %v9817_v63 = vld [vmem:[%s15037_s7 + $0xb4] ss:$8 sps:$4 sm:$0xff]  }
 0x735   :  { %9660 = vmatprep.subr.bf16.mxu1 %v9785_v29 }
 0x738   :  { %9661 = vmatpush3.bf16.msra.mxu1 %v9785_v29 }
 0x739   :  { %9662 = vmatprep.subr.bf16.mxu1 %v9786_v38 }
 0x73c   :  { %9663 = vmatpush3.bf16.msra.mxu1 %v9786_v38  ;;  %v9815_v38 = vld [vmem:[%s15037_s7 + $0xb0] ss:$8 sps:$4 sm:$0xff]  }
 0x73d   :  { %9664 = vmatprep.subr.bf16.mxu1 %v9787_v37 }
 0x740   :  { %9665 = vmatpush3.bf16.msra.mxu1 %v9787_v37 }
 0x741   :  { %7030 = vmatprep.subr.bf16.mxu1 %v9793_v53 }
 0x743   :  { %9667 = vmatmul.mubr.msk.bf16.vlgmr.msra.gmra.mxu1 %vm5140_vm8, %v6512_v22 }
 0x744   :  { %7062 = vmatprep.mubr.bf16.mxu1 %v15385_v20  ;;  %7031 = vmatpush1.bf16.msra.mxu1 %v9791_v59 }
 0x745   :  { %7032 = vmatprep.subr.bf16.mxu1 %v9799_v50 }
 0x748   :  { %7033 = vmatpush1.bf16.msra.mxu1 %v9797_v33 }
 0x749   :  { %7034 = vmatprep.subr.bf16.mxu1 %v9805_v40 }
 0x74c   :  { %7035 = vmatpush1.bf16.msra.mxu1 %v9803_v7 }
 0x74d   :  { %7036 = vmatprep.subr.bf16.mxu1 %v9811_v13 }
 0x750   :  { %7037 = vmatpush1.bf16.msra.mxu1 %v9809_v10 }
 0x751   :  { %7038 = vmatprep.subr.bf16.mxu1 %v9817_v63  ;;  %v6596_v63 = vld [vmem:[%s15038_s10] sm:$0x3] }
 0x754   :  { %7039 = vmatpush1.bf16.msra.mxu1 %v9815_v38 }
 0x7b3   :  { %v9572_v39 = vpop.f32.mrf.mxu1 }
 0x7b5   :  { %v5907_v15 = vpop.f32.mrf.mxu1 }
 0x7b7   :  { %v9573_v21 = vpop.f32.mrf.mxu1 }
 0x7b9   :  { %v5910_v18 = vpop.f32.mrf.mxu1 }
 0x7c3   :  { %v9584_v55 = vpop.f32.mrf.mxu1  ;;  %v9608_v60 = vpop.f32.mrf.mxu0 }
 0x7c4   :  { %v5995_v9 = vadd.f32 %v9584_v55, %v9572_v39  ;;  %v9821_v55 = vld [vmem:[%s15037_s7 + $0xa0] ss:$8 sps:$4 sm:$0xff]  }
 0x7c5   :  { %v5986_v19 = vpop.f32.mrf.mxu1  ;;  %v6152_v45 = vpop.f32.mrf.mxu0 }
 0x7c6   :  { %v5987_v54 = vadd.f32 %v5986_v19, %v5907_v15  ;;  %v9823_v15 = vld [vmem:[%s15037_s7 + $0xa4] ss:$8 sps:$4 sm:$0xff]  }
 0x7c7   :  { %v9585_v46 = vpop.f32.mrf.mxu1  ;;  %v9609_v31 = vpop.f32.mrf.mxu0  ;;  %7040 = vmatprep.subr.bf16.mxu1 %v9823_v15 }
 0x7c8   :  { %v5998_v58 = vadd.f32 %v9585_v46, %v9573_v21  ;;  %7041 = vmatpush1.bf16.msra.mxu1 %v9821_v55 }
 0x7c9   :  { %v5989_v26 = vpop.f32.mrf.mxu1  ;;  %v6155_v62 = vpop.f32.mrf.mxu0 }
 0x7ca   :  { %v5990_v52 = vadd.f32 %v5989_v26, %v5910_v18 }
 0x7d3   :  { %v9596_v17 = vpop.f32.mrf.mxu1 }
 0x7d4   :  { %v6084_v56 = vadd.f32 %v9596_v17, %v5995_v9  ;;  %v9829_v17 = vld [vmem:[%s15037_s7 + $0x94] ss:$8 sps:$4 sm:$0xff]  }
 0x7d5   :  { %v6067_v1 = vpop.f32.mrf.mxu1  ;;  %v9632_v48 = vpop.f32.mrf.mxu0  ;;  %7042 = vmatprep.subr.bf16.mxu1 %v9829_v17 }
 0x7d6   :  { %v6082_v49 = vadd.f32 %v6067_v1, %v5987_v54  ;;  %v6169_v32 = vadd.f32 %v9608_v60, %v6084_v56 }
 0x7d7   :  { %v9597_v47 = vpop.f32.mrf.mxu1  ;;  %v6322_v57 = vpop.f32.mrf.mxu0 }
 0x7d8   :  { %v6085_v34 = vadd.f32 %v9597_v47, %v5998_v58  ;;  %v6167_v16 = vadd.f32 %v6152_v45, %v6082_v49 }
 0x7d9   :  { %v6070_v14 = vpop.f32.mrf.mxu1  ;;  %v9633_v36 = vpop.f32.mrf.mxu0 }
 0x7da   :  { %v6083_v3 = vadd.f32 %v6070_v14, %v5990_v52  ;;  %v6170_v41 = vadd.f32 %v9609_v31, %v6085_v34  ;;  %v9827_v31 = vld [vmem:[%s15037_s7 + $0x90] ss:$8 sps:$4 sm:$0xff]  }
 0x7db   :  { %v6325_v35 = vpop.f32.mrf.mxu0  ;;  %7043 = vmatpush1.bf16.msra.mxu1 %v9827_v31  ;;  %v6813_v31 = vpop.permute.xlu1 %6812 }
 0x7dc   :  { %v6168_v4 = vadd.f32 %v6155_v62, %v6083_v3  ;;  %vm6838_vm0 = vcmp.eq.s32.totalorder %v15383_v23, %v6813_v31  ;;  %v9848_v31 = vld [vmem:[%s15037_s7 + $0x1d0] ss:$8 sps:$4 sm:$0xff]  }
 0x7e3   :  { %v9620_v42 = vpop.f32.mrf.mxu1 }
 0x7e4   :  { %v6254_v12 = vadd.f32 %v9620_v42, %v6169_v32 }
 0x7e5   :  { %v6237_v2 = vpop.f32.mrf.mxu1  ;;  %v9656_v44 = vpop.f32.mrf.mxu0 }
 0x7e6   :  { %v6252_v61 = vadd.f32 %v6237_v2, %v6167_v16  ;;  %v6339_v37 = vadd.f32 %v9632_v48, %v6254_v12 }
 0x7e7   :  { %v9621_v8 = vpop.f32.mrf.mxu1  ;;  %v6492_v6 = vpop.f32.mrf.mxu0 }
 0x7e8   :  { %v6255_v11 = vadd.f32 %v9621_v8, %v6170_v41  ;;  %v6337_v29 = vadd.f32 %v6322_v57, %v6252_v61 }
 0x7e9   :  { %v6240_v25 = vpop.f32.mrf.mxu1  ;;  %v9657_v21 = vpop.f32.mrf.mxu0 }
 0x7ea   :  { %v6253_v43 = vadd.f32 %v6240_v25, %v6168_v4  ;;  %v6340_v46 = vadd.f32 %v9633_v36, %v6255_v11 }
 0x7eb   :  { %v6495_v45 = vpop.f32.mrf.mxu0 }
 0x7ec   :  { %v6338_v39 = vadd.f32 %v6325_v35, %v6253_v43 }
 0x7f3   :  { %v9644_v27 = vpop.f32.mrf.mxu1 }
 0x7f4   :  { %v6424_v19 = vadd.f32 %v9644_v27, %v6339_v37 }
 0x7f5   :  { %v6407_v51 = vpop.f32.mrf.mxu1 }
 0x7f6   :  { %v6422_v22 = vadd.f32 %v6407_v51, %v6337_v29  ;;  %v6509_v42 = vadd.f32 %v9656_v44, %v6424_v19 }
 0x7f7   :  { %v9645_v28 = vpop.f32.mrf.mxu1 }
 0x7f8   :  { %v6425_v60 = vadd.f32 %v9645_v28, %v6340_v46  ;;  %v6507_v47 = vadd.f32 %v6492_v6, %v6422_v22 }
 0x7f9   :  { %v6410_v0 = vpop.f32.mrf.mxu1 }
 0x7fa   :  { %v6423_v26 = vadd.f32 %v6410_v0, %v6338_v39  ;;  %v6510_v57 = vadd.f32 %v9657_v21, %v6425_v60 }
 0x7fc   :  { %v6508_v2 = vadd.f32 %v6495_v45, %v6423_v26 }
 0x803   :  { %v9668_v18 = vpop.f32.mrf.mxu1 }
 0x804   :  { %v6594_v8 = vadd.f32 %v9668_v18, %v6509_v42  ;;  %v6816_v42 = vpop.permute.xlu0 %6815 }
 0x805   :  { %v6577_v1 = vpop.f32.mrf.mxu1  ;;  %vm6839_vm8 = vcmp.eq.s32.totalorder %v15383_v23, %v6816_v42  ;;  %v9853_v42 = vld [vmem:[%s15037_s7 + $0x154] ss:$8 sps:$4 sm:$0xff]  }
 0x806   :  { %v6592_v62 = vadd.f32 %v6577_v1, %v6507_v47  ;;  %v6608_v36 = vmul.f32 %v6594_v8, %v6594_v8 }
 0x807   :  { %v9669_v14 = vpop.f32.mrf.mxu1 }
 0x808   :  { %v6606_v53 = vmul.f32 %v6592_v62, %v6592_v62  ;;  %v6595_v25 = vadd.f32 %v9669_v14, %v6510_v57 }
 0x809   :  { %v6580_v48 = vpop.f32.mrf.mxu1 }
 0x80a   :  { %v6593_v59 = vadd.f32 %v6580_v48, %v6508_v2  ;;  %v6609_v9 = vmul.f32 %v6595_v25, %v6595_v25 }
 0x80c   :  { %v6597_v54 = vadd.f32 %v6593_v59, %v6592_v62  ;;  %v6607_v33 = vmul.f32 %v6593_v59, %v6593_v59 }
 0x80e   :  { %v6598_v27 = vadd.f32 %v6597_v54, %v6594_v8  ;;  %v6610_v50 = vadd.f32 %v6607_v33, %v6606_v53  ;;  %v9796_v33 = vld [vmem:[%s15037_s7 + $0x64] ss:$8 sps:$4 sm:$0xff]  }
 0x810   :  { %v6599_v52 = vadd.f32 %v6598_v27, %v6595_v25  ;;  %v6611_v49 = vadd.f32 %v6610_v50, %v6608_v36  ;;  %v6819_v36 = vpop.permute.xlu1 %6818  ;;  %v6822_v27 = vpop.permute.xlu0 %6821  ;;  %v9794_v50 = vld [vmem:[%s15037_s7 + $0x60] ss:$8 sps:$4 sm:$0xff]  }
 0x811   :  { %vm6840_vm3 = vcmp.eq.s32.totalorder %v15383_v23, %v6819_v36  ;;  %vm6841_vm5 = vcmp.eq.s32.totalorder %v15383_v23, %v6822_v27  ;;  %v9860_v36 = vld [vmem:[%s15037_s7 + $0x1b0] ss:$8 sps:$4 sm:$0xff]   ;;  %v9865_v27 = vld [vmem:[%s15037_s7 + $0x134] ss:$8 sps:$4 sm:$0xff]  }
 0x812   :  { %v6600_v40 = vrot.slane %v6599_v52, 4  ;;  %v6612_v58 = vadd.f32 %v6611_v49, %v6609_v9  ;;  %v9802_v9 = vld [vmem:[%s15037_s7 + $0x54] ss:$8 sps:$4 sm:$0xff]   ;;  %v6850_v49 = vsel %vm6841_vm5, 1.0, %v15384_v24 }
 0x814   :  { %v6601_v56 = vadd.f32 %v6600_v40, %v6599_v52  ;;  %v6613_v3 = vrot.slane %v6612_v58, 4  ;;  %v6849_v52 = vsel %vm6840_vm3, 1.0, %v15384_v24  ;;  %v9800_v40 = vld [vmem:[%s15037_s7 + $0x50] ss:$8 sps:$4 sm:$0xff]  }
 0x816   :  { %v6602_v35 = vrot.slane %v6601_v56, 2  ;;  %v6614_v51 = vadd.f32 %v6613_v3, %v6612_v58  ;;  %v6857_v58 = vpack.c.bf16 %v6850_v49, %v6849_v52  ;;  %v6825_v3 = vpop.permute.xlu1 %6824  ;;  %v9863_v49 = vld [vmem:[%s15037_s7 + $0x130] ss:$8 sps:$4 sm:$0xff]  }
 0x817   :  { %vm6842_vm4 = vcmp.eq.s32.totalorder %v15383_v23, %v6825_v3 }
 0x818   :  { %v6603_v7 = vadd.f32 %v6602_v35, %v6601_v56  ;;  %v6615_v34 = vrot.slane %v6614_v51, 2  ;;  %v9808_v56 = vld [vmem:[%s15037_s7 + $0x44] ss:$8 sps:$4 sm:$0xff]   ;;  %v6828_v35 = vpop.permute.xlu0 %6827 }
 0x819   :  { %vm6843_vm9 = vcmp.eq.s32.totalorder %v15383_v23, %v6828_v35 }
 0x81a   :  { %v6604_v16 = vrot.slane %v6603_v7, 1  ;;  %v6616_v13 = vadd.f32 %v6615_v34, %v6614_v51  ;;  %v9806_v51 = vld [vmem:[%s15037_s7 + $0x40] ss:$8 sps:$4 sm:$0xff]   ;;  %v6851_v34 = vsel %vm6842_vm4, 1.0, %v15384_v24 }
 0x81c   :  { %v6605_v44 = vadd.f32 %v6604_v16, %v6603_v7  ;;  %v6617_v32 = vrot.slane %v6616_v13, 1  ;;  %v9814_v7 = vld [vmem:[%s15037_s7 + $0x34] ss:$8 sps:$4 sm:$0xff]   ;;  %v6852_v16 = vsel %vm6843_vm9, 1.0, %v15384_v24 }
 0x81e   :  { %v6618_v61 = vadd.f32 %v6617_v32, %v6616_v13  ;;  %v6619_v4 = vmul.f32 0.03125, %v6605_v44  ;;  %v6831_v13 = vpop.permute.xlu1 %6830  ;;  %v6834_v44 = vpop.permute.xlu0 %6833  ;;  %v9812_v32 = vld [vmem:[%s15037_s7 + $0x30] ss:$8 sps:$4 sm:$0xff]  }
 0x81f   :  { %vm6844_vm2 = vcmp.eq.s32.totalorder %v15383_v23, %v6831_v13  ;;  %vm6845_vm1 = vcmp.eq.s32.totalorder %v15383_v23, %v6834_v44 }
 0x820   :  { %v6620_v28 = vmul.f32 0.03125, %v6618_v61  ;;  %v6621_v10 = vmul.f32 %v6619_v4, %v6619_v4  ;;  %v6858_v61 = vpack.c.bf16 %v6852_v16, %v6851_v34  ;;  %v9877_v34 = vld [vmem:[%s15037_s7 + $0x114] ss:$8 sps:$4 sm:$0xff]   ;;  %v9880_v16 = vld [vmem:[%s15037_s7 + $0x184] ss:$8 sps:$4 sm:$0xff]  }
 0x822   :  { %v6622_v12 = vsub.f32 %v6620_v28, %v6621_v10  ;;  %v9818_v28 = vld [vmem:[%s15037_s7 + $0x20] ss:$8 sps:$4 sm:$0xff]   ;;  %v9826_v10 = vld [vmem:[%s15037_s7 + $0x14] ss:$8 sps:$4 sm:$0xff]  }
 0x824   :  { %v6623_v41 = vmax.f32 %v6622_v12, 0.0  ;;  %v6853_v12 = vsel %vm6844_vm2, 1.0, %v15384_v24 }
 0x826   :  { %v6624_v43 = vadd.f32 1e-05, %v6623_v41  ;;  %v6854_v41 = vsel %vm6845_vm1, 1.0, %v15384_v24 }
 0x828   :  { %10008 = vrsqrt.f32 %v6624_v43  ;;  %v6837_v43 = vpop.permute.xlu1 %6836 }
 0x829   :  { %vm6846_vm11 = vcmp.eq.s32.totalorder %v15383_v23, %v6837_v43  ;;  %v9833_v23 = vld [vmem:[%s15037_s7 + $0x80] ss:$8 sps:$4 sm:$0xff]   ;;  %v9884_v43 = vld [vmem:[%s15037_s7 + $0x2f0] ss:$8 sps:$4 sm:$0xff]  }
 0x835   :  { %v10009_v6 = vpop.eup %10008 }
 0x836   :  { %v6626_v11 = vmul.f32 %v10009_v6, %v6596_v63  ;;  %v6859_v6 = vpack.c.bf16 %v6854_v41, %v6853_v12  ;;  %v9881_v41 = vld [vmem:[%s15037_s7 + $0x100] ss:$8 sps:$4 sm:$0xff]  }
 0x838   :  { %v6627_v29 = vmul.f32 %v6626_v11, %v6619_v4  ;;  %v6635_v0 = vrot.slane %v6626_v11, %v15381_v30  ;;  %v9820_v4 = vld [vmem:[%s15037_s7 + $0x24] ss:$8 sps:$4 sm:$0xff]  }
 0x839   :  { %v9832_v11 = vld [vmem:[%s15037_s7 + $0x4] ss:$8 sps:$4 sm:$0xff]  }
 0x83a   :  { %v6629_v38 = vrot.slane %v6627_v29, 7  ;;  %v6637_v22 = vmul.f32 %v6635_v0, %v6593_v59  ;;  %v6638_v15 = vmul.f32 %v6635_v0, %v6594_v8  ;;  %v6639_v21 = vmul.f32 %v6635_v0, %v6595_v25  ;;  %v9788_v25 = vld [vmem:[%s15037_s7 + $0x70] ss:$8 sps:$4 sm:$0xff]   ;;  %v9830_v29 = vld [vmem:[%s15037_s7] ss:$8 sps:$4 sm:$0xff]  }
 0x83b   :  { %v6636_v18 = vmul.f32 %v6635_v0, %v6592_v62  ;;  %v9790_v62 = vld [vmem:[%s15037_s7 + $0x74] ss:$8 sps:$4 sm:$0xff]   ;;  %v6847_v8 = vsel %vm6838_vm0, 1.0, %v15384_v24  ;;  %v6848_v59 = vsel %vm6839_vm8, 1.0, %v15384_v24  ;;  %v6855_v0 = vsel %vm6846_vm11, 1.0, %v15384_v24 }
 0x83c   :  { %v6631_v37 = vsub.f32 %v6596_v63, %v6629_v38  ;;  %v6856_v54 = vpack.c.bf16 %v6848_v59, %v6847_v8  ;;  %v9824_v63 = vld [vmem:[%s15037_s7 + $0x10] ss:$8 sps:$4 sm:$0xff]   ;;  %v6860_v38 = vpack.c.bf16 %v6855_v0, %v6855_v0  ;;  %v9854_v8 = vld [vmem:[%s15037_s7 + $0x1c0] ss:$8 sps:$4 sm:$0xff]   ;;  %v9859_v59 = vld [vmem:[%s15037_s7 + $0x144] ss:$8 sps:$4 sm:$0xff]  }
 0x83e   :  { %v6643_v39 = vrot.slane %v6631_v37, %v15382_v5  ;;  %v9835_v37 = vld [vmem:[%s15037_s7 + $0x84] ss:$8 sps:$4 sm:$0xff]  }
 0x83f   :  { %7044 = vmatprep.subr.bf16.mxu1 %v9835_v37 }
 0x840   :  { %v6645_v55 = vadd.f32 %v6643_v39, %v6637_v22  ;;  %v6646_v19 = vadd.f32 %v6643_v39, %v6638_v15  ;;  %v6647_v46 = vadd.f32 %v6643_v39, %v6639_v21  ;;  %v6644_v26 = vadd.f32 %v6643_v39, %v6636_v18  ;;  %v9838_v22 = vld [vmem:[%s15037_s7 + $0x1f4] ss:$8 sps:$4 sm:$0xff]   ;;  %7045 = vmatpush1.bf16.msra.mxu1 %v9833_v23  ;;  %v9836_v15 = vld [vmem:[%s15037_s7 + $0x1f0] ss:$8 sps:$4 sm:$0xff]   ;;  %v9844_v18 = vld [vmem:[%s15037_s7 + $0x1e4] ss:$8 sps:$4 sm:$0xff]  }
 0x841   :  { %v9890_v23 = vld [vmem:[%s15037_s7 + $0x2e0] ss:$8 sps:$4 sm:$0xff]  }
 0x842   :  { %v6649_v17 = vmul.f32 0.01, %v6645_v55  ;;  %v6650_v1 = vmul.f32 0.01, %v6646_v19  ;;  %v6651_v60 = vmul.f32 0.01, %v6647_v46 }
 0x843   :  { %v6648_v47 = vmul.f32 0.01, %v6644_v26 }
 0x844   :  { %v6654_v45 = vmax.f32 %v6646_v19, %v6650_v1  ;;  %v6655_v14 = vmax.f32 %v6647_v46, %v6651_v60  ;;  %v6653_v2 = vmax.f32 %v6645_v55, %v6649_v17  ;;  %v9839_v46 = vld [vmem:[%s15037_s7 + $0x170] ss:$8 sps:$4 sm:$0xff]   ;;  %v9847_v1 = vld [vmem:[%s15037_s7 + $0x164] ss:$8 sps:$4 sm:$0xff]   ;;  %v9850_v60 = vld [vmem:[%s15037_s7 + $0x1d4] ss:$8 sps:$4 sm:$0xff]  }
 0x845   :  { %v6652_v57 = vmax.f32 %v6644_v26, %v6648_v47  ;;  %v9842_v26 = vld [vmem:[%s15037_s7 + $0x1e0] ss:$8 sps:$4 sm:$0xff]  }
 0x846   :  { %v6810_v48 = vpack.c.bf16 %v6655_v14, %v6654_v45  ;;  %v9845_v14 = vld [vmem:[%s15037_s7 + $0x160] ss:$8 sps:$4 sm:$0xff]  }
 0x847   :  { %v6809_v53 = vpack.c.bf16 %v6653_v2, %v6652_v57  ;;  %v9856_v2 = vld [vmem:[%s15037_s7 + $0x1c4] ss:$8 sps:$4 sm:$0xff]  }
 0x848   :  { %9671 = vmatpush3.bf16.msra.mxu0 %v6810_v48 }
 0x849   :  { %9672 = vmatprep.subr.bf16.mxu0 %v15384_v24 }
 0x84c   :  { %9673 = vmatpush3.bf16.msra.mxu0 %v6809_v53  ;;  %v9862_v53 = vld [vmem:[%s15037_s7 + $0x1b4] ss:$8 sps:$4 sm:$0xff]  }
 0x84d   :  { %7151 = vmatprep.subr.bf16.mxu0 %v9790_v62  ;;  %v9851_v62 = vld [vmem:[%s15037_s7 + $0x150] ss:$8 sps:$4 sm:$0xff]  }
 0x84f   :  { %9675 = vmatmul.mubr.msk.bf16.vlgmr.msra.gmra.mxu0 %vm15386_vm6, %v6856_v54 }
 0x850   :  { %9678 = vmatprep.mubr.msk.bf16.mxu0 %vm15283_vm12, %v15384_v24  ;;  %7152 = vmatpush1.bf16.msra.mxu0 %v9788_v25 }
 0x851   :  { %7153 = vmatprep.subr.bf16.mxu0 %v9796_v33  ;;  %v9857_v33 = vld [vmem:[%s15037_s7 + $0x140] ss:$8 sps:$4 sm:$0xff]  }
 0x854   :  { %7154 = vmatpush1.bf16.msra.mxu0 %v9794_v50  ;;  %v9868_v50 = vld [vmem:[%s15037_s7 + $0x1a4] ss:$8 sps:$4 sm:$0xff]  }
 0x855   :  { %7155 = vmatprep.subr.bf16.mxu0 %v9802_v9 }
 0x857   :  { %9679 = vmatmul.mubr.msk.bf16.gmra.mxu0 %vm15387_vm7, %v6857_v58  ;;  %v9871_v58 = vld [vmem:[%s15037_s7 + $0x124] ss:$8 sps:$4 sm:$0xff]  }
 0x858   :  { %9682 = vmatprep.mubr.msk.bf16.mxu0 %vm15283_vm12, %v15384_v24  ;;  %7156 = vmatpush1.bf16.msra.mxu0 %v9800_v40  ;;  %v9866_v40 = vld [vmem:[%s15037_s7 + $0x1a0] ss:$8 sps:$4 sm:$0xff]  }
 0x859   :  { %7157 = vmatprep.subr.bf16.mxu0 %v9808_v56  ;;  %v9874_v56 = vld [vmem:[%s15037_s7 + $0x194] ss:$8 sps:$4 sm:$0xff]  }
 0x85c   :  { %7158 = vmatpush1.bf16.msra.mxu0 %v9806_v51  ;;  %v9869_v51 = vld [vmem:[%s15037_s7 + $0x120] ss:$8 sps:$4 sm:$0xff]  }
 0x85d   :  { %7159 = vmatprep.subr.bf16.mxu0 %v9814_v7  ;;  %v9872_v7 = vld [vmem:[%s15037_s7 + $0x190] ss:$8 sps:$4 sm:$0xff]  }
 0x85f   :  { %9683 = vmatmul.mubr.msk.bf16.gmra.mxu0 %vm15388_vm10, %v6858_v61  ;;  %v9878_v61 = vld [vmem:[%s15037_s7 + $0x180] ss:$8 sps:$4 sm:$0xff]  }
 0x860   :  { %9686 = vmatprep.mubr.msk.bf16.mxu0 %vm15283_vm12, %v15384_v24  ;;  %7160 = vmatpush1.bf16.msra.mxu0 %v9812_v32  ;;  %v9875_v32 = vld [vmem:[%s15037_s7 + $0x110] ss:$8 sps:$4 sm:$0xff]  }
 0x861   :  { %7161 = vmatprep.subr.bf16.mxu0 %v9820_v4  ;;  %v9883_v4 = vld [vmem:[%s15037_s7 + $0x104] ss:$8 sps:$4 sm:$0xff]  }
 0x864   :  { %7162 = vmatpush1.bf16.msra.mxu0 %v9818_v28  ;;  %v9886_v28 = vld [vmem:[%s15037_s7 + $0x2f4] ss:$8 sps:$4 sm:$0xff]  }
 0x865   :  { %7163 = vmatprep.subr.bf16.mxu0 %v9826_v10 }
 0x867   :  { %9687 = vmatmul.mubr.msk.bf16.gmra.mxu0 %vm15389_vm13, %v6859_v6  ;;  %v9889_v6 = vld [vmem:[%s15037_s7 + $0x274] ss:$8 sps:$4 sm:$0xff]  }
 0x868   :  { %9690 = vmatprep.mubr.msk.bf16.mxu0 %vm15283_vm12, %v15384_v24  ;;  %7164 = vmatpush1.bf16.msra.mxu0 %v9824_v63  ;;  %v9841_v24 = vld [vmem:[%s15037_s7 + $0x174] ss:$8 sps:$4 sm:$0xff]  }
 0x869   :  { %7165 = vmatprep.subr.bf16.mxu0 %v9832_v11  ;;  %7273 = vmatprep.subr.bf16.mxu1 %v9841_v24  ;;  %v9892_v11 = vld [vmem:[%s15037_s7 + $0x2e4] ss:$8 sps:$4 sm:$0xff]   ;;  %v9898_v24 = vld [vmem:[%s15037_s7 + $0x2d4] ss:$8 sps:$4 sm:$0xff]  }
 0x86c   :  { %7166 = vmatpush1.bf16.msra.mxu0 %v9830_v29 }
 0x86d   :  { %7397 = vmatprep.subr.bf16.mxu0 %v9838_v22  ;;  %v9895_v22 = vld [vmem:[%s15037_s7 + $0x264] ss:$8 sps:$4 sm:$0xff]  }
 0x86f   :  { %9691 = vmatmul.mubr.msk.bf16.gmra.mxu0 %vm15390_vm14, %v6860_v38  ;;  %v9887_v38 = vld [vmem:[%s15037_s7 + $0x270] ss:$8 sps:$4 sm:$0xff]  }
 0x870   :  { %7183 = vmatprep.mubr.bf16.mxu0 %v15385_v20 }
 0x90f   :  { %v6910_v39 = vpop.f32.mrf.mxu0 }
 0x910   :  { %v6948_v21 = vpack.c.bf16 %v6910_v39, %v6910_v39 }
 0x911   :  { %v9676_v55 = vpop.f32.mrf.mxu0 }
 0x912   :  { %7184 = vmatmul.mubr.bf16.vlgmr.msra.gmra.mxu0 %v6948_v21  ;;  %v9896_v21 = vld [vmem:[%s15037_s7 + $0x2d0] ss:$8 sps:$4 sm:$0xff]   ;;  %v9904_v55 = vld [vmem:[%s15037_s7 + $0x2c4] ss:$8 sps:$4 sm:$0xff]  }
 0x913   :  { %7398 = vmatpush1.bf16.msra.mxu0 %v9836_v15  ;;  %v6913_v19 = vpop.f32.mrf.mxu0  ;;  %7429 = vmatprep.mubr.bf16.mxu0 %v15385_v20  ;;  %v9893_v15 = vld [vmem:[%s15037_s7 + $0x260] ss:$8 sps:$4 sm:$0xff]  }
 0x914   :  { %v6949_v17 = vpack.c.bf16 %v6913_v19, %v6913_v19  ;;  %7399 = vmatprep.subr.bf16.mxu0 %v9844_v18  ;;  %v9901_v18 = vld [vmem:[%s15037_s7 + $0x254] ss:$8 sps:$4 sm:$0xff]   ;;  %v9899_v19 = vld [vmem:[%s15037_s7 + $0x250] ss:$8 sps:$4 sm:$0xff]  }
 0x915   :  { %v9677_v47 = vpop.f32.mrf.mxu0 }
 0x916   :  { %7063 = vmatmul.mubr.bf16.vlgmr.msra.gmra.mxu1 %v6949_v17  ;;  %v9910_v17 = vld [vmem:[%s15037_s7 + $0x2b4] ss:$8 sps:$4 sm:$0xff]  }
 0x917   :  { %7274 = vmatpush1.bf16.msra.mxu1 %v9839_v46  ;;  %7400 = vmatpush1.bf16.msra.mxu0 %v9842_v26  ;;  %v14661_v45 = vpop.f32.mrf.mxu0  ;;  %v9902_v46 = vld [vmem:[%s15037_s7 + $0x2c0] ss:$8 sps:$4 sm:$0xff]   ;;  %v9907_v26 = vld [vmem:[%s15037_s7 + $0x244] ss:$8 sps:$4 sm:$0xff]   ;;  %v9913_v47 = vld [vmem:[%s15037_s7 + $0x234] ss:$8 sps:$4 sm:$0xff]  }
 0x918   :  { %7275 = vmatprep.subr.bf16.mxu1 %v9847_v1  ;;  %7401 = vmatprep.subr.bf16.mxu0 %v9850_v60  ;;  %v7192_v37 = vpack.c.bf16 %v14661_v45, %v14661_v45  ;;  %v9905_v1 = vld [vmem:[%s15037_s7 + $0x240] ss:$8 sps:$4 sm:$0xff]   ;;  %v9908_v60 = vld [vmem:[%s15037_s7 + $0x2b0] ss:$8 sps:$4 sm:$0xff]   ;;  %v9916_v45 = vld [vmem:[%s15037_s7 + $0x2a4] ss:$8 sps:$4 sm:$0xff]  }
 0x919   :  { %v9680_v48 = vpop.f32.mrf.mxu0  ;;  %7305 = vmatprep.mubr.bf16.mxu1 %v15385_v20 }
 0x91a   :  { %v9917_v48 = vld [vmem:[%s15037_s7 + $0x220] ss:$8 sps:$4 sm:$0xff]  }
 0x91b   :  { %7276 = vmatpush1.bf16.msra.mxu1 %v9845_v14  ;;  %7402 = vmatpush1.bf16.msra.mxu0 %v9848_v31  ;;  %v6921_v57 = vpop.f32.mrf.mxu0  ;;  %v9911_v14 = vld [vmem:[%s15037_s7 + $0x230] ss:$8 sps:$4 sm:$0xff]   ;;  %v9914_v31 = vld [vmem:[%s15037_s7 + $0x2a0] ss:$8 sps:$4 sm:$0xff]  }
 0x91c   :  { %7277 = vmatprep.subr.bf16.mxu1 %v9853_v42  ;;  %7403 = vmatprep.subr.bf16.mxu0 %v9856_v2  ;;  %v7316_v63 = vpack.c.bf16 %v6921_v57, %v6921_v57  ;;  %v9919_v42 = vld [vmem:[%s15037_s7 + $0x224] ss:$8 sps:$4 sm:$0xff]   ;;  %v9922_v2 = vld [vmem:[%s15037_s7 + $0x294] ss:$8 sps:$4 sm:$0xff]   ;;  %v9920_v57 = vld [vmem:[%s15037_s7 + $0x290] ss:$8 sps:$4 sm:$0xff]  }
 0x91d   :  { %v9681_v25 = vpop.f32.mrf.mxu0 }
 0x91e   :  { %v9931_v25 = vld [vmem:[%s15037_s7 + $0x204] ss:$8 sps:$4 sm:$0xff]  }
 0x91f   :  { %7278 = vmatpush1.bf16.msra.mxu1 %v9851_v62  ;;  %7404 = vmatpush1.bf16.msra.mxu0 %v9854_v8  ;;  %v14688_v54 = vpop.f32.mrf.mxu0  ;;  %v9925_v62 = vld [vmem:[%s15037_s7 + $0x214] ss:$8 sps:$4 sm:$0xff]   ;;  %v9928_v8 = vld [vmem:[%s15037_s7 + $0x284] ss:$8 sps:$4 sm:$0xff]  }
 0x920   :  { %7279 = vmatprep.subr.bf16.mxu1 %v9859_v59  ;;  %7405 = vmatprep.subr.bf16.mxu0 %v9862_v53  ;;  %v9923_v59 = vld [vmem:[%s15037_s7 + $0x210] ss:$8 sps:$4 sm:$0xff]   ;;  %v9926_v53 = vld [vmem:[%s15037_s7 + $0x280] ss:$8 sps:$4 sm:$0xff]  }
 0x921   :  { %v9684_v9 = vpop.f32.mrf.mxu0 }
 0x922   :  { %v9937_v9 = vld [vmem:[%s15037_s7 + $0x374] ss:$8 sps:$4 sm:$0xff]  }
 0x923   :  { %7280 = vmatpush1.bf16.msra.mxu1 %v9857_v33  ;;  %7406 = vmatpush1.bf16.msra.mxu0 %v9860_v36  ;;  %v14702_v52 = vpop.f32.mrf.mxu0  ;;  %v9934_v33 = vld [vmem:[%s15037_s7 + $0x3f4] ss:$8 sps:$4 sm:$0xff]   ;;  %v9929_v36 = vld [vmem:[%s15037_s7 + $0x200] ss:$8 sps:$4 sm:$0xff]  }
 0x924   :  { %7281 = vmatprep.subr.bf16.mxu1 %v9865_v27  ;;  %7407 = vmatprep.subr.bf16.mxu0 %v9868_v50  ;;  %v9932_v27 = vld [vmem:[%s15037_s7 + $0x3f0] ss:$8 sps:$4 sm:$0xff]   ;;  %v7564_v50 = vpack.c.bf16 %v14702_v52, %v14702_v52  ;;  %v9938_v52 = vld [vmem:[%s15037_s7 + $0x3e0] ss:$8 sps:$4 sm:$0xff]  }
 0x925   :  { %v9685_v3 = vpop.f32.mrf.mxu0 }
 0x926   :  { %v9946_v3 = vld [vmem:[%s15037_s7 + $0x3d4] ss:$8 sps:$4 sm:$0xff]  }
 0x927   :  { %7282 = vmatpush1.bf16.msra.mxu1 %v9863_v49  ;;  %7408 = vmatpush1.bf16.msra.mxu0 %v9866_v40  ;;  %v14716_v35 = vpop.f32.mrf.mxu0  ;;  %v9940_v49 = vld [vmem:[%s15037_s7 + $0x3e4] ss:$8 sps:$4 sm:$0xff]   ;;  %v9935_v40 = vld [vmem:[%s15037_s7 + $0x370] ss:$8 sps:$4 sm:$0xff]  }
 0x928   :  { %7283 = vmatprep.subr.bf16.mxu1 %v9871_v58  ;;  %7409 = vmatprep.subr.bf16.mxu0 %v9874_v56  ;;  %v7440_v58 = vpack.c.bf16 %v14688_v54, %v14688_v54  ;;  %v9943_v56 = vld [vmem:[%s15037_s7 + $0x364] ss:$8 sps:$4 sm:$0xff]   ;;  %v9944_v54 = vld [vmem:[%s15037_s7 + $0x3d0] ss:$8 sps:$4 sm:$0xff]  }
 0x929   :  { %v9688_v13 = vpop.f32.mrf.mxu0 }
 0x92a   :  { %v9950_v13 = vld [vmem:[%s15037_s7 + $0x3c0] ss:$8 sps:$4 sm:$0xff]  }
 0x92b   :  { %7284 = vmatpush1.bf16.msra.mxu1 %v9869_v51  ;;  %7410 = vmatpush1.bf16.msra.mxu0 %v9872_v7  ;;  %v14730_v44 = vpop.f32.mrf.mxu0  ;;  %v9941_v51 = vld [vmem:[%s15037_s7 + $0x360] ss:$8 sps:$4 sm:$0xff]   ;;  %v9949_v7 = vld [vmem:[%s15037_s7 + $0x354] ss:$8 sps:$4 sm:$0xff]  }
 0x92c   :  { %7285 = vmatprep.subr.bf16.mxu1 %v9877_v34  ;;  %7411 = vmatprep.subr.bf16.mxu0 %v9880_v16  ;;  %v9952_v34 = vld [vmem:[%s15037_s7 + $0x3c4] ss:$8 sps:$4 sm:$0xff]   ;;  %v9947_v16 = vld [vmem:[%s15037_s7 + $0x350] ss:$8 sps:$4 sm:$0xff]  }
 0x92d   :  { %v9689_v10 = vpop.f32.mrf.mxu0 }
 0x92e   :  { %v9961_v10 = vld [vmem:[%s15037_s7 + $0x334] ss:$8 sps:$4 sm:$0xff]  }
 0x92f   :  { %7286 = vmatpush1.bf16.msra.mxu1 %v9875_v32  ;;  %7412 = vmatpush1.bf16.msra.mxu0 %v9878_v61  ;;  %v14744_v12 = vpop.f32.mrf.mxu0  ;;  %v9955_v32 = vld [vmem:[%s15037_s7 + $0x344] ss:$8 sps:$4 sm:$0xff]   ;;  %v9958_v61 = vld [vmem:[%s15037_s7 + $0x3b4] ss:$8 sps:$4 sm:$0xff]  }
 0x930   :  { %7287 = vmatprep.subr.bf16.mxu1 %v9883_v4  ;;  %7645 = vmatprep.subr.bf16.mxu0 %v9886_v28  ;;  %v9953_v4 = vld [vmem:[%s15037_s7 + $0x340] ss:$8 sps:$4 sm:$0xff]   ;;  %v9956_v28 = vld [vmem:[%s15037_s7 + $0x3b0] ss:$8 sps:$4 sm:$0xff]  }
 0x931   :  { %v9692_v29 = vpop.f32.mrf.mxu0 }
 0x932   :  { %7430 = vmatmul.mubr.bf16.vlgmr.msra.gmra.mxu0 %v7316_v63  ;;  %v9962_v63 = vld [vmem:[%s15037_s7 + $0x3a0] ss:$8 sps:$4 sm:$0xff]  }
 0x933   :  { %7288 = vmatpush1.bf16.msra.mxu1 %v9881_v41  ;;  %7646 = vmatpush1.bf16.msra.mxu0 %v9884_v43  ;;  %v6945_v0 = vpop.f32.mrf.mxu0  ;;  %v9964_v41 = vld [vmem:[%s15037_s7 + $0x3a4] ss:$8 sps:$4 sm:$0xff]   ;;  %v9959_v43 = vld [vmem:[%s15037_s7 + $0x330] ss:$8 sps:$4 sm:$0xff]   ;;  %v9965_v29 = vld [vmem:[%s15037_s7 + $0x320] ss:$8 sps:$4 sm:$0xff]  }
 0x934   :  { %7521 = vmatprep.subr.bf16.mxu1 %v9889_v6  ;;  %7647 = vmatprep.subr.bf16.mxu0 %v9892_v11  ;;  %v9967_v6 = vld [vmem:[%s15037_s7 + $0x324] ss:$8 sps:$4 sm:$0xff]   ;;  %v9970_v11 = vld [vmem:[%s15037_s7 + $0x394] ss:$8 sps:$4 sm:$0xff]   ;;  %v9968_v0 = vld [vmem:[%s15037_s7 + $0x390] ss:$8 sps:$4 sm:$0xff]  }
 0x935   :  { %v9693_v39 = vpop.f32.mrf.mxu0  ;;  %7677 = vmatprep.mubr.bf16.mxu0 %v15385_v20 }
 0x936   :  { %7306 = vmatmul.mubr.bf16.vlgmr.msra.gmra.mxu1 %v7192_v37  ;;  %v9971_v37 = vld [vmem:[%s15037_s7 + $0x310] ss:$8 sps:$4 sm:$0xff]   ;;  %v9977_v39 = vld [vmem:[%s15037_s7 + $0x300] ss:$8 sps:$4 sm:$0xff]  }
 0x937   :  { %7522 = vmatpush1.bf16.msra.mxu1 %v9887_v38  ;;  %7648 = vmatpush1.bf16.msra.mxu0 %v9890_v23  ;;  %v9973_v38 = vld [vmem:[%s15037_s7 + $0x314] ss:$8 sps:$4 sm:$0xff]   ;;  %v9976_v23 = vld [vmem:[%s15037_s7 + $0x384] ss:$8 sps:$4 sm:$0xff]  }
 0x938   :  { %7523 = vmatprep.subr.bf16.mxu1 %v9895_v22  ;;  %7649 = vmatprep.subr.bf16.mxu0 %v9898_v24  ;;  %v9974_v22 = vld [vmem:[%s15037_s7 + $0x380] ss:$8 sps:$4 sm:$0xff]   ;;  %v9979_v24 = vld [vmem:[%s15037_s7 + $0x304] ss:$8 sps:$4 sm:$0xff]  }
 0x939   :  { %7553 = vmatprep.mubr.bf16.mxu1 %v15385_v20 }
 0x93b   :  { %7524 = vmatpush1.bf16.msra.mxu1 %v9893_v15  ;;  %7650 = vmatpush1.bf16.msra.mxu0 %v9896_v21  ;;  %v7812_v15 = vpack.c.bf16 %v14730_v44, %v14730_v44  ;;  %v9982_v21 = vld [vmem:[%s15037_s7 + $0x474] ss:$8 sps:$4 sm:$0xff]   ;;  %v9983_v44 = vld [vmem:[%s15037_s7 + $0x460] ss:$8 sps:$4 sm:$0xff]  }
 0x93c   :  { %7525 = vmatprep.subr.bf16.mxu1 %v9901_v18  ;;  %7651 = vmatprep.subr.bf16.mxu0 %v9904_v55  ;;  %v9980_v18 = vld [vmem:[%s15037_s7 + $0x470] ss:$8 sps:$4 sm:$0xff]   ;;  %v7688_v55 = vpack.c.bf16 %v14716_v35, %v14716_v35 }
 0x93d   :  { %v9986_v35 = vld [vmem:[%s15037_s7 + $0x450] ss:$8 sps:$4 sm:$0xff]  }
 0x93f   :  { %7526 = vmatpush1.bf16.msra.mxu1 %v9899_v19  ;;  %7652 = vmatpush1.bf16.msra.mxu0 %v9902_v46  ;;  %v9985_v19 = vld [vmem:[%s15037_s7 + $0x464] ss:$8 sps:$4 sm:$0xff]   ;;  %v9988_v46 = vld [vmem:[%s15037_s7 + $0x454] ss:$8 sps:$4 sm:$0xff]  }
 0x940   :  { %7527 = vmatprep.subr.bf16.mxu1 %v9907_v26  ;;  %7653 = vmatprep.subr.bf16.mxu0 %v9910_v17  ;;  %v9991_v26 = vld [vmem:[%s15037_s7 + $0x444] ss:$8 sps:$4 sm:$0xff]   ;;  %v9994_v17 = vld [vmem:[%s15037_s7 + $0x434] ss:$8 sps:$4 sm:$0xff]  }
 0x943   :  { %7528 = vmatpush1.bf16.msra.mxu1 %v9905_v1  ;;  %7654 = vmatpush1.bf16.msra.mxu0 %v9908_v60  ;;  %v9992_v1 = vld [vmem:[%s15037_s7 + $0x430] ss:$8 sps:$4 sm:$0xff]   ;;  %v9997_v60 = vld [vmem:[%s15037_s7 + $0x424] ss:$8 sps:$4 sm:$0xff]  }
 0x944   :  { %7529 = vmatprep.subr.bf16.mxu1 %v9913_v47  ;;  %7655 = vmatprep.subr.bf16.mxu0 %v9916_v45  ;;  %v9995_v47 = vld [vmem:[%s15037_s7 + $0x420] ss:$8 sps:$4 sm:$0xff]   ;;  %v10000_v45 = vld [vmem:[%s15037_s7 + $0x414] ss:$8 sps:$4 sm:$0xff]  }
 0x947   :  { %7530 = vmatpush1.bf16.msra.mxu1 %v9911_v14  ;;  %7656 = vmatpush1.bf16.msra.mxu0 %v9914_v31  ;;  %v9998_v14 = vld [vmem:[%s15037_s7 + $0x410] ss:$8 sps:$4 sm:$0xff]   ;;  %v10003_v31 = vld [vmem:[%s15037_s7 + $0x404] ss:$8 sps:$4 sm:$0xff]  }
 0x948   :  { %7531 = vmatprep.subr.bf16.mxu1 %v9919_v42  ;;  %7657 = vmatprep.subr.bf16.mxu0 %v9922_v2  ;;  %v10001_v42 = vld [vmem:[%s15037_s7 + $0x400] ss:$8 sps:$4 sm:$0xff]   ;;  %v7936_v2 = vpack.c.bf16 %v14744_v12, %v14744_v12 }
 0x94b   :  { %7532 = vmatpush1.bf16.msra.mxu1 %v9917_v48  ;;  %7658 = vmatpush1.bf16.msra.mxu0 %v9920_v57 }
 0x94c   :  { %7533 = vmatprep.subr.bf16.mxu1 %v9925_v62  ;;  %7659 = vmatprep.subr.bf16.mxu0 %v9928_v8 }
 0x94f   :  { %7534 = vmatpush1.bf16.msra.mxu1 %v9923_v59  ;;  %7660 = vmatpush1.bf16.msra.mxu0 %v9926_v53 }
 0x950   :  { %7535 = vmatprep.subr.bf16.mxu1 %v9931_v25  ;;  %7893 = vmatprep.subr.bf16.mxu0 %v9934_v33 }
 0x952   :  { %7678 = vmatmul.mubr.bf16.vlgmr.msra.gmra.mxu0 %v7564_v50 }
 0x953   :  { %7536 = vmatpush1.bf16.msra.mxu1 %v9929_v36  ;;  %7894 = vmatpush1.bf16.msra.mxu0 %v9932_v27 }
 0x954   :  { %7769 = vmatprep.subr.bf16.mxu1 %v9937_v9  ;;  %7895 = vmatprep.subr.bf16.mxu0 %v9940_v49 }
 0x955   :  { %7925 = vmatprep.mubr.bf16.mxu0 %v15385_v20 }
 0x956   :  { %7554 = vmatmul.mubr.bf16.vlgmr.msra.gmra.mxu1 %v7440_v58 }
 0x957   :  { %7770 = vmatpush1.bf16.msra.mxu1 %v9935_v40  ;;  %7896 = vmatpush1.bf16.msra.mxu0 %v9938_v52 }
 0x958   :  { %7771 = vmatprep.subr.bf16.mxu1 %v9943_v56  ;;  %7897 = vmatprep.subr.bf16.mxu0 %v9946_v3 }
 0x959   :  { %7801 = vmatprep.mubr.bf16.mxu1 %v15385_v20 }
 0x95b   :  { %7772 = vmatpush1.bf16.msra.mxu1 %v9941_v51  ;;  %7898 = vmatpush1.bf16.msra.mxu0 %v9944_v54 }
 0x95c   :  { %7773 = vmatprep.subr.bf16.mxu1 %v9949_v7  ;;  %7899 = vmatprep.subr.bf16.mxu0 %v9952_v34 }
 0x95f   :  { %7774 = vmatpush1.bf16.msra.mxu1 %v9947_v16  ;;  %7900 = vmatpush1.bf16.msra.mxu0 %v9950_v13 }
 0x960   :  { %7775 = vmatprep.subr.bf16.mxu1 %v9955_v32  ;;  %7901 = vmatprep.subr.bf16.mxu0 %v9958_v61 }
 0x963   :  { %7776 = vmatpush1.bf16.msra.mxu1 %v9953_v4  ;;  %7902 = vmatpush1.bf16.msra.mxu0 %v9956_v28 }
 0x964   :  { %7777 = vmatprep.subr.bf16.mxu1 %v9961_v10  ;;  %7903 = vmatprep.subr.bf16.mxu0 %v9964_v41 }
 0x967   :  { %7778 = vmatpush1.bf16.msra.mxu1 %v9959_v43  ;;  %7904 = vmatpush1.bf16.msra.mxu0 %v9962_v63 }
 0x968   :  { %7779 = vmatprep.subr.bf16.mxu1 %v9967_v6  ;;  %7905 = vmatprep.subr.bf16.mxu0 %v9970_v11 }
 0x96b   :  { %7780 = vmatpush1.bf16.msra.mxu1 %v9965_v29  ;;  %7906 = vmatpush1.bf16.msra.mxu0 %v9968_v0 }
 0x96c   :  { %7781 = vmatprep.subr.bf16.mxu1 %v9973_v38  ;;  %7907 = vmatprep.subr.bf16.mxu0 %v9976_v23 }
 0x96f   :  { %7782 = vmatpush1.bf16.msra.mxu1 %v9971_v37  ;;  %7908 = vmatpush1.bf16.msra.mxu0 %v9974_v22 }
 0x970   :  { %7783 = vmatprep.subr.bf16.mxu1 %v9979_v24 }
 0x972   :  { %7926 = vmatmul.mubr.bf16.vlgmr.msra.gmra.mxu0 %v7812_v15 }
 0x973   :  { %7784 = vmatpush1.bf16.msra.mxu1 %v9977_v39 }
 0x974   :  { %8017 = vmatprep.subr.bf16.mxu1 %v9982_v21 }
 0x976   :  { %7802 = vmatmul.mubr.bf16.vlgmr.msra.gmra.mxu1 %v7688_v55 }
 0x977   :  { %8018 = vmatpush1.bf16.msra.mxu1 %v9980_v18  ;;  %8049 = vmatprep.mubr.bf16.mxu1 %v15385_v20  ;;  %v9989_v20 = vld [vmem:[%s15037_s7 + $0x440] ss:$8 sps:$4 sm:$0xff]  }
 0x978   :  { %8019 = vmatprep.subr.bf16.mxu1 %v9985_v19 }
 0x97b   :  { %8020 = vmatpush1.bf16.msra.mxu1 %v9983_v44 }
 0x97c   :  { %8021 = vmatprep.subr.bf16.mxu1 %v9988_v46 }
 0x97f   :  { %8022 = vmatpush1.bf16.msra.mxu1 %v9986_v35 }
 0x980   :  { %8023 = vmatprep.subr.bf16.mxu1 %v9991_v26 }
 0x983   :  { %8024 = vmatpush1.bf16.msra.mxu1 %v9989_v20 }
 0x984   :  { %8025 = vmatprep.subr.bf16.mxu1 %v9994_v17 }
 0x987   :  { %8026 = vmatpush1.bf16.msra.mxu1 %v9992_v1 }
 0x988   :  { %8027 = vmatprep.subr.bf16.mxu1 %v9997_v60 }
 0x98b   :  { %8028 = vmatpush1.bf16.msra.mxu1 %v9995_v47 }
 0x98c   :  { %8029 = vmatprep.subr.bf16.mxu1 %v10000_v45 }
 0x98f   :  { %8030 = vmatpush1.bf16.msra.mxu1 %v9998_v14 }
 0x990   :  { %8031 = vmatprep.subr.bf16.mxu1 %v10003_v31 }
 0x993   :  { %8032 = vmatpush1.bf16.msra.mxu1 %v10001_v42 }
 0x996   :  { %8050 = vmatmul.mubr.bf16.vlgmr.msra.gmra.mxu1 %v7936_v2 }
 0x9d2   :  { %v7185_v48 = vpop.f32.mrf.mxu0 }
 0x9d4   :  { %v7187_v57 = vpop.f32.mrf.mxu0 }
 0x9d6   :  { %v7064_v62 = vpop.f32.mrf.mxu1  ;;  %v7189_v8 = vpop.f32.mrf.mxu0 }
 0x9d7   :  { %v7186_v59 = vadd.f32 %v7185_v48, %v7064_v62 }
 0x9d8   :  { %v7066_v53 = vpop.f32.mrf.mxu1  ;;  %v7190_v25 = vpop.f32.mrf.mxu0 }
 0x9d9   :  { %v7188_v33 = vadd.f32 %v7187_v57, %v7066_v53 }
 0x9da   :  { %v7068_v36 = vpop.f32.mrf.mxu1 }
 0x9dc   :  { %v7069_v27 = vpop.f32.mrf.mxu1 }
 0x9f2   :  { %v7431_v50 = vpop.f32.mrf.mxu0 }
 0x9f4   :  { %v7433_v9 = vpop.f32.mrf.mxu0 }
 0x9f6   :  { %v7307_v49 = vpop.f32.mrf.mxu1  ;;  %v7435_v40 = vpop.f32.mrf.mxu0 }
 0x9f7   :  { %v7314_v52 = vadd.f32 %v7307_v49, %v7186_v59 }
 0x9f8   :  { %v7309_v58 = vpop.f32.mrf.mxu1  ;;  %v7436_v56 = vpop.f32.mrf.mxu0 }
 0x9f9   :  { %v7315_v3 = vadd.f32 %v7309_v58, %v7188_v33  ;;  %v7438_v12 = vadd.f32 %v7431_v50, %v7314_v52 }
 0x9fa   :  { %v7311_v51 = vpop.f32.mrf.mxu1 }
 0x9fb   :  { %v7439_v54 = vadd.f32 %v7433_v9, %v7315_v3 }
 0x9fc   :  { %v7312_v7 = vpop.f32.mrf.mxu1 }
 0xa12   :  { %v7679_v34 = vpop.f32.mrf.mxu0 }
 0xa14   :  { %v7681_v16 = vpop.f32.mrf.mxu0 }
 0xa16   :  { %v7555_v13 = vpop.f32.mrf.mxu1  ;;  %v7683_v32 = vpop.f32.mrf.mxu0 }
 0xa17   :  { %v7562_v61 = vadd.f32 %v7555_v13, %v7438_v12 }
 0xa18   :  { %v7557_v4 = vpop.f32.mrf.mxu1  ;;  %v7684_v28 = vpop.f32.mrf.mxu0 }
 0xa19   :  { %v7686_v10 = vadd.f32 %v7679_v34, %v7562_v61  ;;  %v7563_v22 = vadd.f32 %v7557_v4, %v7439_v54  ;;  %v10019_v28 = vmov 1983009808  }
 0xa1a   :  { %v7559_v41 = vpop.f32.mrf.mxu1 }
 0xa1b   :  { %v7687_v39 = vadd.f32 %v7681_v16, %v7563_v22 }
 0xa1c   :  { %v7560_v43 = vpop.f32.mrf.mxu1 }
 0xa32   :  { %v7927_v63 = vpop.f32.mrf.mxu0 }
 0xa34   :  { %v7929_v6 = vpop.f32.mrf.mxu0 }
 0xa36   :  { %v7803_v11 = vpop.f32.mrf.mxu1  ;;  %v7931_v29 = vpop.f32.mrf.mxu0 }
 0xa37   :  { %v7810_v24 = vadd.f32 %v7803_v11, %v7686_v10  ;;  %v8105_v10 = vunpack.c.l.s4 %v10019_v28 }
 0xa38   :  { %v7805_v0 = vpop.f32.mrf.mxu1  ;;  %v7932_v38 = vpop.f32.mrf.mxu0 }
 0xa39   :  { %v7811_v15 = vadd.f32 %v7805_v0, %v7687_v39  ;;  %v7934_v21 = vadd.f32 %v7927_v63, %v7810_v24  ;;  %v8106_v41 = vunpack.c.0.s8 %v8105_v10  ;;  %v15391_v63 = vld [vmem:[#allocation71_spill] sm:$0xff]  ;;  %v8060_v0 = vld [vmem:[%s15039_s11] sm:$0xf] }
 0xa3a   :  { %v7807_v23 = vpop.f32.mrf.mxu1 }
 0xa3b   :  { %v7935_v19 = vadd.f32 %v7929_v6, %v7811_v15  ;;  %v8109_v6 = vsub.s32 %v8106_v41, %v15391_v63  ;;  %v8120_v23 = vsub.s32 2, %v15391_v63 }
 0xa3c   :  { %v7808_v37 = vpop.f32.mrf.mxu1 }
 0xa56   :  { %v8051_v18 = vpop.f32.mrf.mxu1 }
 0xa57   :  { %v15003_v55 = vadd.f32 %v8051_v18, %v7934_v21 }
 0xa58   :  { %v8053_v44 = vpop.f32.mrf.mxu1 }
 0xa59   :  { %v8061_v46 = vrot.slane %v15003_v55, 4  ;;  %v8073_v35 = vmul.f32 %v15003_v55, %v15003_v55  ;;  %v8059_v26 = vadd.f32 %v8053_v44, %v7935_v19 }
 0xa5a   :  { %v8055_v20 = vpop.f32.mrf.mxu1 }
 0xa5b   :  { %v8062_v17 = vadd.f32 %v8061_v46, %v15003_v55  ;;  %v8075_v1 = vrot.slane %v8073_v35, 4  ;;  %v8067_v60 = vrot.slane %v8059_v26, 4  ;;  %v8074_v47 = vmul.f32 %v8059_v26, %v8059_v26 }
 0xa5c   :  { %v8056_v45 = vpop.f32.mrf.mxu1 }
 0xa5d   :  { %v8063_v14 = vrot.slane %v8062_v17, 2  ;;  %v8076_v31 = vadd.f32 %v8075_v1, %v8073_v35  ;;  %v8068_v42 = vadd.f32 %v8067_v60, %v8059_v26  ;;  %v8081_v2 = vrot.slane %v8074_v47, 4 }
 0xa5f   :  { %v8064_v48 = vadd.f32 %v8063_v14, %v8062_v17  ;;  %v8077_v57 = vrot.slane %v8076_v31, 2  ;;  %v8069_v62 = vrot.slane %v8068_v42, 2  ;;  %v8082_v8 = vadd.f32 %v8081_v2, %v8074_v47 }
 0xa60   :  { %v8156_v17 = vsub.s32 3, %v15391_v63 }
 0xa61   :  { %v8065_v59 = vrot.slane %v8064_v48, 1  ;;  %v8078_v53 = vadd.f32 %v8077_v57, %v8076_v31  ;;  %v8070_v25 = vadd.f32 %v8069_v62, %v8068_v42  ;;  %v8083_v33 = vrot.slane %v8082_v8, 2 }
 0xa63   :  { %v8066_v36 = vadd.f32 %v8065_v59, %v8064_v48  ;;  %v8079_v27 = vrot.slane %v8078_v53, 1  ;;  %v8071_v50 = vrot.slane %v8070_v25, 1  ;;  %v8084_v9 = vadd.f32 %v8083_v33, %v8082_v8 }
 0xa65   :  { %v8080_v49 = vadd.f32 %v8079_v27, %v8078_v53  ;;  %v8087_v40 = vmul.f32 0.125, %v8066_v36  ;;  %v8072_v52 = vadd.f32 %v8071_v50, %v8070_v25  ;;  %v8085_v58 = vrot.slane %v8084_v9, 1 }
 0xa67   :  { %v8089_v56 = vmul.f32 0.125, %v8080_v49  ;;  %v8091_v3 = vmul.f32 %v8087_v40, %v8087_v40  ;;  %v8086_v12 = vadd.f32 %v8085_v58, %v8084_v9  ;;  %v8088_v51 = vmul.f32 0.125, %v8072_v52 }
 0xa69   :  { %v8093_v54 = vsub.f32 %v8089_v56, %v8091_v3  ;;  %v8090_v7 = vmul.f32 0.125, %v8086_v12  ;;  %v8092_v34 = vmul.f32 %v8088_v51, %v8088_v51 }
 0xa6b   :  { %v8095_v16 = vmax.f32 %v8093_v54, 0.0  ;;  %v8094_v13 = vsub.f32 %v8090_v7, %v8092_v34 }
 0xa6d   :  { %v8097_v32 = vadd.f32 1e-05, %v8095_v16  ;;  %v8096_v61 = vmax.f32 %v8094_v13, 0.0 }
 0xa6f   :  { %v8098_v4 = vadd.f32 1e-05, %v8096_v61  ;;  %10010 = vrsqrt.f32 %v8097_v32 }
 0xa71   :  { %10012 = vrsqrt.f32 %v8098_v4 }
 0xa7c   :  { %v10011_v43 = vpop.eup %10010 }
 0xa7e   :  { %v10013_v11 = vpop.eup %10012 }
 0xa7f   :  { %v8103_v29 = vcombine.low %v10011_v43, %v10013_v11 }
 0xa81   :  { %v8110_v38 = vrot.slane %v8103_v29, %v8109_v6 }
 0xa83   :  { %v8112_v37 = vmul.f32 %v8110_v38, %v8060_v0 }
 0xa85   :  { %v8117_v22 = vrot.slane %v8112_v37, %v15381_v30  ;;  %v8121_v24 = vrot.slane %v8112_v37, %v8120_v23 }
 0xa87   :  { %v8124_v39 = vmul.f32 %v8117_v22, %v8087_v40  ;;  %v8125_v15 = vmul.f32 %v8121_v24, %v8088_v51  ;;  %v8142_v21 = vrot.slane %v8117_v22, %v15381_v30  ;;  %v8146_v18 = vrot.slane %v8121_v24, %v15381_v30 }
 0xa89   :  { %v8128_v19 = vcombine.low %v8124_v39, %v8125_v15  ;;  %v8147_v44 = vmul.f32 %v8142_v21, %v15003_v55  ;;  %v8148_v46 = vmul.f32 %v8146_v18, %v8059_v26 }
 0xa8b   :  { %v8135_v35 = vrot.slane %v8128_v19, %v8109_v6 }
 0xa8d   :  { %v8136_v20 = vrot.slane %v8135_v35, 7 }
 0xa8f   :  { %v8138_v1 = vsub.f32 %v8060_v0, %v8136_v20 }
 0xa91   :  { %v8153_v60 = vrot.slane %v8138_v1, %v15382_v5  ;;  %v8157_v47 = vrot.slane %v8138_v1, %v8156_v17 }
 0xa93   :  { %v8163_v45 = vrot.slane %v8153_v60, %v15382_v5  ;;  %v8167_v14 = vrot.slane %v8157_v47, %v15382_v5 }
 0xa95   :  { %v8168_v31 = vadd.f32 %v8163_v45, %v8147_v44  ;;  %v8169_v42 = vadd.f32 %v8167_v14, %v8148_v46 }
 0xa97   :  { %v8170_v2 = vmul.f32 0.01, %v8168_v31  ;;  %v8171_v30 = vmul.f32 0.01, %v8169_v42 }
 0xa99   :  { %v8172_v48 = vmax.f32 %v8168_v31, %v8170_v2  ;;  %v8173_v57 = vmax.f32 %v8169_v42, %v8171_v30 }
 0xa9b   :  { %8174 = vst [vmem:[%s15040_s12] sm:$0xff] %v8172_v48  ;;  %8175 = vst [vmem:[%s15040_s12 + $0x8] sm:$0xff] %v8173_v57 }

</bundles_post_ra>
